<compile_context>
chip_gen: v7x
topology: tpu7x:2x2x1
jax: 0.10.0
libtpu: 0.0.40
codegen_flags: <defaults>
</compile_context>

<pallas_src>
import functools
import math

import jax
import jax.numpy as jnp
from jax.experimental import pallas as pl
from jax.experimental.pallas import tpu as pltpu

D_MODEL = 32
N_HEADS = 4
D_HEAD = D_MODEL // N_HEADS
D_FF = 64
N_LAYERS = 2
EPS = 1e-6
MASK_NEG = -1e9
SLAB_W = 128
F32 = jnp.float32


# ----------------------- in-kernel building blocks -----------------------

def _layer_norm(x, g, b):
    # Annotated-Transformer LayerNorm: unbiased std, eps added to std.
    mean = jnp.mean(x, axis=-1, keepdims=True)
    var = jnp.sum((x - mean) ** 2, axis=-1, keepdims=True) / (x.shape[-1] - 1)
    std = jnp.sqrt(var)
    return g * (x - mean) / (std + EPS) + b


def _embed(tok, lut, pe, b, s, vocab):
    # tok: (b*s, 1) int32; lut: (vocab, D); pe: (s, D)  ->  (b*s, D)
    iota_v = jax.lax.broadcasted_iota(jnp.int32, (b * s, vocab), 1)
    onehot = (tok == iota_v).astype(F32)
    emb = jnp.dot(onehot, lut, preferred_element_type=F32) * math.sqrt(D_MODEL)
    # add PE with a batch broadcast (PE is NOT pre-broadcast in the wrapper)
    return (emb.reshape(b, s, D_MODEL) + pe[None, :, :]).reshape(b * s, D_MODEL)


def _mha(xq, xkv, wqkv, bqkv, wo, bo, b, sq, sk, add_mask, self_attn):
    """Multi-head attention on 2-D slabs xq:(b*sq,D), xkv:(b*sk,D)."""
    d = D_MODEL
    if self_attn:                       # single fused QKV matmul
        qkv = jnp.dot(xq, wqkv, preferred_element_type=F32) + bqkv
        q, k, v = qkv[:, :d], qkv[:, d:2 * d], qkv[:, 2 * d:]
    else:                               # cross-attention: Q from xq, KV from xkv
        q = jnp.dot(xq, wqkv[:, :d], preferred_element_type=F32) + bqkv[:, :d]
        kv = jnp.dot(xkv, wqkv[:, d:], preferred_element_type=F32) + bqkv[:, d:]
        k, v = kv[:, :d], kv[:, d:]
    q3 = q.reshape(b, sq, d)
    k3 = k.reshape(b, sk, d)
    v3 = v.reshape(b, sk, d)
    scale = 1.0 / math.sqrt(D_HEAD)

    # per-head scores (static lane slices, batch-dim einsums), then one
    # softmax over all heads at once (heads stacked along the sublane axis)
    parts = []
    for h in range(N_HEADS):
        sl = slice(h * D_HEAD, (h + 1) * D_HEAD)
        s = jnp.einsum("bqd,bkd->bqk", q3[:, :, sl], k3[:, :, sl],
                       preferred_element_type=F32) * scale
        if add_mask is not None:        # only decoder self-attention
            s = s + add_mask[None, :, :]
        parts.append(s)
    s_all = jnp.concatenate(parts, axis=1)            # (b, H*sq, sk)
    mx = jnp.max(s_all, axis=-1, keepdims=True)
    p = jnp.exp(s_all - mx)
    p = p * pl.reciprocal(jnp.sum(p, axis=-1, keepdims=True), approx=True)

    # per-head PV, merge heads with a lane concat, single K=32 output proj
    o_parts = []
    for h in range(N_HEADS):
        sl = slice(h * D_HEAD, (h + 1) * D_HEAD)
        ph = p[:, h * sq:(h + 1) * sq, :]
        o_parts.append(jnp.einsum("bqk,bkd->bqd", ph, v3[:, :, sl],
                                  preferred_element_type=F32))
    o = jnp.concatenate(o_parts, axis=-1).reshape(b * sq, d)
    return jnp.dot(o, wo, preferred_element_type=F32) + bo


def _ffn(x, w1, b1, w2, b2):
    h = jnp.maximum(jnp.dot(x, w1, preferred_element_type=F32) + b1, 0.0)
    return jnp.dot(h, w2, preferred_element_type=F32) + b2


# ------------------------------ fused kernel ------------------------------

def _fused_kernel(src_ref, tgt_ref, slab_ref, o_ref, *,
                  B, Ss, St, src_vocab, tgt_vocab, index):
    def rd(name, nrows=None):
        r0, r, c = index[name]
        if nrows is not None:
            r = nrows
        return slab_ref[r0:r0 + r, 0:c]

    # ------------------------------ encoder -------------------------------
    x = _embed(src_ref[...], rd("src_lut"), rd("src_pe", Ss), B, Ss, src_vocab)
    for l in range(N_LAYERS):                                    # unrolled
        p = f"enc{l}_"
        xn = _layer_norm(x, rd(p + "ln1g"), rd(p + "ln1b"))
        x = x + _mha(xn, xn, rd(p + "wqkv"), rd(p + "bqkv"),
                     rd(p + "wo"), rd(p + "bo"),
                     B, Ss, Ss, add_mask=None, self_attn=True)
        xn = _layer_norm(x, rd(p + "ln2g"), rd(p + "ln2b"))
        x = x + _ffn(xn, rd(p + "w1"), rd(p + "b1"), rd(p + "w2"), rd(p + "b2"))
    mem = _layer_norm(x, rd("enc_fng"), rd("enc_fnb"))           # (B*Ss, D)

    # ------------------------------ decoder -------------------------------
    # causal (subsequent) additive mask generated in-kernel
    rows = jax.lax.broadcasted_iota(jnp.int32, (St, St), 0)
    cols = jax.lax.broadcasted_iota(jnp.int32, (St, St), 1)
    causal = jnp.where(rows >= cols, 0.0, MASK_NEG).astype(F32)

    y = _embed(tgt_ref[...], rd("tgt_lut"), rd("tgt_pe", St), B, St, tgt_vocab)
    for l in range(N_LAYERS):                                    # unrolled
        p = f"dec{l}_"
        yn = _layer_norm(y, rd(p + "ln1g"), rd(p + "ln1b"))
        y = y + _mha(yn, yn, rd(p + "s_wqkv"), rd(p + "s_bqkv"),
                     rd(p + "s_wo"), rd(p + "s_bo"),
                     B, St, St, add_mask=causal, self_attn=True)
        yn = _layer_norm(y, rd(p + "ln2g"), rd(p + "ln2b"))
        y = y + _mha(yn, mem, rd(p + "c_wqkv"), rd(p + "c_bqkv"),
                     rd(p + "c_wo"), rd(p + "c_bo"),
                     B, St, Ss, add_mask=None, self_attn=False)
        yn = _layer_norm(y, rd(p + "ln3g"), rd(p + "ln3b"))
        y = y + _ffn(yn, rd(p + "w1"), rd(p + "b1"), rd(p + "w2"), rd(p + "b2"))
    y = _layer_norm(y, rd("dec_fng"), rd("dec_fnb"))
    o_ref[...] = y.reshape(B, St, D_MODEL)


# ------------------------------- wrapper -----------------------------------

def make_model(packed):
    index = packed["index"]           # static python layout metadata
    src_vocab = packed["src_vocab"]
    tgt_vocab = packed["tgt_vocab"]

    @jax.jit
    def forward(slab, src, tgt):
        """EncoderDecoder.forward: decode(encode(src), tgt, causal_tgt_mask)."""
        B, Ss = src.shape
        _, St = tgt.shape
        kernel = functools.partial(
            _fused_kernel, B=B, Ss=Ss, St=St,
            src_vocab=src_vocab, tgt_vocab=tgt_vocab, index=index)
        return pl.pallas_call(
            kernel,
            out_shape=jax.ShapeDtypeStruct((B, St, D_MODEL), F32),
            in_specs=[pl.BlockSpec(memory_space=pltpu.MemorySpace.VMEM)] * 3,
            out_specs=pl.BlockSpec(memory_space=pltpu.MemorySpace.VMEM),
        )(src.reshape(B * Ss, 1).astype(jnp.int32),
          tgt.reshape(B * St, 1).astype(jnp.int32),
          slab)

    return forward


# ----------------------------- parameters ----------------------------------

def _dense(key, fan_in, fan_out):
    kw, kb = jax.random.split(key)
    w = jax.random.normal(kw, (fan_in, fan_out), F32) / math.sqrt(fan_in)
    b = 0.01 * jax.random.normal(kb, (fan_out,), F32)
    return w, b


def _attn_params(key):
    ks = jax.random.split(key, 4)
    p = {}
    for name, k in zip(("q", "k", "v", "o"), ks):
        w, b = _dense(k, D_MODEL, D_MODEL)
        p["w" + name], p["b" + name] = w, b
    return p


def _ff_params(key):
    k1, k2 = jax.random.split(key)
    w1, b1 = _dense(k1, D_MODEL, D_FF)
    w2, b2 = _dense(k2, D_FF, D_MODEL)
    return {"w1": w1, "b1": b1, "w2": w2, "b2": b2}


def _ln_params():
    return {"g": jnp.ones((D_MODEL,), F32), "b": jnp.zeros((D_MODEL,), F32)}


def _positional_encoding(max_len):
    pos = jnp.arange(max_len, dtype=F32)[:, None]
    div = jnp.exp(jnp.arange(0, D_MODEL, 2, dtype=F32)
                  * (-math.log(10000.0) / D_MODEL))
    pe = jnp.zeros((max_len, D_MODEL), F32)
    pe = pe.at[:, 0::2].set(jnp.sin(pos * div))
    pe = pe.at[:, 1::2].set(jnp.cos(pos * div))
    return pe


def init_params(key, src_vocab, tgt_vocab, max_len=64):
    keys = jax.random.split(key, 2 + 2 * N_LAYERS * 4)
    ki = iter(keys)
    params = {
        "src_embed": {"lut": jax.random.normal(next(ki), (src_vocab, D_MODEL),
                                               F32),
                      "pe": _positional_encoding(max_len)},
        "tgt_embed": {"lut": jax.random.normal(next(ki), (tgt_vocab, D_MODEL),
                                               F32),
                      "pe": _positional_encoding(max_len)},
        "encoder": {"layers": [], "norm": _ln_params()},
        "decoder": {"layers": [], "norm": _ln_params()},
    }
    for _ in range(N_LAYERS):
        params["encoder"]["layers"].append({
            "self_attn": _attn_params(next(ki)),
            "ff": _ff_params(next(ki)),
            "ln1": _ln_params(), "ln2": _ln_params(),
        })
    for _ in range(N_LAYERS):
        params["decoder"]["layers"].append({
            "self_attn": _attn_params(next(ki)),
            "src_attn": _attn_params(next(ki)),
            "ff": _ff_params(next(ki)),
            "ln1": _ln_params(), "ln2": _ln_params(), "ln3": _ln_params(),
        })
    return params


# ----------------------------- slab packing --------------------------------

class _Slab:
    """Packs many small f32 arrays into ONE (R, 128) slab, records offsets."""

    def __init__(self):
        self.blocks = []
        self.index = {}
        self.nrows = 0

    def add(self, name, arr):
        arr = jnp.asarray(arr, F32)
        if arr.ndim == 1:
            arr = arr[None, :]
        r, c = arr.shape
        assert c <= SLAB_W, (name, arr.shape)
        self.index[name] = (self.nrows, r, c)
        self.blocks.append(jnp.pad(arr, ((0, 0), (0, SLAB_W - c))))
        self.nrows += r

    def build(self):
        pad = (-self.nrows) % 8
        blocks = list(self.blocks)
        if pad:
            blocks.append(jnp.zeros((pad, SLAB_W), F32))
        return jnp.concatenate(blocks, axis=0), self.index


def pack_params(params):
    enc = params["encoder"]["layers"]
    dec = params["decoder"]["layers"]
    sl = _Slab()

    # --- matrices first (row counts are multiples of 8 -> aligned blocks) ---
    for l, lyr in enumerate(enc):
        a = lyr["self_attn"]
        sl.add(f"enc{l}_wqkv", jnp.concatenate([a["wq"], a["wk"], a["wv"]], 1))
        sl.add(f"enc{l}_wo", a["wo"])
        sl.add(f"enc{l}_w1", lyr["ff"]["w1"])
        sl.add(f"enc{l}_w2", lyr["ff"]["w2"])
    for l, lyr in enumerate(dec):
        sa, ca = lyr["self_attn"], lyr["src_attn"]
        sl.add(f"dec{l}_s_wqkv", jnp.concatenate([sa["wq"], sa["wk"], sa["wv"]], 1))
        sl.add(f"dec{l}_s_wo", sa["wo"])
        sl.add(f"dec{l}_c_wqkv", jnp.concatenate([ca["wq"], ca["wk"], ca["wv"]], 1))
        sl.add(f"dec{l}_c_wo", ca["wo"])
        sl.add(f"dec{l}_w1", lyr["ff"]["w1"])
        sl.add(f"dec{l}_w2", lyr["ff"]["w2"])
    sl.add("src_lut", params["src_embed"]["lut"])
    sl.add("tgt_lut", params["tgt_embed"]["lut"])
    sl.add("src_pe", params["src_embed"]["pe"])
    sl.add("tgt_pe", params["tgt_embed"]["pe"])

    # --- 1-row vectors (biases, LayerNorm params) ---
    for l, lyr in enumerate(enc):
        a = lyr["self_attn"]
        sl.add(f"enc{l}_bqkv", jnp.concatenate([a["bq"], a["bk"], a["bv"]]))
        sl.add(f"enc{l}_bo", a["bo"])
        sl.add(f"enc{l}_b1", lyr["ff"]["b1"])
        sl.add(f"enc{l}_b2", lyr["ff"]["b2"])
        sl.add(f"enc{l}_ln1g", lyr["ln1"]["g"])
        sl.add(f"enc{l}_ln1b", lyr["ln1"]["b"])
        sl.add(f"enc{l}_ln2g", lyr["ln2"]["g"])
        sl.add(f"enc{l}_ln2b", lyr["ln2"]["b"])
    sl.add("enc_fng", params["encoder"]["norm"]["g"])
    sl.add("enc_fnb", params["encoder"]["norm"]["b"])
    for l, lyr in enumerate(dec):
        sa, ca = lyr["self_attn"], lyr["src_attn"]
        sl.add(f"dec{l}_s_bqkv", jnp.concatenate([sa["bq"], sa["bk"], sa["bv"]]))
        sl.add(f"dec{l}_s_bo", sa["bo"])
        sl.add(f"dec{l}_c_bqkv", jnp.concatenate([ca["bq"], ca["bk"], ca["bv"]]))
        sl.add(f"dec{l}_c_bo", ca["bo"])
        sl.add(f"dec{l}_b1", lyr["ff"]["b1"])
        sl.add(f"dec{l}_b2", lyr["ff"]["b2"])
        sl.add(f"dec{l}_ln1g", lyr["ln1"]["g"])
        sl.add(f"dec{l}_ln1b", lyr["ln1"]["b"])
        sl.add(f"dec{l}_ln2g", lyr["ln2"]["g"])
        sl.add(f"dec{l}_ln2b", lyr["ln2"]["b"])
        sl.add(f"dec{l}_ln3g", lyr["ln3"]["g"])
        sl.add(f"dec{l}_ln3b", lyr["ln3"]["b"])
    sl.add("dec_fng", params["decoder"]["norm"]["g"])
    sl.add("dec_fnb", params["decoder"]["norm"]["b"])

    slab, index = sl.build()
    return {"slab": slab, "index": index,
            "src_vocab": params["src_embed"]["lut"].shape[0],
            "tgt_vocab": params["tgt_embed"]["lut"].shape[0],
            "max_len": params["src_embed"]["pe"].shape[0]}


# -------------------------------- driver -----------------------------------

if __name__ == "__main__":
    key = jax.random.PRNGKey(0)
    kp, ks, kt = jax.random.split(key, 3)

    B = 2
    SRC_LEN = 8
    TGT_LEN = 8
    VOCAB = 16

    params = init_params(kp, VOCAB, VOCAB)
    packed = pack_params(params)
    forward = make_model(packed)

    src = jax.random.randint(ks, (B, SRC_LEN), 0, VOCAB, dtype=jnp.int32)
    tgt = jax.random.randint(kt, (B, TGT_LEN), 0, VOCAB, dtype=jnp.int32)

    out = forward(packed["slab"], src, tgt)
    out = jax.block_until_ready(out)
    assert out.shape == (B, TGT_LEN, D_MODEL)
    assert bool(jnp.all(jnp.isfinite(out)))
    print("KERNEL_OK")
</pallas_src>

<mosaic_0001>
module attributes {stable_mosaic.version = 11 : i64} {
  func.func @_fused_kernel(%arg0: memref<16x1xi32, #tpu.memory_space<vmem>>, %arg1: memref<16x1xi32, #tpu.memory_space<vmem>>, %arg2: memref<976x128xf32, #tpu.memory_space<vmem>>, %arg3: memref<2x8x32xf32, #tpu.memory_space<vmem>>) attributes {dimension_semantics = [], scalar_prefetch = 0 : i64, scratch_operands = 0 : i64, tpu.core_type = #tpu.core_type<tc>} {
    %c0 = arith.constant 0 : index
    %c0_0 = arith.constant 0 : index
    %0 = vector.load %arg0[%c0, %c0_0] : memref<16x1xi32, #tpu.memory_space<vmem>>, vector<16x1xi32>
    %c768 = arith.constant 768 : index
    %c0_1 = arith.constant 0 : index
    %1 = vector.load %arg2[%c768, %c0_1] : memref<976x128xf32, #tpu.memory_space<vmem>>, vector<16x32xf32>
    %c800 = arith.constant 800 : index
    %c0_2 = arith.constant 0 : index
    %2 = vector.load %arg2[%c800, %c0_2] : memref<976x128xf32, #tpu.memory_space<vmem>>, vector<8x32xf32>
    %3 = tpu.iota {dimensions = array<i32: 1>} : vector<16x16xi32>
    %4 = vector.broadcast %0 : vector<16x1xi32> to vector<16x16xi32>
    %5 = arith.cmpi eq, %4, %3 : vector<16x16xi32>
    %6 = arith.extui %5 : vector<16x16xi1> to vector<16x16xi32>
    %7 = arith.sitofp %6 : vector<16x16xi32> to vector<16x16xf32>
    %cst = arith.constant dense<0.000000e+00> : vector<16x32xf32>
    %8 = tpu.matmul %7, %1, %cst {dimension_numbers = #tpu.dot_dimension_numbers<[1], [0], [0], [1], [0, 0, 1, 1], [], []>} : vector<16x16xf32>, vector<16x32xf32>, vector<16x32xf32> -> vector<16x32xf32>
    %cst_3 = arith.constant 5.65685415 : f32
    %9 = vector.broadcast %cst_3 : f32 to vector<16x32xf32>
    %10 = arith.mulf %8, %9 : vector<16x32xf32>
    %11 = vector.shape_cast %10 : vector<16x32xf32> to vector<2x8x32xf32>
    %12 = vector.shape_cast %2 : vector<8x32xf32> to vector<1x8x32xf32>
    %13 = vector.broadcast %12 : vector<1x8x32xf32> to vector<2x8x32xf32>
    %14 = arith.addf %11, %13 : vector<2x8x32xf32>
    %15 = vector.shape_cast %14 : vector<2x8x32xf32> to vector<16x32xf32>
    %c932 = arith.constant 932 : index
    %c0_4 = arith.constant 0 : index
    %16 = vector.load %arg2[%c932, %c0_4] : memref<976x128xf32, #tpu.memory_space<vmem>>, vector<1x32xf32>
    %c933 = arith.constant 933 : index
    %c0_5 = arith.constant 0 : index
    %17 = vector.load %arg2[%c933, %c0_5] : memref<976x128xf32, #tpu.memory_space<vmem>>, vector<1x32xf32>
    %cst_6 = arith.constant dense<0.000000e+00> : vector<16xf32>
    %18 = vector.multi_reduction <add>, %15, %cst_6 [1] : vector<16x32xf32> to vector<16xf32>
    %19 = vector.shape_cast %18 : vector<16xf32> to vector<16x1xf32>
    %cst_7 = arith.constant 3.200000e+01 : f32
    %20 = vector.broadcast %cst_7 : f32 to vector<16x1xf32>
    %21 = arith.divf %19, %20 : vector<16x1xf32>
    %22 = vector.broadcast %21 : vector<16x1xf32> to vector<16x32xf32>
    %23 = arith.subf %15, %22 : vector<16x32xf32>
    %24 = arith.mulf %23, %23 : vector<16x32xf32>
    %cst_8 = arith.constant dense<0.000000e+00> : vector<16xf32>
    %25 = vector.multi_reduction <add>, %24, %cst_8 [1] : vector<16x32xf32> to vector<16xf32>
    %26 = vector.shape_cast %25 : vector<16xf32> to vector<16x1xf32>
    %cst_9 = arith.constant 3.100000e+01 : f32
    %27 = vector.broadcast %cst_9 : f32 to vector<16x1xf32>
    %28 = arith.divf %26, %27 : vector<16x1xf32>
    %29 = math.sqrt %28 : vector<16x1xf32>
    %30 = vector.broadcast %21 : vector<16x1xf32> to vector<16x32xf32>
    %31 = arith.subf %15, %30 : vector<16x32xf32>
    %32 = vector.broadcast %16 : vector<1x32xf32> to vector<16x32xf32>
    %33 = arith.mulf %32, %31 : vector<16x32xf32>
    %cst_10 = arith.constant 9.99999997E-7 : f32
    %34 = vector.broadcast %cst_10 : f32 to vector<16x1xf32>
    %35 = arith.addf %29, %34 : vector<16x1xf32>
    %36 = vector.broadcast %35 : vector<16x1xf32> to vector<16x32xf32>
    %37 = arith.divf %33, %36 : vector<16x32xf32>
    %38 = vector.broadcast %17 : vector<1x32xf32> to vector<16x32xf32>
    %39 = arith.addf %37, %38 : vector<16x32xf32>
    %c0_11 = arith.constant 0 : index
    %c0_12 = arith.constant 0 : index
    %40 = vector.load %arg2[%c0_11, %c0_12] : memref<976x128xf32, #tpu.memory_space<vmem>>, vector<32x96xf32>
    %c928 = arith.constant 928 : index
    %c0_13 = arith.constant 0 : index
    %41 = vector.load %arg2[%c928, %c0_13] : memref<976x128xf32, #tpu.memory_space<vmem>>, vector<1x96xf32>
    %c32 = arith.constant 32 : index
    %c0_14 = arith.constant 0 : index
    %42 = vector.load %arg2[%c32, %c0_14] : memref<976x128xf32, #tpu.memory_space<vmem>>, vector<32x32xf32>
    %c929 = arith.constant 929 : index
    %c0_15 = arith.constant 0 : index
    %43 = vector.load %arg2[%c929, %c0_15] : memref<976x128xf32, #tpu.memory_space<vmem>>, vector<1x32xf32>
    %cst_16 = arith.constant dense<0.000000e+00> : vector<16x96xf32>
    %44 = tpu.matmul %39, %40, %cst_16 {dimension_numbers = #tpu.dot_dimension_numbers<[1], [0], [0], [1], [0, 0, 1, 1], [], []>} : vector<16x32xf32>, vector<32x96xf32>, vector<16x96xf32> -> vector<16x96xf32>
    %45 = vector.broadcast %41 : vector<1x96xf32> to vector<16x96xf32>
    %46 = arith.addf %44, %45 : vector<16x96xf32>
    %47 = vector.extract_strided_slice %46 {offsets = [0, 0], sizes = [16, 32], strides = [1, 1]} : vector<16x96xf32> to vector<16x32xf32>
    %48 = vector.extract_strided_slice %46 {offsets = [0, 32], sizes = [16, 32], strides = [1, 1]} : vector<16x96xf32> to vector<16x32xf32>
    %49 = vector.extract_strided_slice %46 {offsets = [0, 64], sizes = [16, 32], strides = [1, 1]} : vector<16x96xf32> to vector<16x32xf32>
    %50 = vector.shape_cast %47 : vector<16x32xf32> to vector<2x8x32xf32>
    %51 = vector.shape_cast %48 : vector<16x32xf32> to vector<2x8x32xf32>
    %52 = vector.shape_cast %49 : vector<16x32xf32> to vector<2x8x32xf32>
    %53 = vector.extract_strided_slice %50 {offsets = [0, 0, 0], sizes = [2, 8, 8], strides = [1, 1, 1]} : vector<2x8x32xf32> to vector<2x8x8xf32>
    %54 = vector.extract_strided_slice %51 {offsets = [0, 0, 0], sizes = [2, 8, 8], strides = [1, 1, 1]} : vector<2x8x32xf32> to vector<2x8x8xf32>
    "tpu.trace_start"() <{level = 10 : i32, message = "bqd,bkd->bqk"}> : () -> ()
    %cst_17 = arith.constant dense<0.000000e+00> : vector<2x8x8xf32>
    %55 = tpu.matmul %53, %54, %cst_17 {dimension_numbers = #tpu.dot_dimension_numbers<[2], [2], [1], [1], [0, 0, 0, 1, 1, 1], [0], [0]>} : vector<2x8x8xf32>, vector<2x8x8xf32>, vector<2x8x8xf32> -> vector<2x8x8xf32>
    "tpu.trace_stop"() : () -> ()
    %cst_18 = arith.constant 0.353553385 : f32
    %56 = vector.broadcast %cst_18 : f32 to vector<2x8x8xf32>
    %57 = arith.mulf %55, %56 : vector<2x8x8xf32>
    %58 = vector.extract_strided_slice %50 {offsets = [0, 0, 8], sizes = [2, 8, 8], strides = [1, 1, 1]} : vector<2x8x32xf32> to vector<2x8x8xf32>
    %59 = vector.extract_strided_slice %51 {offsets = [0, 0, 8], sizes = [2, 8, 8], strides = [1, 1, 1]} : vector<2x8x32xf32> to vector<2x8x8xf32>
    "tpu.trace_start"() <{level = 10 : i32, message = "bqd,bkd->bqk"}> : () -> ()
    %cst_19 = arith.constant dense<0.000000e+00> : vector<2x8x8xf32>
    %60 = tpu.matmul %58, %59, %cst_19 {dimension_numbers = #tpu.dot_dimension_numbers<[2], [2], [1], [1], [0, 0, 0, 1, 1, 1], [0], [0]>} : vector<2x8x8xf32>, vector<2x8x8xf32>, vector<2x8x8xf32> -> vector<2x8x8xf32>
    "tpu.trace_stop"() : () -> ()
    %cst_20 = arith.constant 0.353553385 : f32
    %61 = vector.broadcast %cst_20 : f32 to vector<2x8x8xf32>
    %62 = arith.mulf %60, %61 : vector<2x8x8xf32>
    %63 = vector.extract_strided_slice %50 {offsets = [0, 0, 16], sizes = [2, 8, 8], strides = [1, 1, 1]} : vector<2x8x32xf32> to vector<2x8x8xf32>
    %64 = vector.extract_strided_slice %51 {offsets = [0, 0, 16], sizes = [2, 8, 8], strides = [1, 1, 1]} : vector<2x8x32xf32> to vector<2x8x8xf32>
    "tpu.trace_start"() <{level = 10 : i32, message = "bqd,bkd->bqk"}> : () -> ()
    %cst_21 = arith.constant dense<0.000000e+00> : vector<2x8x8xf32>
    %65 = tpu.matmul %63, %64, %cst_21 {dimension_numbers = #tpu.dot_dimension_numbers<[2], [2], [1], [1], [0, 0, 0, 1, 1, 1], [0], [0]>} : vector<2x8x8xf32>, vector<2x8x8xf32>, vector<2x8x8xf32> -> vector<2x8x8xf32>
    "tpu.trace_stop"() : () -> ()
    %cst_22 = arith.constant 0.353553385 : f32
    %66 = vector.broadcast %cst_22 : f32 to vector<2x8x8xf32>
    %67 = arith.mulf %65, %66 : vector<2x8x8xf32>
    %68 = vector.extract_strided_slice %50 {offsets = [0, 0, 24], sizes = [2, 8, 8], strides = [1, 1, 1]} : vector<2x8x32xf32> to vector<2x8x8xf32>
    %69 = vector.extract_strided_slice %51 {offsets = [0, 0, 24], sizes = [2, 8, 8], strides = [1, 1, 1]} : vector<2x8x32xf32> to vector<2x8x8xf32>
    "tpu.trace_start"() <{level = 10 : i32, message = "bqd,bkd->bqk"}> : () -> ()
    %cst_23 = arith.constant dense<0.000000e+00> : vector<2x8x8xf32>
    %70 = tpu.matmul %68, %69, %cst_23 {dimension_numbers = #tpu.dot_dimension_numbers<[2], [2], [1], [1], [0, 0, 0, 1, 1, 1], [0], [0]>} : vector<2x8x8xf32>, vector<2x8x8xf32>, vector<2x8x8xf32> -> vector<2x8x8xf32>
    "tpu.trace_stop"() : () -> ()
    %cst_24 = arith.constant 0.353553385 : f32
    %71 = vector.broadcast %cst_24 : f32 to vector<2x8x8xf32>
    %72 = arith.mulf %70, %71 : vector<2x8x8xf32>
    %73 = tpu.concatenate %57, %62, %67, %72 in 1 : vector<2x8x8xf32>, vector<2x8x8xf32>, vector<2x8x8xf32>, vector<2x8x8xf32> -> vector<2x32x8xf32>
    %cst_25 = arith.constant dense<0xFF800000> : vector<2x32xf32>
    %74 = vector.multi_reduction <maximumf>, %73, %cst_25 [2] : vector<2x32x8xf32> to vector<2x32xf32>
    %75 = vector.shape_cast %74 : vector<2x32xf32> to vector<2x32x1xf32>
    %76 = vector.broadcast %75 : vector<2x32x1xf32> to vector<2x32x8xf32>
    %77 = arith.subf %73, %76 : vector<2x32x8xf32>
    %78 = math.exp %77 : vector<2x32x8xf32>
    %cst_26 = arith.constant dense<0.000000e+00> : vector<2x32xf32>
    %79 = vector.multi_reduction <add>, %78, %cst_26 [2] : vector<2x32x8xf32> to vector<2x32xf32>
    %80 = vector.shape_cast %79 : vector<2x32xf32> to vector<2x32x1xf32>
    %81 = tpu.reciprocal %80 {approx = true} : vector<2x32x1xf32> -> vector<2x32x1xf32>
    %82 = vector.broadcast %81 : vector<2x32x1xf32> to vector<2x32x8xf32>
    %83 = arith.mulf %78, %82 : vector<2x32x8xf32>
    %84 = vector.extract_strided_slice %83 {offsets = [0, 0, 0], sizes = [2, 8, 8], strides = [1, 1, 1]} : vector<2x32x8xf32> to vector<2x8x8xf32>
    %85 = vector.extract_strided_slice %52 {offsets = [0, 0, 0], sizes = [2, 8, 8], strides = [1, 1, 1]} : vector<2x8x32xf32> to vector<2x8x8xf32>
    "tpu.trace_start"() <{level = 10 : i32, message = "bqk,bkd->bqd"}> : () -> ()
    %cst_27 = arith.constant dense<0.000000e+00> : vector<2x8x8xf32>
    %86 = tpu.matmul %84, %85, %cst_27 {dimension_numbers = #tpu.dot_dimension_numbers<[2], [1], [1], [2], [0, 0, 0, 1, 1, 2], [0], [0]>} : vector<2x8x8xf32>, vector<2x8x8xf32>, vector<2x8x8xf32> -> vector<2x8x8xf32>
    "tpu.trace_stop"() : () -> ()
    %87 = vector.extract_strided_slice %83 {offsets = [0, 8, 0], sizes = [2, 8, 8], strides = [1, 1, 1]} : vector<2x32x8xf32> to vector<2x8x8xf32>
    %88 = vector.extract_strided_slice %52 {offsets = [0, 0, 8], sizes = [2, 8, 8], strides = [1, 1, 1]} : vector<2x8x32xf32> to vector<2x8x8xf32>
    "tpu.trace_start"() <{level = 10 : i32, message = "bqk,bkd->bqd"}> : () -> ()
    %cst_28 = arith.constant dense<0.000000e+00> : vector<2x8x8xf32>
    %89 = tpu.matmul %87, %88, %cst_28 {dimension_numbers = #tpu.dot_dimension_numbers<[2], [1], [1], [2], [0, 0, 0, 1, 1, 2], [0], [0]>} : vector<2x8x8xf32>, vector<2x8x8xf32>, vector<2x8x8xf32> -> vector<2x8x8xf32>
    "tpu.trace_stop"() : () -> ()
    %90 = vector.extract_strided_slice %83 {offsets = [0, 16, 0], sizes = [2, 8, 8], strides = [1, 1, 1]} : vector<2x32x8xf32> to vector<2x8x8xf32>
    %91 = vector.extract_strided_slice %52 {offsets = [0, 0, 16], sizes = [2, 8, 8], strides = [1, 1, 1]} : vector<2x8x32xf32> to vector<2x8x8xf32>
    "tpu.trace_start"() <{level = 10 : i32, message = "bqk,bkd->bqd"}> : () -> ()
    %cst_29 = arith.constant dense<0.000000e+00> : vector<2x8x8xf32>
    %92 = tpu.matmul %90, %91, %cst_29 {dimension_numbers = #tpu.dot_dimension_numbers<[2], [1], [1], [2], [0, 0, 0, 1, 1, 2], [0], [0]>} : vector<2x8x8xf32>, vector<2x8x8xf32>, vector<2x8x8xf32> -> vector<2x8x8xf32>
    "tpu.trace_stop"() : () -> ()
    %93 = vector.extract_strided_slice %83 {offsets = [0, 24, 0], sizes = [2, 8, 8], strides = [1, 1, 1]} : vector<2x32x8xf32> to vector<2x8x8xf32>
    %94 = vector.extract_strided_slice %52 {offsets = [0, 0, 24], sizes = [2, 8, 8], strides = [1, 1, 1]} : vector<2x8x32xf32> to vector<2x8x8xf32>
    "tpu.trace_start"() <{level = 10 : i32, message = "bqk,bkd->bqd"}> : () -> ()
    %cst_30 = arith.constant dense<0.000000e+00> : vector<2x8x8xf32>
    %95 = tpu.matmul %93, %94, %cst_30 {dimension_numbers = #tpu.dot_dimension_numbers<[2], [1], [1], [2], [0, 0, 0, 1, 1, 2], [0], [0]>} : vector<2x8x8xf32>, vector<2x8x8xf32>, vector<2x8x8xf32> -> vector<2x8x8xf32>
    "tpu.trace_stop"() : () -> ()
    %96 = tpu.concatenate %86, %89, %92, %95 in 2 : vector<2x8x8xf32>, vector<2x8x8xf32>, vector<2x8x8xf32>, vector<2x8x8xf32> -> vector<2x8x32xf32>
    %97 = vector.shape_cast %96 : vector<2x8x32xf32> to vector<16x32xf32>
    %cst_31 = arith.constant dense<0.000000e+00> : vector<16x32xf32>
    %98 = tpu.matmul %97, %42, %cst_31 {dimension_numbers = #tpu.dot_dimension_numbers<[1], [0], [0], [1], [0, 0, 1, 1], [], []>} : vector<16x32xf32>, vector<32x32xf32>, vector<16x32xf32> -> vector<16x32xf32>
    %99 = vector.broadcast %43 : vector<1x32xf32> to vector<16x32xf32>
    %100 = arith.addf %98, %99 : vector<16x32xf32>
    %101 = arith.addf %15, %100 : vector<16x32xf32>
    %c934 = arith.constant 934 : index
    %c0_32 = arith.constant 0 : index
    %102 = vector.load %arg2[%c934, %c0_32] : memref<976x128xf32, #tpu.memory_space<vmem>>, vector<1x32xf32>
    %c935 = arith.constant 935 : index
    %c0_33 = arith.constant 0 : index
    %103 = vector.load %arg2[%c935, %c0_33] : memref<976x128xf32, #tpu.memory_space<vmem>>, vector<1x32xf32>
    %cst_34 = arith.constant dense<0.000000e+00> : vector<16xf32>
    %104 = vector.multi_reduction <add>, %101, %cst_34 [1] : vector<16x32xf32> to vector<16xf32>
    %105 = vector.shape_cast %104 : vector<16xf32> to vector<16x1xf32>
    %cst_35 = arith.constant 3.200000e+01 : f32
    %106 = vector.broadcast %cst_35 : f32 to vector<16x1xf32>
    %107 = arith.divf %105, %106 : vector<16x1xf32>
    %108 = vector.broadcast %107 : vector<16x1xf32> to vector<16x32xf32>
    %109 = arith.subf %101, %108 : vector<16x32xf32>
    %110 = arith.mulf %109, %109 : vector<16x32xf32>
    %cst_36 = arith.constant dense<0.000000e+00> : vector<16xf32>
    %111 = vector.multi_reduction <add>, %110, %cst_36 [1] : vector<16x32xf32> to vector<16xf32>
    %112 = vector.shape_cast %111 : vector<16xf32> to vector<16x1xf32>
    %cst_37 = arith.constant 3.100000e+01 : f32
    %113 = vector.broadcast %cst_37 : f32 to vector<16x1xf32>
    %114 = arith.divf %112, %113 : vector<16x1xf32>
    %115 = math.sqrt %114 : vector<16x1xf32>
    %116 = vector.broadcast %107 : vector<16x1xf32> to vector<16x32xf32>
    %117 = arith.subf %101, %116 : vector<16x32xf32>
    %118 = vector.broadcast %102 : vector<1x32xf32> to vector<16x32xf32>
    %119 = arith.mulf %118, %117 : vector<16x32xf32>
    %cst_38 = arith.constant 9.99999997E-7 : f32
    %120 = vector.broadcast %cst_38 : f32 to vector<16x1xf32>
    %121 = arith.addf %115, %120 : vector<16x1xf32>
    %122 = vector.broadcast %121 : vector<16x1xf32> to vector<16x32xf32>
    %123 = arith.divf %119, %122 : vector<16x32xf32>
    %124 = vector.broadcast %103 : vector<1x32xf32> to vector<16x32xf32>
    %125 = arith.addf %123, %124 : vector<16x32xf32>
    %c64 = arith.constant 64 : index
    %c0_39 = arith.constant 0 : index
    %126 = vector.load %arg2[%c64, %c0_39] : memref<976x128xf32, #tpu.memory_space<vmem>>, vector<32x64xf32>
    %c930 = arith.constant 930 : index
    %c0_40 = arith.constant 0 : index
    %127 = vector.load %arg2[%c930, %c0_40] : memref<976x128xf32, #tpu.memory_space<vmem>>, vector<1x64xf32>
    %c96 = arith.constant 96 : index
    %c0_41 = arith.constant 0 : index
    %128 = vector.load %arg2[%c96, %c0_41] : memref<976x128xf32, #tpu.memory_space<vmem>>, vector<64x32xf32>
    %c931 = arith.constant 931 : index
    %c0_42 = arith.constant 0 : index
    %129 = vector.load %arg2[%c931, %c0_42] : memref<976x128xf32, #tpu.memory_space<vmem>>, vector<1x32xf32>
    %cst_43 = arith.constant dense<0.000000e+00> : vector<16x64xf32>
    %130 = tpu.matmul %125, %126, %cst_43 {dimension_numbers = #tpu.dot_dimension_numbers<[1], [0], [0], [1], [0, 0, 1, 1], [], []>} : vector<16x32xf32>, vector<32x64xf32>, vector<16x64xf32> -> vector<16x64xf32>
    %131 = vector.broadcast %127 : vector<1x64xf32> to vector<16x64xf32>
    %132 = arith.addf %130, %131 : vector<16x64xf32>
    %cst_44 = arith.constant 0.000000e+00 : f32
    %133 = vector.broadcast %cst_44 : f32 to vector<16x64xf32>
    %134 = arith.maximumf %132, %133 : vector<16x64xf32>
    %cst_45 = arith.constant dense<0.000000e+00> : vector<16x32xf32>
    %135 = tpu.matmul %134, %128, %cst_45 {dimension_numbers = #tpu.dot_dimension_numbers<[1], [0], [0], [1], [0, 0, 1, 1], [], []>} : vector<16x64xf32>, vector<64x32xf32>, vector<16x32xf32> -> vector<16x32xf32>
    %136 = vector.broadcast %129 : vector<1x32xf32> to vector<16x32xf32>
    %137 = arith.addf %135, %136 : vector<16x32xf32>
    %138 = arith.addf %101, %137 : vector<16x32xf32>
    %c940 = arith.constant 940 : index
    %c0_46 = arith.constant 0 : index
    %139 = vector.load %arg2[%c940, %c0_46] : memref<976x128xf32, #tpu.memory_space<vmem>>, vector<1x32xf32>
    %c941 = arith.constant 941 : index
    %c0_47 = arith.constant 0 : index
    %140 = vector.load %arg2[%c941, %c0_47] : memref<976x128xf32, #tpu.memory_space<vmem>>, vector<1x32xf32>
    %cst_48 = arith.constant dense<0.000000e+00> : vector<16xf32>
    %141 = vector.multi_reduction <add>, %138, %cst_48 [1] : vector<16x32xf32> to vector<16xf32>
    %142 = vector.shape_cast %141 : vector<16xf32> to vector<16x1xf32>
    %cst_49 = arith.constant 3.200000e+01 : f32
    %143 = vector.broadcast %cst_49 : f32 to vector<16x1xf32>
    %144 = arith.divf %142, %143 : vector<16x1xf32>
    %145 = vector.broadcast %144 : vector<16x1xf32> to vector<16x32xf32>
    %146 = arith.subf %138, %145 : vector<16x32xf32>
    %147 = arith.mulf %146, %146 : vector<16x32xf32>
    %cst_50 = arith.constant dense<0.000000e+00> : vector<16xf32>
    %148 = vector.multi_reduction <add>, %147, %cst_50 [1] : vector<16x32xf32> to vector<16xf32>
    %149 = vector.shape_cast %148 : vector<16xf32> to vector<16x1xf32>
    %cst_51 = arith.constant 3.100000e+01 : f32
    %150 = vector.broadcast %cst_51 : f32 to vector<16x1xf32>
    %151 = arith.divf %149, %150 : vector<16x1xf32>
    %152 = math.sqrt %151 : vector<16x1xf32>
    %153 = vector.broadcast %144 : vector<16x1xf32> to vector<16x32xf32>
    %154 = arith.subf %138, %153 : vector<16x32xf32>
    %155 = vector.broadcast %139 : vector<1x32xf32> to vector<16x32xf32>
    %156 = arith.mulf %155, %154 : vector<16x32xf32>
    %cst_52 = arith.constant 9.99999997E-7 : f32
    %157 = vector.broadcast %cst_52 : f32 to vector<16x1xf32>
    %158 = arith.addf %152, %157 : vector<16x1xf32>
    %159 = vector.broadcast %158 : vector<16x1xf32> to vector<16x32xf32>
    %160 = arith.divf %156, %159 : vector<16x32xf32>
    %161 = vector.broadcast %140 : vector<1x32xf32> to vector<16x32xf32>
    %162 = arith.addf %160, %161 : vector<16x32xf32>
    %c160 = arith.constant 160 : index
    %c0_53 = arith.constant 0 : index
    %163 = vector.load %arg2[%c160, %c0_53] : memref<976x128xf32, #tpu.memory_space<vmem>>, vector<32x96xf32>
    %c936 = arith.constant 936 : index
    %c0_54 = arith.constant 0 : index
    %164 = vector.load %arg2[%c936, %c0_54] : memref<976x128xf32, #tpu.memory_space<vmem>>, vector<1x96xf32>
    %c192 = arith.constant 192 : index
    %c0_55 = arith.constant 0 : index
    %165 = vector.load %arg2[%c192, %c0_55] : memref<976x128xf32, #tpu.memory_space<vmem>>, vector<32x32xf32>
    %c937 = arith.constant 937 : index
    %c0_56 = arith.constant 0 : index
    %166 = vector.load %arg2[%c937, %c0_56] : memref<976x128xf32, #tpu.memory_space<vmem>>, vector<1x32xf32>
    %cst_57 = arith.constant dense<0.000000e+00> : vector<16x96xf32>
    %167 = tpu.matmul %162, %163, %cst_57 {dimension_numbers = #tpu.dot_dimension_numbers<[1], [0], [0], [1], [0, 0, 1, 1], [], []>} : vector<16x32xf32>, vector<32x96xf32>, vector<16x96xf32> -> vector<16x96xf32>
    %168 = vector.broadcast %164 : vector<1x96xf32> to vector<16x96xf32>
    %169 = arith.addf %167, %168 : vector<16x96xf32>
    %170 = vector.extract_strided_slice %169 {offsets = [0, 0], sizes = [16, 32], strides = [1, 1]} : vector<16x96xf32> to vector<16x32xf32>
    %171 = vector.extract_strided_slice %169 {offsets = [0, 32], sizes = [16, 32], strides = [1, 1]} : vector<16x96xf32> to vector<16x32xf32>
    %172 = vector.extract_strided_slice %169 {offsets = [0, 64], sizes = [16, 32], strides = [1, 1]} : vector<16x96xf32> to vector<16x32xf32>
    %173 = vector.shape_cast %170 : vector<16x32xf32> to vector<2x8x32xf32>
    %174 = vector.shape_cast %171 : vector<16x32xf32> to vector<2x8x32xf32>
    %175 = vector.shape_cast %172 : vector<16x32xf32> to vector<2x8x32xf32>
    %176 = vector.extract_strided_slice %173 {offsets = [0, 0, 0], sizes = [2, 8, 8], strides = [1, 1, 1]} : vector<2x8x32xf32> to vector<2x8x8xf32>
    %177 = vector.extract_strided_slice %174 {offsets = [0, 0, 0], sizes = [2, 8, 8], strides = [1, 1, 1]} : vector<2x8x32xf32> to vector<2x8x8xf32>
    "tpu.trace_start"() <{level = 10 : i32, message = "bqd,bkd->bqk"}> : () -> ()
    %cst_58 = arith.constant dense<0.000000e+00> : vector<2x8x8xf32>
    %178 = tpu.matmul %176, %177, %cst_58 {dimension_numbers = #tpu.dot_dimension_numbers<[2], [2], [1], [1], [0, 0, 0, 1, 1, 1], [0], [0]>} : vector<2x8x8xf32>, vector<2x8x8xf32>, vector<2x8x8xf32> -> vector<2x8x8xf32>
    "tpu.trace_stop"() : () -> ()
    %cst_59 = arith.constant 0.353553385 : f32
    %179 = vector.broadcast %cst_59 : f32 to vector<2x8x8xf32>
    %180 = arith.mulf %178, %179 : vector<2x8x8xf32>
    %181 = vector.extract_strided_slice %173 {offsets = [0, 0, 8], sizes = [2, 8, 8], strides = [1, 1, 1]} : vector<2x8x32xf32> to vector<2x8x8xf32>
    %182 = vector.extract_strided_slice %174 {offsets = [0, 0, 8], sizes = [2, 8, 8], strides = [1, 1, 1]} : vector<2x8x32xf32> to vector<2x8x8xf32>
    "tpu.trace_start"() <{level = 10 : i32, message = "bqd,bkd->bqk"}> : () -> ()
    %cst_60 = arith.constant dense<0.000000e+00> : vector<2x8x8xf32>
    %183 = tpu.matmul %181, %182, %cst_60 {dimension_numbers = #tpu.dot_dimension_numbers<[2], [2], [1], [1], [0, 0, 0, 1, 1, 1], [0], [0]>} : vector<2x8x8xf32>, vector<2x8x8xf32>, vector<2x8x8xf32> -> vector<2x8x8xf32>
    "tpu.trace_stop"() : () -> ()
    %cst_61 = arith.constant 0.353553385 : f32
    %184 = vector.broadcast %cst_61 : f32 to vector<2x8x8xf32>
    %185 = arith.mulf %183, %184 : vector<2x8x8xf32>
    %186 = vector.extract_strided_slice %173 {offsets = [0, 0, 16], sizes = [2, 8, 8], strides = [1, 1, 1]} : vector<2x8x32xf32> to vector<2x8x8xf32>
    %187 = vector.extract_strided_slice %174 {offsets = [0, 0, 16], sizes = [2, 8, 8], strides = [1, 1, 1]} : vector<2x8x32xf32> to vector<2x8x8xf32>
    "tpu.trace_start"() <{level = 10 : i32, message = "bqd,bkd->bqk"}> : () -> ()
    %cst_62 = arith.constant dense<0.000000e+00> : vector<2x8x8xf32>
    %188 = tpu.matmul %186, %187, %cst_62 {dimension_numbers = #tpu.dot_dimension_numbers<[2], [2], [1], [1], [0, 0, 0, 1, 1, 1], [0], [0]>} : vector<2x8x8xf32>, vector<2x8x8xf32>, vector<2x8x8xf32> -> vector<2x8x8xf32>
    "tpu.trace_stop"() : () -> ()
    %cst_63 = arith.constant 0.353553385 : f32
    %189 = vector.broadcast %cst_63 : f32 to vector<2x8x8xf32>
    %190 = arith.mulf %188, %189 : vector<2x8x8xf32>
    %191 = vector.extract_strided_slice %173 {offsets = [0, 0, 24], sizes = [2, 8, 8], strides = [1, 1, 1]} : vector<2x8x32xf32> to vector<2x8x8xf32>
    %192 = vector.extract_strided_slice %174 {offsets = [0, 0, 24], sizes = [2, 8, 8], strides = [1, 1, 1]} : vector<2x8x32xf32> to vector<2x8x8xf32>
    "tpu.trace_start"() <{level = 10 : i32, message = "bqd,bkd->bqk"}> : () -> ()
    %cst_64 = arith.constant dense<0.000000e+00> : vector<2x8x8xf32>
    %193 = tpu.matmul %191, %192, %cst_64 {dimension_numbers = #tpu.dot_dimension_numbers<[2], [2], [1], [1], [0, 0, 0, 1, 1, 1], [0], [0]>} : vector<2x8x8xf32>, vector<2x8x8xf32>, vector<2x8x8xf32> -> vector<2x8x8xf32>
    "tpu.trace_stop"() : () -> ()
    %cst_65 = arith.constant 0.353553385 : f32
    %194 = vector.broadcast %cst_65 : f32 to vector<2x8x8xf32>
    %195 = arith.mulf %193, %194 : vector<2x8x8xf32>
    %196 = tpu.concatenate %180, %185, %190, %195 in 1 : vector<2x8x8xf32>, vector<2x8x8xf32>, vector<2x8x8xf32>, vector<2x8x8xf32> -> vector<2x32x8xf32>
    %cst_66 = arith.constant dense<0xFF800000> : vector<2x32xf32>
    %197 = vector.multi_reduction <maximumf>, %196, %cst_66 [2] : vector<2x32x8xf32> to vector<2x32xf32>
    %198 = vector.shape_cast %197 : vector<2x32xf32> to vector<2x32x1xf32>
    %199 = vector.broadcast %198 : vector<2x32x1xf32> to vector<2x32x8xf32>
    %200 = arith.subf %196, %199 : vector<2x32x8xf32>
    %201 = math.exp %200 : vector<2x32x8xf32>
    %cst_67 = arith.constant dense<0.000000e+00> : vector<2x32xf32>
    %202 = vector.multi_reduction <add>, %201, %cst_67 [2] : vector<2x32x8xf32> to vector<2x32xf32>
    %203 = vector.shape_cast %202 : vector<2x32xf32> to vector<2x32x1xf32>
    %204 = tpu.reciprocal %203 {approx = true} : vector<2x32x1xf32> -> vector<2x32x1xf32>
    %205 = vector.broadcast %204 : vector<2x32x1xf32> to vector<2x32x8xf32>
    %206 = arith.mulf %201, %205 : vector<2x32x8xf32>
    %207 = vector.extract_strided_slice %206 {offsets = [0, 0, 0], sizes = [2, 8, 8], strides = [1, 1, 1]} : vector<2x32x8xf32> to vector<2x8x8xf32>
    %208 = vector.extract_strided_slice %175 {offsets = [0, 0, 0], sizes = [2, 8, 8], strides = [1, 1, 1]} : vector<2x8x32xf32> to vector<2x8x8xf32>
    "tpu.trace_start"() <{level = 10 : i32, message = "bqk,bkd->bqd"}> : () -> ()
    %cst_68 = arith.constant dense<0.000000e+00> : vector<2x8x8xf32>
    %209 = tpu.matmul %207, %208, %cst_68 {dimension_numbers = #tpu.dot_dimension_numbers<[2], [1], [1], [2], [0, 0, 0, 1, 1, 2], [0], [0]>} : vector<2x8x8xf32>, vector<2x8x8xf32>, vector<2x8x8xf32> -> vector<2x8x8xf32>
    "tpu.trace_stop"() : () -> ()
    %210 = vector.extract_strided_slice %206 {offsets = [0, 8, 0], sizes = [2, 8, 8], strides = [1, 1, 1]} : vector<2x32x8xf32> to vector<2x8x8xf32>
    %211 = vector.extract_strided_slice %175 {offsets = [0, 0, 8], sizes = [2, 8, 8], strides = [1, 1, 1]} : vector<2x8x32xf32> to vector<2x8x8xf32>
    "tpu.trace_start"() <{level = 10 : i32, message = "bqk,bkd->bqd"}> : () -> ()
    %cst_69 = arith.constant dense<0.000000e+00> : vector<2x8x8xf32>
    %212 = tpu.matmul %210, %211, %cst_69 {dimension_numbers = #tpu.dot_dimension_numbers<[2], [1], [1], [2], [0, 0, 0, 1, 1, 2], [0], [0]>} : vector<2x8x8xf32>, vector<2x8x8xf32>, vector<2x8x8xf32> -> vector<2x8x8xf32>
    "tpu.trace_stop"() : () -> ()
    %213 = vector.extract_strided_slice %206 {offsets = [0, 16, 0], sizes = [2, 8, 8], strides = [1, 1, 1]} : vector<2x32x8xf32> to vector<2x8x8xf32>
    %214 = vector.extract_strided_slice %175 {offsets = [0, 0, 16], sizes = [2, 8, 8], strides = [1, 1, 1]} : vector<2x8x32xf32> to vector<2x8x8xf32>
    "tpu.trace_start"() <{level = 10 : i32, message = "bqk,bkd->bqd"}> : () -> ()
    %cst_70 = arith.constant dense<0.000000e+00> : vector<2x8x8xf32>
    %215 = tpu.matmul %213, %214, %cst_70 {dimension_numbers = #tpu.dot_dimension_numbers<[2], [1], [1], [2], [0, 0, 0, 1, 1, 2], [0], [0]>} : vector<2x8x8xf32>, vector<2x8x8xf32>, vector<2x8x8xf32> -> vector<2x8x8xf32>
    "tpu.trace_stop"() : () -> ()
    %216 = vector.extract_strided_slice %206 {offsets = [0, 24, 0], sizes = [2, 8, 8], strides = [1, 1, 1]} : vector<2x32x8xf32> to vector<2x8x8xf32>
    %217 = vector.extract_strided_slice %175 {offsets = [0, 0, 24], sizes = [2, 8, 8], strides = [1, 1, 1]} : vector<2x8x32xf32> to vector<2x8x8xf32>
    "tpu.trace_start"() <{level = 10 : i32, message = "bqk,bkd->bqd"}> : () -> ()
    %cst_71 = arith.constant dense<0.000000e+00> : vector<2x8x8xf32>
    %218 = tpu.matmul %216, %217, %cst_71 {dimension_numbers = #tpu.dot_dimension_numbers<[2], [1], [1], [2], [0, 0, 0, 1, 1, 2], [0], [0]>} : vector<2x8x8xf32>, vector<2x8x8xf32>, vector<2x8x8xf32> -> vector<2x8x8xf32>
    "tpu.trace_stop"() : () -> ()
    %219 = tpu.concatenate %209, %212, %215, %218 in 2 : vector<2x8x8xf32>, vector<2x8x8xf32>, vector<2x8x8xf32>, vector<2x8x8xf32> -> vector<2x8x32xf32>
    %220 = vector.shape_cast %219 : vector<2x8x32xf32> to vector<16x32xf32>
    %cst_72 = arith.constant dense<0.000000e+00> : vector<16x32xf32>
    %221 = tpu.matmul %220, %165, %cst_72 {dimension_numbers = #tpu.dot_dimension_numbers<[1], [0], [0], [1], [0, 0, 1, 1], [], []>} : vector<16x32xf32>, vector<32x32xf32>, vector<16x32xf32> -> vector<16x32xf32>
    %222 = vector.broadcast %166 : vector<1x32xf32> to vector<16x32xf32>
    %223 = arith.addf %221, %222 : vector<16x32xf32>
    %224 = arith.addf %138, %223 : vector<16x32xf32>
    %c942 = arith.constant 942 : index
    %c0_73 = arith.constant 0 : index
    %225 = vector.load %arg2[%c942, %c0_73] : memref<976x128xf32, #tpu.memory_space<vmem>>, vector<1x32xf32>
    %c943 = arith.constant 943 : index
    %c0_74 = arith.constant 0 : index
    %226 = vector.load %arg2[%c943, %c0_74] : memref<976x128xf32, #tpu.memory_space<vmem>>, vector<1x32xf32>
    %cst_75 = arith.constant dense<0.000000e+00> : vector<16xf32>
    %227 = vector.multi_reduction <add>, %224, %cst_75 [1] : vector<16x32xf32> to vector<16xf32>
    %228 = vector.shape_cast %227 : vector<16xf32> to vector<16x1xf32>
    %cst_76 = arith.constant 3.200000e+01 : f32
    %229 = vector.broadcast %cst_76 : f32 to vector<16x1xf32>
    %230 = arith.divf %228, %229 : vector<16x1xf32>
    %231 = vector.broadcast %230 : vector<16x1xf32> to vector<16x32xf32>
    %232 = arith.subf %224, %231 : vector<16x32xf32>
    %233 = arith.mulf %232, %232 : vector<16x32xf32>
    %cst_77 = arith.constant dense<0.000000e+00> : vector<16xf32>
    %234 = vector.multi_reduction <add>, %233, %cst_77 [1] : vector<16x32xf32> to vector<16xf32>
    %235 = vector.shape_cast %234 : vector<16xf32> to vector<16x1xf32>
    %cst_78 = arith.constant 3.100000e+01 : f32
    %236 = vector.broadcast %cst_78 : f32 to vector<16x1xf32>
    %237 = arith.divf %235, %236 : vector<16x1xf32>
    %238 = math.sqrt %237 : vector<16x1xf32>
    %239 = vector.broadcast %230 : vector<16x1xf32> to vector<16x32xf32>
    %240 = arith.subf %224, %239 : vector<16x32xf32>
    %241 = vector.broadcast %225 : vector<1x32xf32> to vector<16x32xf32>
    %242 = arith.mulf %241, %240 : vector<16x32xf32>
    %cst_79 = arith.constant 9.99999997E-7 : f32
    %243 = vector.broadcast %cst_79 : f32 to vector<16x1xf32>
    %244 = arith.addf %238, %243 : vector<16x1xf32>
    %245 = vector.broadcast %244 : vector<16x1xf32> to vector<16x32xf32>
    %246 = arith.divf %242, %245 : vector<16x32xf32>
    %247 = vector.broadcast %226 : vector<1x32xf32> to vector<16x32xf32>
    %248 = arith.addf %246, %247 : vector<16x32xf32>
    %c224 = arith.constant 224 : index
    %c0_80 = arith.constant 0 : index
    %249 = vector.load %arg2[%c224, %c0_80] : memref<976x128xf32, #tpu.memory_space<vmem>>, vector<32x64xf32>
    %c938 = arith.constant 938 : index
    %c0_81 = arith.constant 0 : index
    %250 = vector.load %arg2[%c938, %c0_81] : memref<976x128xf32, #tpu.memory_space<vmem>>, vector<1x64xf32>
    %c256 = arith.constant 256 : index
    %c0_82 = arith.constant 0 : index
    %251 = vector.load %arg2[%c256, %c0_82] : memref<976x128xf32, #tpu.memory_space<vmem>>, vector<64x32xf32>
    %c939 = arith.constant 939 : index
    %c0_83 = arith.constant 0 : index
    %252 = vector.load %arg2[%c939, %c0_83] : memref<976x128xf32, #tpu.memory_space<vmem>>, vector<1x32xf32>
    %cst_84 = arith.constant dense<0.000000e+00> : vector<16x64xf32>
    %253 = tpu.matmul %248, %249, %cst_84 {dimension_numbers = #tpu.dot_dimension_numbers<[1], [0], [0], [1], [0, 0, 1, 1], [], []>} : vector<16x32xf32>, vector<32x64xf32>, vector<16x64xf32> -> vector<16x64xf32>
    %254 = vector.broadcast %250 : vector<1x64xf32> to vector<16x64xf32>
    %255 = arith.addf %253, %254 : vector<16x64xf32>
    %cst_85 = arith.constant 0.000000e+00 : f32
    %256 = vector.broadcast %cst_85 : f32 to vector<16x64xf32>
    %257 = arith.maximumf %255, %256 : vector<16x64xf32>
    %cst_86 = arith.constant dense<0.000000e+00> : vector<16x32xf32>
    %258 = tpu.matmul %257, %251, %cst_86 {dimension_numbers = #tpu.dot_dimension_numbers<[1], [0], [0], [1], [0, 0, 1, 1], [], []>} : vector<16x64xf32>, vector<64x32xf32>, vector<16x32xf32> -> vector<16x32xf32>
    %259 = vector.broadcast %252 : vector<1x32xf32> to vector<16x32xf32>
    %260 = arith.addf %258, %259 : vector<16x32xf32>
    %261 = arith.addf %224, %260 : vector<16x32xf32>
    %c944 = arith.constant 944 : index
    %c0_87 = arith.constant 0 : index
    %262 = vector.load %arg2[%c944, %c0_87] : memref<976x128xf32, #tpu.memory_space<vmem>>, vector<1x32xf32>
    %c945 = arith.constant 945 : index
    %c0_88 = arith.constant 0 : index
    %263 = vector.load %arg2[%c945, %c0_88] : memref<976x128xf32, #tpu.memory_space<vmem>>, vector<1x32xf32>
    %cst_89 = arith.constant dense<0.000000e+00> : vector<16xf32>
    %264 = vector.multi_reduction <add>, %261, %cst_89 [1] : vector<16x32xf32> to vector<16xf32>
    %265 = vector.shape_cast %264 : vector<16xf32> to vector<16x1xf32>
    %cst_90 = arith.constant 3.200000e+01 : f32
    %266 = vector.broadcast %cst_90 : f32 to vector<16x1xf32>
    %267 = arith.divf %265, %266 : vector<16x1xf32>
    %268 = vector.broadcast %267 : vector<16x1xf32> to vector<16x32xf32>
    %269 = arith.subf %261, %268 : vector<16x32xf32>
    %270 = arith.mulf %269, %269 : vector<16x32xf32>
    %cst_91 = arith.constant dense<0.000000e+00> : vector<16xf32>
    %271 = vector.multi_reduction <add>, %270, %cst_91 [1] : vector<16x32xf32> to vector<16xf32>
    %272 = vector.shape_cast %271 : vector<16xf32> to vector<16x1xf32>
    %cst_92 = arith.constant 3.100000e+01 : f32
    %273 = vector.broadcast %cst_92 : f32 to vector<16x1xf32>
    %274 = arith.divf %272, %273 : vector<16x1xf32>
    %275 = math.sqrt %274 : vector<16x1xf32>
    %276 = vector.broadcast %267 : vector<16x1xf32> to vector<16x32xf32>
    %277 = arith.subf %261, %276 : vector<16x32xf32>
    %278 = vector.broadcast %262 : vector<1x32xf32> to vector<16x32xf32>
    %279 = arith.mulf %278, %277 : vector<16x32xf32>
    %cst_93 = arith.constant 9.99999997E-7 : f32
    %280 = vector.broadcast %cst_93 : f32 to vector<16x1xf32>
    %281 = arith.addf %275, %280 : vector<16x1xf32>
    %282 = vector.broadcast %281 : vector<16x1xf32> to vector<16x32xf32>
    %283 = arith.divf %279, %282 : vector<16x32xf32>
    %284 = vector.broadcast %263 : vector<1x32xf32> to vector<16x32xf32>
    %285 = arith.addf %283, %284 : vector<16x32xf32>
    %286 = tpu.iota {dimensions = array<i32: 0>} : vector<8x8xi32>
    %287 = tpu.iota {dimensions = array<i32: 1>} : vector<8x8xi32>
    %288 = arith.cmpi sge, %286, %287 : vector<8x8xi32>
    %cst_94 = arith.constant 0.000000e+00 : f32
    %cst_95 = arith.constant -1.000000e+09 : f32
    %289 = vector.broadcast %cst_94 : f32 to vector<8x8xf32>
    %290 = vector.broadcast %cst_95 : f32 to vector<8x8xf32>
    %291 = arith.select %288, %289, %290 : vector<8x8xi1>, vector<8x8xf32>
    %c0_96 = arith.constant 0 : index
    %c0_97 = arith.constant 0 : index
    %292 = vector.load %arg1[%c0_96, %c0_97] : memref<16x1xi32, #tpu.memory_space<vmem>>, vector<16x1xi32>
    %c784 = arith.constant 784 : index
    %c0_98 = arith.constant 0 : index
    %293 = vector.load %arg2[%c784, %c0_98] : memref<976x128xf32, #tpu.memory_space<vmem>>, vector<16x32xf32>
    %c864 = arith.constant 864 : index
    %c0_99 = arith.constant 0 : index
    %294 = vector.load %arg2[%c864, %c0_99] : memref<976x128xf32, #tpu.memory_space<vmem>>, vector<8x32xf32>
    %295 = tpu.iota {dimensions = array<i32: 1>} : vector<16x16xi32>
    %296 = vector.broadcast %292 : vector<16x1xi32> to vector<16x16xi32>
    %297 = arith.cmpi eq, %296, %295 : vector<16x16xi32>
    %298 = arith.extui %297 : vector<16x16xi1> to vector<16x16xi32>
    %299 = arith.sitofp %298 : vector<16x16xi32> to vector<16x16xf32>
    %cst_100 = arith.constant dense<0.000000e+00> : vector<16x32xf32>
    %300 = tpu.matmul %299, %293, %cst_100 {dimension_numbers = #tpu.dot_dimension_numbers<[1], [0], [0], [1], [0, 0, 1, 1], [], []>} : vector<16x16xf32>, vector<16x32xf32>, vector<16x32xf32> -> vector<16x32xf32>
    %cst_101 = arith.constant 5.65685415 : f32
    %301 = vector.broadcast %cst_101 : f32 to vector<16x32xf32>
    %302 = arith.mulf %300, %301 : vector<16x32xf32>
    %303 = vector.shape_cast %302 : vector<16x32xf32> to vector<2x8x32xf32>
    %304 = vector.shape_cast %294 : vector<8x32xf32> to vector<1x8x32xf32>
    %305 = vector.broadcast %304 : vector<1x8x32xf32> to vector<2x8x32xf32>
    %306 = arith.addf %303, %305 : vector<2x8x32xf32>
    %307 = vector.shape_cast %306 : vector<2x8x32xf32> to vector<16x32xf32>
    %c952 = arith.constant 952 : index
    %c0_102 = arith.constant 0 : index
    %308 = vector.load %arg2[%c952, %c0_102] : memref<976x128xf32, #tpu.memory_space<vmem>>, vector<1x32xf32>
    %c953 = arith.constant 953 : index
    %c0_103 = arith.constant 0 : index
    %309 = vector.load %arg2[%c953, %c0_103] : memref<976x128xf32, #tpu.memory_space<vmem>>, vector<1x32xf32>
    %cst_104 = arith.constant dense<0.000000e+00> : vector<16xf32>
    %310 = vector.multi_reduction <add>, %307, %cst_104 [1] : vector<16x32xf32> to vector<16xf32>
    %311 = vector.shape_cast %310 : vector<16xf32> to vector<16x1xf32>
    %cst_105 = arith.constant 3.200000e+01 : f32
    %312 = vector.broadcast %cst_105 : f32 to vector<16x1xf32>
    %313 = arith.divf %311, %312 : vector<16x1xf32>
    %314 = vector.broadcast %313 : vector<16x1xf32> to vector<16x32xf32>
    %315 = arith.subf %307, %314 : vector<16x32xf32>
    %316 = arith.mulf %315, %315 : vector<16x32xf32>
    %cst_106 = arith.constant dense<0.000000e+00> : vector<16xf32>
    %317 = vector.multi_reduction <add>, %316, %cst_106 [1] : vector<16x32xf32> to vector<16xf32>
    %318 = vector.shape_cast %317 : vector<16xf32> to vector<16x1xf32>
    %cst_107 = arith.constant 3.100000e+01 : f32
    %319 = vector.broadcast %cst_107 : f32 to vector<16x1xf32>
    %320 = arith.divf %318, %319 : vector<16x1xf32>
    %321 = math.sqrt %320 : vector<16x1xf32>
    %322 = vector.broadcast %313 : vector<16x1xf32> to vector<16x32xf32>
    %323 = arith.subf %307, %322 : vector<16x32xf32>
    %324 = vector.broadcast %308 : vector<1x32xf32> to vector<16x32xf32>
    %325 = arith.mulf %324, %323 : vector<16x32xf32>
    %cst_108 = arith.constant 9.99999997E-7 : f32
    %326 = vector.broadcast %cst_108 : f32 to vector<16x1xf32>
    %327 = arith.addf %321, %326 : vector<16x1xf32>
    %328 = vector.broadcast %327 : vector<16x1xf32> to vector<16x32xf32>
    %329 = arith.divf %325, %328 : vector<16x32xf32>
    %330 = vector.broadcast %309 : vector<1x32xf32> to vector<16x32xf32>
    %331 = arith.addf %329, %330 : vector<16x32xf32>
    %c320 = arith.constant 320 : index
    %c0_109 = arith.constant 0 : index
    %332 = vector.load %arg2[%c320, %c0_109] : memref<976x128xf32, #tpu.memory_space<vmem>>, vector<32x96xf32>
    %c946 = arith.constant 946 : index
    %c0_110 = arith.constant 0 : index
    %333 = vector.load %arg2[%c946, %c0_110] : memref<976x128xf32, #tpu.memory_space<vmem>>, vector<1x96xf32>
    %c352 = arith.constant 352 : index
    %c0_111 = arith.constant 0 : index
    %334 = vector.load %arg2[%c352, %c0_111] : memref<976x128xf32, #tpu.memory_space<vmem>>, vector<32x32xf32>
    %c947 = arith.constant 947 : index
    %c0_112 = arith.constant 0 : index
    %335 = vector.load %arg2[%c947, %c0_112] : memref<976x128xf32, #tpu.memory_space<vmem>>, vector<1x32xf32>
    %cst_113 = arith.constant dense<0.000000e+00> : vector<16x96xf32>
    %336 = tpu.matmul %331, %332, %cst_113 {dimension_numbers = #tpu.dot_dimension_numbers<[1], [0], [0], [1], [0, 0, 1, 1], [], []>} : vector<16x32xf32>, vector<32x96xf32>, vector<16x96xf32> -> vector<16x96xf32>
    %337 = vector.broadcast %333 : vector<1x96xf32> to vector<16x96xf32>
    %338 = arith.addf %336, %337 : vector<16x96xf32>
    %339 = vector.extract_strided_slice %338 {offsets = [0, 0], sizes = [16, 32], strides = [1, 1]} : vector<16x96xf32> to vector<16x32xf32>
    %340 = vector.extract_strided_slice %338 {offsets = [0, 32], sizes = [16, 32], strides = [1, 1]} : vector<16x96xf32> to vector<16x32xf32>
    %341 = vector.extract_strided_slice %338 {offsets = [0, 64], sizes = [16, 32], strides = [1, 1]} : vector<16x96xf32> to vector<16x32xf32>
    %342 = vector.shape_cast %339 : vector<16x32xf32> to vector<2x8x32xf32>
    %343 = vector.shape_cast %340 : vector<16x32xf32> to vector<2x8x32xf32>
    %344 = vector.shape_cast %341 : vector<16x32xf32> to vector<2x8x32xf32>
    %345 = vector.extract_strided_slice %342 {offsets = [0, 0, 0], sizes = [2, 8, 8], strides = [1, 1, 1]} : vector<2x8x32xf32> to vector<2x8x8xf32>
    %346 = vector.extract_strided_slice %343 {offsets = [0, 0, 0], sizes = [2, 8, 8], strides = [1, 1, 1]} : vector<2x8x32xf32> to vector<2x8x8xf32>
    "tpu.trace_start"() <{level = 10 : i32, message = "bqd,bkd->bqk"}> : () -> ()
    %cst_114 = arith.constant dense<0.000000e+00> : vector<2x8x8xf32>
    %347 = tpu.matmul %345, %346, %cst_114 {dimension_numbers = #tpu.dot_dimension_numbers<[2], [2], [1], [1], [0, 0, 0, 1, 1, 1], [0], [0]>} : vector<2x8x8xf32>, vector<2x8x8xf32>, vector<2x8x8xf32> -> vector<2x8x8xf32>
    "tpu.trace_stop"() : () -> ()
    %cst_115 = arith.constant 0.353553385 : f32
    %348 = vector.broadcast %cst_115 : f32 to vector<2x8x8xf32>
    %349 = arith.mulf %347, %348 : vector<2x8x8xf32>
    %350 = vector.shape_cast %291 : vector<8x8xf32> to vector<1x8x8xf32>
    %351 = vector.broadcast %350 : vector<1x8x8xf32> to vector<2x8x8xf32>
    %352 = arith.addf %349, %351 : vector<2x8x8xf32>
    %353 = vector.extract_strided_slice %342 {offsets = [0, 0, 8], sizes = [2, 8, 8], strides = [1, 1, 1]} : vector<2x8x32xf32> to vector<2x8x8xf32>
    %354 = vector.extract_strided_slice %343 {offsets = [0, 0, 8], sizes = [2, 8, 8], strides = [1, 1, 1]} : vector<2x8x32xf32> to vector<2x8x8xf32>
    "tpu.trace_start"() <{level = 10 : i32, message = "bqd,bkd->bqk"}> : () -> ()
    %cst_116 = arith.constant dense<0.000000e+00> : vector<2x8x8xf32>
    %355 = tpu.matmul %353, %354, %cst_116 {dimension_numbers = #tpu.dot_dimension_numbers<[2], [2], [1], [1], [0, 0, 0, 1, 1, 1], [0], [0]>} : vector<2x8x8xf32>, vector<2x8x8xf32>, vector<2x8x8xf32> -> vector<2x8x8xf32>
    "tpu.trace_stop"() : () -> ()
    %cst_117 = arith.constant 0.353553385 : f32
    %356 = vector.broadcast %cst_117 : f32 to vector<2x8x8xf32>
    %357 = arith.mulf %355, %356 : vector<2x8x8xf32>
    %358 = vector.shape_cast %291 : vector<8x8xf32> to vector<1x8x8xf32>
    %359 = vector.broadcast %358 : vector<1x8x8xf32> to vector<2x8x8xf32>
    %360 = arith.addf %357, %359 : vector<2x8x8xf32>
    %361 = vector.extract_strided_slice %342 {offsets = [0, 0, 16], sizes = [2, 8, 8], strides = [1, 1, 1]} : vector<2x8x32xf32> to vector<2x8x8xf32>
    %362 = vector.extract_strided_slice %343 {offsets = [0, 0, 16], sizes = [2, 8, 8], strides = [1, 1, 1]} : vector<2x8x32xf32> to vector<2x8x8xf32>
    "tpu.trace_start"() <{level = 10 : i32, message = "bqd,bkd->bqk"}> : () -> ()
    %cst_118 = arith.constant dense<0.000000e+00> : vector<2x8x8xf32>
    %363 = tpu.matmul %361, %362, %cst_118 {dimension_numbers = #tpu.dot_dimension_numbers<[2], [2], [1], [1], [0, 0, 0, 1, 1, 1], [0], [0]>} : vector<2x8x8xf32>, vector<2x8x8xf32>, vector<2x8x8xf32> -> vector<2x8x8xf32>
    "tpu.trace_stop"() : () -> ()
    %cst_119 = arith.constant 0.353553385 : f32
    %364 = vector.broadcast %cst_119 : f32 to vector<2x8x8xf32>
    %365 = arith.mulf %363, %364 : vector<2x8x8xf32>
    %366 = vector.shape_cast %291 : vector<8x8xf32> to vector<1x8x8xf32>
    %367 = vector.broadcast %366 : vector<1x8x8xf32> to vector<2x8x8xf32>
    %368 = arith.addf %365, %367 : vector<2x8x8xf32>
    %369 = vector.extract_strided_slice %342 {offsets = [0, 0, 24], sizes = [2, 8, 8], strides = [1, 1, 1]} : vector<2x8x32xf32> to vector<2x8x8xf32>
    %370 = vector.extract_strided_slice %343 {offsets = [0, 0, 24], sizes = [2, 8, 8], strides = [1, 1, 1]} : vector<2x8x32xf32> to vector<2x8x8xf32>
    "tpu.trace_start"() <{level = 10 : i32, message = "bqd,bkd->bqk"}> : () -> ()
    %cst_120 = arith.constant dense<0.000000e+00> : vector<2x8x8xf32>
    %371 = tpu.matmul %369, %370, %cst_120 {dimension_numbers = #tpu.dot_dimension_numbers<[2], [2], [1], [1], [0, 0, 0, 1, 1, 1], [0], [0]>} : vector<2x8x8xf32>, vector<2x8x8xf32>, vector<2x8x8xf32> -> vector<2x8x8xf32>
    "tpu.trace_stop"() : () -> ()
    %cst_121 = arith.constant 0.353553385 : f32
    %372 = vector.broadcast %cst_121 : f32 to vector<2x8x8xf32>
    %373 = arith.mulf %371, %372 : vector<2x8x8xf32>
    %374 = vector.shape_cast %291 : vector<8x8xf32> to vector<1x8x8xf32>
    %375 = vector.broadcast %374 : vector<1x8x8xf32> to vector<2x8x8xf32>
    %376 = arith.addf %373, %375 : vector<2x8x8xf32>
    %377 = tpu.concatenate %352, %360, %368, %376 in 1 : vector<2x8x8xf32>, vector<2x8x8xf32>, vector<2x8x8xf32>, vector<2x8x8xf32> -> vector<2x32x8xf32>
    %cst_122 = arith.constant dense<0xFF800000> : vector<2x32xf32>
    %378 = vector.multi_reduction <maximumf>, %377, %cst_122 [2] : vector<2x32x8xf32> to vector<2x32xf32>
    %379 = vector.shape_cast %378 : vector<2x32xf32> to vector<2x32x1xf32>
    %380 = vector.broadcast %379 : vector<2x32x1xf32> to vector<2x32x8xf32>
    %381 = arith.subf %377, %380 : vector<2x32x8xf32>
    %382 = math.exp %381 : vector<2x32x8xf32>
    %cst_123 = arith.constant dense<0.000000e+00> : vector<2x32xf32>
    %383 = vector.multi_reduction <add>, %382, %cst_123 [2] : vector<2x32x8xf32> to vector<2x32xf32>
    %384 = vector.shape_cast %383 : vector<2x32xf32> to vector<2x32x1xf32>
    %385 = tpu.reciprocal %384 {approx = true} : vector<2x32x1xf32> -> vector<2x32x1xf32>
    %386 = vector.broadcast %385 : vector<2x32x1xf32> to vector<2x32x8xf32>
    %387 = arith.mulf %382, %386 : vector<2x32x8xf32>
    %388 = vector.extract_strided_slice %387 {offsets = [0, 0, 0], sizes = [2, 8, 8], strides = [1, 1, 1]} : vector<2x32x8xf32> to vector<2x8x8xf32>
    %389 = vector.extract_strided_slice %344 {offsets = [0, 0, 0], sizes = [2, 8, 8], strides = [1, 1, 1]} : vector<2x8x32xf32> to vector<2x8x8xf32>
    "tpu.trace_start"() <{level = 10 : i32, message = "bqk,bkd->bqd"}> : () -> ()
    %cst_124 = arith.constant dense<0.000000e+00> : vector<2x8x8xf32>
    %390 = tpu.matmul %388, %389, %cst_124 {dimension_numbers = #tpu.dot_dimension_numbers<[2], [1], [1], [2], [0, 0, 0, 1, 1, 2], [0], [0]>} : vector<2x8x8xf32>, vector<2x8x8xf32>, vector<2x8x8xf32> -> vector<2x8x8xf32>
    "tpu.trace_stop"() : () -> ()
    %391 = vector.extract_strided_slice %387 {offsets = [0, 8, 0], sizes = [2, 8, 8], strides = [1, 1, 1]} : vector<2x32x8xf32> to vector<2x8x8xf32>
    %392 = vector.extract_strided_slice %344 {offsets = [0, 0, 8], sizes = [2, 8, 8], strides = [1, 1, 1]} : vector<2x8x32xf32> to vector<2x8x8xf32>
    "tpu.trace_start"() <{level = 10 : i32, message = "bqk,bkd->bqd"}> : () -> ()
    %cst_125 = arith.constant dense<0.000000e+00> : vector<2x8x8xf32>
    %393 = tpu.matmul %391, %392, %cst_125 {dimension_numbers = #tpu.dot_dimension_numbers<[2], [1], [1], [2], [0, 0, 0, 1, 1, 2], [0], [0]>} : vector<2x8x8xf32>, vector<2x8x8xf32>, vector<2x8x8xf32> -> vector<2x8x8xf32>
    "tpu.trace_stop"() : () -> ()
    %394 = vector.extract_strided_slice %387 {offsets = [0, 16, 0], sizes = [2, 8, 8], strides = [1, 1, 1]} : vector<2x32x8xf32> to vector<2x8x8xf32>
    %395 = vector.extract_strided_slice %344 {offsets = [0, 0, 16], sizes = [2, 8, 8], strides = [1, 1, 1]} : vector<2x8x32xf32> to vector<2x8x8xf32>
    "tpu.trace_start"() <{level = 10 : i32, message = "bqk,bkd->bqd"}> : () -> ()
    %cst_126 = arith.constant dense<0.000000e+00> : vector<2x8x8xf32>
    %396 = tpu.matmul %394, %395, %cst_126 {dimension_numbers = #tpu.dot_dimension_numbers<[2], [1], [1], [2], [0, 0, 0, 1, 1, 2], [0], [0]>} : vector<2x8x8xf32>, vector<2x8x8xf32>, vector<2x8x8xf32> -> vector<2x8x8xf32>
    "tpu.trace_stop"() : () -> ()
    %397 = vector.extract_strided_slice %387 {offsets = [0, 24, 0], sizes = [2, 8, 8], strides = [1, 1, 1]} : vector<2x32x8xf32> to vector<2x8x8xf32>
    %398 = vector.extract_strided_slice %344 {offsets = [0, 0, 24], sizes = [2, 8, 8], strides = [1, 1, 1]} : vector<2x8x32xf32> to vector<2x8x8xf32>
    "tpu.trace_start"() <{level = 10 : i32, message = "bqk,bkd->bqd"}> : () -> ()
    %cst_127 = arith.constant dense<0.000000e+00> : vector<2x8x8xf32>
    %399 = tpu.matmul %397, %398, %cst_127 {dimension_numbers = #tpu.dot_dimension_numbers<[2], [1], [1], [2], [0, 0, 0, 1, 1, 2], [0], [0]>} : vector<2x8x8xf32>, vector<2x8x8xf32>, vector<2x8x8xf32> -> vector<2x8x8xf32>
    "tpu.trace_stop"() : () -> ()
    %400 = tpu.concatenate %390, %393, %396, %399 in 2 : vector<2x8x8xf32>, vector<2x8x8xf32>, vector<2x8x8xf32>, vector<2x8x8xf32> -> vector<2x8x32xf32>
    %401 = vector.shape_cast %400 : vector<2x8x32xf32> to vector<16x32xf32>
    %cst_128 = arith.constant dense<0.000000e+00> : vector<16x32xf32>
    %402 = tpu.matmul %401, %334, %cst_128 {dimension_numbers = #tpu.dot_dimension_numbers<[1], [0], [0], [1], [0, 0, 1, 1], [], []>} : vector<16x32xf32>, vector<32x32xf32>, vector<16x32xf32> -> vector<16x32xf32>
    %403 = vector.broadcast %335 : vector<1x32xf32> to vector<16x32xf32>
    %404 = arith.addf %402, %403 : vector<16x32xf32>
    %405 = arith.addf %307, %404 : vector<16x32xf32>
    %c954 = arith.constant 954 : index
    %c0_129 = arith.constant 0 : index
    %406 = vector.load %arg2[%c954, %c0_129] : memref<976x128xf32, #tpu.memory_space<vmem>>, vector<1x32xf32>
    %c955 = arith.constant 955 : index
    %c0_130 = arith.constant 0 : index
    %407 = vector.load %arg2[%c955, %c0_130] : memref<976x128xf32, #tpu.memory_space<vmem>>, vector<1x32xf32>
    %cst_131 = arith.constant dense<0.000000e+00> : vector<16xf32>
    %408 = vector.multi_reduction <add>, %405, %cst_131 [1] : vector<16x32xf32> to vector<16xf32>
    %409 = vector.shape_cast %408 : vector<16xf32> to vector<16x1xf32>
    %cst_132 = arith.constant 3.200000e+01 : f32
    %410 = vector.broadcast %cst_132 : f32 to vector<16x1xf32>
    %411 = arith.divf %409, %410 : vector<16x1xf32>
    %412 = vector.broadcast %411 : vector<16x1xf32> to vector<16x32xf32>
    %413 = arith.subf %405, %412 : vector<16x32xf32>
    %414 = arith.mulf %413, %413 : vector<16x32xf32>
    %cst_133 = arith.constant dense<0.000000e+00> : vector<16xf32>
    %415 = vector.multi_reduction <add>, %414, %cst_133 [1] : vector<16x32xf32> to vector<16xf32>
    %416 = vector.shape_cast %415 : vector<16xf32> to vector<16x1xf32>
    %cst_134 = arith.constant 3.100000e+01 : f32
    %417 = vector.broadcast %cst_134 : f32 to vector<16x1xf32>
    %418 = arith.divf %416, %417 : vector<16x1xf32>
    %419 = math.sqrt %418 : vector<16x1xf32>
    %420 = vector.broadcast %411 : vector<16x1xf32> to vector<16x32xf32>
    %421 = arith.subf %405, %420 : vector<16x32xf32>
    %422 = vector.broadcast %406 : vector<1x32xf32> to vector<16x32xf32>
    %423 = arith.mulf %422, %421 : vector<16x32xf32>
    %cst_135 = arith.constant 9.99999997E-7 : f32
    %424 = vector.broadcast %cst_135 : f32 to vector<16x1xf32>
    %425 = arith.addf %419, %424 : vector<16x1xf32>
    %426 = vector.broadcast %425 : vector<16x1xf32> to vector<16x32xf32>
    %427 = arith.divf %423, %426 : vector<16x32xf32>
    %428 = vector.broadcast %407 : vector<1x32xf32> to vector<16x32xf32>
    %429 = arith.addf %427, %428 : vector<16x32xf32>
    %c384 = arith.constant 384 : index
    %c0_136 = arith.constant 0 : index
    %430 = vector.load %arg2[%c384, %c0_136] : memref<976x128xf32, #tpu.memory_space<vmem>>, vector<32x96xf32>
    %c948 = arith.constant 948 : index
    %c0_137 = arith.constant 0 : index
    %431 = vector.load %arg2[%c948, %c0_137] : memref<976x128xf32, #tpu.memory_space<vmem>>, vector<1x96xf32>
    %c416 = arith.constant 416 : index
    %c0_138 = arith.constant 0 : index
    %432 = vector.load %arg2[%c416, %c0_138] : memref<976x128xf32, #tpu.memory_space<vmem>>, vector<32x32xf32>
    %c949 = arith.constant 949 : index
    %c0_139 = arith.constant 0 : index
    %433 = vector.load %arg2[%c949, %c0_139] : memref<976x128xf32, #tpu.memory_space<vmem>>, vector<1x32xf32>
    %434 = vector.extract_strided_slice %430 {offsets = [0, 0], sizes = [32, 32], strides = [1, 1]} : vector<32x96xf32> to vector<32x32xf32>
    %cst_140 = arith.constant dense<0.000000e+00> : vector<16x32xf32>
    %435 = tpu.matmul %429, %434, %cst_140 {dimension_numbers = #tpu.dot_dimension_numbers<[1], [0], [0], [1], [0, 0, 1, 1], [], []>} : vector<16x32xf32>, vector<32x32xf32>, vector<16x32xf32> -> vector<16x32xf32>
    %436 = vector.extract_strided_slice %431 {offsets = [0, 0], sizes = [1, 32], strides = [1, 1]} : vector<1x96xf32> to vector<1x32xf32>
    %437 = vector.broadcast %436 : vector<1x32xf32> to vector<16x32xf32>
    %438 = arith.addf %435, %437 : vector<16x32xf32>
    %439 = vector.extract_strided_slice %430 {offsets = [0, 32], sizes = [32, 64], strides = [1, 1]} : vector<32x96xf32> to vector<32x64xf32>
    %cst_141 = arith.constant dense<0.000000e+00> : vector<16x64xf32>
    %440 = tpu.matmul %285, %439, %cst_141 {dimension_numbers = #tpu.dot_dimension_numbers<[1], [0], [0], [1], [0, 0, 1, 1], [], []>} : vector<16x32xf32>, vector<32x64xf32>, vector<16x64xf32> -> vector<16x64xf32>
    %441 = vector.extract_strided_slice %431 {offsets = [0, 32], sizes = [1, 64], strides = [1, 1]} : vector<1x96xf32> to vector<1x64xf32>
    %442 = vector.broadcast %441 : vector<1x64xf32> to vector<16x64xf32>
    %443 = arith.addf %440, %442 : vector<16x64xf32>
    %444 = vector.extract_strided_slice %443 {offsets = [0, 0], sizes = [16, 32], strides = [1, 1]} : vector<16x64xf32> to vector<16x32xf32>
    %445 = vector.extract_strided_slice %443 {offsets = [0, 32], sizes = [16, 32], strides = [1, 1]} : vector<16x64xf32> to vector<16x32xf32>
    %446 = vector.shape_cast %438 : vector<16x32xf32> to vector<2x8x32xf32>
    %447 = vector.shape_cast %444 : vector<16x32xf32> to vector<2x8x32xf32>
    %448 = vector.shape_cast %445 : vector<16x32xf32> to vector<2x8x32xf32>
    %449 = vector.extract_strided_slice %446 {offsets = [0, 0, 0], sizes = [2, 8, 8], strides = [1, 1, 1]} : vector<2x8x32xf32> to vector<2x8x8xf32>
    %450 = vector.extract_strided_slice %447 {offsets = [0, 0, 0], sizes = [2, 8, 8], strides = [1, 1, 1]} : vector<2x8x32xf32> to vector<2x8x8xf32>
    "tpu.trace_start"() <{level = 10 : i32, message = "bqd,bkd->bqk"}> : () -> ()
    %cst_142 = arith.constant dense<0.000000e+00> : vector<2x8x8xf32>
    %451 = tpu.matmul %449, %450, %cst_142 {dimension_numbers = #tpu.dot_dimension_numbers<[2], [2], [1], [1], [0, 0, 0, 1, 1, 1], [0], [0]>} : vector<2x8x8xf32>, vector<2x8x8xf32>, vector<2x8x8xf32> -> vector<2x8x8xf32>
    "tpu.trace_stop"() : () -> ()
    %cst_143 = arith.constant 0.353553385 : f32
    %452 = vector.broadcast %cst_143 : f32 to vector<2x8x8xf32>
    %453 = arith.mulf %451, %452 : vector<2x8x8xf32>
    %454 = vector.extract_strided_slice %446 {offsets = [0, 0, 8], sizes = [2, 8, 8], strides = [1, 1, 1]} : vector<2x8x32xf32> to vector<2x8x8xf32>
    %455 = vector.extract_strided_slice %447 {offsets = [0, 0, 8], sizes = [2, 8, 8], strides = [1, 1, 1]} : vector<2x8x32xf32> to vector<2x8x8xf32>
    "tpu.trace_start"() <{level = 10 : i32, message = "bqd,bkd->bqk"}> : () -> ()
    %cst_144 = arith.constant dense<0.000000e+00> : vector<2x8x8xf32>
    %456 = tpu.matmul %454, %455, %cst_144 {dimension_numbers = #tpu.dot_dimension_numbers<[2], [2], [1], [1], [0, 0, 0, 1, 1, 1], [0], [0]>} : vector<2x8x8xf32>, vector<2x8x8xf32>, vector<2x8x8xf32> -> vector<2x8x8xf32>
    "tpu.trace_stop"() : () -> ()
    %cst_145 = arith.constant 0.353553385 : f32
    %457 = vector.broadcast %cst_145 : f32 to vector<2x8x8xf32>
    %458 = arith.mulf %456, %457 : vector<2x8x8xf32>
    %459 = vector.extract_strided_slice %446 {offsets = [0, 0, 16], sizes = [2, 8, 8], strides = [1, 1, 1]} : vector<2x8x32xf32> to vector<2x8x8xf32>
    %460 = vector.extract_strided_slice %447 {offsets = [0, 0, 16], sizes = [2, 8, 8], strides = [1, 1, 1]} : vector<2x8x32xf32> to vector<2x8x8xf32>
    "tpu.trace_start"() <{level = 10 : i32, message = "bqd,bkd->bqk"}> : () -> ()
    %cst_146 = arith.constant dense<0.000000e+00> : vector<2x8x8xf32>
    %461 = tpu.matmul %459, %460, %cst_146 {dimension_numbers = #tpu.dot_dimension_numbers<[2], [2], [1], [1], [0, 0, 0, 1, 1, 1], [0], [0]>} : vector<2x8x8xf32>, vector<2x8x8xf32>, vector<2x8x8xf32> -> vector<2x8x8xf32>
    "tpu.trace_stop"() : () -> ()
    %cst_147 = arith.constant 0.353553385 : f32
    %462 = vector.broadcast %cst_147 : f32 to vector<2x8x8xf32>
    %463 = arith.mulf %461, %462 : vector<2x8x8xf32>
    %464 = vector.extract_strided_slice %446 {offsets = [0, 0, 24], sizes = [2, 8, 8], strides = [1, 1, 1]} : vector<2x8x32xf32> to vector<2x8x8xf32>
    %465 = vector.extract_strided_slice %447 {offsets = [0, 0, 24], sizes = [2, 8, 8], strides = [1, 1, 1]} : vector<2x8x32xf32> to vector<2x8x8xf32>
    "tpu.trace_start"() <{level = 10 : i32, message = "bqd,bkd->bqk"}> : () -> ()
    %cst_148 = arith.constant dense<0.000000e+00> : vector<2x8x8xf32>
    %466 = tpu.matmul %464, %465, %cst_148 {dimension_numbers = #tpu.dot_dimension_numbers<[2], [2], [1], [1], [0, 0, 0, 1, 1, 1], [0], [0]>} : vector<2x8x8xf32>, vector<2x8x8xf32>, vector<2x8x8xf32> -> vector<2x8x8xf32>
    "tpu.trace_stop"() : () -> ()
    %cst_149 = arith.constant 0.353553385 : f32
    %467 = vector.broadcast %cst_149 : f32 to vector<2x8x8xf32>
    %468 = arith.mulf %466, %467 : vector<2x8x8xf32>
    %469 = tpu.concatenate %453, %458, %463, %468 in 1 : vector<2x8x8xf32>, vector<2x8x8xf32>, vector<2x8x8xf32>, vector<2x8x8xf32> -> vector<2x32x8xf32>
    %cst_150 = arith.constant dense<0xFF800000> : vector<2x32xf32>
    %470 = vector.multi_reduction <maximumf>, %469, %cst_150 [2] : vector<2x32x8xf32> to vector<2x32xf32>
    %471 = vector.shape_cast %470 : vector<2x32xf32> to vector<2x32x1xf32>
    %472 = vector.broadcast %471 : vector<2x32x1xf32> to vector<2x32x8xf32>
    %473 = arith.subf %469, %472 : vector<2x32x8xf32>
    %474 = math.exp %473 : vector<2x32x8xf32>
    %cst_151 = arith.constant dense<0.000000e+00> : vector<2x32xf32>
    %475 = vector.multi_reduction <add>, %474, %cst_151 [2] : vector<2x32x8xf32> to vector<2x32xf32>
    %476 = vector.shape_cast %475 : vector<2x32xf32> to vector<2x32x1xf32>
    %477 = tpu.reciprocal %476 {approx = true} : vector<2x32x1xf32> -> vector<2x32x1xf32>
    %478 = vector.broadcast %477 : vector<2x32x1xf32> to vector<2x32x8xf32>
    %479 = arith.mulf %474, %478 : vector<2x32x8xf32>
    %480 = vector.extract_strided_slice %479 {offsets = [0, 0, 0], sizes = [2, 8, 8], strides = [1, 1, 1]} : vector<2x32x8xf32> to vector<2x8x8xf32>
    %481 = vector.extract_strided_slice %448 {offsets = [0, 0, 0], sizes = [2, 8, 8], strides = [1, 1, 1]} : vector<2x8x32xf32> to vector<2x8x8xf32>
    "tpu.trace_start"() <{level = 10 : i32, message = "bqk,bkd->bqd"}> : () -> ()
    %cst_152 = arith.constant dense<0.000000e+00> : vector<2x8x8xf32>
    %482 = tpu.matmul %480, %481, %cst_152 {dimension_numbers = #tpu.dot_dimension_numbers<[2], [1], [1], [2], [0, 0, 0, 1, 1, 2], [0], [0]>} : vector<2x8x8xf32>, vector<2x8x8xf32>, vector<2x8x8xf32> -> vector<2x8x8xf32>
    "tpu.trace_stop"() : () -> ()
    %483 = vector.extract_strided_slice %479 {offsets = [0, 8, 0], sizes = [2, 8, 8], strides = [1, 1, 1]} : vector<2x32x8xf32> to vector<2x8x8xf32>
    %484 = vector.extract_strided_slice %448 {offsets = [0, 0, 8], sizes = [2, 8, 8], strides = [1, 1, 1]} : vector<2x8x32xf32> to vector<2x8x8xf32>
    "tpu.trace_start"() <{level = 10 : i32, message = "bqk,bkd->bqd"}> : () -> ()
    %cst_153 = arith.constant dense<0.000000e+00> : vector<2x8x8xf32>
    %485 = tpu.matmul %483, %484, %cst_153 {dimension_numbers = #tpu.dot_dimension_numbers<[2], [1], [1], [2], [0, 0, 0, 1, 1, 2], [0], [0]>} : vector<2x8x8xf32>, vector<2x8x8xf32>, vector<2x8x8xf32> -> vector<2x8x8xf32>
    "tpu.trace_stop"() : () -> ()
    %486 = vector.extract_strided_slice %479 {offsets = [0, 16, 0], sizes = [2, 8, 8], strides = [1, 1, 1]} : vector<2x32x8xf32> to vector<2x8x8xf32>
    %487 = vector.extract_strided_slice %448 {offsets = [0, 0, 16], sizes = [2, 8, 8], strides = [1, 1, 1]} : vector<2x8x32xf32> to vector<2x8x8xf32>
    "tpu.trace_start"() <{level = 10 : i32, message = "bqk,bkd->bqd"}> : () -> ()
    %cst_154 = arith.constant dense<0.000000e+00> : vector<2x8x8xf32>
    %488 = tpu.matmul %486, %487, %cst_154 {dimension_numbers = #tpu.dot_dimension_numbers<[2], [1], [1], [2], [0, 0, 0, 1, 1, 2], [0], [0]>} : vector<2x8x8xf32>, vector<2x8x8xf32>, vector<2x8x8xf32> -> vector<2x8x8xf32>
    "tpu.trace_stop"() : () -> ()
    %489 = vector.extract_strided_slice %479 {offsets = [0, 24, 0], sizes = [2, 8, 8], strides = [1, 1, 1]} : vector<2x32x8xf32> to vector<2x8x8xf32>
    %490 = vector.extract_strided_slice %448 {offsets = [0, 0, 24], sizes = [2, 8, 8], strides = [1, 1, 1]} : vector<2x8x32xf32> to vector<2x8x8xf32>
    "tpu.trace_start"() <{level = 10 : i32, message = "bqk,bkd->bqd"}> : () -> ()
    %cst_155 = arith.constant dense<0.000000e+00> : vector<2x8x8xf32>
    %491 = tpu.matmul %489, %490, %cst_155 {dimension_numbers = #tpu.dot_dimension_numbers<[2], [1], [1], [2], [0, 0, 0, 1, 1, 2], [0], [0]>} : vector<2x8x8xf32>, vector<2x8x8xf32>, vector<2x8x8xf32> -> vector<2x8x8xf32>
    "tpu.trace_stop"() : () -> ()
    %492 = tpu.concatenate %482, %485, %488, %491 in 2 : vector<2x8x8xf32>, vector<2x8x8xf32>, vector<2x8x8xf32>, vector<2x8x8xf32> -> vector<2x8x32xf32>
    %493 = vector.shape_cast %492 : vector<2x8x32xf32> to vector<16x32xf32>
    %cst_156 = arith.constant dense<0.000000e+00> : vector<16x32xf32>
    %494 = tpu.matmul %493, %432, %cst_156 {dimension_numbers = #tpu.dot_dimension_numbers<[1], [0], [0], [1], [0, 0, 1, 1], [], []>} : vector<16x32xf32>, vector<32x32xf32>, vector<16x32xf32> -> vector<16x32xf32>
    %495 = vector.broadcast %433 : vector<1x32xf32> to vector<16x32xf32>
    %496 = arith.addf %494, %495 : vector<16x32xf32>
    %497 = arith.addf %405, %496 : vector<16x32xf32>
    %c956 = arith.constant 956 : index
    %c0_157 = arith.constant 0 : index
    %498 = vector.load %arg2[%c956, %c0_157] : memref<976x128xf32, #tpu.memory_space<vmem>>, vector<1x32xf32>
    %c957 = arith.constant 957 : index
    %c0_158 = arith.constant 0 : index
    %499 = vector.load %arg2[%c957, %c0_158] : memref<976x128xf32, #tpu.memory_space<vmem>>, vector<1x32xf32>
    %cst_159 = arith.constant dense<0.000000e+00> : vector<16xf32>
    %500 = vector.multi_reduction <add>, %497, %cst_159 [1] : vector<16x32xf32> to vector<16xf32>
    %501 = vector.shape_cast %500 : vector<16xf32> to vector<16x1xf32>
    %cst_160 = arith.constant 3.200000e+01 : f32
    %502 = vector.broadcast %cst_160 : f32 to vector<16x1xf32>
    %503 = arith.divf %501, %502 : vector<16x1xf32>
    %504 = vector.broadcast %503 : vector<16x1xf32> to vector<16x32xf32>
    %505 = arith.subf %497, %504 : vector<16x32xf32>
    %506 = arith.mulf %505, %505 : vector<16x32xf32>
    %cst_161 = arith.constant dense<0.000000e+00> : vector<16xf32>
    %507 = vector.multi_reduction <add>, %506, %cst_161 [1] : vector<16x32xf32> to vector<16xf32>
    %508 = vector.shape_cast %507 : vector<16xf32> to vector<16x1xf32>
    %cst_162 = arith.constant 3.100000e+01 : f32
    %509 = vector.broadcast %cst_162 : f32 to vector<16x1xf32>
    %510 = arith.divf %508, %509 : vector<16x1xf32>
    %511 = math.sqrt %510 : vector<16x1xf32>
    %512 = vector.broadcast %503 : vector<16x1xf32> to vector<16x32xf32>
    %513 = arith.subf %497, %512 : vector<16x32xf32>
    %514 = vector.broadcast %498 : vector<1x32xf32> to vector<16x32xf32>
    %515 = arith.mulf %514, %513 : vector<16x32xf32>
    %cst_163 = arith.constant 9.99999997E-7 : f32
    %516 = vector.broadcast %cst_163 : f32 to vector<16x1xf32>
    %517 = arith.addf %511, %516 : vector<16x1xf32>
    %518 = vector.broadcast %517 : vector<16x1xf32> to vector<16x32xf32>
    %519 = arith.divf %515, %518 : vector<16x32xf32>
    %520 = vector.broadcast %499 : vector<1x32xf32> to vector<16x32xf32>
    %521 = arith.addf %519, %520 : vector<16x32xf32>
    %c448 = arith.constant 448 : index
    %c0_164 = arith.constant 0 : index
    %522 = vector.load %arg2[%c448, %c0_164] : memref<976x128xf32, #tpu.memory_space<vmem>>, vector<32x64xf32>
    %c950 = arith.constant 950 : index
    %c0_165 = arith.constant 0 : index
    %523 = vector.load %arg2[%c950, %c0_165] : memref<976x128xf32, #tpu.memory_space<vmem>>, vector<1x64xf32>
    %c480 = arith.constant 480 : index
    %c0_166 = arith.constant 0 : index
    %524 = vector.load %arg2[%c480, %c0_166] : memref<976x128xf32, #tpu.memory_space<vmem>>, vector<64x32xf32>
    %c951 = arith.constant 951 : index
    %c0_167 = arith.constant 0 : index
    %525 = vector.load %arg2[%c951, %c0_167] : memref<976x128xf32, #tpu.memory_space<vmem>>, vector<1x32xf32>
    %cst_168 = arith.constant dense<0.000000e+00> : vector<16x64xf32>
    %526 = tpu.matmul %521, %522, %cst_168 {dimension_numbers = #tpu.dot_dimension_numbers<[1], [0], [0], [1], [0, 0, 1, 1], [], []>} : vector<16x32xf32>, vector<32x64xf32>, vector<16x64xf32> -> vector<16x64xf32>
    %527 = vector.broadcast %523 : vector<1x64xf32> to vector<16x64xf32>
    %528 = arith.addf %526, %527 : vector<16x64xf32>
    %cst_169 = arith.constant 0.000000e+00 : f32
    %529 = vector.broadcast %cst_169 : f32 to vector<16x64xf32>
    %530 = arith.maximumf %528, %529 : vector<16x64xf32>
    %cst_170 = arith.constant dense<0.000000e+00> : vector<16x32xf32>
    %531 = tpu.matmul %530, %524, %cst_170 {dimension_numbers = #tpu.dot_dimension_numbers<[1], [0], [0], [1], [0, 0, 1, 1], [], []>} : vector<16x64xf32>, vector<64x32xf32>, vector<16x32xf32> -> vector<16x32xf32>
    %532 = vector.broadcast %525 : vector<1x32xf32> to vector<16x32xf32>
    %533 = arith.addf %531, %532 : vector<16x32xf32>
    %534 = arith.addf %497, %533 : vector<16x32xf32>
    %c964 = arith.constant 964 : index
    %c0_171 = arith.constant 0 : index
    %535 = vector.load %arg2[%c964, %c0_171] : memref<976x128xf32, #tpu.memory_space<vmem>>, vector<1x32xf32>
    %c965 = arith.constant 965 : index
    %c0_172 = arith.constant 0 : index
    %536 = vector.load %arg2[%c965, %c0_172] : memref<976x128xf32, #tpu.memory_space<vmem>>, vector<1x32xf32>
    %cst_173 = arith.constant dense<0.000000e+00> : vector<16xf32>
    %537 = vector.multi_reduction <add>, %534, %cst_173 [1] : vector<16x32xf32> to vector<16xf32>
    %538 = vector.shape_cast %537 : vector<16xf32> to vector<16x1xf32>
    %cst_174 = arith.constant 3.200000e+01 : f32
    %539 = vector.broadcast %cst_174 : f32 to vector<16x1xf32>
    %540 = arith.divf %538, %539 : vector<16x1xf32>
    %541 = vector.broadcast %540 : vector<16x1xf32> to vector<16x32xf32>
    %542 = arith.subf %534, %541 : vector<16x32xf32>
    %543 = arith.mulf %542, %542 : vector<16x32xf32>
    %cst_175 = arith.constant dense<0.000000e+00> : vector<16xf32>
    %544 = vector.multi_reduction <add>, %543, %cst_175 [1] : vector<16x32xf32> to vector<16xf32>
    %545 = vector.shape_cast %544 : vector<16xf32> to vector<16x1xf32>
    %cst_176 = arith.constant 3.100000e+01 : f32
    %546 = vector.broadcast %cst_176 : f32 to vector<16x1xf32>
    %547 = arith.divf %545, %546 : vector<16x1xf32>
    %548 = math.sqrt %547 : vector<16x1xf32>
    %549 = vector.broadcast %540 : vector<16x1xf32> to vector<16x32xf32>
    %550 = arith.subf %534, %549 : vector<16x32xf32>
    %551 = vector.broadcast %535 : vector<1x32xf32> to vector<16x32xf32>
    %552 = arith.mulf %551, %550 : vector<16x32xf32>
    %cst_177 = arith.constant 9.99999997E-7 : f32
    %553 = vector.broadcast %cst_177 : f32 to vector<16x1xf32>
    %554 = arith.addf %548, %553 : vector<16x1xf32>
    %555 = vector.broadcast %554 : vector<16x1xf32> to vector<16x32xf32>
    %556 = arith.divf %552, %555 : vector<16x32xf32>
    %557 = vector.broadcast %536 : vector<1x32xf32> to vector<16x32xf32>
    %558 = arith.addf %556, %557 : vector<16x32xf32>
    %c544 = arith.constant 544 : index
    %c0_178 = arith.constant 0 : index
    %559 = vector.load %arg2[%c544, %c0_178] : memref<976x128xf32, #tpu.memory_space<vmem>>, vector<32x96xf32>
    %c958 = arith.constant 958 : index
    %c0_179 = arith.constant 0 : index
    %560 = vector.load %arg2[%c958, %c0_179] : memref<976x128xf32, #tpu.memory_space<vmem>>, vector<1x96xf32>
    %c576 = arith.constant 576 : index
    %c0_180 = arith.constant 0 : index
    %561 = vector.load %arg2[%c576, %c0_180] : memref<976x128xf32, #tpu.memory_space<vmem>>, vector<32x32xf32>
    %c959 = arith.constant 959 : index
    %c0_181 = arith.constant 0 : index
    %562 = vector.load %arg2[%c959, %c0_181] : memref<976x128xf32, #tpu.memory_space<vmem>>, vector<1x32xf32>
    %cst_182 = arith.constant dense<0.000000e+00> : vector<16x96xf32>
    %563 = tpu.matmul %558, %559, %cst_182 {dimension_numbers = #tpu.dot_dimension_numbers<[1], [0], [0], [1], [0, 0, 1, 1], [], []>} : vector<16x32xf32>, vector<32x96xf32>, vector<16x96xf32> -> vector<16x96xf32>
    %564 = vector.broadcast %560 : vector<1x96xf32> to vector<16x96xf32>
    %565 = arith.addf %563, %564 : vector<16x96xf32>
    %566 = vector.extract_strided_slice %565 {offsets = [0, 0], sizes = [16, 32], strides = [1, 1]} : vector<16x96xf32> to vector<16x32xf32>
    %567 = vector.extract_strided_slice %565 {offsets = [0, 32], sizes = [16, 32], strides = [1, 1]} : vector<16x96xf32> to vector<16x32xf32>
    %568 = vector.extract_strided_slice %565 {offsets = [0, 64], sizes = [16, 32], strides = [1, 1]} : vector<16x96xf32> to vector<16x32xf32>
    %569 = vector.shape_cast %566 : vector<16x32xf32> to vector<2x8x32xf32>
    %570 = vector.shape_cast %567 : vector<16x32xf32> to vector<2x8x32xf32>
    %571 = vector.shape_cast %568 : vector<16x32xf32> to vector<2x8x32xf32>
    %572 = vector.extract_strided_slice %569 {offsets = [0, 0, 0], sizes = [2, 8, 8], strides = [1, 1, 1]} : vector<2x8x32xf32> to vector<2x8x8xf32>
    %573 = vector.extract_strided_slice %570 {offsets = [0, 0, 0], sizes = [2, 8, 8], strides = [1, 1, 1]} : vector<2x8x32xf32> to vector<2x8x8xf32>
    "tpu.trace_start"() <{level = 10 : i32, message = "bqd,bkd->bqk"}> : () -> ()
    %cst_183 = arith.constant dense<0.000000e+00> : vector<2x8x8xf32>
    %574 = tpu.matmul %572, %573, %cst_183 {dimension_numbers = #tpu.dot_dimension_numbers<[2], [2], [1], [1], [0, 0, 0, 1, 1, 1], [0], [0]>} : vector<2x8x8xf32>, vector<2x8x8xf32>, vector<2x8x8xf32> -> vector<2x8x8xf32>
    "tpu.trace_stop"() : () -> ()
    %cst_184 = arith.constant 0.353553385 : f32
    %575 = vector.broadcast %cst_184 : f32 to vector<2x8x8xf32>
    %576 = arith.mulf %574, %575 : vector<2x8x8xf32>
    %577 = vector.shape_cast %291 : vector<8x8xf32> to vector<1x8x8xf32>
    %578 = vector.broadcast %577 : vector<1x8x8xf32> to vector<2x8x8xf32>
    %579 = arith.addf %576, %578 : vector<2x8x8xf32>
    %580 = vector.extract_strided_slice %569 {offsets = [0, 0, 8], sizes = [2, 8, 8], strides = [1, 1, 1]} : vector<2x8x32xf32> to vector<2x8x8xf32>
    %581 = vector.extract_strided_slice %570 {offsets = [0, 0, 8], sizes = [2, 8, 8], strides = [1, 1, 1]} : vector<2x8x32xf32> to vector<2x8x8xf32>
    "tpu.trace_start"() <{level = 10 : i32, message = "bqd,bkd->bqk"}> : () -> ()
    %cst_185 = arith.constant dense<0.000000e+00> : vector<2x8x8xf32>
    %582 = tpu.matmul %580, %581, %cst_185 {dimension_numbers = #tpu.dot_dimension_numbers<[2], [2], [1], [1], [0, 0, 0, 1, 1, 1], [0], [0]>} : vector<2x8x8xf32>, vector<2x8x8xf32>, vector<2x8x8xf32> -> vector<2x8x8xf32>
    "tpu.trace_stop"() : () -> ()
    %cst_186 = arith.constant 0.353553385 : f32
    %583 = vector.broadcast %cst_186 : f32 to vector<2x8x8xf32>
    %584 = arith.mulf %582, %583 : vector<2x8x8xf32>
    %585 = vector.shape_cast %291 : vector<8x8xf32> to vector<1x8x8xf32>
    %586 = vector.broadcast %585 : vector<1x8x8xf32> to vector<2x8x8xf32>
    %587 = arith.addf %584, %586 : vector<2x8x8xf32>
    %588 = vector.extract_strided_slice %569 {offsets = [0, 0, 16], sizes = [2, 8, 8], strides = [1, 1, 1]} : vector<2x8x32xf32> to vector<2x8x8xf32>
    %589 = vector.extract_strided_slice %570 {offsets = [0, 0, 16], sizes = [2, 8, 8], strides = [1, 1, 1]} : vector<2x8x32xf32> to vector<2x8x8xf32>
    "tpu.trace_start"() <{level = 10 : i32, message = "bqd,bkd->bqk"}> : () -> ()
    %cst_187 = arith.constant dense<0.000000e+00> : vector<2x8x8xf32>
    %590 = tpu.matmul %588, %589, %cst_187 {dimension_numbers = #tpu.dot_dimension_numbers<[2], [2], [1], [1], [0, 0, 0, 1, 1, 1], [0], [0]>} : vector<2x8x8xf32>, vector<2x8x8xf32>, vector<2x8x8xf32> -> vector<2x8x8xf32>
    "tpu.trace_stop"() : () -> ()
    %cst_188 = arith.constant 0.353553385 : f32
    %591 = vector.broadcast %cst_188 : f32 to vector<2x8x8xf32>
    %592 = arith.mulf %590, %591 : vector<2x8x8xf32>
    %593 = vector.shape_cast %291 : vector<8x8xf32> to vector<1x8x8xf32>
    %594 = vector.broadcast %593 : vector<1x8x8xf32> to vector<2x8x8xf32>
    %595 = arith.addf %592, %594 : vector<2x8x8xf32>
    %596 = vector.extract_strided_slice %569 {offsets = [0, 0, 24], sizes = [2, 8, 8], strides = [1, 1, 1]} : vector<2x8x32xf32> to vector<2x8x8xf32>
    %597 = vector.extract_strided_slice %570 {offsets = [0, 0, 24], sizes = [2, 8, 8], strides = [1, 1, 1]} : vector<2x8x32xf32> to vector<2x8x8xf32>
    "tpu.trace_start"() <{level = 10 : i32, message = "bqd,bkd->bqk"}> : () -> ()
    %cst_189 = arith.constant dense<0.000000e+00> : vector<2x8x8xf32>
    %598 = tpu.matmul %596, %597, %cst_189 {dimension_numbers = #tpu.dot_dimension_numbers<[2], [2], [1], [1], [0, 0, 0, 1, 1, 1], [0], [0]>} : vector<2x8x8xf32>, vector<2x8x8xf32>, vector<2x8x8xf32> -> vector<2x8x8xf32>
    "tpu.trace_stop"() : () -> ()
    %cst_190 = arith.constant 0.353553385 : f32
    %599 = vector.broadcast %cst_190 : f32 to vector<2x8x8xf32>
    %600 = arith.mulf %598, %599 : vector<2x8x8xf32>
    %601 = vector.shape_cast %291 : vector<8x8xf32> to vector<1x8x8xf32>
    %602 = vector.broadcast %601 : vector<1x8x8xf32> to vector<2x8x8xf32>
    %603 = arith.addf %600, %602 : vector<2x8x8xf32>
    %604 = tpu.concatenate %579, %587, %595, %603 in 1 : vector<2x8x8xf32>, vector<2x8x8xf32>, vector<2x8x8xf32>, vector<2x8x8xf32> -> vector<2x32x8xf32>
    %cst_191 = arith.constant dense<0xFF800000> : vector<2x32xf32>
    %605 = vector.multi_reduction <maximumf>, %604, %cst_191 [2] : vector<2x32x8xf32> to vector<2x32xf32>
    %606 = vector.shape_cast %605 : vector<2x32xf32> to vector<2x32x1xf32>
    %607 = vector.broadcast %606 : vector<2x32x1xf32> to vector<2x32x8xf32>
    %608 = arith.subf %604, %607 : vector<2x32x8xf32>
    %609 = math.exp %608 : vector<2x32x8xf32>
    %cst_192 = arith.constant dense<0.000000e+00> : vector<2x32xf32>
    %610 = vector.multi_reduction <add>, %609, %cst_192 [2] : vector<2x32x8xf32> to vector<2x32xf32>
    %611 = vector.shape_cast %610 : vector<2x32xf32> to vector<2x32x1xf32>
    %612 = tpu.reciprocal %611 {approx = true} : vector<2x32x1xf32> -> vector<2x32x1xf32>
    %613 = vector.broadcast %612 : vector<2x32x1xf32> to vector<2x32x8xf32>
    %614 = arith.mulf %609, %613 : vector<2x32x8xf32>
    %615 = vector.extract_strided_slice %614 {offsets = [0, 0, 0], sizes = [2, 8, 8], strides = [1, 1, 1]} : vector<2x32x8xf32> to vector<2x8x8xf32>
    %616 = vector.extract_strided_slice %571 {offsets = [0, 0, 0], sizes = [2, 8, 8], strides = [1, 1, 1]} : vector<2x8x32xf32> to vector<2x8x8xf32>
    "tpu.trace_start"() <{level = 10 : i32, message = "bqk,bkd->bqd"}> : () -> ()
    %cst_193 = arith.constant dense<0.000000e+00> : vector<2x8x8xf32>
    %617 = tpu.matmul %615, %616, %cst_193 {dimension_numbers = #tpu.dot_dimension_numbers<[2], [1], [1], [2], [0, 0, 0, 1, 1, 2], [0], [0]>} : vector<2x8x8xf32>, vector<2x8x8xf32>, vector<2x8x8xf32> -> vector<2x8x8xf32>
    "tpu.trace_stop"() : () -> ()
    %618 = vector.extract_strided_slice %614 {offsets = [0, 8, 0], sizes = [2, 8, 8], strides = [1, 1, 1]} : vector<2x32x8xf32> to vector<2x8x8xf32>
    %619 = vector.extract_strided_slice %571 {offsets = [0, 0, 8], sizes = [2, 8, 8], strides = [1, 1, 1]} : vector<2x8x32xf32> to vector<2x8x8xf32>
    "tpu.trace_start"() <{level = 10 : i32, message = "bqk,bkd->bqd"}> : () -> ()
    %cst_194 = arith.constant dense<0.000000e+00> : vector<2x8x8xf32>
    %620 = tpu.matmul %618, %619, %cst_194 {dimension_numbers = #tpu.dot_dimension_numbers<[2], [1], [1], [2], [0, 0, 0, 1, 1, 2], [0], [0]>} : vector<2x8x8xf32>, vector<2x8x8xf32>, vector<2x8x8xf32> -> vector<2x8x8xf32>
    "tpu.trace_stop"() : () -> ()
    %621 = vector.extract_strided_slice %614 {offsets = [0, 16, 0], sizes = [2, 8, 8], strides = [1, 1, 1]} : vector<2x32x8xf32> to vector<2x8x8xf32>
    %622 = vector.extract_strided_slice %571 {offsets = [0, 0, 16], sizes = [2, 8, 8], strides = [1, 1, 1]} : vector<2x8x32xf32> to vector<2x8x8xf32>
    "tpu.trace_start"() <{level = 10 : i32, message = "bqk,bkd->bqd"}> : () -> ()
    %cst_195 = arith.constant dense<0.000000e+00> : vector<2x8x8xf32>
    %623 = tpu.matmul %621, %622, %cst_195 {dimension_numbers = #tpu.dot_dimension_numbers<[2], [1], [1], [2], [0, 0, 0, 1, 1, 2], [0], [0]>} : vector<2x8x8xf32>, vector<2x8x8xf32>, vector<2x8x8xf32> -> vector<2x8x8xf32>
    "tpu.trace_stop"() : () -> ()
    %624 = vector.extract_strided_slice %614 {offsets = [0, 24, 0], sizes = [2, 8, 8], strides = [1, 1, 1]} : vector<2x32x8xf32> to vector<2x8x8xf32>
    %625 = vector.extract_strided_slice %571 {offsets = [0, 0, 24], sizes = [2, 8, 8], strides = [1, 1, 1]} : vector<2x8x32xf32> to vector<2x8x8xf32>
    "tpu.trace_start"() <{level = 10 : i32, message = "bqk,bkd->bqd"}> : () -> ()
    %cst_196 = arith.constant dense<0.000000e+00> : vector<2x8x8xf32>
    %626 = tpu.matmul %624, %625, %cst_196 {dimension_numbers = #tpu.dot_dimension_numbers<[2], [1], [1], [2], [0, 0, 0, 1, 1, 2], [0], [0]>} : vector<2x8x8xf32>, vector<2x8x8xf32>, vector<2x8x8xf32> -> vector<2x8x8xf32>
    "tpu.trace_stop"() : () -> ()
    %627 = tpu.concatenate %617, %620, %623, %626 in 2 : vector<2x8x8xf32>, vector<2x8x8xf32>, vector<2x8x8xf32>, vector<2x8x8xf32> -> vector<2x8x32xf32>
    %628 = vector.shape_cast %627 : vector<2x8x32xf32> to vector<16x32xf32>
    %cst_197 = arith.constant dense<0.000000e+00> : vector<16x32xf32>
    %629 = tpu.matmul %628, %561, %cst_197 {dimension_numbers = #tpu.dot_dimension_numbers<[1], [0], [0], [1], [0, 0, 1, 1], [], []>} : vector<16x32xf32>, vector<32x32xf32>, vector<16x32xf32> -> vector<16x32xf32>
    %630 = vector.broadcast %562 : vector<1x32xf32> to vector<16x32xf32>
    %631 = arith.addf %629, %630 : vector<16x32xf32>
    %632 = arith.addf %534, %631 : vector<16x32xf32>
    %c966 = arith.constant 966 : index
    %c0_198 = arith.constant 0 : index
    %633 = vector.load %arg2[%c966, %c0_198] : memref<976x128xf32, #tpu.memory_space<vmem>>, vector<1x32xf32>
    %c967 = arith.constant 967 : index
    %c0_199 = arith.constant 0 : index
    %634 = vector.load %arg2[%c967, %c0_199] : memref<976x128xf32, #tpu.memory_space<vmem>>, vector<1x32xf32>
    %cst_200 = arith.constant dense<0.000000e+00> : vector<16xf32>
    %635 = vector.multi_reduction <add>, %632, %cst_200 [1] : vector<16x32xf32> to vector<16xf32>
    %636 = vector.shape_cast %635 : vector<16xf32> to vector<16x1xf32>
    %cst_201 = arith.constant 3.200000e+01 : f32
    %637 = vector.broadcast %cst_201 : f32 to vector<16x1xf32>
    %638 = arith.divf %636, %637 : vector<16x1xf32>
    %639 = vector.broadcast %638 : vector<16x1xf32> to vector<16x32xf32>
    %640 = arith.subf %632, %639 : vector<16x32xf32>
    %641 = arith.mulf %640, %640 : vector<16x32xf32>
    %cst_202 = arith.constant dense<0.000000e+00> : vector<16xf32>
    %642 = vector.multi_reduction <add>, %641, %cst_202 [1] : vector<16x32xf32> to vector<16xf32>
    %643 = vector.shape_cast %642 : vector<16xf32> to vector<16x1xf32>
    %cst_203 = arith.constant 3.100000e+01 : f32
    %644 = vector.broadcast %cst_203 : f32 to vector<16x1xf32>
    %645 = arith.divf %643, %644 : vector<16x1xf32>
    %646 = math.sqrt %645 : vector<16x1xf32>
    %647 = vector.broadcast %638 : vector<16x1xf32> to vector<16x32xf32>
    %648 = arith.subf %632, %647 : vector<16x32xf32>
    %649 = vector.broadcast %633 : vector<1x32xf32> to vector<16x32xf32>
    %650 = arith.mulf %649, %648 : vector<16x32xf32>
    %cst_204 = arith.constant 9.99999997E-7 : f32
    %651 = vector.broadcast %cst_204 : f32 to vector<16x1xf32>
    %652 = arith.addf %646, %651 : vector<16x1xf32>
    %653 = vector.broadcast %652 : vector<16x1xf32> to vector<16x32xf32>
    %654 = arith.divf %650, %653 : vector<16x32xf32>
    %655 = vector.broadcast %634 : vector<1x32xf32> to vector<16x32xf32>
    %656 = arith.addf %654, %655 : vector<16x32xf32>
    %c608 = arith.constant 608 : index
    %c0_205 = arith.constant 0 : index
    %657 = vector.load %arg2[%c608, %c0_205] : memref<976x128xf32, #tpu.memory_space<vmem>>, vector<32x96xf32>
    %c960 = arith.constant 960 : index
    %c0_206 = arith.constant 0 : index
    %658 = vector.load %arg2[%c960, %c0_206] : memref<976x128xf32, #tpu.memory_space<vmem>>, vector<1x96xf32>
    %c640 = arith.constant 640 : index
    %c0_207 = arith.constant 0 : index
    %659 = vector.load %arg2[%c640, %c0_207] : memref<976x128xf32, #tpu.memory_space<vmem>>, vector<32x32xf32>
    %c961 = arith.constant 961 : index
    %c0_208 = arith.constant 0 : index
    %660 = vector.load %arg2[%c961, %c0_208] : memref<976x128xf32, #tpu.memory_space<vmem>>, vector<1x32xf32>
    %661 = vector.extract_strided_slice %657 {offsets = [0, 0], sizes = [32, 32], strides = [1, 1]} : vector<32x96xf32> to vector<32x32xf32>
    %cst_209 = arith.constant dense<0.000000e+00> : vector<16x32xf32>
    %662 = tpu.matmul %656, %661, %cst_209 {dimension_numbers = #tpu.dot_dimension_numbers<[1], [0], [0], [1], [0, 0, 1, 1], [], []>} : vector<16x32xf32>, vector<32x32xf32>, vector<16x32xf32> -> vector<16x32xf32>
    %663 = vector.extract_strided_slice %658 {offsets = [0, 0], sizes = [1, 32], strides = [1, 1]} : vector<1x96xf32> to vector<1x32xf32>
    %664 = vector.broadcast %663 : vector<1x32xf32> to vector<16x32xf32>
    %665 = arith.addf %662, %664 : vector<16x32xf32>
    %666 = vector.extract_strided_slice %657 {offsets = [0, 32], sizes = [32, 64], strides = [1, 1]} : vector<32x96xf32> to vector<32x64xf32>
    %cst_210 = arith.constant dense<0.000000e+00> : vector<16x64xf32>
    %667 = tpu.matmul %285, %666, %cst_210 {dimension_numbers = #tpu.dot_dimension_numbers<[1], [0], [0], [1], [0, 0, 1, 1], [], []>} : vector<16x32xf32>, vector<32x64xf32>, vector<16x64xf32> -> vector<16x64xf32>
    %668 = vector.extract_strided_slice %658 {offsets = [0, 32], sizes = [1, 64], strides = [1, 1]} : vector<1x96xf32> to vector<1x64xf32>
    %669 = vector.broadcast %668 : vector<1x64xf32> to vector<16x64xf32>
    %670 = arith.addf %667, %669 : vector<16x64xf32>
    %671 = vector.extract_strided_slice %670 {offsets = [0, 0], sizes = [16, 32], strides = [1, 1]} : vector<16x64xf32> to vector<16x32xf32>
    %672 = vector.extract_strided_slice %670 {offsets = [0, 32], sizes = [16, 32], strides = [1, 1]} : vector<16x64xf32> to vector<16x32xf32>
    %673 = vector.shape_cast %665 : vector<16x32xf32> to vector<2x8x32xf32>
    %674 = vector.shape_cast %671 : vector<16x32xf32> to vector<2x8x32xf32>
    %675 = vector.shape_cast %672 : vector<16x32xf32> to vector<2x8x32xf32>
    %676 = vector.extract_strided_slice %673 {offsets = [0, 0, 0], sizes = [2, 8, 8], strides = [1, 1, 1]} : vector<2x8x32xf32> to vector<2x8x8xf32>
    %677 = vector.extract_strided_slice %674 {offsets = [0, 0, 0], sizes = [2, 8, 8], strides = [1, 1, 1]} : vector<2x8x32xf32> to vector<2x8x8xf32>
    "tpu.trace_start"() <{level = 10 : i32, message = "bqd,bkd->bqk"}> : () -> ()
    %cst_211 = arith.constant dense<0.000000e+00> : vector<2x8x8xf32>
    %678 = tpu.matmul %676, %677, %cst_211 {dimension_numbers = #tpu.dot_dimension_numbers<[2], [2], [1], [1], [0, 0, 0, 1, 1, 1], [0], [0]>} : vector<2x8x8xf32>, vector<2x8x8xf32>, vector<2x8x8xf32> -> vector<2x8x8xf32>
    "tpu.trace_stop"() : () -> ()
    %cst_212 = arith.constant 0.353553385 : f32
    %679 = vector.broadcast %cst_212 : f32 to vector<2x8x8xf32>
    %680 = arith.mulf %678, %679 : vector<2x8x8xf32>
    %681 = vector.extract_strided_slice %673 {offsets = [0, 0, 8], sizes = [2, 8, 8], strides = [1, 1, 1]} : vector<2x8x32xf32> to vector<2x8x8xf32>
    %682 = vector.extract_strided_slice %674 {offsets = [0, 0, 8], sizes = [2, 8, 8], strides = [1, 1, 1]} : vector<2x8x32xf32> to vector<2x8x8xf32>
    "tpu.trace_start"() <{level = 10 : i32, message = "bqd,bkd->bqk"}> : () -> ()
    %cst_213 = arith.constant dense<0.000000e+00> : vector<2x8x8xf32>
    %683 = tpu.matmul %681, %682, %cst_213 {dimension_numbers = #tpu.dot_dimension_numbers<[2], [2], [1], [1], [0, 0, 0, 1, 1, 1], [0], [0]>} : vector<2x8x8xf32>, vector<2x8x8xf32>, vector<2x8x8xf32> -> vector<2x8x8xf32>
    "tpu.trace_stop"() : () -> ()
    %cst_214 = arith.constant 0.353553385 : f32
    %684 = vector.broadcast %cst_214 : f32 to vector<2x8x8xf32>
    %685 = arith.mulf %683, %684 : vector<2x8x8xf32>
    %686 = vector.extract_strided_slice %673 {offsets = [0, 0, 16], sizes = [2, 8, 8], strides = [1, 1, 1]} : vector<2x8x32xf32> to vector<2x8x8xf32>
    %687 = vector.extract_strided_slice %674 {offsets = [0, 0, 16], sizes = [2, 8, 8], strides = [1, 1, 1]} : vector<2x8x32xf32> to vector<2x8x8xf32>
    "tpu.trace_start"() <{level = 10 : i32, message = "bqd,bkd->bqk"}> : () -> ()
    %cst_215 = arith.constant dense<0.000000e+00> : vector<2x8x8xf32>
    %688 = tpu.matmul %686, %687, %cst_215 {dimension_numbers = #tpu.dot_dimension_numbers<[2], [2], [1], [1], [0, 0, 0, 1, 1, 1], [0], [0]>} : vector<2x8x8xf32>, vector<2x8x8xf32>, vector<2x8x8xf32> -> vector<2x8x8xf32>
    "tpu.trace_stop"() : () -> ()
    %cst_216 = arith.constant 0.353553385 : f32
    %689 = vector.broadcast %cst_216 : f32 to vector<2x8x8xf32>
    %690 = arith.mulf %688, %689 : vector<2x8x8xf32>
    %691 = vector.extract_strided_slice %673 {offsets = [0, 0, 24], sizes = [2, 8, 8], strides = [1, 1, 1]} : vector<2x8x32xf32> to vector<2x8x8xf32>
    %692 = vector.extract_strided_slice %674 {offsets = [0, 0, 24], sizes = [2, 8, 8], strides = [1, 1, 1]} : vector<2x8x32xf32> to vector<2x8x8xf32>
    "tpu.trace_start"() <{level = 10 : i32, message = "bqd,bkd->bqk"}> : () -> ()
    %cst_217 = arith.constant dense<0.000000e+00> : vector<2x8x8xf32>
    %693 = tpu.matmul %691, %692, %cst_217 {dimension_numbers = #tpu.dot_dimension_numbers<[2], [2], [1], [1], [0, 0, 0, 1, 1, 1], [0], [0]>} : vector<2x8x8xf32>, vector<2x8x8xf32>, vector<2x8x8xf32> -> vector<2x8x8xf32>
    "tpu.trace_stop"() : () -> ()
    %cst_218 = arith.constant 0.353553385 : f32
    %694 = vector.broadcast %cst_218 : f32 to vector<2x8x8xf32>
    %695 = arith.mulf %693, %694 : vector<2x8x8xf32>
    %696 = tpu.concatenate %680, %685, %690, %695 in 1 : vector<2x8x8xf32>, vector<2x8x8xf32>, vector<2x8x8xf32>, vector<2x8x8xf32> -> vector<2x32x8xf32>
    %cst_219 = arith.constant dense<0xFF800000> : vector<2x32xf32>
    %697 = vector.multi_reduction <maximumf>, %696, %cst_219 [2] : vector<2x32x8xf32> to vector<2x32xf32>
    %698 = vector.shape_cast %697 : vector<2x32xf32> to vector<2x32x1xf32>
    %699 = vector.broadcast %698 : vector<2x32x1xf32> to vector<2x32x8xf32>
    %700 = arith.subf %696, %699 : vector<2x32x8xf32>
    %701 = math.exp %700 : vector<2x32x8xf32>
    %cst_220 = arith.constant dense<0.000000e+00> : vector<2x32xf32>
    %702 = vector.multi_reduction <add>, %701, %cst_220 [2] : vector<2x32x8xf32> to vector<2x32xf32>
    %703 = vector.shape_cast %702 : vector<2x32xf32> to vector<2x32x1xf32>
    %704 = tpu.reciprocal %703 {approx = true} : vector<2x32x1xf32> -> vector<2x32x1xf32>
    %705 = vector.broadcast %704 : vector<2x32x1xf32> to vector<2x32x8xf32>
    %706 = arith.mulf %701, %705 : vector<2x32x8xf32>
    %707 = vector.extract_strided_slice %706 {offsets = [0, 0, 0], sizes = [2, 8, 8], strides = [1, 1, 1]} : vector<2x32x8xf32> to vector<2x8x8xf32>
    %708 = vector.extract_strided_slice %675 {offsets = [0, 0, 0], sizes = [2, 8, 8], strides = [1, 1, 1]} : vector<2x8x32xf32> to vector<2x8x8xf32>
    "tpu.trace_start"() <{level = 10 : i32, message = "bqk,bkd->bqd"}> : () -> ()
    %cst_221 = arith.constant dense<0.000000e+00> : vector<2x8x8xf32>
    %709 = tpu.matmul %707, %708, %cst_221 {dimension_numbers = #tpu.dot_dimension_numbers<[2], [1], [1], [2], [0, 0, 0, 1, 1, 2], [0], [0]>} : vector<2x8x8xf32>, vector<2x8x8xf32>, vector<2x8x8xf32> -> vector<2x8x8xf32>
    "tpu.trace_stop"() : () -> ()
    %710 = vector.extract_strided_slice %706 {offsets = [0, 8, 0], sizes = [2, 8, 8], strides = [1, 1, 1]} : vector<2x32x8xf32> to vector<2x8x8xf32>
    %711 = vector.extract_strided_slice %675 {offsets = [0, 0, 8], sizes = [2, 8, 8], strides = [1, 1, 1]} : vector<2x8x32xf32> to vector<2x8x8xf32>
    "tpu.trace_start"() <{level = 10 : i32, message = "bqk,bkd->bqd"}> : () -> ()
    %cst_222 = arith.constant dense<0.000000e+00> : vector<2x8x8xf32>
    %712 = tpu.matmul %710, %711, %cst_222 {dimension_numbers = #tpu.dot_dimension_numbers<[2], [1], [1], [2], [0, 0, 0, 1, 1, 2], [0], [0]>} : vector<2x8x8xf32>, vector<2x8x8xf32>, vector<2x8x8xf32> -> vector<2x8x8xf32>
    "tpu.trace_stop"() : () -> ()
    %713 = vector.extract_strided_slice %706 {offsets = [0, 16, 0], sizes = [2, 8, 8], strides = [1, 1, 1]} : vector<2x32x8xf32> to vector<2x8x8xf32>
    %714 = vector.extract_strided_slice %675 {offsets = [0, 0, 16], sizes = [2, 8, 8], strides = [1, 1, 1]} : vector<2x8x32xf32> to vector<2x8x8xf32>
    "tpu.trace_start"() <{level = 10 : i32, message = "bqk,bkd->bqd"}> : () -> ()
    %cst_223 = arith.constant dense<0.000000e+00> : vector<2x8x8xf32>
    %715 = tpu.matmul %713, %714, %cst_223 {dimension_numbers = #tpu.dot_dimension_numbers<[2], [1], [1], [2], [0, 0, 0, 1, 1, 2], [0], [0]>} : vector<2x8x8xf32>, vector<2x8x8xf32>, vector<2x8x8xf32> -> vector<2x8x8xf32>
    "tpu.trace_stop"() : () -> ()
    %716 = vector.extract_strided_slice %706 {offsets = [0, 24, 0], sizes = [2, 8, 8], strides = [1, 1, 1]} : vector<2x32x8xf32> to vector<2x8x8xf32>
    %717 = vector.extract_strided_slice %675 {offsets = [0, 0, 24], sizes = [2, 8, 8], strides = [1, 1, 1]} : vector<2x8x32xf32> to vector<2x8x8xf32>
    "tpu.trace_start"() <{level = 10 : i32, message = "bqk,bkd->bqd"}> : () -> ()
    %cst_224 = arith.constant dense<0.000000e+00> : vector<2x8x8xf32>
    %718 = tpu.matmul %716, %717, %cst_224 {dimension_numbers = #tpu.dot_dimension_numbers<[2], [1], [1], [2], [0, 0, 0, 1, 1, 2], [0], [0]>} : vector<2x8x8xf32>, vector<2x8x8xf32>, vector<2x8x8xf32> -> vector<2x8x8xf32>
    "tpu.trace_stop"() : () -> ()
    %719 = tpu.concatenate %709, %712, %715, %718 in 2 : vector<2x8x8xf32>, vector<2x8x8xf32>, vector<2x8x8xf32>, vector<2x8x8xf32> -> vector<2x8x32xf32>
    %720 = vector.shape_cast %719 : vector<2x8x32xf32> to vector<16x32xf32>
    %cst_225 = arith.constant dense<0.000000e+00> : vector<16x32xf32>
    %721 = tpu.matmul %720, %659, %cst_225 {dimension_numbers = #tpu.dot_dimension_numbers<[1], [0], [0], [1], [0, 0, 1, 1], [], []>} : vector<16x32xf32>, vector<32x32xf32>, vector<16x32xf32> -> vector<16x32xf32>
    %722 = vector.broadcast %660 : vector<1x32xf32> to vector<16x32xf32>
    %723 = arith.addf %721, %722 : vector<16x32xf32>
    %724 = arith.addf %632, %723 : vector<16x32xf32>
    %c968 = arith.constant 968 : index
    %c0_226 = arith.constant 0 : index
    %725 = vector.load %arg2[%c968, %c0_226] : memref<976x128xf32, #tpu.memory_space<vmem>>, vector<1x32xf32>
    %c969 = arith.constant 969 : index
    %c0_227 = arith.constant 0 : index
    %726 = vector.load %arg2[%c969, %c0_227] : memref<976x128xf32, #tpu.memory_space<vmem>>, vector<1x32xf32>
    %cst_228 = arith.constant dense<0.000000e+00> : vector<16xf32>
    %727 = vector.multi_reduction <add>, %724, %cst_228 [1] : vector<16x32xf32> to vector<16xf32>
    %728 = vector.shape_cast %727 : vector<16xf32> to vector<16x1xf32>
    %cst_229 = arith.constant 3.200000e+01 : f32
    %729 = vector.broadcast %cst_229 : f32 to vector<16x1xf32>
    %730 = arith.divf %728, %729 : vector<16x1xf32>
    %731 = vector.broadcast %730 : vector<16x1xf32> to vector<16x32xf32>
    %732 = arith.subf %724, %731 : vector<16x32xf32>
    %733 = arith.mulf %732, %732 : vector<16x32xf32>
    %cst_230 = arith.constant dense<0.000000e+00> : vector<16xf32>
    %734 = vector.multi_reduction <add>, %733, %cst_230 [1] : vector<16x32xf32> to vector<16xf32>
    %735 = vector.shape_cast %734 : vector<16xf32> to vector<16x1xf32>
    %cst_231 = arith.constant 3.100000e+01 : f32
    %736 = vector.broadcast %cst_231 : f32 to vector<16x1xf32>
    %737 = arith.divf %735, %736 : vector<16x1xf32>
    %738 = math.sqrt %737 : vector<16x1xf32>
    %739 = vector.broadcast %730 : vector<16x1xf32> to vector<16x32xf32>
    %740 = arith.subf %724, %739 : vector<16x32xf32>
    %741 = vector.broadcast %725 : vector<1x32xf32> to vector<16x32xf32>
    %742 = arith.mulf %741, %740 : vector<16x32xf32>
    %cst_232 = arith.constant 9.99999997E-7 : f32
    %743 = vector.broadcast %cst_232 : f32 to vector<16x1xf32>
    %744 = arith.addf %738, %743 : vector<16x1xf32>
    %745 = vector.broadcast %744 : vector<16x1xf32> to vector<16x32xf32>
    %746 = arith.divf %742, %745 : vector<16x32xf32>
    %747 = vector.broadcast %726 : vector<1x32xf32> to vector<16x32xf32>
    %748 = arith.addf %746, %747 : vector<16x32xf32>
    %c672 = arith.constant 672 : index
    %c0_233 = arith.constant 0 : index
    %749 = vector.load %arg2[%c672, %c0_233] : memref<976x128xf32, #tpu.memory_space<vmem>>, vector<32x64xf32>
    %c962 = arith.constant 962 : index
    %c0_234 = arith.constant 0 : index
    %750 = vector.load %arg2[%c962, %c0_234] : memref<976x128xf32, #tpu.memory_space<vmem>>, vector<1x64xf32>
    %c704 = arith.constant 704 : index
    %c0_235 = arith.constant 0 : index
    %751 = vector.load %arg2[%c704, %c0_235] : memref<976x128xf32, #tpu.memory_space<vmem>>, vector<64x32xf32>
    %c963 = arith.constant 963 : index
    %c0_236 = arith.constant 0 : index
    %752 = vector.load %arg2[%c963, %c0_236] : memref<976x128xf32, #tpu.memory_space<vmem>>, vector<1x32xf32>
    %cst_237 = arith.constant dense<0.000000e+00> : vector<16x64xf32>
    %753 = tpu.matmul %748, %749, %cst_237 {dimension_numbers = #tpu.dot_dimension_numbers<[1], [0], [0], [1], [0, 0, 1, 1], [], []>} : vector<16x32xf32>, vector<32x64xf32>, vector<16x64xf32> -> vector<16x64xf32>
    %754 = vector.broadcast %750 : vector<1x64xf32> to vector<16x64xf32>
    %755 = arith.addf %753, %754 : vector<16x64xf32>
    %cst_238 = arith.constant 0.000000e+00 : f32
    %756 = vector.broadcast %cst_238 : f32 to vector<16x64xf32>
    %757 = arith.maximumf %755, %756 : vector<16x64xf32>
    %cst_239 = arith.constant dense<0.000000e+00> : vector<16x32xf32>
    %758 = tpu.matmul %757, %751, %cst_239 {dimension_numbers = #tpu.dot_dimension_numbers<[1], [0], [0], [1], [0, 0, 1, 1], [], []>} : vector<16x64xf32>, vector<64x32xf32>, vector<16x32xf32> -> vector<16x32xf32>
    %759 = vector.broadcast %752 : vector<1x32xf32> to vector<16x32xf32>
    %760 = arith.addf %758, %759 : vector<16x32xf32>
    %761 = arith.addf %724, %760 : vector<16x32xf32>
    %c970 = arith.constant 970 : index
    %c0_240 = arith.constant 0 : index
    %762 = vector.load %arg2[%c970, %c0_240] : memref<976x128xf32, #tpu.memory_space<vmem>>, vector<1x32xf32>
    %c971 = arith.constant 971 : index
    %c0_241 = arith.constant 0 : index
    %763 = vector.load %arg2[%c971, %c0_241] : memref<976x128xf32, #tpu.memory_space<vmem>>, vector<1x32xf32>
    %cst_242 = arith.constant dense<0.000000e+00> : vector<16xf32>
    %764 = vector.multi_reduction <add>, %761, %cst_242 [1] : vector<16x32xf32> to vector<16xf32>
    %765 = vector.shape_cast %764 : vector<16xf32> to vector<16x1xf32>
    %cst_243 = arith.constant 3.200000e+01 : f32
    %766 = vector.broadcast %cst_243 : f32 to vector<16x1xf32>
    %767 = arith.divf %765, %766 : vector<16x1xf32>
    %768 = vector.broadcast %767 : vector<16x1xf32> to vector<16x32xf32>
    %769 = arith.subf %761, %768 : vector<16x32xf32>
    %770 = arith.mulf %769, %769 : vector<16x32xf32>
    %cst_244 = arith.constant dense<0.000000e+00> : vector<16xf32>
    %771 = vector.multi_reduction <add>, %770, %cst_244 [1] : vector<16x32xf32> to vector<16xf32>
    %772 = vector.shape_cast %771 : vector<16xf32> to vector<16x1xf32>
    %cst_245 = arith.constant 3.100000e+01 : f32
    %773 = vector.broadcast %cst_245 : f32 to vector<16x1xf32>
    %774 = arith.divf %772, %773 : vector<16x1xf32>
    %775 = math.sqrt %774 : vector<16x1xf32>
    %776 = vector.broadcast %767 : vector<16x1xf32> to vector<16x32xf32>
    %777 = arith.subf %761, %776 : vector<16x32xf32>
    %778 = vector.broadcast %762 : vector<1x32xf32> to vector<16x32xf32>
    %779 = arith.mulf %778, %777 : vector<16x32xf32>
    %cst_246 = arith.constant 9.99999997E-7 : f32
    %780 = vector.broadcast %cst_246 : f32 to vector<16x1xf32>
    %781 = arith.addf %775, %780 : vector<16x1xf32>
    %782 = vector.broadcast %781 : vector<16x1xf32> to vector<16x32xf32>
    %783 = arith.divf %779, %782 : vector<16x32xf32>
    %784 = vector.broadcast %763 : vector<1x32xf32> to vector<16x32xf32>
    %785 = arith.addf %783, %784 : vector<16x32xf32>
    %786 = vector.shape_cast %785 : vector<16x32xf32> to vector<2x8x32xf32>
    %c0_247 = arith.constant 0 : index
    %c0_248 = arith.constant 0 : index
    %c0_249 = arith.constant 0 : index
    %787 = vector.load %arg3[%c0_247, %c0_248, %c0_249] : memref<2x8x32xf32, #tpu.memory_space<vmem>>, vector<2x8x32xf32>
    tpu.vector_store %arg3[%c0_247, %c0_248, %c0_249], %786 {strides = array<i32>} : memref<2x8x32xf32, #tpu.memory_space<vmem>>, vector<2x8x32xf32>,
    return
  }
}

</mosaic_0001>

<bundles_post_ra>
// kernel: forward.1
= control target key start
LH: loop header
LB: loop body
LE: loop exit
PB: predicated region body
PF: predicated region fallthrough
CT: control target
= control target key end

     0   :  { %8 = vsyncpa [#allocation3], 0  ;;  %s14375_s0 = inlined_call_operand.vmem [shape: s32[16,1], index: 0, kind: input, shape index: {}]   ;;  %s14376_s1 = inlined_call_operand.vmem [shape: s32[16,1], index: 1, kind: input, shape index: {}]   ;;  %s14377_s2 = inlined_call_operand.hbm [shape: f32[976,128], index: 2, kind: input, shape index: {}]   ;;  %s14378_s3 = inlined_call_operand.hbm [shape: f32[2,8,32], index: 3, kind: output, shape index: {}]  }
   0x1   :  { %9 = vsyncpa [#allocation4], 0  ;;  %s13052_s12 = smov [#allocation2]   ;;  %s13004_s16 = scalar_lea.hbm %s14377_s2, 15616 }
   0x2   :  { %s19_s13 = sshll.u32 %s13052_s12, 4  ;;  %p13005_p0 = scmp.ne.s32.totalorder %s14377_s2, %s13004_s16  ;;  %s20_s13 = int_to_ptr.vmem [resolvable:$true] %s19_s13 }
   0x3   :  { %p13008_p1 = scmp.lt.u32.totalorder %s13004_s16, %s14377_s2 }
   0x5   :  { %p13010_p2 = pnand %p13008_p1, %p13005_p0 }
   0x7   :  { %13013 = shalt.err (!%p13010_p2)
}
   0x8   :  { %s13014_s21 = scalar_lea.vmem %s20_s13, 15616  ;;  %p13019_p4 = scmp.lt.s32.totalorder %s20_s13, %s20_s13 }
   0x9   :  { %p13015_p3 = scmp.ne.s32.totalorder %s20_s13, %s13014_s21  ;;  %p13020_p5 = scmp.lt.s32.totalorder %s13014_s21, %s13014_s21 }
   0xb   :  { %p13021_p6 = por %p13020_p5, %p13019_p4 }
   0xd   :  { %p13022_p7 = pnand %p13021_p6, %p13015_p3 }
   0xf   :  { %13025 = shalt.err (!%p13022_p7)
}
  0x10   :  { %s13053_s22 = smov 128   ;;  %s13054_s23 = smov 8  }
  0x11   :  { %25 = dma.hbm_to_vmem [thread:$0]  %s14377_s2, 15616, %s20_s13, [#allocation3], %s13053_s22, %s13053_s22, %s13054_s23  }
  0x12   :  { %13048 = dma.done.wait [#allocation3], 15616  }
  0x13   :  { %13049 = vsyncadd [#allocation3], 4294951680  ;;  %v13055_v0 = vmov 0   ;;  %v29_v1 = vld [vmem:[%s14375_s0] sm:$0xff]  ;;  %v32_v3 = vld [vmem:[#allocation2 + $0x308] sm:$0xff]  ;;  %v13056_v6 = vmov 0.0   ;;  %v34_v7 = vlaneseq }
  0x14   :  { %12694 = vset.pattern.permute.xlu0 %v13055_v0  ;;  %12695 = vset.pattern.permute.xlu1 %v13055_v0  ;;  %v31_v2 = vld [vmem:[#allocation2 + $0x300] sm:$0xff]  ;;  %v30_v4 = vld [vmem:[%s14375_s0 + $0x8] sm:$0xff]  ;;  %vm48_vm0 = vcmask 130048   ;;  %vm136_vm3 = vcmask 261120   ;;  %v193_v34 = vld [vmem:[#allocation2 + $0x10] sm:$0xff]  ;;  %s13057_s0 = smov 96  }
  0x15   :  { %37 = vperm.xlu0 %12694, %v29_v1   ;;  %v12457_v5 = vpack.c.bf16 %v32_v3, %v31_v2  ;;  %v13116_v8 = vand.u32 127, %v34_v7  ;;  %v33_v14 = vld [vmem:[#allocation2 + $0x320] sm:$0xff]  ;;  %v192_v33 = vld [vmem:[#allocation2 + $0x8] sm:$0xff]  ;;  %v194_v36 = vld [vmem:[#allocation2 + $0x18] sm:$0xff]  ;;  %s13058_s2 = smov 120   ;;  %s13059_s30 = smov 88  }
  0x16   :  { %v191_v32 = vld [vmem:[#allocation2] sm:$0xff]  ;;  %v12465_v37 = vpack.c.bf16 %v194_v36, %v193_v34  ;;  %s13060_s4 = smov 72   ;;  %vm13061_vm8 = vmmov 0   ;;  %s13062_s5 = smov 104   ;;  %vm289_vm9 = vcmask 64512   ;;  %vm1641_vm10 = vcmask 195584  }
  0x17   :  { %12458 = vmatprep.subr.bf16.mxu0 %v12457_v5  ;;  %v12461_v35 = vpack.c.bf16 %v192_v33, %v191_v32  ;;  %v11105_v54 = vld [vmem:[#allocation2 + $0x3a4] ss:$0 sm:$0xff]  ;;  %v11106_v57 = vld [vmem:[#allocation2 + $0x3a5] ss:$0 sm:$0xff]  ;;  %v11107_v0 = vld [vmem:[#allocation2 + $0x3a0] ss:$0 sm:$0xff] }
  0x18   :  { %12460 = vmatpush3.bf16.msra.mxu0 %v12457_v5  ;;  %s13063_s6 = smov 80   ;;  %s13064_s7 = smov 112   ;;  %vm1890_vm15 = vcmask 523264  }
  0x19   :  { %40 = vperm.xlu0 %12694, %v30_v4   ;;  %11707 = vmatprep.subr.mxu0 %v13056_v6  ;;  %s13065_s8 = smov 64   ;;  %s13066_s9 = smov 56  }
  0x1a   :  { %12462 = vmatprep.subr.bf16.mxu1 %v12461_v35  ;;  %s13067_s10 = smov 48   ;;  %s13068_s11 = smov 40  }
  0x1b   :  { %12464 = vmatpush3.bf16.msra.mxu1 %v12461_v35  ;;  %s13069_s12 = smov 16   ;;  %s13070_s13 = smov 24  }
  0x1c   :  { %12466 = vmatprep.subr.bf16.mxu1 %v12465_v37 }
  0x1f   :  { %12468 = vmatpush3.bf16.msra.mxu1 %v12465_v37 }
  0x20   :  { %11717 = vmatprep.subr.mxu1 %v13056_v6 }
  0x94   :  { %v38_v9 = vpop.permute.xlu0 %37 }
  0x95   :  { %vm42_vm1 = vcmp.eq.s32.totalorder %v38_v9, %v13116_v8 }
  0x96   :  { %v11101_v10 = vsel %vm42_vm1, 1.0, %v13056_v6 }
  0x97   :  { %11693 = vmatprep.mubr.msk.f32.mxu0 %vm48_vm0, %v11101_v10 }
  0x98   :  { %v41_v11 = vpop.permute.xlu0 %40 }
  0x99   :  { %vm43_vm2 = vcmp.eq.s32.totalorder %v41_v11, %v13116_v8 }
  0x9a   :  { %v11102_v12 = vsel %vm43_vm2, 1.0, %v13056_v6 }
  0x9b   :  { %11694 = vmatmul.mubr.msk.f32.vlgmr.msra.gmra.mrb[0].mxu0 %vm48_vm0, %v11102_v12 }
  0x9c   :  { %11709 = vmatprep.mubr.msk.f32.mxu0 %vm13061_vm8, %v13056_v6 }
 0x16e   :  { %v11695_v13 = vpop.f32.mrb[0].mxu0 }
 0x16f   :  { %v121_v15 = vpop.f32.mrb[1].mxu0  ;;  %v131_v16 = vmul.f32 5.656854, %v11695_v13 }
 0x170   :  { %v130_v17 = vmul.f32 5.656854, %v121_v15 }
 0x171   :  { %v13126_v19 = vadd.f32 %v131_v16, %v33_v14 }
 0x172   :  { %v13124_v18 = vadd.f32 %v130_v17, %v33_v14 }
 0x173   :  { %v140_v21 = vsel %vm136_vm3, %v13126_v19, 0.0 }
 0x174   :  { %v137_v20 = vsel %vm136_vm3, %v13124_v18, 0.0 }
 0x175   :  { %138 = vadd.xlane.f32.xlu1 %v137_v20 }
 0x179   :  { %141 = vadd.xlane.f32.xlu1 %v140_v21 }
 0x202   :  { %v139_v22 = vpop.xlane.xlu1 %138 }
 0x203   :  { %v144_v23 = vmul.f32 0.03125, %v139_v22 }
 0x205   :  { %v146_v24 = vsub.f32 %v13124_v18, %v144_v23 }
 0x206   :  { %v142_v25 = vpop.xlane.xlu1 %141 }
 0x207   :  { %v145_v26 = vmul.f32 0.03125, %v142_v25  ;;  %v148_v27 = vmul.f32 %v146_v24, %v146_v24  ;;  %v177_v55 = vmul.f32 %v11105_v54, %v146_v24 }
 0x209   :  { %v147_v28 = vsub.f32 %v13126_v19, %v145_v26  ;;  %v150_v29 = vsel %vm136_vm3, %v148_v27, 0.0 }
 0x20a   :  { %151 = vadd.xlane.f32.xlu0 %v150_v29 }
 0x20b   :  { %v149_v30 = vmul.f32 %v147_v28, %v147_v28  ;;  %v178_v59 = vmul.f32 %v11105_v54, %v147_v28 }
 0x20d   :  { %v153_v31 = vsel %vm136_vm3, %v149_v30, 0.0 }
 0x20e   :  { %154 = vadd.xlane.f32.xlu1 %v153_v31 }
 0x297   :  { %v152_v38 = vpop.xlane.xlu0 %151 }
 0x298   :  { %v157_v39 = vmul.f32 0.032258064, %v152_v38 }
 0x29a   :  { %12716 = vrsqrt.f32 %v157_v39  ;;  %vm161_vm4 = vcmp.eq.f32.partialorder %v157_v39, inf  ;;  %v164_v44 = vand.u32 2147483648, %v157_v39  ;;  %vm163_vm5 = vcmp.eq.f32.partialorder %v157_v39, 0.0 }
 0x29b   :  { %v155_v40 = vpop.xlane.xlu1 %154 }
 0x29c   :  { %v158_v41 = vmul.f32 0.032258064, %v155_v40 }
 0x29e   :  { %12718 = vrsqrt.f32 %v158_v41  ;;  %vm168_vm6 = vcmp.eq.f32.partialorder %v158_v41, inf  ;;  %v171_v50 = vand.u32 2147483648, %v158_v41  ;;  %vm170_vm7 = vcmp.eq.f32.partialorder %v158_v41, 0.0 }
 0x2a4   :  { %v12717_v42 = vpop.eup %12716 }
 0x2a5   :  { %v160_v43 = vmul.f32 %v12717_v42, %v157_v39 }
 0x2a7   :  { %v162_v45 = vsel %vm161_vm4, %v157_v39, %v160_v43 }
 0x2a8   :  { %v12719_v46 = vpop.eup %12718  ;;  %v165_v47 = vsel %vm163_vm5, %v164_v44, %v162_v45 }
 0x2a9   :  { %v167_v48 = vmul.f32 %v12719_v46, %v158_v41  ;;  %v179_v49 = vadd.f32 1e-06, %v165_v47 }
 0x2ab   :  { %v169_v51 = vsel %vm168_vm6, %v158_v41, %v167_v48  ;;  %12720 = vrcp.f32 %v179_v49 }
 0x2ac   :  { %v172_v52 = vsel %vm170_vm7, %v171_v50, %v169_v51 }
 0x2ad   :  { %v180_v53 = vadd.f32 1e-06, %v172_v52 }
 0x2af   :  { %12722 = vrcp.f32 %v180_v53 }
 0x2b5   :  { %v12721_v56 = vpop.eup %12720 }
 0x2b6   :  { %v182_v58 = vmul.f32 %v12721_v56, %v177_v55 }
 0x2b8   :  { %v189_v60 = vadd.f32 %v11106_v57, %v182_v58 }
 0x2b9   :  { %v12723_v61 = vpop.eup %12722 }
 0x2ba   :  { %v184_v62 = vmul.f32 %v12723_v61, %v178_v59  ;;  %11704 = vmatprep.mubr.msk.f32.mxu1 %vm136_vm3, %v189_v60 }
 0x2bc   :  { %v190_v63 = vadd.f32 %v11106_v57, %v184_v62 }
 0x2be   :  { %11705 = vmatmul.mubr.msk.f32.vlgmr.msra.gmra.mrb[0].mxu1 %vm136_vm3, %v190_v63 }
 0x2bf   :  { %11719 = vmatprep.mubr.msk.f32.mxu1 %vm13061_vm8, %v13056_v6 }
 0x391   :  { %v11706_v1 = vpop.f32.mrb[0].mxu1 }
 0x392   :  { %v13139_v2 = vadd.f32 %v11706_v1, %v11107_v0  ;;  %v277_v3 = vpop.f32.mrb[1].mxu1 }
 0x393   :  { %v13141_v4 = vadd.f32 %v11107_v0, %v277_v3 }
 0x394   :  { %365 = vrot.lane.b32.xlu1 %v13139_v2, %s13057_s0 }
 0x395   :  { %443 = vrot.lane.b32.xlu0 %v13141_v4, %s13058_s2 }
 0x398   :  { %523 = vrot.lane.b32.xlu1 %v13139_v2, %s13059_s30 }
 0x399   :  { %761 = vrot.lane.b32.xlu0 %v13141_v4, %s13060_s4 }
 0x39c   :  { %521 = vrot.lane.b32.xlu1 %v13139_v2, %s13058_s2 }
 0x39d   :  { %759 = vrot.lane.b32.xlu0 %v13141_v4, %s13062_s5 }
 0x3a0   :  { %681 = vrot.lane.b32.xlu1 %v13139_v2, %s13063_s6 }
 0x3a4   :  { %679 = vrot.lane.b32.xlu1 %v13139_v2, %s13064_s7 }
 0x3a8   :  { %287 = vrot.lane.b32.xlu1 %v13141_v4, %s13057_s0 }
 0x3ac   :  { %445 = vrot.lane.b32.xlu1 %v13141_v4, %s13059_s30 }
 0x3b0   :  { %603 = vrot.lane.b32.xlu1 %v13141_v4, %s13063_s6 }
 0x3b4   :  { %601 = vrot.lane.b32.xlu1 %v13141_v4, %s13064_s7 }
 0x3b8   :  { %839 = vrot.lane.b32.xlu1 %v13139_v2, %s13060_s4 }
 0x3bc   :  { %837 = vrot.lane.b32.xlu1 %v13139_v2, %s13062_s5 }
 0x406   :  { %v366_v5 = vpop.permute.xlu1 %365 }
 0x407   :  { %v444_v14 = vpop.permute.xlu0 %443 }
 0x40a   :  { %v524_v9 = vpop.permute.xlu1 %523 }
 0x40b   :  { %v762_v17 = vpop.permute.xlu0 %761 }
 0x40e   :  { %v522_v10 = vpop.permute.xlu1 %521 }
 0x40f   :  { %v760_v21 = vpop.permute.xlu0 %759 }
 0x412   :  { %v682_v11 = vpop.permute.xlu1 %681 }
 0x416   :  { %v680_v12 = vpop.permute.xlu1 %679 }
 0x41a   :  { %v288_v13 = vpop.permute.xlu1 %287 }
 0x41b   :  { %11708 = vmatpush3.xpose.msk.msra.mxu0 %vm289_vm9, %v288_v13 }
 0x41c   :  { %11712 = vmatprep.subr.mxu0 %v13056_v6 }
 0x41e   :  { %11710 = vmatmul.mubr.msk.f32.vlgmr.msra.gmra.mrb[2].mxu0 %vm289_vm9, %v13141_v4  ;;  %v446_v15 = vpop.permute.xlu1 %445 }
 0x41f   :  { %11713 = vmatpush3.xpose.msk.msra.mxu0 %vm289_vm9, %v366_v5  ;;  %11718 = vmatpush3.xpose.msk.msra.mxu1 %vm289_vm9, %v446_v15 }
 0x420   :  { %11714 = vmatprep.mubr.msk.f32.mxu0 %vm13061_vm8, %v13056_v6  ;;  %11722 = vmatprep.subr.mxu0 %v13056_v6 }
 0x421   :  { %11727 = vmatprep.subr.mxu1 %v13056_v6 }
 0x422   :  { %11715 = vmatmul.mubr.msk.f32.vlgmr.msra.gmra.mrb[4].mxu0 %vm289_vm9, %v13139_v2  ;;  %11720 = vmatmul.mubr.msk.f32.vlgmr.msra.gmra.mrb[2].mxu1 %vm289_vm9, %v444_v14  ;;  %v604_v16 = vpop.permute.xlu1 %603 }
 0x423   :  { %11723 = vmatpush3.xpose.msk.msra.mxu0 %vm289_vm9, %v524_v9  ;;  %11728 = vmatpush3.xpose.msk.msra.mxu1 %vm289_vm9, %v604_v16 }
 0x424   :  { %11724 = vmatprep.mubr.msk.f32.mxu0 %vm13061_vm8, %v13056_v6  ;;  %11729 = vmatprep.mubr.msk.f32.mxu1 %vm13061_vm8, %v13056_v6 }
 0x425   :  { %11732 = vmatprep.subr.mxu0 %v13056_v6  ;;  %11737 = vmatprep.subr.mxu1 %v13056_v6 }
 0x426   :  { %11725 = vmatmul.mubr.msk.f32.vlgmr.msra.gmra.mrb[6].mxu0 %vm289_vm9, %v522_v10  ;;  %v602_v20 = vpop.permute.xlu1 %601 }
 0x427   :  { %11730 = vmatmul.mubr.msk.f32.vlgmr.msra.gmra.mrb[4].mxu1 %vm289_vm9, %v602_v20  ;;  %11733 = vmatpush3.xpose.msk.msra.mxu0 %vm289_vm9, %v682_v11 }
 0x428   :  { %11738 = vmatpush3.xpose.msk.msra.mxu1 %vm289_vm9, %v762_v17  ;;  %11734 = vmatprep.mubr.msk.f32.mxu0 %vm13061_vm8, %v13056_v6 }
 0x429   :  { %11739 = vmatprep.mubr.msk.f32.mxu1 %vm13061_vm8, %v13056_v6  ;;  %11742 = vmatprep.subr.mxu0 %v13056_v6 }
 0x42a   :  { %11735 = vmatmul.mubr.msk.f32.vlgmr.msra.gmra.mrb[8].mxu0 %vm289_vm9, %v680_v12  ;;  %v840_v22 = vpop.permute.xlu1 %839  ;;  %11747 = vmatprep.subr.mxu1 %v13056_v6 }
 0x42b   :  { %11740 = vmatmul.mubr.msk.f32.vlgmr.msra.gmra.mrb[6].mxu1 %vm289_vm9, %v760_v21  ;;  %11743 = vmatpush3.xpose.msk.msra.mxu0 %vm289_vm9, %v840_v22 }
 0x42c   :  { %11744 = vmatprep.mubr.msk.f32.mxu0 %vm13061_vm8, %v13056_v6  ;;  %11752 = vmatprep.subr.mxu0 %v13056_v6 }
 0x42d   :  { %11749 = vmatprep.mubr.msk.f32.mxu1 %vm13061_vm8, %v13056_v6 }
 0x42e   :  { %v838_v23 = vpop.permute.xlu1 %837 }
 0x42f   :  { %11745 = vmatmul.mubr.msk.f32.vlgmr.msra.gmra.mrb[10].mxu0 %vm289_vm9, %v838_v23 }
 0x430   :  { %11754 = vmatprep.mubr.msk.f32.mxu0 %vm13061_vm8, %v13056_v6 }
 0x4f1   :  { %v360_v24 = vpop.f32.mrb[2].mxu0 }
 0x4f2   :  { %v441_v25 = vmul.f32 0.35355338, %v360_v24  ;;  %v11711_v26 = vpop.f32.mrb[3].mxu0 }
 0x4f4   :  { %v917_v27 = vsel %vm289_vm9, %v441_v25, -inf }
 0x4f5   :  { %918 = vmax.xlane.f32.xlu0 %v917_v27  ;;  %v437_v28 = vpop.f32.mrb[4].mxu0  ;;  %v517_v29 = vpop.f32.mrb[2].mxu1 }
 0x4f6   :  { %v442_v30 = vmul.f32 0.35355338, %v437_v28  ;;  %v599_v31 = vmul.f32 0.35355338, %v517_v29  ;;  %v11716_v32 = vpop.f32.mrb[5].mxu0  ;;  %v11721_v33 = vpop.f32.mrb[3].mxu1 }
 0x4f8   :  { %v929_v34 = vsel %vm289_vm9, %v442_v30, -inf  ;;  %v920_v35 = vsel %vm289_vm9, %v599_v31, -inf }
 0x4f9   :  { %930 = vmax.xlane.f32.xlu1 %v929_v34  ;;  %v595_v36 = vpop.f32.mrb[6].mxu0  ;;  %921 = vmax.xlane.f32.xlu0 %v920_v35 }
 0x4fa   :  { %v600_v37 = vmul.f32 0.35355338, %v595_v36  ;;  %v11726_v38 = vpop.f32.mrb[7].mxu0  ;;  %v675_v39 = vpop.f32.mrb[4].mxu1 }
 0x4fb   :  { %v757_v40 = vmul.f32 0.35355338, %v675_v39  ;;  %v11731_v41 = vpop.f32.mrb[5].mxu1 }
 0x4fc   :  { %v932_v42 = vsel %vm289_vm9, %v600_v37, -inf }
 0x4fd   :  { %v753_v43 = vpop.f32.mrb[8].mxu0  ;;  %933 = vmax.xlane.f32.xlu0 %v932_v42  ;;  %v923_v44 = vsel %vm289_vm9, %v757_v40, -inf }
 0x4fe   :  { %v758_v45 = vmul.f32 0.35355338, %v753_v43  ;;  %v11736_v46 = vpop.f32.mrb[9].mxu0  ;;  %924 = vmax.xlane.f32.xlu1 %v923_v44  ;;  %v833_v47 = vpop.f32.mrb[6].mxu1 }
 0x4ff   :  { %v915_v48 = vmul.f32 0.35355338, %v833_v47  ;;  %v11741_v49 = vpop.f32.mrb[7].mxu1 }
 0x500   :  { %v935_v50 = vsel %vm289_vm9, %v758_v45, -inf }
 0x501   :  { %936 = vmax.xlane.f32.xlu0 %v935_v50  ;;  %v926_v51 = vsel %vm289_vm9, %v915_v48, -inf }
 0x502   :  { %927 = vmax.xlane.f32.xlu1 %v926_v51  ;;  %v911_v52 = vpop.f32.mrb[10].mxu0 }
 0x503   :  { %v916_v53 = vmul.f32 0.35355338, %v911_v52  ;;  %v11746_v54 = vpop.f32.mrb[11].mxu0 }
 0x505   :  { %v938_v55 = vsel %vm289_vm9, %v916_v53, -inf }
 0x506   :  { %939 = vmax.xlane.f32.xlu0 %v938_v55 }
 0x513   :  { %1005 = vrot.lane.b32.xlu1 %v13141_v4, %s13065_s8 }
 0x517   :  { %1157 = vrot.lane.b32.xlu1 %v13141_v4, %s13066_s9 }
 0x51b   :  { %1233 = vrot.lane.b32.xlu1 %v13139_v2, %s13066_s9 }
 0x51c   :  { %1081 = vrot.lane.b32.xlu0 %v13139_v2, %s13065_s8 }
 0x51f   :  { %1385 = vrot.lane.b32.xlu1 %v13139_v2, %s13067_s10 }
 0x520   :  { %1309 = vrot.lane.b32.xlu0 %v13141_v4, %s13067_s10 }
 0x582   :  { %v919_v56 = vpop.xlane.xlu0 %918 }
 0x583   :  { %v941_v57 = vsub.f32 %v441_v25, %v919_v56 }
 0x585   :  { %v949_v58 = vmul.f32 1.442695, %v941_v57 }
 0x586   :  { %v922_v59 = vpop.xlane.xlu0 %921  ;;  %v931_v60 = vpop.xlane.xlu1 %930 }
 0x587   :  { %12724 = vpow2.f32 %v949_v58  ;;  %v942_v61 = vsub.f32 %v599_v31, %v922_v59  ;;  %v945_v62 = vsub.f32 %v442_v30, %v931_v60 }
 0x589   :  { %v951_v63 = vmul.f32 1.442695, %v942_v61  ;;  %v957_v0 = vmul.f32 1.442695, %v945_v62 }
 0x58a   :  { %v934_v1 = vpop.xlane.xlu0 %933 }
 0x58b   :  { %12726 = vpow2.f32 %v951_v63  ;;  %v946_v3 = vsub.f32 %v600_v37, %v934_v1  ;;  %v925_v5 = vpop.xlane.xlu1 %924 }
 0x58c   :  { %12728 = vpow2.f32 %v957_v0  ;;  %v943_v9 = vsub.f32 %v757_v40, %v925_v5 }
 0x58d   :  { %v959_v10 = vmul.f32 1.442695, %v946_v3 }
 0x58e   :  { %v953_v11 = vmul.f32 1.442695, %v943_v9  ;;  %v937_v12 = vpop.xlane.xlu0 %936 }
 0x58f   :  { %12730 = vpow2.f32 %v959_v10  ;;  %v947_v13 = vsub.f32 %v758_v45, %v937_v12  ;;  %v928_v14 = vpop.xlane.xlu1 %927  ;;  %v196_v10 = vld [vmem:[#allocation2 + $0x20] sm:$0xff] }
 0x590   :  { %12732 = vpow2.f32 %v953_v11  ;;  %v944_v15 = vsub.f32 %v915_v48, %v928_v14  ;;  %v197_v11 = vld [vmem:[#allocation2 + $0x28] sm:$0xff] }
 0x591   :  { %v12725_v16 = vpop.eup %12724  ;;  %v961_v17 = vmul.f32 1.442695, %v947_v13  ;;  %v12469_v12 = vpack.c.bf16 %v197_v11, %v196_v10 }
 0x592   :  { %v955_v20 = vmul.f32 1.442695, %v944_v15  ;;  %v965_v21 = vsel %vm289_vm9, %v12725_v16, 0.0  ;;  %v198_v15 = vld [vmem:[#allocation2 + $0x30] sm:$0xff] }
 0x593   :  { %12734 = vpow2.f32 %v961_v17  ;;  %966 = vadd.xlane.f32.xlu1 %v965_v21  ;;  %v940_v22 = vpop.xlane.xlu0 %939  ;;  %v1006_v23 = vpop.permute.xlu1 %1005 }
 0x594   :  { %12736 = vpow2.f32 %v955_v20  ;;  %v948_v24 = vsub.f32 %v916_v53, %v940_v22  ;;  %11748 = vmatpush3.msra.mxu1 %v1006_v23 }
 0x595   :  { %v12727_v25 = vpop.eup %12726  ;;  %11757 = vmatprep.subr.mxu1 %v13056_v6 }
 0x596   :  { %v12729_v26 = vpop.eup %12728  ;;  %v963_v27 = vmul.f32 1.442695, %v948_v24  ;;  %v968_v28 = vsel %vm289_vm9, %v12727_v25, 0.0 }
 0x597   :  { %969 = vadd.xlane.f32.xlu1 %v968_v28  ;;  %v1082_v29 = vpop.permute.xlu0 %1081  ;;  %v977_v30 = vsel %vm289_vm9, %v12729_v26, 0.0  ;;  %v1158_v41 = vpop.permute.xlu1 %1157 }
 0x598   :  { %12738 = vpow2.f32 %v963_v27  ;;  %978 = vadd.xlane.f32.xlu0 %v977_v30  ;;  %11753 = vmatpush3.msra.mxu0 %v1082_v29 }
 0x599   :  { %v12731_v31 = vpop.eup %12730  ;;  %11762 = vmatprep.subr.mxu0 %v13056_v6 }
 0x59a   :  { %v12733_v32 = vpop.eup %12732  ;;  %v980_v33 = vsel %vm289_vm9, %v12731_v31, 0.0 }
 0x59b   :  { %v971_v34 = vsel %vm289_vm9, %v12733_v32, 0.0  ;;  %v1234_v42 = vpop.permute.xlu1 %1233  ;;  %v1310_v45 = vpop.permute.xlu0 %1309 }
 0x59c   :  { %981 = vadd.xlane.f32.xlu0 %v980_v33  ;;  %972 = vadd.xlane.f32.xlu1 %v971_v34 }
 0x59d   :  { %v12735_v35 = vpop.eup %12734 }
 0x59e   :  { %v13244_v36 = vpop.eup %12736  ;;  %v983_v37 = vsel %vm289_vm9, %v12735_v35, 0.0 }
 0x59f   :  { %v974_v38 = vsel %vm289_vm9, %v13244_v36, 0.0  ;;  %v1386_v43 = vpop.permute.xlu1 %1385 }
 0x5a0   :  { %984 = vadd.xlane.f32.xlu0 %v983_v37  ;;  %975 = vadd.xlane.f32.xlu1 %v974_v38 }
 0x5a2   :  { %v13249_v39 = vpop.eup %12738 }
 0x5a3   :  { %v986_v40 = vsel %vm289_vm9, %v13249_v39, 0.0 }
 0x5a4   :  { %987 = vadd.xlane.f32.xlu0 %v986_v40 }
 0x5b1   :  { %1537 = vrot.lane.b32.xlu1 %v13139_v2, %s13068_s11 }
 0x5ba   :  { %1461 = vrot.lane.b32.xlu0 %v13141_v4, %s13068_s11 }
 0x620   :  { %v967_v44 = vpop.xlane.xlu1 %966 }
 0x621   :  { %12740 = vrcp.f32 %v967_v44 }
 0x624   :  { %v970_v46 = vpop.xlane.xlu1 %969 }
 0x625   :  { %v979_v47 = vpop.xlane.xlu0 %978  ;;  %12742 = vrcp.f32 %v970_v46  ;;  %v11134_v46 = vld [vmem:[#allocation2 + $0x3a1] ss:$0 sm:$0xff] }
 0x626   :  { %12744 = vrcp.f32 %v979_v47 }
 0x629   :  { %v982_v48 = vpop.xlane.xlu0 %981  ;;  %v973_v49 = vpop.xlane.xlu1 %972 }
 0x62a   :  { %12746 = vrcp.f32 %v982_v48 }
 0x62b   :  { %v12741_v50 = vpop.eup %12740  ;;  %12748 = vrcp.f32 %v973_v49 }
 0x62c   :  { %v997_v51 = vmul.f32 %v12741_v50, %v12725_v16  ;;  %v199_v16 = vld [vmem:[#allocation2 + $0x38] sm:$0xff] }
 0x62d   :  { %v985_v2 = vpop.xlane.xlu0 %984  ;;  %v976_v52 = vpop.xlane.xlu1 %975  ;;  %v12473_v17 = vpack.c.bf16 %v199_v16, %v198_v15 }
 0x62e   :  { %12750 = vrcp.f32 %v985_v2  ;;  %11750 = vmatmul.mubr.msk.f32.vlgmr.msra.gmra.mrb[8].mxu1 %vm289_vm9, %v997_v51 }
 0x62f   :  { %v12743_v4 = vpop.eup %12742  ;;  %12752 = vrcp.f32 %v976_v52  ;;  %11758 = vmatpush3.msra.mxu1 %v1158_v41  ;;  %11759 = vmatprep.mubr.msk.f32.mxu1 %vm13061_vm8, %v13056_v6 }
 0x630   :  { %v12745_v53 = vpop.eup %12744  ;;  %11767 = vmatprep.subr.mxu1 %v13056_v6  ;;  %v998_v54 = vmul.f32 %v12743_v4, %v12727_v25 }
 0x631   :  { %v988_v55 = vpop.xlane.xlu0 %987  ;;  %v1001_v56 = vmul.f32 %v12745_v53, %v12729_v26  ;;  %v1538_v3 = vpop.permute.xlu1 %1537 }
 0x632   :  { %12754 = vrcp.f32 %v988_v55  ;;  %11760 = vmatmul.mubr.msk.f32.vlgmr.msra.gmra.mrb[10].mxu1 %vm289_vm9, %v998_v54 }
 0x633   :  { %11755 = vmatmul.mubr.msk.f32.vlgmr.msra.gmra.mrb[12].mxu0 %vm289_vm9, %v1001_v56  ;;  %11768 = vmatpush3.msra.mxu1 %v1310_v45 }
 0x634   :  { %v12747_v57 = vpop.eup %12746  ;;  %11763 = vmatpush3.msra.mxu0 %v1234_v42  ;;  %11764 = vmatprep.mubr.msk.f32.mxu0 %vm13061_vm8, %v13056_v6 }
 0x635   :  { %v12749_v58 = vpop.eup %12748  ;;  %11772 = vmatprep.subr.mxu0 %v13056_v6  ;;  %v1002_v59 = vmul.f32 %v12747_v57, %v12731_v31  ;;  %11769 = vmatprep.mubr.msk.f32.mxu1 %vm13061_vm8, %v13056_v6  ;;  %v1462_v60 = vpop.permute.xlu0 %1461 }
 0x636   :  { %11777 = vmatprep.subr.mxu1 %v13056_v6  ;;  %v999_v61 = vmul.f32 %v12749_v58, %v12733_v32 }
 0x637   :  { %11765 = vmatmul.mubr.msk.f32.vlgmr.msra.gmra.mrb[14].mxu0 %vm289_vm9, %v1002_v59 }
 0x638   :  { %v12751_v62 = vpop.eup %12750  ;;  %11773 = vmatpush3.msra.mxu0 %v1386_v43  ;;  %11770 = vmatmul.mubr.msk.f32.vlgmr.msra.gmra.mrb[12].mxu1 %vm289_vm9, %v999_v61  ;;  %v1785_v61 = vld [vmem:[#allocation2 + $0x40] sm:$0xff] }
 0x639   :  { %v12753_v63 = vpop.eup %12752  ;;  %11778 = vmatpush3.msra.mxu1 %v1462_v60  ;;  %11774 = vmatprep.mubr.msk.f32.mxu0 %vm13061_vm8, %v13056_v6  ;;  %v1003_v0 = vmul.f32 %v12751_v62, %v12735_v35  ;;  %v1786_v62 = vld [vmem:[#allocation2 + $0x48] sm:$0xff] }
 0x63a   :  { %11782 = vmatprep.subr.mxu0 %v13056_v6  ;;  %11779 = vmatprep.mubr.msk.f32.mxu1 %vm13061_vm8, %v13056_v6  ;;  %v1000_v1 = vmul.f32 %v12753_v63, %v13244_v36  ;;  %v1787_v63 = vld [vmem:[#allocation2 + $0x50] sm:$0xff] }
 0x63b   :  { %11775 = vmatmul.mubr.msk.f32.vlgmr.msra.gmra.mrb[16].mxu0 %vm289_vm9, %v1003_v0  ;;  %12470 = vmatprep.subr.bf16.mxu1 %v12469_v12  ;;  %v12477_v0 = vpack.c.bf16 %v1786_v62, %v1785_v61 }
 0x63c   :  { %v12755_v5 = vpop.eup %12754  ;;  %11783 = vmatpush3.msra.mxu0 %v1538_v3  ;;  %11780 = vmatmul.mubr.msk.f32.vlgmr.msra.gmra.mrb[14].mxu1 %vm289_vm9, %v1000_v1  ;;  %v1788_v1 = vld [vmem:[#allocation2 + $0x58] sm:$0xff] }
 0x63d   :  { %11784 = vmatprep.mubr.msk.f32.mxu0 %vm13061_vm8, %v13056_v6  ;;  %v1004_v9 = vmul.f32 %v12755_v5, %v13249_v39  ;;  %12472 = vmatpush3.bf16.msra.mxu1 %v12469_v12  ;;  %v12481_v3 = vpack.c.bf16 %v1788_v1, %v1787_v63  ;;  %v1790_v5 = vld [vmem:[#allocation2 + $0x60] sm:$0xff] }
 0x63e   :  { %12474 = vmatprep.subr.bf16.mxu1 %v12473_v17 }
 0x63f   :  { %11785 = vmatmul.mubr.msk.f32.vlgmr.msra.gmra.mrb[18].mxu0 %vm289_vm9, %v1004_v9  ;;  %v1791_v9 = vld [vmem:[#allocation2 + $0x68] sm:$0xff] }
 0x640   :  { %v12485_v10 = vpack.c.bf16 %v1791_v9, %v1790_v5 }
 0x641   :  { %12476 = vmatpush3.bf16.msra.mxu1 %v12473_v17 }
 0x642   :  { %12478 = vmatprep.subr.bf16.mxu1 %v12477_v0 }
 0x701   :  { %v1077_v13 = vpop.f32.mrb[8].mxu1 }
 0x702   :  { %v11751_v14 = vpop.f32.mrb[9].mxu1 }
 0x705   :  { %v1229_v20 = vpop.f32.mrb[10].mxu1 }
 0x706   :  { %v1153_v21 = vpop.f32.mrb[12].mxu0  ;;  %1615 = vrot.lane.b32.xlu0 %v1229_v20, %s13054_s23  ;;  %v11761_v22 = vpop.f32.mrb[11].mxu1 }
 0x707   :  { %v11756_v23 = vpop.f32.mrb[13].mxu0 }
 0x70a   :  { %v1305_v24 = vpop.f32.mrb[14].mxu0 }
 0x70b   :  { %1617 = vrot.lane.b32.xlu1 %v1305_v24, %s13054_s23  ;;  %v11766_v25 = vpop.f32.mrb[15].mxu0  ;;  %v1381_v26 = vpop.f32.mrb[12].mxu1 }
 0x70c   :  { %1623 = vrot.lane.b32.xlu0 %v1381_v26, %s13069_s12  ;;  %v11771_v27 = vpop.f32.mrb[13].mxu1 }
 0x70e   :  { %v1457_v28 = vpop.f32.mrb[16].mxu0 }
 0x70f   :  { %1625 = vrot.lane.b32.xlu1 %v1457_v28, %s13069_s12  ;;  %v11776_v29 = vpop.f32.mrb[17].mxu0  ;;  %v1533_v30 = vpop.f32.mrb[14].mxu1 }
 0x710   :  { %1631 = vrot.lane.b32.xlu0 %v1533_v30, %s13070_s13  ;;  %v11781_v31 = vpop.f32.mrb[15].mxu1  ;;  %v11137_v29 = vld [vmem:[#allocation2 + $0x3a6] ss:$0 sm:$0xff] }
 0x712   :  { %v1609_v32 = vpop.f32.mrb[18].mxu0 }
 0x713   :  { %1633 = vrot.lane.b32.xlu1 %v1609_v32, %s13070_s13  ;;  %v11786_v33 = vpop.f32.mrb[19].mxu0  ;;  %v11138_v32 = vld [vmem:[#allocation2 + $0x3a7] ss:$0 sm:$0xff] }
 0x778   :  { %v1616_v34 = vpop.permute.xlu0 %1615 }
 0x779   :  { %v1637_v37 = vsel %vm289_vm9, %v1077_v13, %v1616_v34 }
 0x77d   :  { %v1618_v35 = vpop.permute.xlu1 %1617 }
 0x77e   :  { %v1624_v36 = vpop.permute.xlu0 %1623  ;;  %v1638_v42 = vsel %vm289_vm9, %v1153_v21, %v1618_v35 }
 0x77f   :  { %v1639_v39 = vsel %vm48_vm0, %v1637_v37, %v1624_v36  ;;  %v1792_v37 = vld [vmem:[#allocation2 + $0x70] sm:$0xff] }
 0x781   :  { %v1626_v38 = vpop.permute.xlu1 %1625 }
 0x782   :  { %v1632_v40 = vpop.permute.xlu0 %1631  ;;  %v1640_v43 = vsel %vm48_vm0, %v1638_v42, %v1626_v38  ;;  %v1793_v38 = vld [vmem:[#allocation2 + $0x78] sm:$0xff]  ;;  %v1794_v42 = vld [vmem:[#allocation2 + $0x80] sm:$0xff] }
 0x783   :  { %v1642_v41 = vsel %vm1641_vm10, %v1639_v39, %v1632_v40 }
 0x784   :  { %11795 = vmatprep.mubr.msk.f32.mxu1 %vm136_vm3, %v1642_v41  ;;  %v12489_v41 = vpack.c.bf16 %v1793_v38, %v1792_v37 }
 0x785   :  { %v1634_v44 = vpop.permute.xlu1 %1633 }
 0x786   :  { %v1643_v45 = vsel %vm1641_vm10, %v1640_v43, %v1634_v44  ;;  %v1795_v43 = vld [vmem:[#allocation2 + $0x88] sm:$0xff] }
 0x787   :  { %11796 = vmatmul.mubr.msk.f32.vlgmr.msra.gmra.mrb[16].mxu1 %vm136_vm3, %v1643_v45  ;;  %v12493_v44 = vpack.c.bf16 %v1795_v43, %v1794_v42  ;;  %v1796_v45 = vld [vmem:[#allocation2 + $0x90] sm:$0xff] }
 0x788   :  { %12480 = vmatpush3.bf16.msra.mxu1 %v12477_v0 }
 0x789   :  { %12482 = vmatprep.subr.bf16.mxu1 %v12481_v3 }
 0x78c   :  { %12484 = vmatpush3.bf16.msra.mxu1 %v12481_v3 }
 0x78d   :  { %12486 = vmatprep.subr.bf16.mxu1 %v12485_v10 }
 0x85a   :  { %v11797_v47 = vpop.f32.mrb[16].mxu1 }
 0x85b   :  { %v1726_v48 = vadd.f32 %v11797_v47, %v11134_v46  ;;  %v1720_v49 = vpop.f32.mrb[17].mxu1 }
 0x85c   :  { %v1721_v50 = vadd.f32 %v11134_v46, %v1720_v49  ;;  %v1797_v46 = vld [vmem:[#allocation2 + $0x98] sm:$0xff] }
 0x85d   :  { %v13298_v51 = vadd.f32 %v1726_v48, %v13126_v19  ;;  %v12497_v47 = vpack.c.bf16 %v1797_v46, %v1796_v45  ;;  %v11139_v48 = vld [vmem:[#allocation2 + $0x3a2] ss:$0 sm:$0xff]  ;;  %v11147_v45 = vld [vmem:[#allocation2 + $0x3a8] ss:$0 sm:$0xff] }
 0x85e   :  { %v13301_v2 = vadd.f32 %v1721_v50, %v13124_v18 }
 0x85f   :  { %v1736_v52 = vsel %vm136_vm3, %v13298_v51, 0.0 }
 0x860   :  { %1737 = vadd.xlane.f32.xlu1 %v1736_v52  ;;  %v1733_v4 = vsel %vm136_vm3, %v13301_v2, 0.0 }
 0x861   :  { %1734 = vadd.xlane.f32.xlu0 %v1733_v4 }
 0x8ed   :  { %v1738_v53 = vpop.xlane.xlu1 %1737 }
 0x8ee   :  { %v1740_v54 = vmul.f32 0.03125, %v1738_v53  ;;  %v1735_v55 = vpop.xlane.xlu0 %1734 }
 0x8ef   :  { %v1739_v56 = vmul.f32 0.03125, %v1735_v55  ;;  %v11142_v55 = vld [vmem:[#allocation2 + $0x3a3] ss:$0 sm:$0xff] }
 0x8f0   :  { %v1742_v57 = vsub.f32 %v13298_v51, %v1740_v54 }
 0x8f1   :  { %v1741_v19 = vsub.f32 %v13301_v2, %v1739_v56 }
 0x8f2   :  { %v1744_v59 = vmul.f32 %v1742_v57, %v1742_v57  ;;  %v1772_v34 = vmul.f32 %v11137_v29, %v1742_v57 }
 0x8f3   :  { %v1743_v58 = vmul.f32 %v1741_v19, %v1741_v19  ;;  %v1771_v30 = vmul.f32 %v11137_v29, %v1741_v19 }
 0x8f4   :  { %v1748_v60 = vsel %vm136_vm3, %v1744_v59, 0.0 }
 0x8f5   :  { %v1745_v18 = vsel %vm136_vm3, %v1743_v58, 0.0 }
 0x8f6   :  { %1746 = vadd.xlane.f32.xlu0 %v1745_v18 }
 0x8fa   :  { %1749 = vadd.xlane.f32.xlu0 %v1748_v60 }
 0x983   :  { %v1747_v11 = vpop.xlane.xlu0 %1746 }
 0x984   :  { %v1751_v12 = vmul.f32 0.032258064, %v1747_v11  ;;  %v2028_v11 = vld [vmem:[#allocation2 + $0xa0] sm:$0xff] }
 0x986   :  { %12756 = vrsqrt.f32 %v1751_v12  ;;  %vm1755_vm11 = vcmp.eq.f32.partialorder %v1751_v12, inf  ;;  %v1758_v17 = vand.u32 2147483648, %v1751_v12  ;;  %vm1757_vm12 = vcmp.eq.f32.partialorder %v1751_v12, 0.0 }
 0x987   :  { %v1750_v13 = vpop.xlane.xlu0 %1749 }
 0x988   :  { %v1752_v14 = vmul.f32 0.032258064, %v1750_v13  ;;  %v2030_v13 = vld [vmem:[#allocation2 + $0xb0] sm:$0xff] }
 0x98a   :  { %12758 = vrsqrt.f32 %v1752_v14  ;;  %vm1762_vm13 = vcmp.eq.f32.partialorder %v1752_v14, inf  ;;  %v1765_v25 = vand.u32 2147483648, %v1752_v14  ;;  %vm1764_vm14 = vcmp.eq.f32.partialorder %v1752_v14, 0.0 }
 0x990   :  { %v12757_v15 = vpop.eup %12756 }
 0x991   :  { %v1754_v16 = vmul.f32 %v12757_v15, %v1751_v12  ;;  %v2031_v15 = vld [vmem:[#allocation2 + $0xb8] sm:$0xff] }
 0x993   :  { %v1756_v20 = vsel %vm1755_vm11, %v1751_v12, %v1754_v16  ;;  %v2029_v12 = vld [vmem:[#allocation2 + $0xa8] sm:$0xff]  ;;  %v12505_v16 = vpack.c.bf16 %v2031_v15, %v2030_v13 }
 0x994   :  { %v12759_v21 = vpop.eup %12758  ;;  %v1759_v22 = vsel %vm1757_vm12, %v1758_v17, %v1756_v20 }
 0x995   :  { %v1761_v23 = vmul.f32 %v12759_v21, %v1752_v14  ;;  %v1773_v24 = vadd.f32 1e-06, %v1759_v22 }
 0x997   :  { %v1763_v26 = vsel %vm1762_vm13, %v1752_v14, %v1761_v23  ;;  %12760 = vrcp.f32 %v1773_v24  ;;  %v12501_v14 = vpack.c.bf16 %v2029_v12, %v2028_v11 }
 0x998   :  { %v1766_v27 = vsel %vm1764_vm14, %v1765_v25, %v1763_v26 }
 0x999   :  { %v1774_v28 = vadd.f32 1e-06, %v1766_v27  ;;  %12502 = vmatprep.subr.bf16.mxu0 %v12501_v14 }
 0x99a   :  { %12504 = vmatpush3.bf16.msra.mxu0 %v12501_v14 }
 0x99b   :  { %12762 = vrcp.f32 %v1774_v28  ;;  %12506 = vmatprep.subr.bf16.mxu0 %v12505_v16 }
 0x99e   :  { %12508 = vmatpush3.bf16.msra.mxu0 %v12505_v16 }
 0x99f   :  { %11839 = vmatprep.subr.mxu0 %v13056_v6 }
 0x9a1   :  { %v12761_v31 = vpop.eup %12760 }
 0x9a2   :  { %v1776_v33 = vmul.f32 %v12761_v31, %v1771_v30 }
 0x9a4   :  { %v1783_v35 = vadd.f32 %v11138_v32, %v1776_v33 }
 0x9a5   :  { %v12763_v36 = vpop.eup %12762 }
 0x9a6   :  { %v1778_v39 = vmul.f32 %v12763_v36, %v1772_v34  ;;  %11806 = vmatprep.mubr.msk.f32.mxu1 %vm136_vm3, %v1783_v35  ;;  %v11145_v35 = vld [vmem:[#allocation2 + $0x3ac] ss:$0 sm:$0xff] }
 0x9a8   :  { %v1784_v40 = vadd.f32 %v11138_v32, %v1778_v39 }
 0x9aa   :  { %11807 = vmatmul.mubr.msk.f32.vlgmr.msra.gmra.mrb[18].mxu1 %vm136_vm3, %v1784_v40  ;;  %v11146_v40 = vld [vmem:[#allocation2 + $0x3ad] ss:$0 sm:$0xff] }
 0x9ab   :  { %12488 = vmatpush3.bf16.msra.mxu1 %v12485_v10 }
 0x9ac   :  { %12490 = vmatprep.subr.bf16.mxu1 %v12489_v41 }
 0x9af   :  { %12492 = vmatpush3.bf16.msra.mxu1 %v12489_v41 }
 0x9b0   :  { %12494 = vmatprep.subr.bf16.mxu1 %v12493_v44 }
 0x9b3   :  { %12496 = vmatpush3.bf16.msra.mxu1 %v12493_v44 }
 0x9b4   :  { %12498 = vmatprep.subr.bf16.mxu1 %v12497_v47 }
 0x9b7   :  { %12500 = vmatpush3.bf16.msra.mxu1 %v12497_v47 }
 0x9b8   :  { %11849 = vmatprep.subr.mxu1 %v13056_v6 }
 0xa7d   :  { %v11808_v49 = vpop.f32.mrb[18].mxu1 }
 0xa7e   :  { %v1881_v50 = vadd.f32 %v11808_v49, %v11139_v48  ;;  %v1875_v52 = vpop.f32.mrb[19].mxu1 }
 0xa7f   :  { %v1876_v4 = vadd.f32 %v11139_v48, %v1875_v52 }
 0xa80   :  { %v1885_v54 = vmax.f32 %v1881_v50, 0.0 }
 0xa81   :  { %v1884_v53 = vmax.f32 %v1876_v4, 0.0 }
 0xa83   :  { %11825 = vmatprep.mubr.msk.f32.mxu1 %vm1890_vm15, %v1884_v53 }
 0xa84   :  { %11826 = vmatmul.mubr.msk.f32.vlgmr.msra.gmra.mrb[20].mxu1 %vm1890_vm15, %v1885_v54 }
 0xa85   :  { %11851 = vmatprep.mubr.msk.f32.mxu1 %vm13061_vm8, %v13056_v6 }
 0xb57   :  { %v11827_v56 = vpop.f32.mrb[20].mxu1 }
 0xb58   :  { %v1969_v57 = vadd.f32 %v11827_v56, %v11142_v55  ;;  %v1963_v19 = vpop.f32.mrb[21].mxu1 }
 0xb59   :  { %v1964_v58 = vadd.f32 %v11142_v55, %v1963_v19 }
 0xb5a   :  { %v13319_v18 = vadd.f32 %v1969_v57, %v13298_v51 }
 0xb5b   :  { %v13322_v59 = vadd.f32 %v1964_v58, %v13301_v2 }
 0xb5c   :  { %v1979_v60 = vsel %vm136_vm3, %v13319_v18, 0.0 }
 0xb5d   :  { %1980 = vadd.xlane.f32.xlu0 %v1979_v60  ;;  %v1976_v61 = vsel %vm136_vm3, %v13322_v59, 0.0 }
 0xb5e   :  { %1977 = vadd.xlane.f32.xlu1 %v1976_v61 }
 0xbea   :  { %v1981_v62 = vpop.xlane.xlu0 %1980 }
 0xbeb   :  { %v1983_v63 = vmul.f32 0.03125, %v1981_v62  ;;  %v1978_v0 = vpop.xlane.xlu1 %1977 }
 0xbec   :  { %v1982_v1 = vmul.f32 0.03125, %v1978_v0 }
 0xbed   :  { %v1985_v3 = vsub.f32 %v13319_v18, %v1983_v63 }
 0xbee   :  { %v1984_v51 = vsub.f32 %v13322_v59, %v1982_v1 }
 0xbef   :  { %v1987_v5 = vmul.f32 %v1985_v3, %v1985_v3  ;;  %v2015_v36 = vmul.f32 %v11145_v35, %v1985_v3 }
 0xbf0   :  { %v1986_v9 = vmul.f32 %v1984_v51, %v1984_v51  ;;  %v2014_v38 = vmul.f32 %v11145_v35, %v1984_v51 }
 0xbf1   :  { %v1991_v2 = vsel %vm136_vm3, %v1987_v5, 0.0 }
 0xbf2   :  { %1992 = vadd.xlane.f32.xlu0 %v1991_v2  ;;  %v1988_v10 = vsel %vm136_vm3, %v1986_v9, 0.0 }
 0xbf3   :  { %1989 = vadd.xlane.f32.xlu1 %v1988_v10 }
 0xc7f   :  { %v1993_v17 = vpop.xlane.xlu0 %1992 }
 0xc80   :  { %v1995_v20 = vmul.f32 0.032258064, %v1993_v17  ;;  %v1990_v21 = vpop.xlane.xlu1 %1989 }
 0xc81   :  { %v1994_v22 = vmul.f32 0.032258064, %v1990_v21 }
 0xc82   :  { %12764 = vrsqrt.f32 %v1995_v20  ;;  %vm2005_vm1 = vcmp.eq.f32.partialorder %v1995_v20, inf  ;;  %v2008_v26 = vand.u32 2147483648, %v1995_v20  ;;  %vm2007_vm2 = vcmp.eq.f32.partialorder %v1995_v20, 0.0 }
 0xc83   :  { %12766 = vrsqrt.f32 %v1994_v22  ;;  %vm1998_vm4 = vcmp.eq.f32.partialorder %v1994_v22, inf  ;;  %v2001_v29 = vand.u32 2147483648, %v1994_v22  ;;  %vm2000_vm5 = vcmp.eq.f32.partialorder %v1994_v22, 0.0 }
 0xc8c   :  { %v12765_v23 = vpop.eup %12764 }
 0xc8d   :  { %v12767_v24 = vpop.eup %12766  ;;  %v2004_v25 = vmul.f32 %v12765_v23, %v1995_v20 }
 0xc8e   :  { %v1997_v27 = vmul.f32 %v12767_v24, %v1994_v22 }
 0xc8f   :  { %v2006_v28 = vsel %vm2005_vm1, %v1995_v20, %v2004_v25 }
 0xc90   :  { %v2009_v30 = vsel %vm2007_vm2, %v2008_v26, %v2006_v28  ;;  %v1999_v31 = vsel %vm1998_vm4, %v1994_v22, %v1997_v27 }
 0xc91   :  { %v2017_v32 = vadd.f32 1e-06, %v2009_v30  ;;  %v2002_v33 = vsel %vm2000_vm5, %v2001_v29, %v1999_v31 }
 0xc92   :  { %v2016_v34 = vadd.f32 1e-06, %v2002_v33 }
 0xc93   :  { %12768 = vrcp.f32 %v2017_v32 }
 0xc94   :  { %12770 = vrcp.f32 %v2016_v34 }
 0xc9d   :  { %v12769_v37 = vpop.eup %12768 }
 0xc9e   :  { %v12771_v39 = vpop.eup %12770  ;;  %v2021_v41 = vmul.f32 %v12769_v37, %v2015_v36 }
 0xc9f   :  { %v2019_v42 = vmul.f32 %v12771_v39, %v2014_v38 }
 0xca0   :  { %v2027_v44 = vadd.f32 %v11146_v40, %v2021_v41 }
 0xca1   :  { %v2026_v43 = vadd.f32 %v11146_v40, %v2019_v42 }
 0xca3   :  { %11836 = vmatprep.mubr.msk.f32.mxu0 %vm136_vm3, %v2026_v43 }
 0xca4   :  { %11837 = vmatmul.mubr.msk.f32.vlgmr.msra.gmra.mrb[20].mxu0 %vm136_vm3, %v2027_v44 }
 0xca5   :  { %11841 = vmatprep.mubr.msk.f32.mxu0 %vm13061_vm8, %v13056_v6 }
 0xd77   :  { %v11838_v46 = vpop.f32.mrb[20].mxu0 }
 0xd78   :  { %v13337_v47 = vadd.f32 %v11838_v46, %v11147_v45  ;;  %v2114_v48 = vpop.f32.mrb[21].mxu0 }
 0xd79   :  { %v13343_v49 = vadd.f32 %v11147_v45, %v2114_v48 }
 0xd7a   :  { %2359 = vrot.lane.b32.xlu1 %v13337_v47, %s13059_s30  ;;  %2201 = vrot.lane.b32.xlu0 %v13337_v47, %s13057_s0 }
 0xd7e   :  { %2357 = vrot.lane.b32.xlu1 %v13337_v47, %s13058_s2  ;;  %2279 = vrot.lane.b32.xlu0 %v13343_v49, %s13058_s2 }
 0xd82   :  { %2439 = vrot.lane.b32.xlu0 %v13343_v49, %s13063_s6  ;;  %2124 = vrot.lane.b32.xlu1 %v13343_v49, %s13057_s0 }
 0xd86   :  { %2437 = vrot.lane.b32.xlu0 %v13343_v49, %s13064_s7  ;;  %2517 = vrot.lane.b32.xlu1 %v13337_v47, %s13063_s6 }
 0xd8a   :  { %2597 = vrot.lane.b32.xlu0 %v13343_v49, %s13060_s4  ;;  %2281 = vrot.lane.b32.xlu1 %v13343_v49, %s13059_s30 }
 0xd8e   :  { %2595 = vrot.lane.b32.xlu0 %v13343_v49, %s13062_s5  ;;  %2515 = vrot.lane.b32.xlu1 %v13337_v47, %s13064_s7 }
 0xd92   :  { %2675 = vrot.lane.b32.xlu1 %v13337_v47, %s13060_s4 }
 0xd96   :  { %2673 = vrot.lane.b32.xlu1 %v13337_v47, %s13062_s5 }
 0xdec   :  { %v2360_v50 = vpop.permute.xlu1 %2359  ;;  %v2202_v52 = vpop.permute.xlu0 %2201 }
 0xdf0   :  { %v2358_v4 = vpop.permute.xlu1 %2357  ;;  %v2280_v53 = vpop.permute.xlu0 %2279 }
 0xdf4   :  { %v2125_v54 = vpop.permute.xlu1 %2124  ;;  %v2440_v55 = vpop.permute.xlu0 %2439 }
 0xdf5   :  { %11840 = vmatpush3.xpose.msk.msra.mxu0 %vm289_vm9, %v2125_v54 }
 0xdf6   :  { %11844 = vmatprep.subr.mxu0 %v13056_v6 }
 0xdf8   :  { %11842 = vmatmul.mubr.msk.f32.vlgmr.msra.gmra.mrb[22].mxu0 %vm289_vm9, %v13343_v49  ;;  %v2518_v56 = vpop.permute.xlu1 %2517  ;;  %v2438_v57 = vpop.permute.xlu0 %2437 }
 0xdf9   :  { %11845 = vmatpush3.xpose.msk.msra.mxu0 %vm289_vm9, %v2202_v52  ;;  %11846 = vmatprep.mubr.msk.f32.mxu0 %vm13061_vm8, %v13056_v6 }
 0xdfa   :  { %11854 = vmatprep.subr.mxu0 %v13056_v6 }
 0xdfc   :  { %11847 = vmatmul.mubr.msk.f32.vlgmr.msra.gmra.mrb[24].mxu0 %vm289_vm9, %v13337_v47  ;;  %v2282_v19 = vpop.permute.xlu1 %2281  ;;  %v2598_v60 = vpop.permute.xlu0 %2597 }
 0xdfd   :  { %11850 = vmatpush3.xpose.msk.msra.mxu1 %vm289_vm9, %v2282_v19  ;;  %11855 = vmatpush3.xpose.msk.msra.mxu0 %vm289_vm9, %v2360_v50 }
 0xdfe   :  { %11856 = vmatprep.mubr.msk.f32.mxu0 %vm13061_vm8, %v13056_v6  ;;  %11859 = vmatprep.subr.mxu1 %v13056_v6 }
 0xdff   :  { %11864 = vmatprep.subr.mxu0 %v13056_v6 }
 0xe00   :  { %11852 = vmatmul.mubr.msk.f32.vlgmr.msra.gmra.mrb[22].mxu1 %vm289_vm9, %v2280_v53  ;;  %11857 = vmatmul.mubr.msk.f32.vlgmr.msra.gmra.mrb[26].mxu0 %vm289_vm9, %v2358_v4  ;;  %v2516_v58 = vpop.permute.xlu1 %2515  ;;  %v2596_v62 = vpop.permute.xlu0 %2595 }
 0xe01   :  { %11860 = vmatpush3.xpose.msk.msra.mxu1 %vm289_vm9, %v2440_v55  ;;  %11865 = vmatpush3.xpose.msk.msra.mxu0 %vm289_vm9, %v2518_v56 }
 0xe02   :  { %11861 = vmatprep.mubr.msk.f32.mxu1 %vm13061_vm8, %v13056_v6  ;;  %11866 = vmatprep.mubr.msk.f32.mxu0 %vm13061_vm8, %v13056_v6 }
 0xe03   :  { %11869 = vmatprep.subr.mxu1 %v13056_v6  ;;  %11874 = vmatprep.subr.mxu0 %v13056_v6 }
 0xe04   :  { %11862 = vmatmul.mubr.msk.f32.vlgmr.msra.gmra.mrb[24].mxu1 %vm289_vm9, %v2438_v57  ;;  %11867 = vmatmul.mubr.msk.f32.vlgmr.msra.gmra.mrb[28].mxu0 %vm289_vm9, %v2516_v58  ;;  %v2676_v61 = vpop.permute.xlu1 %2675 }
 0xe05   :  { %11870 = vmatpush3.xpose.msk.msra.mxu1 %vm289_vm9, %v2598_v60  ;;  %11875 = vmatpush3.xpose.msk.msra.mxu0 %vm289_vm9, %v2676_v61 }
 0xe06   :  { %11871 = vmatprep.mubr.msk.f32.mxu1 %vm13061_vm8, %v13056_v6  ;;  %11876 = vmatprep.mubr.msk.f32.mxu0 %vm13061_vm8, %v13056_v6 }
 0xe07   :  { %11879 = vmatprep.subr.mxu1 %v13056_v6  ;;  %11884 = vmatprep.subr.mxu0 %v13056_v6 }
 0xe08   :  { %11872 = vmatmul.mubr.msk.f32.vlgmr.msra.gmra.mrb[26].mxu1 %vm289_vm9, %v2596_v62  ;;  %v2674_v63 = vpop.permute.xlu1 %2673 }
 0xe09   :  { %11877 = vmatmul.mubr.msk.f32.vlgmr.msra.gmra.mrb[30].mxu0 %vm289_vm9, %v2674_v63  ;;  %11881 = vmatprep.mubr.msk.f32.mxu1 %vm13061_vm8, %v13056_v6 }
 0xe0a   :  { %11886 = vmatprep.mubr.msk.f32.mxu0 %vm13061_vm8, %v13056_v6 }
 0xecb   :  { %v2196_v0 = vpop.f32.mrb[22].mxu0 }
 0xecc   :  { %v2277_v1 = vmul.f32 0.35355338, %v2196_v0  ;;  %v11843_v3 = vpop.f32.mrb[23].mxu0 }
 0xece   :  { %v2753_v51 = vsel %vm289_vm9, %v2277_v1, -inf }
 0xecf   :  { %2754 = vmax.xlane.f32.xlu0 %v2753_v51  ;;  %v2273_v5 = vpop.f32.mrb[24].mxu0 }
 0xed0   :  { %v2278_v9 = vmul.f32 0.35355338, %v2273_v5  ;;  %v11848_v2 = vpop.f32.mrb[25].mxu0 }
 0xed2   :  { %v2765_v10 = vsel %vm289_vm9, %v2278_v9, -inf }
 0xed3   :  { %2766 = vmax.xlane.f32.xlu1 %v2765_v10  ;;  %v2353_v11 = vpop.f32.mrb[22].mxu1  ;;  %v2431_v12 = vpop.f32.mrb[26].mxu0 }
 0xed4   :  { %v2435_v13 = vmul.f32 0.35355338, %v2353_v11  ;;  %v11853_v14 = vpop.f32.mrb[23].mxu1  ;;  %v11858_v15 = vpop.f32.mrb[27].mxu0  ;;  %v2436_v16 = vmul.f32 0.35355338, %v2431_v12 }
 0xed6   :  { %v2756_v17 = vsel %vm289_vm9, %v2435_v13, -inf  ;;  %v2768_v26 = vsel %vm289_vm9, %v2436_v16, -inf }
 0xed7   :  { %2757 = vmax.xlane.f32.xlu0 %v2756_v17  ;;  %v2511_v20 = vpop.f32.mrb[24].mxu1  ;;  %v2589_v21 = vpop.f32.mrb[28].mxu0 }
 0xed8   :  { %v2593_v22 = vmul.f32 0.35355338, %v2511_v20  ;;  %v11863_v23 = vpop.f32.mrb[25].mxu1  ;;  %v11868_v24 = vpop.f32.mrb[29].mxu0  ;;  %v2594_v25 = vmul.f32 0.35355338, %v2589_v21 }
 0xeda   :  { %v2759_v27 = vsel %vm289_vm9, %v2593_v22, -inf  ;;  %v2771_v35 = vsel %vm289_vm9, %v2594_v25, -inf }
 0xedb   :  { %2769 = vmax.xlane.f32.xlu0 %v2768_v26  ;;  %2760 = vmax.xlane.f32.xlu1 %v2759_v27  ;;  %v2669_v28 = vpop.f32.mrb[26].mxu1 }
 0xedc   :  { %v2751_v29 = vmul.f32 0.35355338, %v2669_v28  ;;  %v11873_v30 = vpop.f32.mrb[27].mxu1  ;;  %v2747_v31 = vpop.f32.mrb[30].mxu0 }
 0xedd   :  { %v11878_v32 = vpop.f32.mrb[31].mxu0  ;;  %v2752_v33 = vmul.f32 0.35355338, %v2747_v31 }
 0xede   :  { %v2762_v34 = vsel %vm289_vm9, %v2751_v29, -inf }
 0xedf   :  { %2763 = vmax.xlane.f32.xlu1 %v2762_v34  ;;  %2772 = vmax.xlane.f32.xlu0 %v2771_v35  ;;  %v2774_v36 = vsel %vm289_vm9, %v2752_v33, -inf }
 0xee3   :  { %2775 = vmax.xlane.f32.xlu0 %v2774_v36 }
 0xef0   :  { %2841 = vrot.lane.b32.xlu1 %v13343_v49, %s13065_s8 }
 0xef4   :  { %2993 = vrot.lane.b32.xlu1 %v13343_v49, %s13066_s9 }
 0xef8   :  { %3069 = vrot.lane.b32.xlu1 %v13337_v47, %s13066_s9 }
 0xef9   :  { %2917 = vrot.lane.b32.xlu0 %v13337_v47, %s13065_s8 }
 0xefc   :  { %3221 = vrot.lane.b32.xlu1 %v13337_v47, %s13067_s10 }
 0xefd   :  { %3145 = vrot.lane.b32.xlu0 %v13343_v49, %s13067_s10 }
 0xf5c   :  { %v2755_v37 = vpop.xlane.xlu0 %2754 }
 0xf5d   :  { %v2777_v38 = vsub.f32 %v2277_v1, %v2755_v37 }
 0xf5f   :  { %v2785_v39 = vmul.f32 1.442695, %v2777_v38 }
 0xf60   :  { %v2767_v40 = vpop.xlane.xlu1 %2766 }
 0xf61   :  { %12772 = vpow2.f32 %v2785_v39  ;;  %v2781_v41 = vsub.f32 %v2278_v9, %v2767_v40 }
 0xf63   :  { %v2793_v42 = vmul.f32 1.442695, %v2781_v41 }
 0xf64   :  { %v2758_v43 = vpop.xlane.xlu0 %2757 }
 0xf65   :  { %12774 = vpow2.f32 %v2793_v42  ;;  %v2778_v44 = vsub.f32 %v2435_v13, %v2758_v43 }
 0xf67   :  { %v2787_v45 = vmul.f32 1.442695, %v2778_v44 }
 0xf68   :  { %v2770_v46 = vpop.xlane.xlu0 %2769  ;;  %v2761_v48 = vpop.xlane.xlu1 %2760 }
 0xf69   :  { %12776 = vpow2.f32 %v2787_v45  ;;  %v2782_v50 = vsub.f32 %v2436_v16, %v2770_v46  ;;  %v2779_v52 = vsub.f32 %v2593_v22, %v2761_v48 }
 0xf6b   :  { %v12773_v4 = vpop.eup %12772  ;;  %v2795_v53 = vmul.f32 1.442695, %v2782_v50  ;;  %v2789_v54 = vmul.f32 1.442695, %v2779_v52 }
 0xf6c   :  { %v2773_v55 = vpop.xlane.xlu0 %2772  ;;  %v2764_v56 = vpop.xlane.xlu1 %2763  ;;  %v2801_v57 = vsel %vm289_vm9, %v12773_v4, 0.0 }
 0xf6d   :  { %12778 = vpow2.f32 %v2795_v53  ;;  %v2783_v19 = vsub.f32 %v2594_v25, %v2773_v55  ;;  %v2780_v58 = vsub.f32 %v2751_v29, %v2764_v56  ;;  %2802 = vadd.xlane.f32.xlu1 %v2801_v57  ;;  %v2033_v53 = vld [vmem:[#allocation2 + $0xc0] sm:$0xff] }
 0xf6e   :  { %12780 = vpow2.f32 %v2789_v54  ;;  %v2034_v54 = vld [vmem:[#allocation2 + $0xc8] sm:$0xff] }
 0xf6f   :  { %v12775_v60 = vpop.eup %12774  ;;  %v2797_v61 = vmul.f32 1.442695, %v2783_v19  ;;  %v2791_v62 = vmul.f32 1.442695, %v2780_v58  ;;  %v12509_v56 = vpack.c.bf16 %v2034_v54, %v2033_v53  ;;  %v2035_v19 = vld [vmem:[#allocation2 + $0xd0] sm:$0xff]  ;;  %v2036_v58 = vld [vmem:[#allocation2 + $0xd8] sm:$0xff] }
 0xf70   :  { %v2776_v63 = vpop.xlane.xlu0 %2775  ;;  %v2842_v0 = vpop.permute.xlu1 %2841  ;;  %v2813_v1 = vsel %vm289_vm9, %v12775_v60, 0.0  ;;  %v3869_v53 = vld [vmem:[#allocation2 + $0x318] sm:$0xff] }
 0xf71   :  { %12782 = vpow2.f32 %v2797_v61  ;;  %v2784_v3 = vsub.f32 %v2752_v33, %v2776_v63  ;;  %2814 = vadd.xlane.f32.xlu0 %v2813_v1  ;;  %11880 = vmatpush3.msra.mxu1 %v2842_v0  ;;  %v12513_v61 = vpack.c.bf16 %v2036_v58, %v2035_v19  ;;  %v3628_v58 = vld [vmem:[#allocation2 + $0x118] sm:$0xff] }
 0xf72   :  { %12784 = vpow2.f32 %v2791_v62  ;;  %11889 = vmatprep.subr.mxu1 %v13056_v6 }
 0xf73   :  { %v12777_v51 = vpop.eup %12776  ;;  %v2799_v5 = vmul.f32 1.442695, %v2784_v3 }
 0xf74   :  { %v2918_v9 = vpop.permute.xlu0 %2917  ;;  %v2804_v2 = vsel %vm289_vm9, %v12777_v51, 0.0  ;;  %v2994_v22 = vpop.permute.xlu1 %2993 }
 0xf75   :  { %12786 = vpow2.f32 %v2799_v5  ;;  %2805 = vadd.xlane.f32.xlu1 %v2804_v2  ;;  %11885 = vmatpush3.msra.mxu0 %v2918_v9 }
 0xf76   :  { %11894 = vmatprep.subr.mxu0 %v13056_v6 }
 0xf77   :  { %v12779_v10 = vpop.eup %12778 }
 0xf78   :  { %v12781_v11 = vpop.eup %12780  ;;  %v2816_v12 = vsel %vm289_vm9, %v12779_v10, 0.0  ;;  %v3070_v23 = vpop.permute.xlu1 %3069 }
 0xf79   :  { %2817 = vadd.xlane.f32.xlu0 %v2816_v12  ;;  %v2807_v13 = vsel %vm289_vm9, %v12781_v11, 0.0  ;;  %v3146_v25 = vpop.permute.xlu0 %3145 }
 0xf7a   :  { %2808 = vadd.xlane.f32.xlu1 %v2807_v13 }
 0xf7b   :  { %v12783_v14 = vpop.eup %12782 }
 0xf7c   :  { %v13438_v15 = vpop.eup %12784  ;;  %v2819_v16 = vsel %vm289_vm9, %v12783_v14, 0.0  ;;  %v3222_v24 = vpop.permute.xlu1 %3221 }
 0xf7d   :  { %2820 = vadd.xlane.f32.xlu0 %v2819_v16  ;;  %v2810_v17 = vsel %vm289_vm9, %v13438_v15, 0.0 }
 0xf7e   :  { %2811 = vadd.xlane.f32.xlu1 %v2810_v17 }
 0xf7f   :  { %v13443_v20 = vpop.eup %12786 }
 0xf80   :  { %v2822_v21 = vsel %vm289_vm9, %v13443_v20, 0.0 }
 0xf81   :  { %2823 = vadd.xlane.f32.xlu0 %v2822_v21 }
 0xf8f   :  { %3373 = vrot.lane.b32.xlu1 %v13337_v47, %s13068_s11 }
 0xf97   :  { %3297 = vrot.lane.b32.xlu0 %v13343_v49, %s13068_s11 }
 0xffa   :  { %v2803_v26 = vpop.xlane.xlu1 %2802 }
 0xffb   :  { %12788 = vrcp.f32 %v2803_v26 }
 0xffe   :  { %v2815_v27 = vpop.xlane.xlu0 %2814 }
 0xfff   :  { %12790 = vrcp.f32 %v2815_v27  ;;  %v11174_v27 = vld [vmem:[#allocation2 + $0x3a9] ss:$0 sm:$0xff] }
0x1002   :  { %v2806_v28 = vpop.xlane.xlu1 %2805 }
0x1003   :  { %12792 = vrcp.f32 %v2806_v28 }
0x1005   :  { %v12789_v29 = vpop.eup %12788 }
0x1006   :  { %v2818_v30 = vpop.xlane.xlu0 %2817  ;;  %v2833_v31 = vmul.f32 %v12789_v29, %v12773_v4 }
0x1007   :  { %12794 = vrcp.f32 %v2818_v30  ;;  %v2809_v32 = vpop.xlane.xlu1 %2808 }
0x1008   :  { %12796 = vrcp.f32 %v2809_v32  ;;  %11882 = vmatmul.mubr.msk.f32.vlgmr.msra.gmra.mrb[28].mxu1 %vm289_vm9, %v2833_v31 }
0x1009   :  { %v12791_v47 = vpop.eup %12790  ;;  %11890 = vmatpush3.msra.mxu1 %v2994_v22  ;;  %11891 = vmatprep.mubr.msk.f32.mxu1 %vm13061_vm8, %v13056_v6 }
0x100a   :  { %v2821_v49 = vpop.xlane.xlu0 %2820  ;;  %v2837_v33 = vmul.f32 %v12791_v47, %v12775_v60  ;;  %11899 = vmatprep.subr.mxu1 %v13056_v6 }
0x100b   :  { %12798 = vrcp.f32 %v2821_v49  ;;  %v2812_v34 = vpop.xlane.xlu1 %2811 }
0x100c   :  { %12800 = vrcp.f32 %v2812_v34  ;;  %11887 = vmatmul.mubr.msk.f32.vlgmr.msra.gmra.mrb[32].mxu0 %vm289_vm9, %v2837_v33  ;;  %v3866_v34 = vld [vmem:[%s14376_s1] sm:$0xff] }
0x100d   :  { %v12793_v35 = vpop.eup %12792  ;;  %11895 = vmatpush3.msra.mxu0 %v3070_v23  ;;  %11896 = vmatprep.mubr.msk.f32.mxu0 %vm13061_vm8, %v13056_v6 }
0x100e   :  { %v2824_v36 = vpop.xlane.xlu0 %2823  ;;  %v2834_v37 = vmul.f32 %v12793_v35, %v12777_v51  ;;  %11904 = vmatprep.subr.mxu0 %v13056_v6 }
0x100f   :  { %12802 = vrcp.f32 %v2824_v36  ;;  %v3374_v48 = vpop.permute.xlu1 %3373 }
0x1010   :  { %11892 = vmatmul.mubr.msk.f32.vlgmr.msra.gmra.mrb[30].mxu1 %vm289_vm9, %v2834_v37 }
0x1011   :  { %v12795_v38 = vpop.eup %12794  ;;  %11900 = vmatpush3.msra.mxu1 %v3146_v25  ;;  %11901 = vmatprep.mubr.msk.f32.mxu1 %vm13061_vm8, %v13056_v6 }
0x1012   :  { %v12797_v39 = vpop.eup %12796  ;;  %11909 = vmatprep.subr.mxu1 %v13056_v6  ;;  %v2838_v40 = vmul.f32 %v12795_v38, %v12779_v10  ;;  %v3298_v41 = vpop.permute.xlu0 %3297 }
0x1013   :  { %v2835_v42 = vmul.f32 %v12797_v39, %v12781_v11 }
0x1014   :  { %11897 = vmatmul.mubr.msk.f32.vlgmr.msra.gmra.mrb[34].mxu0 %vm289_vm9, %v2838_v40 }
0x1015   :  { %v12799_v43 = vpop.eup %12798  ;;  %11902 = vmatmul.mubr.msk.f32.vlgmr.msra.gmra.mrb[32].mxu1 %vm289_vm9, %v2835_v42  ;;  %11905 = vmatpush3.msra.mxu0 %v3222_v24 }
0x1016   :  { %v12801_v44 = vpop.eup %12800  ;;  %11910 = vmatpush3.msra.mxu1 %v3298_v41  ;;  %11906 = vmatprep.mubr.msk.f32.mxu0 %vm13061_vm8, %v13056_v6  ;;  %v2839_v45 = vmul.f32 %v12799_v43, %v12783_v14  ;;  %v3867_v43 = vld [vmem:[%s14376_s1 + $0x8] sm:$0xff]  ;;  %s13072_s1 = smov [#allocation5]  }
0x1017   :  { %11911 = vmatprep.mubr.msk.f32.mxu1 %vm13061_vm8, %v13056_v6  ;;  %11914 = vmatprep.subr.mxu0 %v13056_v6  ;;  %v2836_v46 = vmul.f32 %v12801_v44, %v13438_v15  ;;  %v3620_v44 = vld [vmem:[#allocation2 + $0xe0] sm:$0xff]  ;;  %s11089_s18 = sshll.u32 %s13072_s1, 4  ;;  %s11090_s18 = int_to_ptr.vmem [resolvable:$true] %s11089_s18 }
0x1018   :  { %11907 = vmatmul.mubr.msk.f32.vlgmr.msra.gmra.mrb[36].mxu0 %vm289_vm9, %v2839_v45  ;;  %12510 = vmatprep.subr.bf16.mxu1 %v12509_v56  ;;  %v3621_v45 = vld [vmem:[#allocation2 + $0xe8] sm:$0xff]  ;;  %s13026_s19 = scalar_lea.vmem %s11090_s18, 256  ;;  %p13031_p9 = scmp.lt.s32.totalorder %s11090_s18, %s11090_s18 }
0x1019   :  { %v12803_v50 = vpop.eup %12802  ;;  %11912 = vmatmul.mubr.msk.f32.vlgmr.msra.gmra.mrb[34].mxu1 %vm289_vm9, %v2836_v46  ;;  %11915 = vmatpush3.msra.mxu0 %v3374_v48  ;;  %v3622_v46 = vld [vmem:[#allocation2 + $0xf0] sm:$0xff]  ;;  %v12517_v48 = vpack.c.bf16 %v3621_v45, %v3620_v44  ;;  %p13027_p8 = scmp.ne.s32.totalorder %s11090_s18, %s13026_s19  ;;  %p13032_p10 = scmp.lt.s32.totalorder %s13026_s19, %s13026_s19 }
0x101a   :  { %11916 = vmatprep.mubr.msk.f32.mxu0 %vm13061_vm8, %v13056_v6  ;;  %v2840_v52 = vmul.f32 %v12803_v50, %v13443_v20  ;;  %12512 = vmatpush3.bf16.msra.mxu1 %v12509_v56  ;;  %v3623_v50 = vld [vmem:[#allocation2 + $0xf8] sm:$0xff]  ;;  %v3626_v56 = vld [vmem:[#allocation2 + $0x108] sm:$0xff] }
0x101b   :  { %12514 = vmatprep.subr.bf16.mxu1 %v12513_v61  ;;  %12518 = vmatprep.subr.bf16.mxu0 %v12517_v48  ;;  %p13033_p11 = por %p13032_p10, %p13031_p9 }
0x101c   :  { %11917 = vmatmul.mubr.msk.f32.vlgmr.msra.gmra.mrb[38].mxu0 %vm289_vm9, %v2840_v52  ;;  %v12521_v52 = vpack.c.bf16 %v3623_v50, %v3622_v46 }
0x101d   :  { %12520 = vmatpush3.bf16.msra.mxu0 %v12517_v48  ;;  %p13034_p12 = pnand %p13033_p11, %p13027_p8 }
0x101e   :  { %12516 = vmatpush3.bf16.msra.mxu1 %v12513_v61  ;;  %12522 = vmatprep.subr.bf16.mxu0 %v12521_v52  ;;  %v3629_v61 = vld [vmem:[#allocation2 + $0x120] sm:$0xff] }
0x1021   :  { %12524 = vmatpush3.bf16.msra.mxu0 %v12521_v52 }
0x10db   :  { %v2913_v4 = vpop.f32.mrb[28].mxu1 }
0x10dc   :  { %v11883_v55 = vpop.f32.mrb[29].mxu1 }
0x10dd   :  { %v3625_v55 = vld [vmem:[#allocation2 + $0x100] sm:$0xff] }
0x10de   :  { %v12525_v19 = vpack.c.bf16 %v3626_v56, %v3625_v55 }
0x10df   :  { %v2989_v57 = vpop.f32.mrb[32].mxu0 }
0x10e0   :  { %v11888_v60 = vpop.f32.mrb[33].mxu0  ;;  %12526 = vmatprep.subr.bf16.mxu1 %v12525_v19 }
0x10e3   :  { %v3065_v62 = vpop.f32.mrb[30].mxu1 }
0x10e4   :  { %3451 = vrot.lane.b32.xlu0 %v3065_v62, %s13054_s23  ;;  %v11893_v63 = vpop.f32.mrb[31].mxu1  ;;  %v3630_v62 = vld [vmem:[#allocation2 + $0x128] sm:$0xff] }
0x10e5   :  { %v12533_v63 = vpack.c.bf16 %v3630_v62, %v3629_v61 }
0x10e7   :  { %v3141_v0 = vpop.f32.mrb[34].mxu0 }
0x10e8   :  { %v3217_v1 = vpop.f32.mrb[32].mxu1  ;;  %3453 = vrot.lane.b32.xlu1 %v3141_v0, %s13054_s23  ;;  %v11898_v3 = vpop.f32.mrb[35].mxu0 }
0x10e9   :  { %3459 = vrot.lane.b32.xlu0 %v3217_v1, %s13069_s12  ;;  %v11903_v51 = vpop.f32.mrb[33].mxu1 }
0x10eb   :  { %v3293_v5 = vpop.f32.mrb[36].mxu0 }
0x10ec   :  { %v3369_v9 = vpop.f32.mrb[34].mxu1  ;;  %3461 = vrot.lane.b32.xlu1 %v3293_v5, %s13069_s12  ;;  %v11908_v2 = vpop.f32.mrb[37].mxu0 }
0x10ed   :  { %3467 = vrot.lane.b32.xlu0 %v3369_v9, %s13070_s13  ;;  %v11913_v10 = vpop.f32.mrb[35].mxu1 }
0x10ef   :  { %v3445_v11 = vpop.f32.mrb[38].mxu0 }
0x10f0   :  { %3469 = vrot.lane.b32.xlu1 %v3445_v11, %s13070_s13  ;;  %v11918_v12 = vpop.f32.mrb[39].mxu0 }
0x1156   :  { %v3452_v13 = vpop.permute.xlu0 %3451 }
0x1157   :  { %v3473_v16 = vsel %vm289_vm9, %v2913_v4, %v3452_v13  ;;  %v3868_v4 = vld [vmem:[#allocation2 + $0x310] sm:$0xff] }
0x1158   :  { %v12541_v54 = vpack.c.bf16 %v3869_v53, %v3868_v4 }
0x115a   :  { %v3454_v14 = vpop.permute.xlu1 %3453  ;;  %12542 = vmatprep.subr.bf16.mxu0 %v12541_v54 }
0x115b   :  { %v3460_v15 = vpop.permute.xlu0 %3459  ;;  %v3474_v23 = vsel %vm289_vm9, %v2989_v57, %v3454_v14  ;;  %v3627_v57 = vld [vmem:[#allocation2 + $0x110] sm:$0xff] }
0x115c   :  { %v3475_v20 = vsel %vm48_vm0, %v3473_v16, %v3460_v15  ;;  %v12529_v60 = vpack.c.bf16 %v3628_v58, %v3627_v57 }
0x115e   :  { %v3462_v17 = vpop.permute.xlu1 %3461 }
0x115f   :  { %v3468_v21 = vpop.permute.xlu0 %3467  ;;  %v3476_v24 = vsel %vm48_vm0, %v3474_v23, %v3462_v17 }
0x1160   :  { %v3477_v22 = vsel %vm1641_vm10, %v3475_v20, %v3468_v21  ;;  %v11177_v21 = vld [vmem:[#allocation2 + $0x3ae] ss:$0 sm:$0xff] }
0x1161   :  { %11927 = vmatprep.mubr.msk.f32.mxu1 %vm136_vm3, %v3477_v22 }
0x1162   :  { %v3470_v25 = vpop.permute.xlu1 %3469 }
0x1163   :  { %v3478_v26 = vsel %vm1641_vm10, %v3476_v24, %v3470_v25  ;;  %v11178_v24 = vld [vmem:[#allocation2 + $0x3af] ss:$0 sm:$0xff] }
0x1164   :  { %11928 = vmatmul.mubr.msk.f32.vlgmr.msra.gmra.mrb[36].mxu1 %vm136_vm3, %v3478_v26 }
0x1165   :  { %12528 = vmatpush3.bf16.msra.mxu1 %v12525_v19 }
0x1166   :  { %12530 = vmatprep.subr.bf16.mxu1 %v12529_v60 }
0x1169   :  { %12532 = vmatpush3.bf16.msra.mxu1 %v12529_v60 }
0x116a   :  { %12534 = vmatprep.subr.bf16.mxu1 %v12533_v63 }
0x116d   :  { %12536 = vmatpush3.bf16.msra.mxu1 %v12533_v63 }
0x1237   :  { %v11929_v28 = vpop.f32.mrb[36].mxu1 }
0x1238   :  { %v3561_v29 = vadd.f32 %v11929_v28, %v11174_v27  ;;  %v3555_v30 = vpop.f32.mrb[37].mxu1 }
0x1239   :  { %v3556_v31 = vadd.f32 %v11174_v27, %v3555_v30 }
0x123a   :  { %v13492_v32 = vadd.f32 %v3561_v29, %v13319_v18 }
0x123b   :  { %v13495_v47 = vadd.f32 %v3556_v31, %v13322_v59 }
0x123c   :  { %v3571_v49 = vsel %vm136_vm3, %v13492_v32, 0.0 }
0x123d   :  { %3572 = vadd.xlane.f32.xlu1 %v3571_v49  ;;  %v3568_v33 = vsel %vm136_vm3, %v13495_v47, 0.0 }
0x123e   :  { %3569 = vadd.xlane.f32.xlu0 %v3568_v33 }
0x124e   :  { %3872 = vperm.xlu1 %12695, %v3866_v34  }
0x12ca   :  { %v3573_v35 = vpop.xlane.xlu1 %3572 }
0x12cb   :  { %v3575_v36 = vmul.f32 0.03125, %v3573_v35  ;;  %v3570_v18 = vpop.xlane.xlu0 %3569  ;;  %v3631_v35 = vld [vmem:[#allocation2 + $0x130] sm:$0xff] }
0x12cc   :  { %v3574_v37 = vmul.f32 0.03125, %v3570_v18 }
0x12cd   :  { %v13505_v59 = vsub.f32 %v13492_v32, %v3575_v36  ;;  %v3632_v36 = vld [vmem:[#allocation2 + $0x138] sm:$0xff] }
0x12ce   :  { %v13508_v38 = vsub.f32 %v13495_v47, %v3574_v37  ;;  %v3873_v26 = vpop.permute.xlu1 %3872  ;;  %v12537_v18 = vpack.c.bf16 %v3632_v36, %v3631_v35  ;;  %v11179_v37 = vld [vmem:[#allocation2 + $0x3aa] ss:$0 sm:$0xff] }
0x12cf   :  { %v3579_v41 = vmul.f32 %v13505_v59, %v13505_v59  ;;  %v3607_v27 = vmul.f32 %v11177_v21, %v13505_v59  ;;  %vm3877_vm13 = vcmp.eq.s32.totalorder %v3873_v26, %v13116_v8 }
0x12d0   :  { %v3578_v39 = vmul.f32 %v13508_v38, %v13508_v38  ;;  %v3606_v22 = vmul.f32 %v11177_v21, %v13508_v38  ;;  %v11187_v33 = vsel %vm3877_vm13, 1.0, %v13056_v6  ;;  %12538 = vmatprep.subr.bf16.mxu1 %v12537_v18 }
0x12d1   :  { %v3583_v42 = vsel %vm136_vm3, %v3579_v41, 0.0  ;;  %12540 = vmatpush3.bf16.msra.mxu1 %v12537_v18 }
0x12d2   :  { %v3580_v40 = vsel %vm136_vm3, %v3578_v39, 0.0  ;;  %11983 = vmatprep.subr.mxu1 %v13056_v6 }
0x12d3   :  { %3581 = vadd.xlane.f32.xlu0 %v3580_v40 }
0x12d7   :  { %3584 = vadd.xlane.f32.xlu0 %v3583_v42  ;;  %v3870_v42 = vld [vmem:[#allocation2 + $0x360] sm:$0xff] }
0x12ed   :  { %3875 = vperm.xlu0 %12694, %v3867_v43  }
0x1360   :  { %v3582_v0 = vpop.xlane.xlu0 %3581 }
0x1361   :  { %v3586_v1 = vmul.f32 0.032258064, %v3582_v0  ;;  %v4022_v0 = vld [vmem:[#allocation2 + $0x140] sm:$0xff] }
0x1363   :  { %12804 = vrsqrt.f32 %v3586_v1  ;;  %vm3590_vm6 = vcmp.eq.f32.partialorder %v3586_v1, inf  ;;  %v3593_v2 = vand.u32 2147483648, %v3586_v1  ;;  %vm3592_vm7 = vcmp.eq.f32.partialorder %v3586_v1, 0.0 }
0x1364   :  { %v3585_v3 = vpop.xlane.xlu0 %3584 }
0x1365   :  { %v3587_v51 = vmul.f32 0.032258064, %v3585_v3  ;;  %v4024_v3 = vld [vmem:[#allocation2 + $0x150] sm:$0xff] }
0x1367   :  { %12806 = vrsqrt.f32 %v3587_v51  ;;  %vm3597_vm11 = vcmp.eq.f32.partialorder %v3587_v51, inf  ;;  %v3600_v15 = vand.u32 2147483648, %v3587_v51  ;;  %vm3599_vm12 = vcmp.eq.f32.partialorder %v3587_v51, 0.0 }
0x136c   :  { %v3876_v31 = vpop.permute.xlu0 %3875 }
0x136d   :  { %v12805_v5 = vpop.eup %12804  ;;  %vm3878_vm14 = vcmp.eq.s32.totalorder %v3876_v31, %v13116_v8 }
0x136e   :  { %v3589_v9 = vmul.f32 %v12805_v5, %v3586_v1  ;;  %v11188_v34 = vsel %vm3878_vm14, 1.0, %v13056_v6  ;;  %v4025_v5 = vld [vmem:[#allocation2 + $0x158] sm:$0xff] }
0x1370   :  { %v3591_v10 = vsel %vm3590_vm6, %v3586_v1, %v3589_v9  ;;  %v4023_v1 = vld [vmem:[#allocation2 + $0x148] sm:$0xff]  ;;  %v12549_v9 = vpack.c.bf16 %v4025_v5, %v4024_v3 }
0x1371   :  { %v12807_v11 = vpop.eup %12806  ;;  %v3594_v12 = vsel %vm3592_vm7, %v3593_v2, %v3591_v10 }
0x1372   :  { %v3596_v13 = vmul.f32 %v12807_v11, %v3587_v51  ;;  %v3608_v14 = vadd.f32 1e-06, %v3594_v12 }
0x1374   :  { %v3598_v16 = vsel %vm3597_vm11, %v3587_v51, %v3596_v13  ;;  %12808 = vrcp.f32 %v3608_v14  ;;  %v12545_v51 = vpack.c.bf16 %v4023_v1, %v4022_v0 }
0x1375   :  { %v3601_v17 = vsel %vm3599_vm12, %v3600_v15, %v3598_v16 }
0x1376   :  { %v3609_v20 = vadd.f32 1e-06, %v3601_v17 }
0x1378   :  { %12810 = vrcp.f32 %v3609_v20 }
0x137e   :  { %v12809_v23 = vpop.eup %12808 }
0x137f   :  { %v3611_v25 = vmul.f32 %v12809_v23, %v3606_v22 }
0x1381   :  { %v3618_v28 = vadd.f32 %v11178_v24, %v3611_v25 }
0x1382   :  { %v12811_v29 = vpop.eup %12810 }
0x1383   :  { %v3613_v30 = vmul.f32 %v12811_v29, %v3607_v27  ;;  %11938 = vmatprep.mubr.msk.f32.mxu0 %vm136_vm3, %v3618_v28  ;;  %v11191_v29 = vld [vmem:[#allocation2 + $0x3b8] ss:$0 sm:$0xff] }
0x1385   :  { %v3619_v49 = vadd.f32 %v11178_v24, %v3613_v30 }
0x1387   :  { %11939 = vmatmul.mubr.msk.f32.vlgmr.msra.gmra.mrb[40].mxu0 %vm136_vm3, %v3619_v49 }
0x1388   :  { %12544 = vmatpush3.bf16.msra.mxu0 %v12541_v54  ;;  %11964 = vmatprep.mubr.msk.f32.mxu0 %vm48_vm0, %v11187_v33 }
0x1389   :  { %12546 = vmatprep.subr.bf16.mxu0 %v12545_v51 }
0x138b   :  { %11965 = vmatmul.mubr.msk.f32.vlgmr.msra.gmra.mrb[42].mxu0 %vm48_vm0, %v11188_v34  ;;  %v11192_v34 = vld [vmem:[#allocation2 + $0x3b9] ss:$0 sm:$0xff] }
0x138c   :  { %12548 = vmatpush3.bf16.msra.mxu0 %v12545_v51 }
0x138d   :  { %12550 = vmatprep.subr.bf16.mxu0 %v12549_v9 }
0x1390   :  { %12552 = vmatpush3.bf16.msra.mxu0 %v12549_v9 }
0x1391   :  { %11978 = vmatprep.subr.mxu0 %v13056_v6 }
0x145a   :  { %v11940_v59 = vpop.f32.mrb[40].mxu0 }
0x145b   :  { %v3716_v38 = vadd.f32 %v11940_v59, %v11179_v37  ;;  %v3710_v39 = vpop.f32.mrb[41].mxu0  ;;  %v11193_v59 = vld [vmem:[#allocation2 + $0x3b2] ss:$0 sm:$0xff] }
0x145c   :  { %v3711_v40 = vadd.f32 %v11179_v37, %v3710_v39 }
0x145d   :  { %v3720_v44 = vmax.f32 %v3716_v38, 0.0 }
0x145e   :  { %v3719_v41 = vmax.f32 %v3711_v40, 0.0  ;;  %v11966_v43 = vpop.f32.mrb[42].mxu0 }
0x145f   :  { %v3965_v45 = vmul.f32 5.656854, %v11966_v43  ;;  %v3955_v46 = vpop.f32.mrb[43].mxu0 }
0x1460   :  { %v3964_v48 = vmul.f32 5.656854, %v3955_v46  ;;  %11957 = vmatprep.mubr.msk.f32.mxu1 %vm1890_vm15, %v3719_v41 }
0x1461   :  { %v13531_v50 = vadd.f32 %v3965_v45, %v3870_v42  ;;  %11958 = vmatmul.mubr.msk.f32.vlgmr.msra.gmra.mrb[38].mxu1 %vm1890_vm15, %v3720_v44 }
0x1462   :  { %v13534_v52 = vadd.f32 %v3964_v48, %v3870_v42  ;;  %11985 = vmatprep.mubr.msk.f32.mxu1 %vm13061_vm8, %v13056_v6 }
0x1463   :  { %v3973_v4 = vsel %vm136_vm3, %v13531_v50, 0.0 }
0x1464   :  { %3974 = vadd.xlane.f32.xlu0 %v3973_v4  ;;  %v3970_v53 = vsel %vm136_vm3, %v13534_v52, 0.0 }
0x1465   :  { %3971 = vadd.xlane.f32.xlu1 %v3970_v53 }
0x14f1   :  { %v3975_v54 = vpop.xlane.xlu0 %3974 }
0x14f2   :  { %v3977_v55 = vmul.f32 0.03125, %v3975_v54  ;;  %v3972_v56 = vpop.xlane.xlu1 %3971 }
0x14f3   :  { %v3976_v57 = vmul.f32 0.03125, %v3972_v56 }
0x14f4   :  { %v3979_v19 = vsub.f32 %v13531_v50, %v3977_v55 }
0x14f5   :  { %v3978_v58 = vsub.f32 %v13534_v52, %v3976_v57 }
0x14f6   :  { %v3981_v60 = vmul.f32 %v3979_v19, %v3979_v19  ;;  %v4009_v30 = vmul.f32 %v11191_v29, %v3979_v19 }
0x14f7   :  { %v3980_v61 = vmul.f32 %v3978_v58, %v3978_v58  ;;  %v4008_v49 = vmul.f32 %v11191_v29, %v3978_v58 }
0x14f8   :  { %v3985_v62 = vsel %vm136_vm3, %v3981_v60, 0.0  ;;  %v3863_v60 = vshrl.u32 %v34_v7, 7 }
0x14f9   :  { %3986 = vadd.xlane.f32.xlu0 %v3985_v62  ;;  %v3982_v63 = vsel %vm136_vm3, %v3980_v61, 0.0  ;;  %v13071_v61 = vmov -1e+09  }
0x14fa   :  { %3983 = vadd.xlane.f32.xlu1 %v3982_v63  ;;  %vm3864_vm6 = vcmp.ge.s32.totalorder %v3863_v60, %v13116_v8 }
0x14fb   :  { %v13631_v62 = vsel %vm3864_vm6, 0.0, %v13071_v61 }
0x1534   :  { %v13547_v2 = vpop.f32.mrb[38].mxu1 }
0x1535   :  { %v13549_v10 = vpop.f32.mrb[39].mxu1 }
0x1586   :  { %v3987_v11 = vpop.xlane.xlu0 %3986 }
0x1587   :  { %v3989_v12 = vmul.f32 0.032258064, %v3987_v11  ;;  %v3984_v13 = vpop.xlane.xlu1 %3983 }
0x1588   :  { %v3988_v14 = vmul.f32 0.032258064, %v3984_v13 }
0x1589   :  { %12812 = vrsqrt.f32 %v3989_v12  ;;  %vm3999_vm1 = vcmp.eq.f32.partialorder %v3989_v12, inf  ;;  %v4002_v20 = vand.u32 2147483648, %v3989_v12  ;;  %vm4001_vm2 = vcmp.eq.f32.partialorder %v3989_v12, 0.0 }
0x158a   :  { %12814 = vrsqrt.f32 %v3988_v14  ;;  %vm3992_vm4 = vcmp.eq.f32.partialorder %v3988_v14, inf  ;;  %v3995_v23 = vand.u32 2147483648, %v3988_v14  ;;  %vm3994_vm5 = vcmp.eq.f32.partialorder %v3988_v14, 0.0 }
0x1593   :  { %v12813_v15 = vpop.eup %12812 }
0x1594   :  { %v12815_v16 = vpop.eup %12814  ;;  %v3998_v17 = vmul.f32 %v12813_v15, %v3989_v12 }
0x1595   :  { %v3991_v21 = vmul.f32 %v12815_v16, %v3988_v14 }
0x1596   :  { %v4000_v22 = vsel %vm3999_vm1, %v3989_v12, %v3998_v17 }
0x1597   :  { %v4003_v24 = vsel %vm4001_vm2, %v4002_v20, %v4000_v22  ;;  %v3993_v25 = vsel %vm3992_vm4, %v3988_v14, %v3991_v21 }
0x1598   :  { %v4011_v26 = vadd.f32 1e-06, %v4003_v24  ;;  %v3996_v27 = vsel %vm3994_vm5, %v3995_v23, %v3993_v25 }
0x1599   :  { %v4010_v28 = vadd.f32 1e-06, %v3996_v27 }
0x159a   :  { %12816 = vrcp.f32 %v4011_v26 }
0x159b   :  { %12818 = vrcp.f32 %v4010_v28 }
0x15a4   :  { %v12817_v31 = vpop.eup %12816 }
0x15a5   :  { %v12819_v33 = vpop.eup %12818  ;;  %v4015_v35 = vmul.f32 %v12817_v31, %v4009_v30 }
0x15a6   :  { %v4013_v36 = vmul.f32 %v12819_v33, %v4008_v49 }
0x15a7   :  { %v4021_v37 = vadd.f32 %v11192_v34, %v4015_v35 }
0x15a8   :  { %v4020_v18 = vadd.f32 %v11192_v34, %v4013_v36 }
0x15aa   :  { %11975 = vmatprep.mubr.msk.f32.mxu0 %vm136_vm3, %v4020_v18 }
0x15ab   :  { %11976 = vmatmul.mubr.msk.f32.vlgmr.msra.gmra.mrb[44].mxu0 %vm136_vm3, %v4021_v37 }
0x15ac   :  { %11980 = vmatprep.mubr.msk.f32.mxu0 %vm13061_vm8, %v13056_v6 }
0x167e   :  { %v11977_v38 = vpop.f32.mrb[44].mxu0 }
0x167f   :  { %v13555_v39 = vadd.f32 %v11977_v38, %v11193_v59  ;;  %v4108_v40 = vpop.f32.mrb[45].mxu0 }
0x1680   :  { %v13561_v41 = vadd.f32 %v11193_v59, %v4108_v40 }
0x1681   :  { %4355 = vrot.lane.b32.xlu1 %v13555_v39, %s13059_s30  ;;  %4195 = vrot.lane.b32.xlu0 %v13555_v39, %s13057_s0 }
0x1685   :  { %4353 = vrot.lane.b32.xlu1 %v13555_v39, %s13058_s2  ;;  %4275 = vrot.lane.b32.xlu0 %v13561_v41, %s13058_s2 }
0x1689   :  { %4515 = vrot.lane.b32.xlu1 %v13555_v39, %s13063_s6  ;;  %4437 = vrot.lane.b32.xlu0 %v13561_v41, %s13063_s6 }
0x168d   :  { %4435 = vrot.lane.b32.xlu0 %v13561_v41, %s13064_s7  ;;  %4118 = vrot.lane.b32.xlu1 %v13561_v41, %s13057_s0 }
0x1691   :  { %4597 = vrot.lane.b32.xlu0 %v13561_v41, %s13060_s4  ;;  %4277 = vrot.lane.b32.xlu1 %v13561_v41, %s13059_s30 }
0x1695   :  { %4595 = vrot.lane.b32.xlu0 %v13561_v41, %s13062_s5  ;;  %4513 = vrot.lane.b32.xlu1 %v13555_v39, %s13064_s7 }
0x1699   :  { %4675 = vrot.lane.b32.xlu1 %v13555_v39, %s13060_s4 }
0x169d   :  { %4673 = vrot.lane.b32.xlu1 %v13555_v39, %s13062_s5 }
0x16f3   :  { %v4356_v42 = vpop.permute.xlu1 %4355  ;;  %v4196_v43 = vpop.permute.xlu0 %4195 }
0x16f4   :  { %11984 = vmatpush3.xpose.msk.msra.mxu1 %vm289_vm9, %v4196_v43 }
0x16f5   :  { %11993 = vmatprep.subr.mxu1 %v13056_v6 }
0x16f7   :  { %v4354_v44 = vpop.permute.xlu1 %4353  ;;  %11986 = vmatmul.mubr.msk.f32.vlgmr.msra.gmra.mrb[40].mxu1 %vm289_vm9, %v13555_v39  ;;  %v4276_v45 = vpop.permute.xlu0 %4275 }
0x16f8   :  { %11994 = vmatpush3.xpose.msk.msra.mxu1 %vm289_vm9, %v4356_v42  ;;  %11995 = vmatprep.mubr.msk.f32.mxu1 %vm13061_vm8, %v13056_v6 }
0x16f9   :  { %12003 = vmatprep.subr.mxu1 %v13056_v6 }
0x16fb   :  { %v4516_v46 = vpop.permute.xlu1 %4515  ;;  %11996 = vmatmul.mubr.msk.f32.vlgmr.msra.gmra.mrb[42].mxu1 %vm289_vm9, %v4354_v44  ;;  %v4438_v48 = vpop.permute.xlu0 %4437 }
0x16fc   :  { %12004 = vmatpush3.xpose.msk.msra.mxu1 %vm289_vm9, %v4516_v46  ;;  %12005 = vmatprep.mubr.msk.f32.mxu1 %vm13061_vm8, %v13056_v6 }
0x16fd   :  { %12013 = vmatprep.subr.mxu1 %v13056_v6 }
0x16ff   :  { %v4119_v4 = vpop.permute.xlu1 %4118  ;;  %v4436_v53 = vpop.permute.xlu0 %4435 }
0x1700   :  { %11979 = vmatpush3.xpose.msk.msra.mxu0 %vm289_vm9, %v4119_v4 }
0x1701   :  { %11988 = vmatprep.subr.mxu0 %v13056_v6 }
0x1703   :  { %11981 = vmatmul.mubr.msk.f32.vlgmr.msra.gmra.mrb[46].mxu0 %vm289_vm9, %v13561_v41  ;;  %v4278_v54 = vpop.permute.xlu1 %4277  ;;  %v4598_v56 = vpop.permute.xlu0 %4597 }
0x1704   :  { %11989 = vmatpush3.xpose.msk.msra.mxu0 %vm289_vm9, %v4278_v54  ;;  %11990 = vmatprep.mubr.msk.f32.mxu0 %vm13061_vm8, %v13056_v6 }
0x1705   :  { %11998 = vmatprep.subr.mxu0 %v13056_v6 }
0x1707   :  { %11991 = vmatmul.mubr.msk.f32.vlgmr.msra.gmra.mrb[48].mxu0 %vm289_vm9, %v4276_v45  ;;  %v4514_v55 = vpop.permute.xlu1 %4513  ;;  %v4596_v19 = vpop.permute.xlu0 %4595 }
0x1708   :  { %11999 = vmatpush3.xpose.msk.msra.mxu0 %vm289_vm9, %v4438_v48  ;;  %12006 = vmatmul.mubr.msk.f32.vlgmr.msra.gmra.mrb[44].mxu1 %vm289_vm9, %v4514_v55 }
0x1709   :  { %12000 = vmatprep.mubr.msk.f32.mxu0 %vm13061_vm8, %v13056_v6  ;;  %12008 = vmatprep.subr.mxu0 %v13056_v6 }
0x170a   :  { %12015 = vmatprep.mubr.msk.f32.mxu1 %vm13061_vm8, %v13056_v6 }
0x170b   :  { %12001 = vmatmul.mubr.msk.f32.vlgmr.msra.gmra.mrb[50].mxu0 %vm289_vm9, %v4436_v53  ;;  %v4676_v57 = vpop.permute.xlu1 %4675 }
0x170c   :  { %12009 = vmatpush3.xpose.msk.msra.mxu0 %vm289_vm9, %v4598_v56  ;;  %12014 = vmatpush3.xpose.msk.msra.mxu1 %vm289_vm9, %v4676_v57 }
0x170d   :  { %12010 = vmatprep.mubr.msk.f32.mxu0 %vm13061_vm8, %v13056_v6  ;;  %12018 = vmatprep.subr.mxu0 %v13056_v6 }
0x170e   :  { %12023 = vmatprep.subr.mxu1 %v13056_v6 }
0x170f   :  { %12011 = vmatmul.mubr.msk.f32.vlgmr.msra.gmra.mrb[52].mxu0 %vm289_vm9, %v4596_v19  ;;  %v4674_v58 = vpop.permute.xlu1 %4673 }
0x1710   :  { %12016 = vmatmul.mubr.msk.f32.vlgmr.msra.gmra.mrb[46].mxu1 %vm289_vm9, %v4674_v58  ;;  %12020 = vmatprep.mubr.msk.f32.mxu0 %vm13061_vm8, %v13056_v6 }
0x1711   :  { %12025 = vmatprep.mubr.msk.f32.mxu1 %vm13061_vm8, %v13056_v6 }
0x17ca   :  { %v4267_v63 = vpop.f32.mrb[40].mxu1 }
0x17cb   :  { %v4272_v0 = vmul.f32 0.35355338, %v4267_v63  ;;  %v11987_v1 = vpop.f32.mrb[41].mxu1 }
0x17cd   :  { %v4274_v3 = vadd.f32 %v4272_v0, %v13631_v62 }
0x17ce   :  { %v4427_v51 = vpop.f32.mrb[42].mxu1 }
0x17cf   :  { %v11997_v5 = vpop.f32.mrb[43].mxu1  ;;  %v4767_v9 = vsel %vm289_vm9, %v4274_v3, -inf  ;;  %v4432_v14 = vmul.f32 0.35355338, %v4427_v51 }
0x17d0   :  { %4768 = vmax.xlane.f32.xlu1 %v4767_v9 }
0x17d1   :  { %v4434_v24 = vadd.f32 %v4432_v14, %v13631_v62 }
0x17d3   :  { %v4770_v35 = vsel %vm289_vm9, %v4434_v24, -inf }
0x17d6   :  { %v4190_v11 = vpop.f32.mrb[46].mxu0 }
0x17d7   :  { %v4271_v12 = vmul.f32 0.35355338, %v4190_v11  ;;  %v11982_v13 = vpop.f32.mrb[47].mxu0 }
0x17d9   :  { %v4273_v7 = vadd.f32 %v4271_v12, %v13631_v62 }
0x17da   :  { %v4349_v8 = vpop.f32.mrb[48].mxu0 }
0x17db   :  { %v4431_v15 = vmul.f32 0.35355338, %v4349_v8  ;;  %v11992_v16 = vpop.f32.mrb[49].mxu0  ;;  %v4587_v17 = vpop.f32.mrb[44].mxu1  ;;  %v4755_v20 = vsel %vm289_vm9, %v4273_v7, -inf }
0x17dc   :  { %4756 = vmax.xlane.f32.xlu0 %v4755_v20  ;;  %v12007_v21 = vpop.f32.mrb[45].mxu1  ;;  %v4592_v25 = vmul.f32 0.35355338, %v4587_v17 }
0x17dd   :  { %v4433_v22 = vadd.f32 %v4431_v15, %v13631_v62 }
0x17de   :  { %v4509_v23 = vpop.f32.mrb[50].mxu0  ;;  %v4594_v31 = vadd.f32 %v4592_v25, %v13631_v62 }
0x17df   :  { %v4591_v26 = vmul.f32 0.35355338, %v4509_v23  ;;  %v12002_v27 = vpop.f32.mrb[51].mxu0  ;;  %v4758_v28 = vsel %vm289_vm9, %v4433_v22, -inf }
0x17e0   :  { %4759 = vmax.xlane.f32.xlu0 %v4758_v28  ;;  %v4773_v42 = vsel %vm289_vm9, %v4594_v31, -inf }
0x17e1   :  { %v4593_v29 = vadd.f32 %v4591_v26, %v13631_v62 }
0x17e2   :  { %v4669_v30 = vpop.f32.mrb[52].mxu0 }
0x17e3   :  { %v4751_v49 = vmul.f32 0.35355338, %v4669_v30  ;;  %v12012_v33 = vpop.f32.mrb[53].mxu0  ;;  %v4747_v34 = vpop.f32.mrb[46].mxu1  ;;  %v4761_v36 = vsel %vm289_vm9, %v4593_v29, -inf }
0x17e4   :  { %v4752_v18 = vmul.f32 0.35355338, %v4747_v34  ;;  %4771 = vmax.xlane.f32.xlu0 %v4770_v35  ;;  %4762 = vmax.xlane.f32.xlu1 %v4761_v36  ;;  %v12017_v37 = vpop.f32.mrb[47].mxu1 }
0x17e5   :  { %v4753_v59 = vadd.f32 %v4751_v49, %v13631_v62 }
0x17e6   :  { %v4754_v38 = vadd.f32 %v4752_v18, %v13631_v62 }
0x17e7   :  { %v4764_v40 = vsel %vm289_vm9, %v4753_v59, -inf }
0x17e8   :  { %4765 = vmax.xlane.f32.xlu1 %v4764_v40  ;;  %4774 = vmax.xlane.f32.xlu0 %v4773_v42  ;;  %v4776_v43 = vsel %vm289_vm9, %v4754_v38, -inf }
0x17ec   :  { %4777 = vmax.xlane.f32.xlu0 %v4776_v43 }
0x17f9   :  { %4843 = vrot.lane.b32.xlu1 %v13561_v41, %s13065_s8 }
0x17fd   :  { %4995 = vrot.lane.b32.xlu1 %v13561_v41, %s13066_s9 }
0x1801   :  { %5071 = vrot.lane.b32.xlu1 %v13555_v39, %s13066_s9 }
0x1802   :  { %4919 = vrot.lane.b32.xlu0 %v13555_v39, %s13065_s8 }
0x1805   :  { %5223 = vrot.lane.b32.xlu1 %v13555_v39, %s13067_s10 }
0x1806   :  { %5147 = vrot.lane.b32.xlu0 %v13561_v41, %s13067_s10 }
0x185d   :  { %v4769_v44 = vpop.xlane.xlu1 %4768 }
0x185e   :  { %v4783_v45 = vsub.f32 %v4274_v3, %v4769_v44 }
0x1860   :  { %v4795_v46 = vmul.f32 1.442695, %v4783_v45 }
0x1862   :  { %12820 = vpow2.f32 %v4795_v46 }
0x1869   :  { %v4757_v48 = vpop.xlane.xlu0 %4756 }
0x186a   :  { %v4779_v4 = vsub.f32 %v4273_v7, %v4757_v48 }
0x186c   :  { %v13661_v53 = vpop.eup %12820  ;;  %v4787_v54 = vmul.f32 1.442695, %v4779_v4 }
0x186d   :  { %v4760_v55 = vpop.xlane.xlu0 %4759  ;;  %v4815_v56 = vsel %vm289_vm9, %v13661_v53, 0.0 }
0x186e   :  { %12822 = vpow2.f32 %v4787_v54  ;;  %v4780_v57 = vsub.f32 %v4433_v22, %v4760_v55  ;;  %4816 = vadd.xlane.f32.xlu0 %v4815_v56 }
0x1870   :  { %v4789_v19 = vmul.f32 1.442695, %v4780_v57 }
0x1871   :  { %v4772_v58 = vpop.xlane.xlu0 %4771  ;;  %v4763_v60 = vpop.xlane.xlu1 %4762 }
0x1872   :  { %12824 = vpow2.f32 %v4789_v19  ;;  %v4784_v61 = vsub.f32 %v4434_v24, %v4772_v58  ;;  %v4781_v63 = vsub.f32 %v4593_v29, %v4763_v60 }
0x1874   :  { %v4797_v0 = vmul.f32 1.442695, %v4784_v61  ;;  %v4791_v1 = vmul.f32 1.442695, %v4781_v63 }
0x1875   :  { %v4775_v3 = vpop.xlane.xlu0 %4774  ;;  %v4766_v51 = vpop.xlane.xlu1 %4765 }
0x1876   :  { %12826 = vpow2.f32 %v4797_v0  ;;  %v4785_v5 = vsub.f32 %v4594_v31, %v4775_v3  ;;  %v4782_v9 = vsub.f32 %v4753_v59, %v4766_v51  ;;  %v4027_v51 = vld [vmem:[#allocation2 + $0x160] sm:$0xff] }
0x1877   :  { %12828 = vpow2.f32 %v4791_v1 }
0x1878   :  { %v12823_v11 = vpop.eup %12822  ;;  %v4799_v12 = vmul.f32 1.442695, %v4785_v5  ;;  %v4793_v13 = vmul.f32 1.442695, %v4782_v9  ;;  %v4028_v5 = vld [vmem:[#allocation2 + $0x168] sm:$0xff] }
0x1879   :  { %v4778_v7 = vpop.xlane.xlu0 %4777  ;;  %v4844_v14 = vpop.permute.xlu1 %4843  ;;  %v4803_v8 = vsel %vm289_vm9, %v12823_v11, 0.0  ;;  %v12553_v9 = vpack.c.bf16 %v4028_v5, %v4027_v51 }
0x187a   :  { %12830 = vpow2.f32 %v4799_v12  ;;  %v4786_v15 = vsub.f32 %v4754_v38, %v4778_v7  ;;  %4804 = vadd.xlane.f32.xlu1 %v4803_v8  ;;  %12019 = vmatpush3.msra.mxu0 %v4844_v14  ;;  %v4029_v12 = vld [vmem:[#allocation2 + $0x170] sm:$0xff] }
0x187b   :  { %12832 = vpow2.f32 %v4793_v13  ;;  %12028 = vmatprep.subr.mxu0 %v13056_v6  ;;  %v4030_v13 = vld [vmem:[#allocation2 + $0x178] sm:$0xff] }
0x187c   :  { %v12825_v16 = vpop.eup %12824  ;;  %v4801_v17 = vmul.f32 1.442695, %v4786_v15  ;;  %v12557_v14 = vpack.c.bf16 %v4030_v13, %v4029_v12 }
0x187d   :  { %v4920_v20 = vpop.permute.xlu0 %4919  ;;  %v4806_v21 = vsel %vm289_vm9, %v12825_v16, 0.0  ;;  %v4996_v49 = vpop.permute.xlu1 %4995 }
0x187e   :  { %12834 = vpow2.f32 %v4801_v17  ;;  %4807 = vadd.xlane.f32.xlu1 %v4806_v21  ;;  %12024 = vmatpush3.msra.mxu1 %v4920_v20 }
0x187f   :  { %12033 = vmatprep.subr.mxu1 %v13056_v6 }
0x1880   :  { %v12827_v22 = vpop.eup %12826 }
0x1881   :  { %v12829_v23 = vpop.eup %12828  ;;  %v4818_v24 = vsel %vm289_vm9, %v12827_v22, 0.0  ;;  %v5148_v33 = vpop.permute.xlu0 %5147 }
0x1882   :  { %4819 = vadd.xlane.f32.xlu0 %v4818_v24  ;;  %v4809_v25 = vsel %vm289_vm9, %v12829_v23, 0.0  ;;  %v5072_v35 = vpop.permute.xlu1 %5071 }
0x1883   :  { %4810 = vadd.xlane.f32.xlu1 %v4809_v25 }
0x1884   :  { %v12831_v26 = vpop.eup %12830 }
0x1885   :  { %v13671_v27 = vpop.eup %12832  ;;  %v4821_v28 = vsel %vm289_vm9, %v12831_v26, 0.0 }
0x1886   :  { %4822 = vadd.xlane.f32.xlu0 %v4821_v28  ;;  %v4812_v29 = vsel %vm289_vm9, %v13671_v27, 0.0  ;;  %v5224_v36 = vpop.permute.xlu1 %5223  ;;  %v11182_v28 = vld [vmem:[#allocation2 + $0x3ab] ss:$0 sm:$0xff] }
0x1887   :  { %4813 = vadd.xlane.f32.xlu1 %v4812_v29  ;;  %v3798_v29 = vadd.f32 %v11182_v28, %v13549_v10 }
0x1888   :  { %v13676_v30 = vpop.eup %12834 }
0x1889   :  { %v4824_v31 = vsel %vm289_vm9, %v13676_v30, 0.0 }
0x188a   :  { %4825 = vadd.xlane.f32.xlu0 %v4824_v31  ;;  %v3803_v31 = vadd.f32 %v13547_v2, %v11182_v28 }
0x1898   :  { %5375 = vrot.lane.b32.xlu1 %v13555_v39, %s13068_s11 }
0x18a0   :  { %5299 = vrot.lane.b32.xlu0 %v13561_v41, %s13068_s11 }
0x18fb   :  { %v4817_v34 = vpop.xlane.xlu0 %4816 }
0x18fc   :  { %12836 = vrcp.f32 %v4817_v34 }
0x1906   :  { %v12837_v18 = vpop.eup %12836 }
0x1907   :  { %v4805_v37 = vpop.xlane.xlu1 %4804  ;;  %v4839_v59 = vmul.f32 %v12837_v18, %v13661_v53 }
0x1908   :  { %12838 = vrcp.f32 %v4805_v37 }
0x1909   :  { %12026 = vmatmul.mubr.msk.f32.vlgmr.msra.gmra.mrb[48].mxu1 %vm289_vm9, %v4839_v59 }
0x190a   :  { %12034 = vmatpush3.msra.mxu1 %v5072_v35  ;;  %12035 = vmatprep.mubr.msk.f32.mxu1 %vm13061_vm8, %v13056_v6 }
0x190b   :  { %v4808_v39 = vpop.xlane.xlu1 %4807  ;;  %12043 = vmatprep.subr.mxu1 %v13056_v6 }
0x190c   :  { %12840 = vrcp.f32 %v4808_v39 }
0x190f   :  { %v4820_v41 = vpop.xlane.xlu0 %4819 }
0x1910   :  { %12842 = vrcp.f32 %v4820_v41  ;;  %v4811_v38 = vpop.xlane.xlu1 %4810 }
0x1911   :  { %12844 = vrcp.f32 %v4811_v38 }
0x1912   :  { %v12839_v40 = vpop.eup %12838 }
0x1913   :  { %v4823_v42 = vpop.xlane.xlu0 %4822  ;;  %v4835_v43 = vmul.f32 %v12839_v40, %v12823_v11 }
0x1914   :  { %12846 = vrcp.f32 %v4823_v42  ;;  %v4814_v44 = vpop.xlane.xlu1 %4813 }
0x1915   :  { %12848 = vrcp.f32 %v4814_v44  ;;  %12021 = vmatmul.mubr.msk.f32.vlgmr.msra.gmra.mrb[54].mxu0 %vm289_vm9, %v4835_v43 }
0x1916   :  { %v12841_v45 = vpop.eup %12840  ;;  %12029 = vmatpush3.msra.mxu0 %v4996_v49  ;;  %12030 = vmatprep.mubr.msk.f32.mxu0 %vm13061_vm8, %v13056_v6 }
0x1917   :  { %v4826_v46 = vpop.xlane.xlu0 %4825  ;;  %12038 = vmatprep.subr.mxu0 %v13056_v6  ;;  %v4836_v48 = vmul.f32 %v12841_v45, %v12825_v16 }
0x1918   :  { %12850 = vrcp.f32 %v4826_v46  ;;  %v5376_v61 = vpop.permute.xlu1 %5375 }
0x1919   :  { %12031 = vmatmul.mubr.msk.f32.vlgmr.msra.gmra.mrb[56].mxu0 %vm289_vm9, %v4836_v48 }
0x191a   :  { %v12843_v4 = vpop.eup %12842  ;;  %12039 = vmatpush3.msra.mxu0 %v5148_v33  ;;  %12040 = vmatprep.mubr.msk.f32.mxu0 %vm13061_vm8, %v13056_v6  ;;  %v3807_v33 = vadd.f32 %v3803_v31, %v13492_v32 }
0x191b   :  { %v12845_v53 = vpop.eup %12844  ;;  %12048 = vmatprep.subr.mxu0 %v13056_v6  ;;  %v4840_v54 = vmul.f32 %v12843_v4, %v12827_v22  ;;  %v5300_v55 = vpop.permute.xlu0 %5299 }
0x191c   :  { %v4837_v56 = vmul.f32 %v12845_v53, %v12829_v23  ;;  %v3813_v34 = vsel %vm136_vm3, %v3807_v33, 0.0  ;;  %v11185_v53 = vld [vmem:[#allocation2 + $0x3b0] ss:$0 sm:$0xff] }
0x191d   :  { %12036 = vmatmul.mubr.msk.f32.vlgmr.msra.gmra.mrb[50].mxu1 %vm289_vm9, %v4840_v54 }
0x191e   :  { %v12847_v57 = vpop.eup %12846  ;;  %12041 = vmatmul.mubr.msk.f32.vlgmr.msra.gmra.mrb[58].mxu0 %vm289_vm9, %v4837_v56  ;;  %12044 = vmatpush3.msra.mxu1 %v5224_v36 }
0x191f   :  { %v12849_v19 = vpop.eup %12848  ;;  %12049 = vmatpush3.msra.mxu0 %v5300_v55  ;;  %12045 = vmatprep.mubr.msk.f32.mxu1 %vm13061_vm8, %v13056_v6  ;;  %v4841_v58 = vmul.f32 %v12847_v57, %v12831_v26  ;;  %v11220_v57 = vld [vmem:[#allocation2 + $0x3b3] ss:$0 sm:$0xff] }
0x1920   :  { %12050 = vmatprep.mubr.msk.f32.mxu0 %vm13061_vm8, %v13056_v6  ;;  %12053 = vmatprep.subr.mxu1 %v13056_v6  ;;  %v4838_v60 = vmul.f32 %v12849_v19, %v13671_v27 }
0x1921   :  { %12046 = vmatmul.mubr.msk.f32.vlgmr.msra.gmra.mrb[52].mxu1 %vm289_vm9, %v4841_v58  ;;  %12554 = vmatprep.subr.bf16.mxu0 %v12553_v9 }
0x1922   :  { %v12851_v63 = vpop.eup %12850  ;;  %12051 = vmatmul.mubr.msk.f32.vlgmr.msra.gmra.mrb[60].mxu0 %vm289_vm9, %v4838_v60  ;;  %12054 = vmatpush3.msra.mxu1 %v5376_v61 }
0x1923   :  { %12055 = vmatprep.mubr.msk.f32.mxu1 %vm13061_vm8, %v13056_v6  ;;  %v4842_v0 = vmul.f32 %v12851_v63, %v13676_v30  ;;  %12556 = vmatpush3.bf16.msra.mxu0 %v12553_v9  ;;  %v3806_v30 = vadd.f32 %v3798_v29, %v13495_v47  ;;  %v5622_v29 = vld [vmem:[#allocation2 + $0x180] sm:$0xff] }
0x1924   :  { %12558 = vmatprep.subr.bf16.mxu0 %v12557_v14 }
0x1925   :  { %12056 = vmatmul.mubr.msk.f32.vlgmr.msra.gmra.mrb[54].mxu1 %vm289_vm9, %v4842_v0  ;;  %v3810_v49 = vsel %vm136_vm3, %v3806_v30, 0.0 }
0x1927   :  { %12560 = vmatpush3.bf16.msra.mxu0 %v12557_v14 }
0x19dc   :  { %v4991_v1 = vpop.f32.mrb[48].mxu1 }
0x19dd   :  { %v12027_v3 = vpop.f32.mrb[49].mxu1 }
0x19e8   :  { %v4915_v11 = vpop.f32.mrb[54].mxu0 }
0x19e9   :  { %v12022_v7 = vpop.f32.mrb[55].mxu0 }
0x19ec   :  { %v5067_v8 = vpop.f32.mrb[56].mxu0 }
0x19ed   :  { %5453 = vrot.lane.b32.xlu0 %v5067_v8, %s13054_s23  ;;  %v12032_v15 = vpop.f32.mrb[57].mxu0  ;;  %v13745_v8 = vld [vmem:[#allocation2 + $0x3b1] ss:$0 sm:$0xff] }
0x19f0   :  { %v5143_v16 = vpop.f32.mrb[50].mxu1 }
0x19f1   :  { %v5219_v17 = vpop.f32.mrb[58].mxu0  ;;  %5455 = vrot.lane.b32.xlu1 %v5143_v16, %s13054_s23  ;;  %v12037_v20 = vpop.f32.mrb[51].mxu1 }
0x19f2   :  { %5461 = vrot.lane.b32.xlu0 %v5219_v17, %s13069_s12  ;;  %v12042_v21 = vpop.f32.mrb[59].mxu0 }
0x19f4   :  { %v5295_v22 = vpop.f32.mrb[52].mxu1 }
0x19f5   :  { %v5371_v23 = vpop.f32.mrb[60].mxu0  ;;  %5463 = vrot.lane.b32.xlu1 %v5295_v22, %s13069_s12  ;;  %v12047_v24 = vpop.f32.mrb[53].mxu1 }
0x19f6   :  { %5469 = vrot.lane.b32.xlu0 %v5371_v23, %s13070_s13  ;;  %v12052_v25 = vpop.f32.mrb[61].mxu0 }
0x19f8   :  { %v5447_v26 = vpop.f32.mrb[54].mxu1 }
0x19f9   :  { %5471 = vrot.lane.b32.xlu1 %v5447_v26, %s13070_s13  ;;  %v12057_v27 = vpop.f32.mrb[55].mxu1 }
0x1a15   :  { %3811 = vadd.xlane.f32.xlu0 %v3810_v49  ;;  %v5624_v49 = vld [vmem:[#allocation2 + $0x190] sm:$0xff] }
0x1a1d   :  { %3814 = vadd.xlane.f32.xlu1 %v3813_v34 }
0x1a5f   :  { %v5454_v35 = vpop.permute.xlu0 %5453 }
0x1a60   :  { %v5475_v37 = vsel %vm289_vm9, %v4915_v11, %v5454_v35 }
0x1a63   :  { %v5456_v36 = vpop.permute.xlu1 %5455 }
0x1a64   :  { %v5462_v18 = vpop.permute.xlu0 %5461  ;;  %v5476_v2 = vsel %vm289_vm9, %v4991_v1, %v5456_v36 }
0x1a65   :  { %v5477_v10 = vsel %vm48_vm0, %v5475_v37, %v5462_v18  ;;  %v13767_v18 = vld [vmem:[#allocation2 + $0x3b4] ss:$0 sm:$0xff] }
0x1a67   :  { %v5464_v59 = vpop.permute.xlu1 %5463 }
0x1a68   :  { %v5470_v39 = vpop.permute.xlu0 %5469  ;;  %v5478_v32 = vsel %vm48_vm0, %v5476_v2, %v5464_v59 }
0x1a69   :  { %v5479_v47 = vsel %vm1641_vm10, %v5477_v10, %v5470_v39 }
0x1a6a   :  { %12066 = vmatprep.mubr.msk.f32.mxu0 %vm136_vm3, %v5479_v47 }
0x1a6b   :  { %v5472_v41 = vpop.permute.xlu1 %5471 }
0x1a6c   :  { %v5480_v38 = vsel %vm1641_vm10, %v5478_v32, %v5472_v41 }
0x1a6d   :  { %12067 = vmatmul.mubr.msk.f32.vlgmr.msra.gmra.mrb[62].mxu0 %vm136_vm3, %v5480_v38 }
0x1aa2   :  { %v3812_v40 = vpop.xlane.xlu0 %3811 }
0x1aa3   :  { %v3816_v42 = vmul.f32 0.03125, %v3812_v40 }
0x1aa5   :  { %v3818_v43 = vsub.f32 %v3806_v30, %v3816_v42  ;;  %v5623_v30 = vld [vmem:[#allocation2 + $0x188] sm:$0xff] }
0x1aa6   :  { %v12696_v31 = vpack.i.bf16 %v5623_v30, %v5622_v29  ;;  %v12561_v35 = vpack.c.bf16 %v5623_v30, %v5622_v29 }
0x1aa7   :  { %v3820_v44 = vmul.f32 %v3818_v43, %v3818_v43  ;;  %v3848_v14 = vmul.f32 %v11185_v53, %v3818_v43 }
0x1aa8   :  { %12562 = vmatprep.subr.bf16.mxu1 %v12561_v35 }
0x1aa9   :  { %v3822_v45 = vsel %vm136_vm3, %v3820_v44, 0.0  ;;  %12564 = vmatpush3.bf16.msra.mxu1 %v12561_v35 }
0x1aaa   :  { %3823 = vadd.xlane.f32.xlu1 %v3822_v45  ;;  %v3815_v46 = vpop.xlane.xlu1 %3814 }
0x1aab   :  { %v3817_v48 = vmul.f32 0.03125, %v3815_v46 }
0x1aad   :  { %v3819_v4 = vsub.f32 %v3807_v33, %v3817_v48  ;;  %v5625_v33 = vld [vmem:[#allocation2 + $0x198] sm:$0xff] }
0x1aae   :  { %v12701_v34 = vpack.i.bf16 %v5625_v33, %v5624_v49  ;;  %v12565_v36 = vpack.c.bf16 %v5625_v33, %v5624_v49 }
0x1aaf   :  { %v13732_v54 = vmul.f32 %v11185_v53, %v3819_v4  ;;  %v3821_v7 = vmul.f32 %v3819_v4, %v3819_v4 }
0x1ab0   :  { %12566 = vmatprep.subr.bf16.mxu1 %v12565_v36 }
0x1ab1   :  { %12568 = vmatpush3.bf16.msra.mxu1 %v12565_v36 }
0x1ab2   :  { %12091 = vmatprep.subr.mxu1 %v13056_v6 }
0x1b37   :  { %v3824_v55 = vpop.xlane.xlu1 %3823 }
0x1b38   :  { %v3828_v56 = vmul.f32 0.032258064, %v3824_v55 }
0x1b3a   :  { %12852 = vrsqrt.f32 %v3828_v56  ;;  %vm3832_vm7 = vcmp.eq.f32.partialorder %v3828_v56, inf  ;;  %v3835_v3 = vand.u32 2147483648, %v3828_v56  ;;  %vm3834_vm11 = vcmp.eq.f32.partialorder %v3828_v56, 0.0 }
0x1b40   :  { %v12068_v19 = vpop.f32.mrb[62].mxu0 }
0x1b41   :  { %v5557_v58 = vpop.f32.mrb[63].mxu0  ;;  %v5563_v60 = vadd.f32 %v12068_v19, %v11220_v57 }
0x1b42   :  { %v5558_v61 = vadd.f32 %v11220_v57, %v5557_v58 }
0x1b43   :  { %v13738_v51 = vadd.f32 %v5563_v60, %v13531_v50 }
0x1b44   :  { %v12853_v63 = vpop.eup %12852  ;;  %v13735_v0 = vadd.f32 %v5558_v61, %v13534_v52  ;;  %v3825_v52 = vsel %vm136_vm3, %v3821_v7, 0.0 }
0x1b45   :  { %v3831_v1 = vmul.f32 %v12853_v63, %v3828_v56  ;;  %v5573_v13 = vsel %vm136_vm3, %v13738_v51, 0.0 }
0x1b46   :  { %v5570_v5 = vsel %vm136_vm3, %v13735_v0, 0.0 }
0x1b47   :  { %v3833_v9 = vsel %vm3832_vm7, %v3828_v56, %v3831_v1  ;;  %5571 = vadd.xlane.f32.xlu0 %v5570_v5 }
0x1b48   :  { %v3836_v11 = vsel %vm3834_vm11, %v3835_v3, %v3833_v9 }
0x1b49   :  { %v3850_v12 = vadd.f32 1e-06, %v3836_v11 }
0x1b4b   :  { %5574 = vadd.xlane.f32.xlu0 %v5573_v13  ;;  %12854 = vrcp.f32 %v3850_v12 }
0x1b4f   :  { %3826 = vadd.xlane.f32.xlu0 %v3825_v52  ;;  %v11223_v52 = vld [vmem:[#allocation2 + $0x3ba] ss:$0 sm:$0xff] }
0x1b55   :  { %v12855_v50 = vpop.eup %12854 }
0x1b56   :  { %v3853_v15 = vmul.f32 %v12855_v50, %v3848_v14 }
0x1b58   :  { %v13748_v16 = vadd.f32 %v13745_v8, %v3853_v15 }
0x1b5a   :  { %12088 = vmatprep.mubr.msk.f32.mxu0 %vm136_vm3, %v13748_v16 }
0x1bd4   :  { %v5572_v17 = vpop.xlane.xlu0 %5571 }
0x1bd5   :  { %v5576_v20 = vmul.f32 0.03125, %v5572_v17 }
0x1bd7   :  { %v13753_v21 = vsub.f32 %v13735_v0, %v5576_v20 }
0x1bd8   :  { %v5575_v22 = vpop.xlane.xlu0 %5574 }
0x1bd9   :  { %v5577_v23 = vmul.f32 0.03125, %v5575_v22  ;;  %v5580_v24 = vmul.f32 %v13753_v21, %v13753_v21  ;;  %v5608_v14 = vmul.f32 %v11223_v52, %v13753_v21 }
0x1bdb   :  { %v13758_v25 = vsub.f32 %v13738_v51, %v5577_v23  ;;  %v5582_v26 = vsel %vm136_vm3, %v5580_v24, 0.0 }
0x1bdc   :  { %5583 = vadd.xlane.f32.xlu1 %v5582_v26  ;;  %v3827_v37 = vpop.xlane.xlu0 %3826 }
0x1bdd   :  { %v5581_v27 = vmul.f32 %v13758_v25, %v13758_v25  ;;  %v3829_v59 = vmul.f32 0.032258064, %v3827_v37  ;;  %v5609_v20 = vmul.f32 %v11223_v52, %v13758_v25 }
0x1bdf   :  { %v5585_v28 = vsel %vm136_vm3, %v5581_v27, 0.0  ;;  %12856 = vrsqrt.f32 %v3829_v59  ;;  %vm3839_vm12 = vcmp.eq.f32.partialorder %v3829_v59, inf  ;;  %v3842_v2 = vand.u32 2147483648, %v3829_v59 }
0x1be0   :  { %5586 = vadd.xlane.f32.xlu0 %v5585_v28  ;;  %vm3841_vm13 = vcmp.eq.f32.partialorder %v3829_v59, 0.0 }
0x1be9   :  { %v12857_v10 = vpop.eup %12856 }
0x1bea   :  { %v3838_v39 = vmul.f32 %v12857_v10, %v3829_v59 }
0x1bec   :  { %v3840_v47 = vsel %vm3839_vm12, %v3829_v59, %v3838_v39 }
0x1bed   :  { %12697 = vrot.lane.b32.xlu1 %v12696_v31, %s13057_s0  ;;  %v3843_v32 = vsel %vm3841_vm13, %v3842_v2, %v3840_v47 }
0x1bee   :  { %v3851_v41 = vadd.f32 1e-06, %v3843_v32 }
0x1bf0   :  { %12858 = vrcp.f32 %v3851_v41 }
0x1bf1   :  { %5734 = vrot.lane.b32.xlu1 %v13767_v18, %s13057_s0 }
0x1bf6   :  { %12702 = vrot.lane.b32.xlu0 %v12701_v34, %s13057_s0 }
0x1bfa   :  { %v12859_v4 = vpop.eup %12858 }
0x1bfb   :  { %v3855_v19 = vmul.f32 %v12859_v4, %v13732_v54 }
0x1bfd   :  { %v13773_v1 = vadd.f32 %v13745_v8, %v3855_v19  ;;  %v11224_v8 = vld [vmem:[#allocation2 + $0x3bb] ss:$0 sm:$0xff] }
0x1c69   :  { %v5584_v38 = vpop.xlane.xlu1 %5583 }
0x1c6a   :  { %v5588_v40 = vmul.f32 0.032258064, %v5584_v38 }
0x1c6c   :  { %12860 = vrsqrt.f32 %v5588_v40  ;;  %vm5592_vm14 = vcmp.eq.f32.partialorder %v5588_v40, inf  ;;  %v5595_v61 = vand.u32 2147483648, %v5588_v40  ;;  %vm5594_vm1 = vcmp.eq.f32.partialorder %v5588_v40, 0.0 }
0x1c6d   :  { %v12698_v42 = vpop.permute.xlu1 %12697  ;;  %v5587_v43 = vpop.xlane.xlu0 %5586 }
0x1c6e   :  { %v12700_v44 = vunpack.i.h.bf16 %v12698_v42  ;;  %v12699_v45 = vunpack.i.l.bf16 %v12698_v42  ;;  %v5589_v46 = vmul.f32 0.032258064, %v5587_v43 }
0x1c70   :  { %v12569_v48 = vpack.c.bf16 %v12700_v44, %v12699_v45  ;;  %12862 = vrsqrt.f32 %v5589_v46  ;;  %vm5599_vm2 = vcmp.eq.f32.partialorder %v5589_v46, inf  ;;  %v5602_v11 = vand.u32 2147483648, %v5589_v46 }
0x1c71   :  { %v12703_v53 = vpop.permute.xlu0 %12702  ;;  %vm5601_vm4 = vcmp.eq.f32.partialorder %v5589_v46, 0.0  ;;  %v5735_v26 = vpop.permute.xlu1 %5734 }
0x1c72   :  { %12570 = vmatprep.subr.bf16.mxu0 %v12569_v48  ;;  %v12705_v55 = vunpack.i.h.bf16 %v12703_v53  ;;  %v12704_v56 = vunpack.i.l.bf16 %v12703_v53 }
0x1c73   :  { %12572 = vmatpush3.bf16.msra.mxu0 %v12569_v48 }
0x1c74   :  { %v12573_v57 = vpack.c.bf16 %v12705_v55, %v12704_v56 }
0x1c76   :  { %v12861_v58 = vpop.eup %12860  ;;  %12574 = vmatprep.subr.bf16.mxu0 %v12573_v57 }
0x1c77   :  { %v5591_v60 = vmul.f32 %v12861_v58, %v5588_v40  ;;  %12576 = vmatpush3.bf16.msra.mxu0 %v12573_v57 }
0x1c78   :  { %12101 = vmatprep.subr.mxu0 %v13056_v6 }
0x1c79   :  { %v5593_v63 = vsel %vm5592_vm14, %v5588_v40, %v5591_v60 }
0x1c7a   :  { %v5596_v3 = vsel %vm5594_vm1, %v5595_v61, %v5593_v63  ;;  %v12863_v5 = vpop.eup %12862  ;;  %12089 = vmatmul.mubr.msk.f32.vlgmr.msra.gmra.mrb[64].mxu0 %vm136_vm3, %v13773_v1 }
0x1c7b   :  { %v5610_v9 = vadd.f32 1e-06, %v5596_v3  ;;  %v5598_v54 = vmul.f32 %v12863_v5, %v5589_v46  ;;  %12103 = vmatprep.mubr.msk.f32.mxu0 %vm13061_vm8, %v13056_v6 }
0x1c7d   :  { %12864 = vrcp.f32 %v5610_v9  ;;  %v5600_v12 = vsel %vm5599_vm2, %v5589_v46, %v5598_v54 }
0x1c7e   :  { %v5603_v13 = vsel %vm5601_vm4, %v5602_v11, %v5600_v12 }
0x1c7f   :  { %v5611_v7 = vadd.f32 1e-06, %v5603_v13 }
0x1c81   :  { %12866 = vrcp.f32 %v5611_v7 }
0x1c87   :  { %v12865_v50 = vpop.eup %12864 }
0x1c88   :  { %v5613_v15 = vmul.f32 %v12865_v50, %v5608_v14 }
0x1c8a   :  { %v5620_v17 = vadd.f32 %v11224_v8, %v5613_v15 }
0x1c8b   :  { %v12867_v22 = vpop.eup %12866 }
0x1c8c   :  { %12077 = vmatprep.mubr.msk.f32.mxu1 %vm136_vm3, %v5620_v17  ;;  %v5615_v23 = vmul.f32 %v12867_v22, %v5609_v20 }
0x1c8e   :  { %v5621_v24 = vadd.f32 %v11224_v8, %v5615_v23 }
0x1c90   :  { %12078 = vmatmul.mubr.msk.f32.vlgmr.msra.gmra.mrb[56].mxu1 %vm136_vm3, %v5621_v24 }
0x1c91   :  { %12093 = vmatprep.mubr.msk.f32.mxu1 %vm13061_vm8, %v13056_v6 }
0x1d4d   :  { %v12090_v27 = vpop.f32.mrb[64].mxu0 }
0x1d4e   :  { %v13786_v28 = vadd.f32 %v12090_v27, %v5735_v26  ;;  %v5809_v21 = vpop.f32.mrb[65].mxu0 }
0x1d4f   :  { %v13788_v29 = vadd.f32 %v5809_v21, %v5735_v26 }
0x1d50   :  { %6052 = vrot.lane.b32.xlu0 %v13786_v28, %s13058_s2 }
0x1d51   :  { %5974 = vrot.lane.b32.xlu1 %v13788_v29, %s13058_s2  ;;  %12092 = vmatpush3.xpose.msk.msra.mxu1 %vm289_vm9, %v13788_v29 }
0x1d52   :  { %12096 = vmatprep.subr.mxu1 %v13056_v6 }
0x1d54   :  { %6210 = vrot.lane.b32.xlu0 %v13786_v28, %s13064_s7 }
0x1d55   :  { %6132 = vrot.lane.b32.xlu1 %v13788_v29, %s13064_s7 }
0x1d58   :  { %6368 = vrot.lane.b32.xlu0 %v13786_v28, %s13062_s5 }
0x1d59   :  { %6290 = vrot.lane.b32.xlu1 %v13788_v29, %s13062_s5 }
0x1d63   :  { %v12079_v25 = vpop.f32.mrb[56].mxu1 }
0x1d64   :  { %v5714_v30 = vadd.f32 %v12079_v25, %v13767_v18  ;;  %v5708_v31 = vpop.f32.mrb[57].mxu1 }
0x1d65   :  { %v5709_v49 = vadd.f32 %v13767_v18, %v5708_v31 }
0x1d66   :  { %6050 = vrot.lane.b32.xlu0 %v5714_v30, %s13058_s2 }
0x1d67   :  { %5972 = vrot.lane.b32.xlu1 %v5709_v49, %s13058_s2  ;;  %12094 = vmatmul.mubr.msk.f32.vlgmr.msra.gmra.mrb[58].mxu1 %vm289_vm9, %v5709_v49 }
0x1d68   :  { %12097 = vmatpush3.xpose.msk.msra.mxu1 %vm289_vm9, %v13786_v28  ;;  %12098 = vmatprep.mubr.msk.f32.mxu1 %vm13061_vm8, %v13056_v6 }
0x1d69   :  { %12106 = vmatprep.subr.mxu1 %v13056_v6 }
0x1d6a   :  { %6208 = vrot.lane.b32.xlu0 %v5714_v30, %s13064_s7 }
0x1d6b   :  { %6130 = vrot.lane.b32.xlu1 %v5709_v49, %s13064_s7  ;;  %12099 = vmatmul.mubr.msk.f32.vlgmr.msra.gmra.mrb[60].mxu1 %vm289_vm9, %v5714_v30 }
0x1d6c   :  { %12108 = vmatprep.mubr.msk.f32.mxu1 %vm13061_vm8, %v13056_v6 }
0x1d6e   :  { %6366 = vrot.lane.b32.xlu0 %v5714_v30, %s13062_s5 }
0x1d6f   :  { %6288 = vrot.lane.b32.xlu1 %v5709_v49, %s13062_s5 }
0x1dc2   :  { %v6053_v33 = vpop.permute.xlu0 %6052 }
0x1dc3   :  { %v5975_v34 = vpop.permute.xlu1 %5974  ;;  %12107 = vmatpush3.xpose.msk.msra.mxu1 %vm289_vm9, %v6053_v33 }
0x1dc4   :  { %12102 = vmatpush3.xpose.msk.msra.mxu0 %vm289_vm9, %v5975_v34  ;;  %12116 = vmatprep.subr.mxu1 %v13056_v6 }
0x1dc5   :  { %12111 = vmatprep.subr.mxu0 %v13056_v6 }
0x1dc6   :  { %v6211_v35 = vpop.permute.xlu0 %6210 }
0x1dc7   :  { %v6133_v36 = vpop.permute.xlu1 %6132 }
0x1dca   :  { %v6369_v18 = vpop.permute.xlu0 %6368 }
0x1dcb   :  { %v6291_v37 = vpop.permute.xlu1 %6290 }
0x1dd8   :  { %v6051_v59 = vpop.permute.xlu0 %6050 }
0x1dd9   :  { %v5973_v10 = vpop.permute.xlu1 %5972  ;;  %12109 = vmatmul.mubr.msk.f32.vlgmr.msra.gmra.mrb[62].mxu1 %vm289_vm9, %v6051_v59 }
0x1dda   :  { %12117 = vmatpush3.xpose.msk.msra.mxu1 %vm289_vm9, %v6211_v35  ;;  %12104 = vmatmul.mubr.msk.f32.vlgmr.msra.gmra.mrb[66].mxu0 %vm289_vm9, %v5973_v10 }
0x1ddb   :  { %12112 = vmatpush3.xpose.msk.msra.mxu0 %vm289_vm9, %v6133_v36  ;;  %12118 = vmatprep.mubr.msk.f32.mxu1 %vm13061_vm8, %v13056_v6 }
0x1ddc   :  { %v6209_v39 = vpop.permute.xlu0 %6208  ;;  %12126 = vmatprep.subr.mxu1 %v13056_v6  ;;  %12113 = vmatprep.mubr.msk.f32.mxu0 %vm13061_vm8, %v13056_v6 }
0x1ddd   :  { %12121 = vmatprep.subr.mxu0 %v13056_v6  ;;  %v6131_v47 = vpop.permute.xlu1 %6130  ;;  %12119 = vmatmul.mubr.msk.f32.vlgmr.msra.gmra.mrb[64].mxu1 %vm289_vm9, %v6209_v39 }
0x1dde   :  { %12127 = vmatpush3.xpose.msk.msra.mxu1 %vm289_vm9, %v6369_v18  ;;  %12114 = vmatmul.mubr.msk.f32.vlgmr.msra.gmra.mrb[68].mxu0 %vm289_vm9, %v6131_v47 }
0x1ddf   :  { %12122 = vmatpush3.xpose.msk.msra.mxu0 %vm289_vm9, %v6291_v37  ;;  %12128 = vmatprep.mubr.msk.f32.mxu1 %vm13061_vm8, %v13056_v6 }
0x1de0   :  { %v6367_v2 = vpop.permute.xlu0 %6366  ;;  %12123 = vmatprep.mubr.msk.f32.mxu0 %vm13061_vm8, %v13056_v6  ;;  %12136 = vmatprep.subr.mxu1 %v13056_v6 }
0x1de1   :  { %v6289_v32 = vpop.permute.xlu1 %6288  ;;  %12129 = vmatmul.mubr.msk.f32.vlgmr.msra.gmra.mrb[66].mxu1 %vm289_vm9, %v6367_v2  ;;  %12131 = vmatprep.subr.mxu0 %v13056_v6 }
0x1de2   :  { %12124 = vmatmul.mubr.msk.f32.vlgmr.msra.gmra.mrb[70].mxu0 %vm289_vm9, %v6289_v32  ;;  %12138 = vmatprep.mubr.msk.f32.mxu1 %vm13061_vm8, %v13056_v6 }
0x1de3   :  { %12133 = vmatprep.mubr.msk.f32.mxu0 %vm13061_vm8, %v13056_v6 }
0x1e3a   :  { %v5890_v41 = vpop.f32.mrb[58].mxu1 }
0x1e3b   :  { %v5970_v38 = vmul.f32 0.35355338, %v5890_v41  ;;  %v12095_v40 = vpop.f32.mrb[59].mxu1 }
0x1e3d   :  { %v6446_v42 = vsel %vm289_vm9, %v5970_v38, -inf }
0x1e3e   :  { %6447 = vmax.xlane.f32.xlu1 %v6446_v42  ;;  %v5966_v43 = vpop.f32.mrb[60].mxu1 }
0x1e3f   :  { %v5971_v44 = vmul.f32 0.35355338, %v5966_v43  ;;  %v12100_v45 = vpop.f32.mrb[61].mxu1 }
0x1e41   :  { %v6458_v46 = vsel %vm289_vm9, %v5971_v44, -inf }
0x1e42   :  { %6459 = vmax.xlane.f32.xlu0 %v6458_v46 }
0x1eac   :  { %v6124_v48 = vpop.f32.mrb[62].mxu1 }
0x1ead   :  { %v6129_v4 = vmul.f32 0.35355338, %v6124_v48  ;;  %v6046_v53 = vpop.f32.mrb[66].mxu0  ;;  %v12110_v55 = vpop.f32.mrb[63].mxu1 }
0x1eae   :  { %v6128_v56 = vmul.f32 0.35355338, %v6046_v53  ;;  %v12105_v57 = vpop.f32.mrb[67].mxu0 }
0x1eaf   :  { %v6461_v19 = vsel %vm289_vm9, %v6129_v4, -inf }
0x1eb0   :  { %6462 = vmax.xlane.f32.xlu1 %v6461_v19  ;;  %v6282_v58 = vpop.f32.mrb[64].mxu1  ;;  %v6449_v60 = vsel %vm289_vm9, %v6128_v56, -inf }
0x1eb1   :  { %v6287_v61 = vmul.f32 0.35355338, %v6282_v58  ;;  %v6204_v63 = vpop.f32.mrb[68].mxu0  ;;  %6450 = vmax.xlane.f32.xlu0 %v6449_v60  ;;  %v12120_v3 = vpop.f32.mrb[65].mxu1 }
0x1eb2   :  { %v6286_v5 = vmul.f32 0.35355338, %v6204_v63  ;;  %v12115_v9 = vpop.f32.mrb[69].mxu0 }
0x1eb3   :  { %v6464_v54 = vsel %vm289_vm9, %v6287_v61, -inf }
0x1eb4   :  { %6465 = vmax.xlane.f32.xlu1 %v6464_v54  ;;  %v6440_v11 = vpop.f32.mrb[66].mxu1  ;;  %v6452_v12 = vsel %vm289_vm9, %v6286_v5, -inf }
0x1eb5   :  { %v6445_v13 = vmul.f32 0.35355338, %v6440_v11  ;;  %v6362_v7 = vpop.f32.mrb[70].mxu0  ;;  %6453 = vmax.xlane.f32.xlu0 %v6452_v12  ;;  %v12130_v52 = vpop.f32.mrb[67].mxu1 }
0x1eb6   :  { %v6444_v14 = vmul.f32 0.35355338, %v6362_v7  ;;  %v12125_v50 = vpop.f32.mrb[71].mxu0 }
0x1eb7   :  { %v6467_v8 = vsel %vm289_vm9, %v6445_v13, -inf }
0x1eb8   :  { %6468 = vmax.xlane.f32.xlu1 %v6467_v8  ;;  %v6455_v15 = vsel %vm289_vm9, %v6444_v14, -inf }
0x1eb9   :  { %6456 = vmax.xlane.f32.xlu0 %v6455_v15 }
0x1ec9   :  { %6610 = vrot.lane.b32.xlu1 %v13786_v28, %s13057_s0 }
0x1ecb   :  { %v6448_v20 = vpop.xlane.xlu1 %6447 }
0x1ecc   :  { %v6470_v23 = vsub.f32 %v5970_v38, %v6448_v20 }
0x1ecd   :  { %6686 = vrot.lane.b32.xlu1 %v13788_v29, %s13059_s30 }
0x1ece   :  { %v6478_v26 = vmul.f32 1.442695, %v6470_v23 }
0x1ecf   :  { %6534 = vrot.lane.b32.xlu0 %v13788_v29, %s13057_s0  ;;  %v6460_v17 = vpop.xlane.xlu0 %6459 }
0x1ed0   :  { %v6474_v22 = vsub.f32 %v5971_v44, %v6460_v17 }
0x1ed1   :  { %6838 = vrot.lane.b32.xlu1 %v13788_v29, %s13063_s6 }
0x1ed2   :  { %v6486_v24 = vmul.f32 1.442695, %v6474_v22 }
0x1ed3   :  { %6762 = vrot.lane.b32.xlu0 %v13786_v28, %s13059_s30 }
0x1ed4   :  { %12868 = vpow2.f32 %v6486_v24 }
0x1ed5   :  { %12870 = vpow2.f32 %v6478_v26 }
0x1ed7   :  { %6914 = vrot.lane.b32.xlu0 %v13786_v28, %s13063_s6 }
0x1ede   :  { %v13872_v27 = vpop.eup %12868 }
0x1edf   :  { %v13874_v21 = vpop.eup %12870  ;;  %v6506_v25 = vsel %vm289_vm9, %v13872_v27, 0.0 }
0x1ee0   :  { %v6494_v30 = vsel %vm289_vm9, %v13874_v21, 0.0 }
0x1ef5   :  { %6507 = vadd.xlane.f32.xlu1 %v6506_v25 }
0x1ef6   :  { %6495 = vadd.xlane.f32.xlu0 %v6494_v30 }
0x1f3d   :  { %v6463_v31 = vpop.xlane.xlu1 %6462 }
0x1f3e   :  { %v6475_v49 = vsub.f32 %v6129_v4, %v6463_v31  ;;  %v6451_v33 = vpop.xlane.xlu0 %6450 }
0x1f3f   :  { %v6471_v34 = vsub.f32 %v6128_v56, %v6451_v33 }
0x1f40   :  { %v6488_v35 = vmul.f32 1.442695, %v6475_v49 }
0x1f41   :  { %v6480_v36 = vmul.f32 1.442695, %v6471_v34  ;;  %v6466_v18 = vpop.xlane.xlu1 %6465 }
0x1f42   :  { %12872 = vpow2.f32 %v6488_v35  ;;  %v6476_v37 = vsub.f32 %v6287_v61, %v6466_v18  ;;  %v6454_v59 = vpop.xlane.xlu0 %6453 }
0x1f43   :  { %12874 = vpow2.f32 %v6480_v36  ;;  %v6472_v10 = vsub.f32 %v6286_v5, %v6454_v59  ;;  %v5627_v59 = vld [vmem:[#allocation2 + $0x1a0] sm:$0xff] }
0x1f44   :  { %v6490_v39 = vmul.f32 1.442695, %v6476_v37 }
0x1f45   :  { %v6482_v47 = vmul.f32 1.442695, %v6472_v10  ;;  %v6469_v2 = vpop.xlane.xlu1 %6468  ;;  %v5628_v10 = vld [vmem:[#allocation2 + $0x1a8] sm:$0xff] }
0x1f46   :  { %12876 = vpow2.f32 %v6490_v39  ;;  %v6477_v32 = vsub.f32 %v6445_v13, %v6469_v2  ;;  %v6457_v41 = vpop.xlane.xlu0 %6456  ;;  %v12577_v39 = vpack.c.bf16 %v5628_v10, %v5627_v59  ;;  %v5630_v2 = vld [vmem:[#allocation2 + $0x1b8] sm:$0xff]  ;;  %v7322_v10 = vld [vmem:[#allocation2 + $0x200] sm:$0xff] }
0x1f47   :  { %12878 = vpow2.f32 %v6482_v47  ;;  %v6473_v38 = vsub.f32 %v6444_v14, %v6457_v41  ;;  %v5629_v47 = vld [vmem:[#allocation2 + $0x1b0] sm:$0xff] }
0x1f48   :  { %v6492_v40 = vmul.f32 1.442695, %v6477_v32  ;;  %v12581_v32 = vpack.c.bf16 %v5630_v2, %v5629_v47 }
0x1f49   :  { %v6484_v42 = vmul.f32 1.442695, %v6473_v38  ;;  %v6611_v43 = vpop.permute.xlu1 %6610 }
0x1f4a   :  { %12880 = vpow2.f32 %v6492_v40  ;;  %v6535_v44 = vpop.permute.xlu0 %6534  ;;  %12137 = vmatpush3.msra.mxu1 %v6611_v43 }
0x1f4b   :  { %12882 = vpow2.f32 %v6484_v42  ;;  %12132 = vmatpush3.msra.mxu0 %v6535_v44  ;;  %12146 = vmatprep.subr.mxu1 %v13056_v6 }
0x1f4c   :  { %v12873_v45 = vpop.eup %12872  ;;  %12141 = vmatprep.subr.mxu0 %v13056_v6 }
0x1f4d   :  { %v12875_v46 = vpop.eup %12874  ;;  %v6509_v48 = vsel %vm289_vm9, %v12873_v45, 0.0  ;;  %v6687_v63 = vpop.permute.xlu1 %6686 }
0x1f4e   :  { %6510 = vadd.xlane.f32.xlu1 %v6509_v48  ;;  %v6497_v4 = vsel %vm289_vm9, %v12875_v46, 0.0  ;;  %v6763_v3 = vpop.permute.xlu0 %6762 }
0x1f4f   :  { %6498 = vadd.xlane.f32.xlu0 %v6497_v4 }
0x1f50   :  { %v12877_v53 = vpop.eup %12876 }
0x1f51   :  { %v12879_v55 = vpop.eup %12878  ;;  %v6512_v56 = vsel %vm289_vm9, %v12877_v53, 0.0  ;;  %v6839_v5 = vpop.permute.xlu1 %6838 }
0x1f52   :  { %6513 = vadd.xlane.f32.xlu1 %v6512_v56  ;;  %v6500_v57 = vsel %vm289_vm9, %v12879_v55, 0.0  ;;  %v6915_v9 = vpop.permute.xlu0 %6914 }
0x1f53   :  { %6501 = vadd.xlane.f32.xlu0 %v6500_v57 }
0x1f54   :  { %v13886_v19 = vpop.eup %12880 }
0x1f55   :  { %v13888_v58 = vpop.eup %12882  ;;  %v6515_v60 = vsel %vm289_vm9, %v13886_v19, 0.0 }
0x1f56   :  { %6516 = vadd.xlane.f32.xlu1 %v6515_v60  ;;  %v6503_v61 = vsel %vm289_vm9, %v13888_v58, 0.0 }
0x1f57   :  { %6504 = vadd.xlane.f32.xlu0 %v6503_v61 }
0x1f67   :  { %6990 = vrot.lane.b32.xlu1 %v13788_v29, %s13060_s4 }
0x1f6d   :  { %7066 = vrot.lane.b32.xlu0 %v13786_v28, %s13060_s4 }
0x1f82   :  { %v6508_v54 = vpop.xlane.xlu1 %6507 }
0x1f83   :  { %12884 = vrcp.f32 %v6508_v54  ;;  %v6496_v11 = vpop.xlane.xlu0 %6495 }
0x1f84   :  { %12886 = vrcp.f32 %v6496_v11 }
0x1f8d   :  { %v12885_v12 = vpop.eup %12884 }
0x1f8e   :  { %v12887_v13 = vpop.eup %12886  ;;  %v6530_v7 = vmul.f32 %v12885_v12, %v13872_v27  ;;  %v11254_v12 = vld [vmem:[#allocation2 + $0x3b5] ss:$0 sm:$0xff] }
0x1f8f   :  { %v6526_v52 = vmul.f32 %v12887_v13, %v13874_v21 }
0x1f90   :  { %12139 = vmatmul.mubr.msk.f32.vlgmr.msra.gmra.mrb[68].mxu1 %vm289_vm9, %v6530_v7 }
0x1f91   :  { %12147 = vmatpush3.msra.mxu1 %v6763_v3  ;;  %12134 = vmatmul.mubr.msk.f32.vlgmr.msra.gmra.mrb[72].mxu0 %vm289_vm9, %v6526_v52 }
0x1f92   :  { %12142 = vmatpush3.msra.mxu0 %v6687_v63  ;;  %12148 = vmatprep.mubr.msk.f32.mxu1 %vm13061_vm8, %v13056_v6 }
0x1f93   :  { %12156 = vmatprep.subr.mxu1 %v13056_v6  ;;  %12143 = vmatprep.mubr.msk.f32.mxu0 %vm13061_vm8, %v13056_v6 }
0x1f94   :  { %12151 = vmatprep.subr.mxu0 %v13056_v6 }
0x1fdb   :  { %v6511_v28 = vpop.xlane.xlu1 %6510 }
0x1fdc   :  { %12888 = vrcp.f32 %v6511_v28  ;;  %v6499_v29 = vpop.xlane.xlu0 %6498 }
0x1fdd   :  { %12890 = vrcp.f32 %v6499_v29 }
0x1fdf   :  { %v6514_v14 = vpop.xlane.xlu1 %6513 }
0x1fe0   :  { %12892 = vrcp.f32 %v6514_v14  ;;  %v6502_v50 = vpop.xlane.xlu0 %6501 }
0x1fe1   :  { %12894 = vrcp.f32 %v6502_v50 }
0x1fe3   :  { %v6517_v8 = vpop.xlane.xlu1 %6516 }
0x1fe4   :  { %12896 = vrcp.f32 %v6517_v8  ;;  %v6505_v15 = vpop.xlane.xlu0 %6504 }
0x1fe5   :  { %12898 = vrcp.f32 %v6505_v15 }
0x1fe6   :  { %v12889_v17 = vpop.eup %12888 }
0x1fe7   :  { %v12891_v20 = vpop.eup %12890  ;;  %v6531_v22 = vmul.f32 %v12889_v17, %v12873_v45  ;;  %v6991_v31 = vpop.permute.xlu1 %6990 }
0x1fe8   :  { %v6527_v23 = vmul.f32 %v12891_v20, %v12875_v46  ;;  %v7067_v25 = vpop.permute.xlu0 %7066 }
0x1fe9   :  { %12149 = vmatmul.mubr.msk.f32.vlgmr.msra.gmra.mrb[70].mxu1 %vm289_vm9, %v6531_v22 }
0x1fea   :  { %v12893_v24 = vpop.eup %12892  ;;  %12157 = vmatpush3.msra.mxu1 %v6915_v9  ;;  %12144 = vmatmul.mubr.msk.f32.vlgmr.msra.gmra.mrb[74].mxu0 %vm289_vm9, %v6527_v23 }
0x1feb   :  { %v12895_v26 = vpop.eup %12894  ;;  %12152 = vmatpush3.msra.mxu0 %v6839_v5  ;;  %12158 = vmatprep.mubr.msk.f32.mxu1 %vm13061_vm8, %v13056_v6  ;;  %v6532_v27 = vmul.f32 %v12893_v24, %v12877_v53 }
0x1fec   :  { %12166 = vmatprep.subr.mxu1 %v13056_v6  ;;  %12153 = vmatprep.mubr.msk.f32.mxu0 %vm13061_vm8, %v13056_v6  ;;  %v6528_v21 = vmul.f32 %v12895_v26, %v12879_v55 }
0x1fed   :  { %12159 = vmatmul.mubr.msk.f32.vlgmr.msra.gmra.mrb[72].mxu1 %vm289_vm9, %v6532_v27  ;;  %12161 = vmatprep.subr.mxu0 %v13056_v6 }
0x1fee   :  { %v12897_v30 = vpop.eup %12896  ;;  %12167 = vmatpush3.msra.mxu1 %v7067_v25  ;;  %12154 = vmatmul.mubr.msk.f32.vlgmr.msra.gmra.mrb[76].mxu0 %vm289_vm9, %v6528_v21  ;;  %v7313_v21 = vld [vmem:[#allocation2 + $0x1c0] sm:$0xff]  ;;  %v7314_v25 = vld [vmem:[#allocation2 + $0x1c8] sm:$0xff] }
0x1fef   :  { %v12899_v49 = vpop.eup %12898  ;;  %12162 = vmatpush3.msra.mxu0 %v6991_v31  ;;  %12168 = vmatprep.mubr.msk.f32.mxu1 %vm13061_vm8, %v13056_v6  ;;  %v6533_v33 = vmul.f32 %v12897_v30, %v13886_v19  ;;  %v7315_v30 = vld [vmem:[#allocation2 + $0x1d0] sm:$0xff]  ;;  %v12585_v31 = vpack.c.bf16 %v7314_v25, %v7313_v21 }
0x1ff0   :  { %12163 = vmatprep.mubr.msk.f32.mxu0 %vm13061_vm8, %v13056_v6  ;;  %v6529_v34 = vmul.f32 %v12899_v49, %v13888_v58  ;;  %12578 = vmatprep.subr.bf16.mxu0 %v12577_v39  ;;  %v7316_v49 = vld [vmem:[#allocation2 + $0x1d8] sm:$0xff] }
0x1ff1   :  { %12169 = vmatmul.mubr.msk.f32.vlgmr.msra.gmra.mrb[74].mxu1 %vm289_vm9, %v6533_v33  ;;  %v12589_v33 = vpack.c.bf16 %v7316_v49, %v7315_v30  ;;  %12586 = vmatprep.subr.bf16.mxu1 %v12585_v31 }
0x1ff2   :  { %12164 = vmatmul.mubr.msk.f32.vlgmr.msra.gmra.mrb[78].mxu0 %vm289_vm9, %v6529_v34  ;;  %12588 = vmatpush3.bf16.msra.mxu1 %v12585_v31  ;;  %v7318_v34 = vld [vmem:[#allocation2 + $0x1e0] sm:$0xff] }
0x1ff3   :  { %12580 = vmatpush3.bf16.msra.mxu0 %v12577_v39  ;;  %12590 = vmatprep.subr.bf16.mxu1 %v12589_v33  ;;  %v7323_v39 = vld [vmem:[#allocation2 + $0x208] sm:$0xff] }
0x1ff4   :  { %12582 = vmatprep.subr.bf16.mxu0 %v12581_v32  ;;  %v12601_v47 = vpack.c.bf16 %v7323_v39, %v7322_v10  ;;  %v7557_v10 = vld [vmem:[#allocation2 + $0x230] sm:$0xff] }
0x1ff6   :  { %12592 = vmatpush3.bf16.msra.mxu1 %v12589_v33 }
0x1ff7   :  { %12584 = vmatpush3.bf16.msra.mxu0 %v12581_v32 }
0x2063   :  { %v6682_v35 = vpop.f32.mrb[68].mxu1 }
0x2064   :  { %v6606_v36 = vpop.f32.mrb[72].mxu0  ;;  %v12140_v18 = vpop.f32.mrb[69].mxu1 }
0x2065   :  { %v12135_v37 = vpop.f32.mrb[73].mxu0 }
0x2066   :  { %v7321_v37 = vld [vmem:[#allocation2 + $0x1f8] sm:$0xff] }
0x20bc   :  { %v6834_v41 = vpop.f32.mrb[70].mxu1 }
0x20bd   :  { %v6758_v38 = vpop.f32.mrb[74].mxu0  ;;  %7146 = vrot.lane.b32.xlu0 %v6834_v41, %s13054_s23  ;;  %v12150_v40 = vpop.f32.mrb[71].mxu1 }
0x20be   :  { %7144 = vrot.lane.b32.xlu1 %v6758_v38, %s13054_s23  ;;  %v12145_v42 = vpop.f32.mrb[75].mxu0 }
0x20c0   :  { %v6986_v43 = vpop.f32.mrb[72].mxu1 }
0x20c1   :  { %v6910_v44 = vpop.f32.mrb[76].mxu0  ;;  %7154 = vrot.lane.b32.xlu0 %v6986_v43, %s13069_s12  ;;  %v12160_v45 = vpop.f32.mrb[73].mxu1 }
0x20c2   :  { %7152 = vrot.lane.b32.xlu1 %v6910_v44, %s13069_s12  ;;  %v12155_v46 = vpop.f32.mrb[77].mxu0 }
0x20c4   :  { %v7138_v48 = vpop.f32.mrb[74].mxu1 }
0x20c5   :  { %v7062_v4 = vpop.f32.mrb[78].mxu0  ;;  %7162 = vrot.lane.b32.xlu0 %v7138_v48, %s13070_s13  ;;  %v12170_v53 = vpop.f32.mrb[75].mxu1 }
0x20c6   :  { %7160 = vrot.lane.b32.xlu1 %v7062_v4, %s13070_s13  ;;  %v12165_v55 = vpop.f32.mrb[79].mxu0 }
0x212f   :  { %v7147_v56 = vpop.permute.xlu0 %7146 }
0x2130   :  { %v7145_v57 = vpop.permute.xlu1 %7144  ;;  %v7167_v63 = vsel %vm289_vm9, %v6682_v35, %v7147_v56  ;;  %v7319_v35 = vld [vmem:[#allocation2 + $0x1e8] sm:$0xff] }
0x2131   :  { %v7166_v60 = vsel %vm289_vm9, %v6606_v36, %v7145_v57  ;;  %v7320_v36 = vld [vmem:[#allocation2 + $0x1f0] sm:$0xff]  ;;  %v12593_v18 = vpack.c.bf16 %v7319_v35, %v7318_v34 }
0x2132   :  { %v12597_v59 = vpack.c.bf16 %v7321_v37, %v7320_v36  ;;  %v7555_v37 = vld [vmem:[#allocation2 + $0x220] sm:$0xff] }
0x2133   :  { %v7155_v19 = vpop.permute.xlu0 %7154  ;;  %12594 = vmatprep.subr.bf16.mxu0 %v12593_v18 }
0x2134   :  { %v7153_v58 = vpop.permute.xlu1 %7152  ;;  %v7169_v9 = vsel %vm48_vm0, %v7167_v63, %v7155_v19  ;;  %v11257_v19 = vld [vmem:[#allocation2 + $0x3bc] ss:$0 sm:$0xff] }
0x2135   :  { %v7168_v3 = vsel %vm48_vm0, %v7166_v60, %v7153_v58 }
0x2137   :  { %v7163_v61 = vpop.permute.xlu0 %7162 }
0x2138   :  { %v7161_v5 = vpop.permute.xlu1 %7160  ;;  %v7171_v11 = vsel %vm1641_vm10, %v7169_v9, %v7163_v61 }
0x2139   :  { %v7170_v54 = vsel %vm1641_vm10, %v7168_v3, %v7161_v5  ;;  %v11258_v3 = vld [vmem:[#allocation2 + $0x3bd] ss:$0 sm:$0xff] }
0x213a   :  { %12179 = vmatprep.mubr.msk.f32.mxu0 %vm136_vm3, %v7170_v54 }
0x213b   :  { %12180 = vmatmul.mubr.msk.f32.vlgmr.msra.gmra.mrb[80].mxu0 %vm136_vm3, %v7171_v11 }
0x213c   :  { %12596 = vmatpush3.bf16.msra.mxu0 %v12593_v18 }
0x213d   :  { %12598 = vmatprep.subr.bf16.mxu0 %v12597_v59 }
0x2140   :  { %12600 = vmatpush3.bf16.msra.mxu0 %v12597_v59  ;;  %v7556_v59 = vld [vmem:[#allocation2 + $0x228] sm:$0xff] }
0x2141   :  { %12602 = vmatprep.subr.bf16.mxu0 %v12601_v47  ;;  %v12609_v39 = vpack.c.bf16 %v7556_v59, %v7555_v37 }
0x2143   :  { %12610 = vmatprep.subr.bf16.mxu1 %v12609_v39 }
0x2144   :  { %12604 = vmatpush3.bf16.msra.mxu0 %v12601_v47  ;;  %v7558_v47 = vld [vmem:[#allocation2 + $0x238] sm:$0xff] }
0x220e   :  { %v12181_v13 = vpop.f32.mrb[80].mxu0 }
0x220f   :  { %v7254_v7 = vadd.f32 %v12181_v13, %v11254_v12  ;;  %v7248_v52 = vpop.f32.mrb[81].mxu0  ;;  %v7325_v13 = vld [vmem:[#allocation2 + $0x218] sm:$0xff] }
0x2210   :  { %v7249_v28 = vadd.f32 %v11254_v12, %v7248_v52  ;;  %v7324_v12 = vld [vmem:[#allocation2 + $0x210] sm:$0xff] }
0x2211   :  { %v13941_v29 = vadd.f32 %v7254_v7, %v13738_v51  ;;  %v12605_v7 = vpack.c.bf16 %v7325_v13, %v7324_v12  ;;  %v11259_v52 = vld [vmem:[#allocation2 + $0x3b6] ss:$0 sm:$0xff]  ;;  %v11267_v13 = vld [vmem:[#allocation2 + $0x3be] ss:$0 sm:$0xff] }
0x2212   :  { %v13944_v14 = vadd.f32 %v7249_v28, %v13735_v0 }
0x2213   :  { %v7264_v50 = vsel %vm136_vm3, %v13941_v29, 0.0  ;;  %12606 = vmatprep.subr.bf16.mxu0 %v12605_v7 }
0x2214   :  { %7265 = vadd.xlane.f32.xlu0 %v7264_v50  ;;  %v7261_v8 = vsel %vm136_vm3, %v13944_v14, 0.0  ;;  %12608 = vmatpush3.bf16.msra.mxu0 %v12605_v7 }
0x2215   :  { %7262 = vadd.xlane.f32.xlu1 %v7261_v8  ;;  %12233 = vmatprep.subr.mxu0 %v13056_v6 }
0x22a1   :  { %v7266_v15 = vpop.xlane.xlu0 %7265 }
0x22a2   :  { %v7268_v17 = vmul.f32 0.03125, %v7266_v15  ;;  %v7263_v20 = vpop.xlane.xlu1 %7262 }
0x22a3   :  { %v7267_v22 = vmul.f32 0.03125, %v7263_v20 }
0x22a4   :  { %v7270_v23 = vsub.f32 %v13941_v29, %v7268_v17 }
0x22a5   :  { %v7269_v51 = vsub.f32 %v13944_v14, %v7267_v22  ;;  %v11262_v22 = vld [vmem:[#allocation2 + $0x3b7] ss:$0 sm:$0xff] }
0x22a6   :  { %v7272_v24 = vmul.f32 %v7270_v23, %v7270_v23  ;;  %v7300_v58 = vmul.f32 %v11257_v19, %v7270_v23 }
0x22a7   :  { %v7271_v26 = vmul.f32 %v7269_v51, %v7269_v51  ;;  %v7299_v61 = vmul.f32 %v11257_v19, %v7269_v51 }
0x22a8   :  { %v7276_v0 = vsel %vm136_vm3, %v7272_v24, 0.0 }
0x22a9   :  { %7277 = vadd.xlane.f32.xlu1 %v7276_v0  ;;  %v7273_v27 = vsel %vm136_vm3, %v7271_v26, 0.0 }
0x22aa   :  { %7274 = vadd.xlane.f32.xlu0 %v7273_v27 }
0x2336   :  { %v7278_v2 = vpop.xlane.xlu1 %7277 }
0x2337   :  { %v7280_v32 = vmul.f32 0.032258064, %v7278_v2  ;;  %v7275_v41 = vpop.xlane.xlu0 %7274  ;;  %v12613_v2 = vpack.c.bf16 %v7558_v47, %v7557_v10 }
0x2338   :  { %v7279_v38 = vmul.f32 0.032258064, %v7275_v41 }
0x2339   :  { %12900 = vrsqrt.f32 %v7280_v32  ;;  %vm7290_vm5 = vcmp.eq.f32.partialorder %v7280_v32, inf  ;;  %v7293_v44 = vand.u32 2147483648, %v7280_v32  ;;  %vm7292_vm6 = vcmp.eq.f32.partialorder %v7280_v32, 0.0 }
0x233a   :  { %12902 = vrsqrt.f32 %v7279_v38  ;;  %vm7283_vm7 = vcmp.eq.f32.partialorder %v7279_v38, inf  ;;  %v7286_v48 = vand.u32 2147483648, %v7279_v38  ;;  %vm7285_vm11 = vcmp.eq.f32.partialorder %v7279_v38, 0.0 }
0x2343   :  { %v12901_v40 = vpop.eup %12900 }
0x2344   :  { %v12903_v42 = vpop.eup %12902  ;;  %v7289_v43 = vmul.f32 %v12901_v40, %v7280_v32 }
0x2345   :  { %v7282_v45 = vmul.f32 %v12903_v42, %v7279_v38 }
0x2346   :  { %v7291_v46 = vsel %vm7290_vm5, %v7280_v32, %v7289_v43 }
0x2347   :  { %v7294_v4 = vsel %vm7292_vm6, %v7293_v44, %v7291_v46  ;;  %v7284_v53 = vsel %vm7283_vm7, %v7279_v38, %v7282_v45 }
0x2348   :  { %v7302_v55 = vadd.f32 1e-06, %v7294_v4  ;;  %v7287_v56 = vsel %vm7285_vm11, %v7286_v48, %v7284_v53 }
0x2349   :  { %v7301_v57 = vadd.f32 1e-06, %v7287_v56 }
0x234a   :  { %12904 = vrcp.f32 %v7302_v55 }
0x234b   :  { %12906 = vrcp.f32 %v7301_v57 }
0x2354   :  { %v12905_v60 = vpop.eup %12904 }
0x2355   :  { %v12907_v63 = vpop.eup %12906  ;;  %v7306_v5 = vmul.f32 %v12905_v60, %v7300_v58  ;;  %v11265_v58 = vld [vmem:[#allocation2 + $0x3c4] ss:$0 sm:$0xff] }
0x2356   :  { %v7304_v9 = vmul.f32 %v12907_v63, %v7299_v61 }
0x2357   :  { %v7312_v11 = vadd.f32 %v11258_v3, %v7306_v5  ;;  %v11266_v5 = vld [vmem:[#allocation2 + $0x3c5] ss:$0 sm:$0xff] }
0x2358   :  { %v7311_v54 = vadd.f32 %v11258_v3, %v7304_v9 }
0x235a   :  { %12190 = vmatprep.mubr.msk.f32.mxu1 %vm136_vm3, %v7311_v54 }
0x235b   :  { %12191 = vmatmul.mubr.msk.f32.vlgmr.msra.gmra.mrb[76].mxu1 %vm136_vm3, %v7312_v11 }
0x235c   :  { %12612 = vmatpush3.bf16.msra.mxu1 %v12609_v39 }
0x235d   :  { %12614 = vmatprep.subr.bf16.mxu1 %v12613_v2 }
0x2360   :  { %12616 = vmatpush3.bf16.msra.mxu1 %v12613_v2 }
0x2361   :  { %12223 = vmatprep.subr.mxu1 %v13056_v6 }
0x242e   :  { %v12192_v28 = vpop.f32.mrb[76].mxu1 }
0x242f   :  { %v7409_v50 = vadd.f32 %v12192_v28, %v11259_v52  ;;  %v7403_v8 = vpop.f32.mrb[77].mxu1 }
0x2430   :  { %v7404_v15 = vadd.f32 %v11259_v52, %v7403_v8 }
0x2431   :  { %v7413_v20 = vmax.f32 %v7409_v50, 0.0 }
0x2432   :  { %v7412_v17 = vmax.f32 %v7404_v15, 0.0 }
0x2434   :  { %12209 = vmatprep.mubr.msk.f32.mxu0 %vm1890_vm15, %v7412_v17 }
0x2435   :  { %12210 = vmatmul.mubr.msk.f32.vlgmr.msra.gmra.mrb[82].mxu0 %vm1890_vm15, %v7413_v20 }
0x2436   :  { %12235 = vmatprep.mubr.msk.f32.mxu0 %vm13061_vm8, %v13056_v6 }
0x2508   :  { %v12211_v23 = vpop.f32.mrb[82].mxu0 }
0x2509   :  { %v7496_v51 = vadd.f32 %v12211_v23, %v11262_v22  ;;  %v7490_v24 = vpop.f32.mrb[83].mxu0 }
0x250a   :  { %v7491_v26 = vadd.f32 %v11262_v22, %v7490_v24 }
0x250b   :  { %v13962_v0 = vadd.f32 %v7496_v51, %v13941_v29 }
0x250c   :  { %v13965_v27 = vadd.f32 %v7491_v26, %v13944_v14 }
0x250d   :  { %v7506_v21 = vsel %vm136_vm3, %v13962_v0, 0.0 }
0x250e   :  { %7507 = vadd.xlane.f32.xlu1 %v7506_v21  ;;  %v7503_v25 = vsel %vm136_vm3, %v13965_v27, 0.0 }
0x250f   :  { %7504 = vadd.xlane.f32.xlu0 %v7503_v25 }
0x259b   :  { %v7508_v30 = vpop.xlane.xlu1 %7507 }
0x259c   :  { %v7510_v31 = vmul.f32 0.03125, %v7508_v30  ;;  %v7505_v49 = vpop.xlane.xlu0 %7504 }
0x259d   :  { %v7509_v33 = vmul.f32 0.03125, %v7505_v49 }
0x259e   :  { %v7512_v34 = vsub.f32 %v13962_v0, %v7510_v31 }
0x259f   :  { %v7511_v29 = vsub.f32 %v13965_v27, %v7509_v33 }
0x25a0   :  { %v7514_v35 = vmul.f32 %v7512_v34, %v7512_v34  ;;  %v7542_v60 = vmul.f32 %v11265_v58, %v7512_v34 }
0x25a1   :  { %v7513_v36 = vmul.f32 %v7511_v29, %v7511_v29  ;;  %v7541_v63 = vmul.f32 %v11265_v58, %v7511_v29 }
0x25a2   :  { %v7518_v14 = vsel %vm136_vm3, %v7514_v35, 0.0 }
0x25a3   :  { %7519 = vadd.xlane.f32.xlu1 %v7518_v14  ;;  %v7515_v18 = vsel %vm136_vm3, %v7513_v36, 0.0 }
0x25a4   :  { %7516 = vadd.xlane.f32.xlu0 %v7515_v18 }
0x2630   :  { %v7520_v32 = vpop.xlane.xlu1 %7519 }
0x2631   :  { %v7522_v41 = vmul.f32 0.032258064, %v7520_v32  ;;  %v7517_v38 = vpop.xlane.xlu0 %7516 }
0x2632   :  { %v7521_v40 = vmul.f32 0.032258064, %v7517_v38 }
0x2633   :  { %12908 = vrsqrt.f32 %v7522_v41  ;;  %vm7532_vm12 = vcmp.eq.f32.partialorder %v7522_v41, inf  ;;  %v7535_v45 = vand.u32 2147483648, %v7522_v41  ;;  %vm7534_vm13 = vcmp.eq.f32.partialorder %v7522_v41, 0.0 }
0x2634   :  { %12910 = vrsqrt.f32 %v7521_v40  ;;  %vm7525_vm14 = vcmp.eq.f32.partialorder %v7521_v40, inf  ;;  %v7528_v4 = vand.u32 2147483648, %v7521_v40  ;;  %vm7527_vm1 = vcmp.eq.f32.partialorder %v7521_v40, 0.0 }
0x263d   :  { %v12909_v42 = vpop.eup %12908 }
0x263e   :  { %v12911_v43 = vpop.eup %12910  ;;  %v7531_v44 = vmul.f32 %v12909_v42, %v7522_v41 }
0x263f   :  { %v7524_v46 = vmul.f32 %v12911_v43, %v7521_v40 }
0x2640   :  { %v7533_v48 = vsel %vm7532_vm12, %v7522_v41, %v7531_v44 }
0x2641   :  { %v7536_v53 = vsel %vm7534_vm13, %v7535_v45, %v7533_v48  ;;  %v7526_v55 = vsel %vm7525_vm14, %v7521_v40, %v7524_v46 }
0x2642   :  { %v7544_v56 = vadd.f32 1e-06, %v7536_v53  ;;  %v7529_v57 = vsel %vm7527_vm1, %v7528_v4, %v7526_v55 }
0x2643   :  { %v7543_v19 = vadd.f32 1e-06, %v7529_v57 }
0x2644   :  { %12912 = vrcp.f32 %v7544_v56 }
0x2645   :  { %12914 = vrcp.f32 %v7543_v19 }
0x264e   :  { %v12913_v61 = vpop.eup %12912 }
0x264f   :  { %v12915_v3 = vpop.eup %12914  ;;  %v7548_v9 = vmul.f32 %v12913_v61, %v7542_v60 }
0x2650   :  { %v7546_v54 = vmul.f32 %v12915_v3, %v7541_v63 }
0x2651   :  { %v7554_v12 = vadd.f32 %v11266_v5, %v7548_v9 }
0x2652   :  { %v7553_v11 = vadd.f32 %v11266_v5, %v7546_v54 }
0x2654   :  { %12220 = vmatprep.mubr.msk.f32.mxu1 %vm136_vm3, %v7553_v11 }
0x2655   :  { %12221 = vmatmul.mubr.msk.f32.vlgmr.msra.gmra.mrb[78].mxu1 %vm136_vm3, %v7554_v12 }
0x2656   :  { %12225 = vmatprep.mubr.msk.f32.mxu1 %vm13061_vm8, %v13056_v6 }
0x2728   :  { %v12222_v7 = vpop.f32.mrb[78].mxu1 }
0x2729   :  { %v13980_v52 = vadd.f32 %v12222_v7, %v11267_v13  ;;  %v7641_v28 = vpop.f32.mrb[79].mxu1 }
0x272a   :  { %v13986_v50 = vadd.f32 %v11267_v13, %v7641_v28 }
0x272b   :  { %7888 = vrot.lane.b32.xlu0 %v13980_v52, %s13059_s30  ;;  %7728 = vrot.lane.b32.xlu1 %v13980_v52, %s13057_s0 }
0x272f   :  { %7810 = vrot.lane.b32.xlu1 %v13986_v50, %s13059_s30  ;;  %7651 = vrot.lane.b32.xlu0 %v13986_v50, %s13057_s0 }
0x2733   :  { %7808 = vrot.lane.b32.xlu1 %v13986_v50, %s13058_s2  ;;  %7886 = vrot.lane.b32.xlu0 %v13980_v52, %s13058_s2 }
0x2737   :  { %7970 = vrot.lane.b32.xlu1 %v13986_v50, %s13063_s6  ;;  %8048 = vrot.lane.b32.xlu0 %v13980_v52, %s13063_s6 }
0x273b   :  { %7968 = vrot.lane.b32.xlu1 %v13986_v50, %s13064_s7  ;;  %8046 = vrot.lane.b32.xlu0 %v13980_v52, %s13064_s7 }
0x273f   :  { %8130 = vrot.lane.b32.xlu1 %v13986_v50, %s13060_s4  ;;  %8208 = vrot.lane.b32.xlu0 %v13980_v52, %s13060_s4 }
0x2743   :  { %8128 = vrot.lane.b32.xlu1 %v13986_v50, %s13062_s5  ;;  %8206 = vrot.lane.b32.xlu0 %v13980_v52, %s13062_s5 }
0x279d   :  { %v7889_v8 = vpop.permute.xlu0 %7888  ;;  %v7729_v15 = vpop.permute.xlu1 %7728 }
0x27a1   :  { %v7811_v17 = vpop.permute.xlu1 %7810  ;;  %v7652_v20 = vpop.permute.xlu0 %7651 }
0x27a2   :  { %12224 = vmatpush3.xpose.msk.msra.mxu1 %vm289_vm9, %v7652_v20  ;;  %12234 = vmatpush3.xpose.msk.msra.mxu0 %vm289_vm9, %v7811_v17 }
0x27a3   :  { %12228 = vmatprep.subr.mxu1 %v13056_v6  ;;  %12243 = vmatprep.subr.mxu0 %v13056_v6 }
0x27a5   :  { %v7809_v22 = vpop.permute.xlu1 %7808  ;;  %12226 = vmatmul.mubr.msk.f32.vlgmr.msra.gmra.mrb[80].mxu1 %vm289_vm9, %v13986_v50  ;;  %v7887_v23 = vpop.permute.xlu0 %7886 }
0x27a6   :  { %12229 = vmatpush3.xpose.msk.msra.mxu1 %vm289_vm9, %v7729_v15  ;;  %12236 = vmatmul.mubr.msk.f32.vlgmr.msra.gmra.mrb[84].mxu0 %vm289_vm9, %v7809_v22 }
0x27a7   :  { %12230 = vmatprep.mubr.msk.f32.mxu1 %vm13061_vm8, %v13056_v6  ;;  %12238 = vmatprep.subr.mxu1 %v13056_v6 }
0x27a8   :  { %12245 = vmatprep.mubr.msk.f32.mxu0 %vm13061_vm8, %v13056_v6 }
0x27a9   :  { %v7971_v51 = vpop.permute.xlu1 %7970  ;;  %12231 = vmatmul.mubr.msk.f32.vlgmr.msra.gmra.mrb[82].mxu1 %vm289_vm9, %v13980_v52  ;;  %v8049_v24 = vpop.permute.xlu0 %8048 }
0x27aa   :  { %12239 = vmatpush3.xpose.msk.msra.mxu1 %vm289_vm9, %v7889_v8  ;;  %12244 = vmatpush3.xpose.msk.msra.mxu0 %vm289_vm9, %v7971_v51 }
0x27ab   :  { %12240 = vmatprep.mubr.msk.f32.mxu1 %vm13061_vm8, %v13056_v6  ;;  %12248 = vmatprep.subr.mxu1 %v13056_v6 }
0x27ac   :  { %12253 = vmatprep.subr.mxu0 %v13056_v6 }
0x27ad   :  { %v7969_v26 = vpop.permute.xlu1 %7968  ;;  %12241 = vmatmul.mubr.msk.f32.vlgmr.msra.gmra.mrb[84].mxu1 %vm289_vm9, %v7887_v23  ;;  %v8047_v21 = vpop.permute.xlu0 %8046 }
0x27ae   :  { %12246 = vmatmul.mubr.msk.f32.vlgmr.msra.gmra.mrb[86].mxu0 %vm289_vm9, %v7969_v26  ;;  %12249 = vmatpush3.xpose.msk.msra.mxu1 %vm289_vm9, %v8049_v24 }
0x27af   :  { %12250 = vmatprep.mubr.msk.f32.mxu1 %vm13061_vm8, %v13056_v6  ;;  %12258 = vmatprep.subr.mxu1 %v13056_v6 }
0x27b0   :  { %12255 = vmatprep.mubr.msk.f32.mxu0 %vm13061_vm8, %v13056_v6 }
0x27b1   :  { %v8131_v25 = vpop.permute.xlu1 %8130  ;;  %12251 = vmatmul.mubr.msk.f32.vlgmr.msra.gmra.mrb[86].mxu1 %vm289_vm9, %v8047_v21  ;;  %v8209_v30 = vpop.permute.xlu0 %8208 }
0x27b2   :  { %12254 = vmatpush3.xpose.msk.msra.mxu0 %vm289_vm9, %v8131_v25  ;;  %12259 = vmatpush3.xpose.msk.msra.mxu1 %vm289_vm9, %v8209_v30 }
0x27b3   :  { %12260 = vmatprep.mubr.msk.f32.mxu1 %vm13061_vm8, %v13056_v6  ;;  %12263 = vmatprep.subr.mxu0 %v13056_v6 }
0x27b4   :  { %12268 = vmatprep.subr.mxu1 %v13056_v6 }
0x27b5   :  { %v8129_v31 = vpop.permute.xlu1 %8128  ;;  %v8207_v49 = vpop.permute.xlu0 %8206 }
0x27b6   :  { %12256 = vmatmul.mubr.msk.f32.vlgmr.msra.gmra.mrb[88].mxu0 %vm289_vm9, %v8129_v31  ;;  %12261 = vmatmul.mubr.msk.f32.vlgmr.msra.gmra.mrb[88].mxu1 %vm289_vm9, %v8207_v49 }
0x27b7   :  { %12265 = vmatprep.mubr.msk.f32.mxu0 %vm13061_vm8, %v13056_v6  ;;  %12270 = vmatprep.mubr.msk.f32.mxu1 %vm13061_vm8, %v13056_v6 }
0x2878   :  { %v7723_v33 = vpop.f32.mrb[80].mxu1 }
0x2879   :  { %v7804_v34 = vmul.f32 0.35355338, %v7723_v33  ;;  %v12227_v29 = vpop.f32.mrb[81].mxu1  ;;  %v7882_v35 = vpop.f32.mrb[84].mxu0 }
0x287a   :  { %v12237_v36 = vpop.f32.mrb[85].mxu0  ;;  %v7964_v37 = vmul.f32 0.35355338, %v7882_v35 }
0x287b   :  { %v7806_v14 = vadd.f32 %v7804_v34, %v13631_v62 }
0x287c   :  { %v7800_v18 = vpop.f32.mrb[82].mxu1  ;;  %v7966_v32 = vadd.f32 %v7964_v37, %v13631_v62 }
0x287d   :  { %v7805_v59 = vmul.f32 0.35355338, %v7800_v18  ;;  %v12232_v10 = vpop.f32.mrb[83].mxu1  ;;  %v8288_v39 = vsel %vm289_vm9, %v7806_v14, -inf }
0x287e   :  { %8289 = vmax.xlane.f32.xlu1 %v8288_v39  ;;  %v8291_v55 = vsel %vm289_vm9, %v7966_v32, -inf }
0x287f   :  { %v7807_v47 = vadd.f32 %v7805_v59, %v13631_v62 }
0x2880   :  { %v7960_v2 = vpop.f32.mrb[84].mxu1 }
0x2881   :  { %v7965_v41 = vmul.f32 0.35355338, %v7960_v2  ;;  %v12242_v38 = vpop.f32.mrb[85].mxu1  ;;  %v8042_v40 = vpop.f32.mrb[86].mxu0  ;;  %v8300_v42 = vsel %vm289_vm9, %v7807_v47, -inf }
0x2882   :  { %v8124_v43 = vmul.f32 0.35355338, %v8042_v40  ;;  %v12247_v44 = vpop.f32.mrb[87].mxu0  ;;  %8301 = vmax.xlane.f32.xlu0 %v8300_v42 }
0x2883   :  { %v7967_v45 = vadd.f32 %v7965_v41, %v13631_v62 }
0x2884   :  { %v8120_v46 = vpop.f32.mrb[86].mxu1  ;;  %v8126_v48 = vadd.f32 %v8124_v43, %v13631_v62 }
0x2885   :  { %v8125_v4 = vmul.f32 0.35355338, %v8120_v46  ;;  %v12252_v53 = vpop.f32.mrb[87].mxu1  ;;  %v8303_v56 = vsel %vm289_vm9, %v7967_v45, -inf }
0x2886   :  { %8292 = vmax.xlane.f32.xlu0 %v8291_v55  ;;  %8304 = vmax.xlane.f32.xlu1 %v8303_v56  ;;  %v8294_v60 = vsel %vm289_vm9, %v8126_v48, -inf }
0x2887   :  { %v8127_v57 = vadd.f32 %v8125_v4, %v13631_v62 }
0x2889   :  { %v8202_v19 = vpop.f32.mrb[88].mxu0  ;;  %v8280_v58 = vpop.f32.mrb[88].mxu1  ;;  %v8306_v61 = vsel %vm289_vm9, %v8127_v57, -inf }
0x288a   :  { %v8284_v63 = vmul.f32 0.35355338, %v8202_v19  ;;  %v8285_v3 = vmul.f32 0.35355338, %v8280_v58  ;;  %v12257_v5 = vpop.f32.mrb[89].mxu0  ;;  %8295 = vmax.xlane.f32.xlu0 %v8294_v60  ;;  %8307 = vmax.xlane.f32.xlu1 %v8306_v61  ;;  %v12262_v9 = vpop.f32.mrb[89].mxu1 }
0x288c   :  { %v8286_v54 = vadd.f32 %v8284_v63, %v13631_v62  ;;  %v8287_v11 = vadd.f32 %v8285_v3, %v13631_v62 }
0x288e   :  { %v8297_v12 = vsel %vm289_vm9, %v8286_v54, -inf  ;;  %v8309_v13 = vsel %vm289_vm9, %v8287_v11, -inf }
0x288f   :  { %8298 = vmax.xlane.f32.xlu0 %v8297_v12  ;;  %8310 = vmax.xlane.f32.xlu1 %v8309_v13 }
0x28a0   :  { %8452 = vrot.lane.b32.xlu1 %v13980_v52, %s13065_s8 }
0x28a4   :  { %8528 = vrot.lane.b32.xlu1 %v13986_v50, %s13066_s9 }
0x28a5   :  { %8376 = vrot.lane.b32.xlu0 %v13986_v50, %s13065_s8 }
0x28a8   :  { %8680 = vrot.lane.b32.xlu1 %v13986_v50, %s13067_s10 }
0x28a9   :  { %8604 = vrot.lane.b32.xlu0 %v13980_v52, %s13066_s9 }
0x28ad   :  { %8756 = vrot.lane.b32.xlu0 %v13980_v52, %s13067_s10 }
0x290b   :  { %v8290_v62 = vpop.xlane.xlu1 %8289 }
0x290c   :  { %v8312_v7 = vsub.f32 %v7806_v14, %v8290_v62 }
0x290e   :  { %v8320_v28 = vmul.f32 1.442695, %v8312_v7 }
0x290f   :  { %v8302_v8 = vpop.xlane.xlu0 %8301 }
0x2910   :  { %12916 = vpow2.f32 %v8320_v28  ;;  %v8316_v15 = vsub.f32 %v7807_v47, %v8302_v8 }
0x2912   :  { %v8328_v17 = vmul.f32 1.442695, %v8316_v15 }
0x2913   :  { %v8305_v20 = vpop.xlane.xlu1 %8304  ;;  %v8293_v22 = vpop.xlane.xlu0 %8292 }
0x2914   :  { %12918 = vpow2.f32 %v8328_v17  ;;  %v8317_v23 = vsub.f32 %v7967_v45, %v8305_v20  ;;  %v8313_v51 = vsub.f32 %v7966_v32, %v8293_v22 }
0x2916   :  { %v8330_v24 = vmul.f32 1.442695, %v8317_v23  ;;  %v8322_v26 = vmul.f32 1.442695, %v8313_v51 }
0x2917   :  { %v8308_v21 = vpop.xlane.xlu1 %8307  ;;  %v8296_v25 = vpop.xlane.xlu0 %8295 }
0x2918   :  { %12920 = vpow2.f32 %v8330_v24  ;;  %v8318_v30 = vsub.f32 %v8127_v57, %v8308_v21  ;;  %v8314_v31 = vsub.f32 %v8126_v48, %v8296_v25  ;;  %v7560_v25 = vld [vmem:[#allocation2 + $0x240] sm:$0xff] }
0x2919   :  { %12922 = vpow2.f32 %v8322_v26 }
0x291a   :  { %v12917_v49 = vpop.eup %12916  ;;  %v8332_v33 = vmul.f32 1.442695, %v8318_v30  ;;  %v8324_v34 = vmul.f32 1.442695, %v8314_v31  ;;  %v7561_v30 = vld [vmem:[#allocation2 + $0x248] sm:$0xff] }
0x291b   :  { %v8336_v29 = vsel %vm289_vm9, %v12917_v49, 0.0  ;;  %v12617_v31 = vpack.c.bf16 %v7561_v30, %v7560_v25 }
0x291c   :  { %12924 = vpow2.f32 %v8332_v33  ;;  %8337 = vadd.xlane.f32.xlu0 %v8336_v29  ;;  %v8311_v35 = vpop.xlane.xlu1 %8310  ;;  %v8299_v36 = vpop.xlane.xlu0 %8298  ;;  %v7563_v29 = vld [vmem:[#allocation2 + $0x258] sm:$0xff] }
0x291d   :  { %12926 = vpow2.f32 %v8324_v34  ;;  %v8319_v14 = vsub.f32 %v8287_v11, %v8311_v35  ;;  %v8315_v18 = vsub.f32 %v8286_v54, %v8299_v36  ;;  %v7562_v34 = vld [vmem:[#allocation2 + $0x250] sm:$0xff] }
0x291e   :  { %v12919_v37 = vpop.eup %12918  ;;  %v12621_v35 = vpack.c.bf16 %v7563_v29, %v7562_v34 }
0x291f   :  { %v8334_v59 = vmul.f32 1.442695, %v8319_v14  ;;  %v8326_v10 = vmul.f32 1.442695, %v8315_v18  ;;  %v8348_v39 = vsel %vm289_vm9, %v12919_v37, 0.0 }
0x2920   :  { %v8453_v47 = vpop.permute.xlu1 %8452  ;;  %8349 = vadd.xlane.f32.xlu1 %v8348_v39  ;;  %v8377_v2 = vpop.permute.xlu0 %8376 }
0x2921   :  { %12928 = vpow2.f32 %v8334_v59  ;;  %12264 = vmatpush3.msra.mxu0 %v8377_v2  ;;  %12269 = vmatpush3.msra.mxu1 %v8453_v47 }
0x2922   :  { %v12921_v32 = vpop.eup %12920  ;;  %12930 = vpow2.f32 %v8326_v10  ;;  %12273 = vmatprep.subr.mxu0 %v13056_v6  ;;  %12278 = vmatprep.subr.mxu1 %v13056_v6 }
0x2923   :  { %v12923_v41 = vpop.eup %12922  ;;  %v8351_v38 = vsel %vm289_vm9, %v12921_v32, 0.0 }
0x2924   :  { %8352 = vadd.xlane.f32.xlu1 %v8351_v38  ;;  %v8339_v40 = vsel %vm289_vm9, %v12923_v41, 0.0  ;;  %v8605_v55 = vpop.permute.xlu0 %8604  ;;  %v8529_v56 = vpop.permute.xlu1 %8528 }
0x2925   :  { %8340 = vadd.xlane.f32.xlu0 %v8339_v40 }
0x2926   :  { %v12925_v42 = vpop.eup %12924 }
0x2927   :  { %v12927_v43 = vpop.eup %12926  ;;  %v8354_v44 = vsel %vm289_vm9, %v12925_v42, 0.0 }
0x2928   :  { %8355 = vadd.xlane.f32.xlu1 %v8354_v44  ;;  %v8342_v45 = vsel %vm289_vm9, %v12927_v43, 0.0  ;;  %v8757_v57 = vpop.permute.xlu0 %8756  ;;  %v8681_v19 = vpop.permute.xlu1 %8680 }
0x2929   :  { %8343 = vadd.xlane.f32.xlu0 %v8342_v45 }
0x292b   :  { %v14090_v46 = vpop.eup %12928 }
0x292c   :  { %v14092_v48 = vpop.eup %12930  ;;  %v8357_v4 = vsel %vm289_vm9, %v14090_v46, 0.0 }
0x292d   :  { %8358 = vadd.xlane.f32.xlu1 %v8357_v4  ;;  %v8345_v53 = vsel %vm289_vm9, %v14092_v48, 0.0 }
0x292e   :  { %8346 = vadd.xlane.f32.xlu0 %v8345_v53 }
0x293e   :  { %8832 = vrot.lane.b32.xlu1 %v13986_v50, %s13068_s11 }
0x2944   :  { %8908 = vrot.lane.b32.xlu0 %v13980_v52, %s13068_s11 }
0x29a9   :  { %v8338_v58 = vpop.xlane.xlu0 %8337 }
0x29aa   :  { %12932 = vrcp.f32 %v8338_v58 }
0x29ad   :  { %v8350_v60 = vpop.xlane.xlu1 %8349 }
0x29ae   :  { %12934 = vrcp.f32 %v8350_v60  ;;  %v11294_v60 = vld [vmem:[#allocation2 + $0x3bf] ss:$0 sm:$0xff] }
0x29b1   :  { %v8353_v61 = vpop.xlane.xlu1 %8352 }
0x29b2   :  { %12936 = vrcp.f32 %v8353_v61  ;;  %v8341_v63 = vpop.xlane.xlu0 %8340 }
0x29b3   :  { %12938 = vrcp.f32 %v8341_v63 }
0x29b4   :  { %v12933_v3 = vpop.eup %12932 }
0x29b5   :  { %v8368_v5 = vmul.f32 %v12933_v3, %v12917_v49  ;;  %v8356_v9 = vpop.xlane.xlu1 %8355 }
0x29b6   :  { %12940 = vrcp.f32 %v8356_v9  ;;  %v8344_v50 = vpop.xlane.xlu0 %8343 }
0x29b7   :  { %12942 = vrcp.f32 %v8344_v50  ;;  %12266 = vmatmul.mubr.msk.f32.vlgmr.msra.gmra.mrb[90].mxu0 %vm289_vm9, %v8368_v5 }
0x29b8   :  { %v12935_v52 = vpop.eup %12934  ;;  %12274 = vmatpush3.msra.mxu0 %v8529_v56  ;;  %12275 = vmatprep.mubr.msk.f32.mxu0 %vm13061_vm8, %v13056_v6 }
0x29b9   :  { %v8372_v54 = vmul.f32 %v12935_v52, %v12919_v37  ;;  %12283 = vmatprep.subr.mxu0 %v13056_v6 }
0x29ba   :  { %v8359_v11 = vpop.xlane.xlu1 %8358 }
0x29bb   :  { %12944 = vrcp.f32 %v8359_v11  ;;  %v8347_v12 = vpop.xlane.xlu0 %8346  ;;  %12271 = vmatmul.mubr.msk.f32.vlgmr.msra.gmra.mrb[90].mxu1 %vm289_vm9, %v8372_v54 }
0x29bc   :  { %v12937_v13 = vpop.eup %12936  ;;  %12946 = vrcp.f32 %v8347_v12  ;;  %12279 = vmatpush3.msra.mxu1 %v8605_v55  ;;  %12280 = vmatprep.mubr.msk.f32.mxu1 %vm13061_vm8, %v13056_v6 }
0x29bd   :  { %v12939_v62 = vpop.eup %12938  ;;  %v8373_v7 = vmul.f32 %v12937_v13, %v12921_v32  ;;  %12288 = vmatprep.subr.mxu1 %v13056_v6 }
0x29be   :  { %v8369_v28 = vmul.f32 %v12939_v62, %v12923_v41  ;;  %v8833_v23 = vpop.permute.xlu1 %8832 }
0x29bf   :  { %12281 = vmatmul.mubr.msk.f32.vlgmr.msra.gmra.mrb[92].mxu1 %vm289_vm9, %v8373_v7  ;;  %v8909_v22 = vpop.permute.xlu0 %8908 }
0x29c0   :  { %v12941_v8 = vpop.eup %12940  ;;  %12276 = vmatmul.mubr.msk.f32.vlgmr.msra.gmra.mrb[92].mxu0 %vm289_vm9, %v8369_v28  ;;  %12289 = vmatpush3.msra.mxu1 %v8757_v57 }
0x29c1   :  { %v12943_v15 = vpop.eup %12942  ;;  %v8374_v17 = vmul.f32 %v12941_v8, %v12925_v42  ;;  %12284 = vmatpush3.msra.mxu0 %v8681_v19  ;;  %12285 = vmatprep.mubr.msk.f32.mxu0 %vm13061_vm8, %v13056_v6 }
0x29c2   :  { %v8370_v20 = vmul.f32 %v12943_v15, %v12927_v43  ;;  %12290 = vmatprep.mubr.msk.f32.mxu1 %vm13061_vm8, %v13056_v6  ;;  %12293 = vmatprep.subr.mxu0 %v13056_v6  ;;  %v9157_v15 = vld [vmem:[#allocation2 + $0x270] sm:$0xff] }
0x29c3   :  { %12298 = vmatprep.subr.mxu1 %v13056_v6  ;;  %12291 = vmatmul.mubr.msk.f32.vlgmr.msra.gmra.mrb[94].mxu1 %vm289_vm9, %v8374_v17  ;;  %v9158_v17 = vld [vmem:[#allocation2 + $0x278] sm:$0xff] }
0x29c4   :  { %12286 = vmatmul.mubr.msk.f32.vlgmr.msra.gmra.mrb[94].mxu0 %vm289_vm9, %v8370_v20  ;;  %12299 = vmatpush3.msra.mxu1 %v8909_v22  ;;  %v12711_v20 = vpack.i.bf16 %v9158_v17, %v9157_v15  ;;  %v9155_v22 = vld [vmem:[#allocation2 + $0x260] sm:$0xff] }
0x29c5   :  { %v12945_v51 = vpop.eup %12944  ;;  %12294 = vmatpush3.msra.mxu0 %v8833_v23  ;;  %12295 = vmatprep.mubr.msk.f32.mxu0 %vm13061_vm8, %v13056_v6  ;;  %v9156_v23 = vld [vmem:[#allocation2 + $0x268] sm:$0xff] }
0x29c6   :  { %v12947_v24 = vpop.eup %12946  ;;  %v8375_v26 = vmul.f32 %v12945_v51, %v14090_v46  ;;  %12300 = vmatprep.mubr.msk.f32.mxu1 %vm13061_vm8, %v13056_v6  ;;  %12618 = vmatprep.subr.bf16.mxu0 %v12617_v31  ;;  %v12706_v51 = vpack.i.bf16 %v9156_v23, %v9155_v22 }
0x29c7   :  { %v8371_v21 = vmul.f32 %v12947_v24, %v14092_v48  ;;  %v12625_v24 = vpack.c.bf16 %v9156_v23, %v9155_v22 }
0x29c8   :  { %12301 = vmatmul.mubr.msk.f32.vlgmr.msra.gmra.mrb[96].mxu1 %vm289_vm9, %v8375_v26  ;;  %v12629_v26 = vpack.c.bf16 %v9158_v17, %v9157_v15 }
0x29c9   :  { %12296 = vmatmul.mubr.msk.f32.vlgmr.msra.gmra.mrb[96].mxu0 %vm289_vm9, %v8371_v21  ;;  %12626 = vmatprep.subr.bf16.mxu1 %v12625_v24  ;;  %v14169_v21 = vld [vmem:[#allocation2 + $0x3c0] ss:$0 sm:$0xff] }
0x29ca   :  { %12620 = vmatpush3.bf16.msra.mxu0 %v12617_v31  ;;  %12628 = vmatpush3.bf16.msra.mxu1 %v12625_v24 }
0x29cb   :  { %12622 = vmatprep.subr.bf16.mxu0 %v12621_v35  ;;  %12630 = vmatprep.subr.bf16.mxu1 %v12629_v26 }
0x29ce   :  { %12624 = vmatpush3.bf16.msra.mxu0 %v12621_v35  ;;  %12632 = vmatpush3.bf16.msra.mxu1 %v12629_v26 }
0x29cf   :  { %12336 = vmatprep.subr.mxu1 %v13056_v6 }
0x2a8a   :  { %v8448_v49 = vpop.f32.mrb[90].mxu0 }
0x2a8b   :  { %v12267_v33 = vpop.f32.mrb[91].mxu0 }
0x2a8e   :  { %v8524_v36 = vpop.f32.mrb[90].mxu1 }
0x2a8f   :  { %v12272_v14 = vpop.f32.mrb[91].mxu1 }
0x2a92   :  { %v8676_v18 = vpop.f32.mrb[92].mxu1 }
0x2a93   :  { %v8600_v37 = vpop.f32.mrb[92].mxu0  ;;  %8988 = vrot.lane.b32.xlu0 %v8676_v18, %s13054_s23  ;;  %v12282_v59 = vpop.f32.mrb[93].mxu1 }
0x2a94   :  { %8986 = vrot.lane.b32.xlu1 %v8600_v37, %s13054_s23  ;;  %v12277_v10 = vpop.f32.mrb[93].mxu0 }
0x2a96   :  { %v8828_v39 = vpop.f32.mrb[94].mxu1 }
0x2a97   :  { %v8752_v47 = vpop.f32.mrb[94].mxu0  ;;  %8996 = vrot.lane.b32.xlu0 %v8828_v39, %s13069_s12  ;;  %v12292_v2 = vpop.f32.mrb[95].mxu1 }
0x2a98   :  { %8994 = vrot.lane.b32.xlu1 %v8752_v47, %s13069_s12  ;;  %v12287_v32 = vpop.f32.mrb[95].mxu0 }
0x2a9b   :  { %v8980_v41 = vpop.f32.mrb[96].mxu1 }
0x2a9c   :  { %v8904_v38 = vpop.f32.mrb[96].mxu0  ;;  %9004 = vrot.lane.b32.xlu0 %v8980_v41, %s13070_s13  ;;  %v12302_v40 = vpop.f32.mrb[97].mxu1 }
0x2a9d   :  { %9002 = vrot.lane.b32.xlu1 %v8904_v38, %s13070_s13  ;;  %v12297_v42 = vpop.f32.mrb[97].mxu0 }
0x2b05   :  { %v8989_v43 = vpop.permute.xlu0 %8988 }
0x2b06   :  { %v8987_v44 = vpop.permute.xlu1 %8986  ;;  %v9009_v48 = vsel %vm289_vm9, %v8524_v36, %v8989_v43 }
0x2b07   :  { %v9008_v4 = vsel %vm289_vm9, %v8448_v49, %v8987_v44 }
0x2b09   :  { %v8997_v45 = vpop.permute.xlu0 %8996 }
0x2b0a   :  { %v8995_v46 = vpop.permute.xlu1 %8994  ;;  %v9011_v53 = vsel %vm48_vm0, %v9009_v48, %v8997_v45  ;;  %v11297_v45 = vld [vmem:[#allocation2 + $0x3c6] ss:$0 sm:$0xff] }
0x2b0b   :  { %v9010_v56 = vsel %vm48_vm0, %v9008_v4, %v8995_v46 }
0x2b0e   :  { %v9005_v55 = vpop.permute.xlu0 %9004 }
0x2b0f   :  { %v9003_v57 = vpop.permute.xlu1 %9002  ;;  %v9013_v19 = vsel %vm1641_vm10, %v9011_v53, %v9005_v55  ;;  %v11298_v55 = vld [vmem:[#allocation2 + $0x3c7] ss:$0 sm:$0xff] }
0x2b10   :  { %v9012_v58 = vsel %vm1641_vm10, %v9010_v56, %v9003_v57 }
0x2b11   :  { %12311 = vmatprep.mubr.msk.f32.mxu0 %vm136_vm3, %v9012_v58 }
0x2b12   :  { %12312 = vmatmul.mubr.msk.f32.vlgmr.msra.gmra.mrb[98].mxu0 %vm136_vm3, %v9013_v19 }
0x2b13   :  { %12333 = vmatprep.mubr.msk.f32.mxu0 %vm136_vm3, %v13748_v16 }
0x2be5   :  { %v12313_v61 = vpop.f32.mrb[98].mxu0 }
0x2be6   :  { %v9096_v63 = vadd.f32 %v12313_v61, %v11294_v60  ;;  %v9090_v3 = vpop.f32.mrb[99].mxu0 }
0x2be7   :  { %v9091_v5 = vadd.f32 %v11294_v60, %v9090_v3 }
0x2be8   :  { %v14145_v9 = vadd.f32 %v9096_v63, %v13962_v0 }
0x2be9   :  { %v14148_v50 = vadd.f32 %v9091_v5, %v13965_v27 }
0x2bea   :  { %v9106_v52 = vsel %vm136_vm3, %v14145_v9, 0.0 }
0x2beb   :  { %9107 = vadd.xlane.f32.xlu0 %v9106_v52  ;;  %v9103_v54 = vsel %vm136_vm3, %v14148_v50, 0.0 }
0x2bec   :  { %9104 = vadd.xlane.f32.xlu1 %v9103_v54 }
0x2c78   :  { %v9108_v16 = vpop.xlane.xlu0 %9107 }
0x2c79   :  { %v9110_v11 = vmul.f32 0.03125, %v9108_v16  ;;  %v9105_v12 = vpop.xlane.xlu1 %9104 }
0x2c7a   :  { %v9109_v13 = vmul.f32 0.03125, %v9105_v12 }
0x2c7b   :  { %v14155_v62 = vsub.f32 %v14145_v9, %v9110_v11 }
0x2c7c   :  { %v14158_v0 = vsub.f32 %v14148_v50, %v9109_v13 }
0x2c7d   :  { %v9114_v27 = vmul.f32 %v14155_v62, %v14155_v62  ;;  %v9142_v46 = vmul.f32 %v11297_v45, %v14155_v62 }
0x2c7e   :  { %v9113_v7 = vmul.f32 %v14158_v0, %v14158_v0  ;;  %v9141_v4 = vmul.f32 %v11297_v45, %v14158_v0 }
0x2c7f   :  { %v9118_v28 = vsel %vm136_vm3, %v9114_v27, 0.0 }
0x2c80   :  { %9119 = vadd.xlane.f32.xlu1 %v9118_v28  ;;  %v9115_v8 = vsel %vm136_vm3, %v9113_v7, 0.0 }
0x2c81   :  { %9116 = vadd.xlane.f32.xlu0 %v9115_v8 }
0x2c91   :  { %12712 = vrot.lane.b32.xlu1 %v12711_v20, %s13057_s0 }
0x2c95   :  { %9267 = vrot.lane.b32.xlu1 %v14169_v21, %s13057_s0 }
0x2c97   :  { %12707 = vrot.lane.b32.xlu0 %v12706_v51, %s13057_s0 }
0x2d0d   :  { %v9120_v25 = vpop.xlane.xlu1 %9119 }
0x2d0e   :  { %v9122_v30 = vmul.f32 0.032258064, %v9120_v25  ;;  %v9117_v31 = vpop.xlane.xlu0 %9116 }
0x2d0f   :  { %v9121_v49 = vmul.f32 0.032258064, %v9117_v31 }
0x2d10   :  { %12948 = vrsqrt.f32 %v9122_v30  ;;  %vm9132_vm2 = vcmp.eq.f32.partialorder %v9122_v30, inf  ;;  %v9135_v47 = vand.u32 2147483648, %v9122_v30  ;;  %vm9134_vm4 = vcmp.eq.f32.partialorder %v9122_v30, 0.0 }
0x2d11   :  { %12950 = vrsqrt.f32 %v9121_v49  ;;  %v12713_v33 = vpop.permute.xlu1 %12712  ;;  %vm9125_vm5 = vcmp.eq.f32.partialorder %v9121_v49, inf  ;;  %v9128_v41 = vand.u32 2147483648, %v9121_v49  ;;  %vm9127_vm6 = vcmp.eq.f32.partialorder %v9121_v49, 0.0 }
0x2d12   :  { %v12708_v34 = vpop.permute.xlu0 %12707  ;;  %v12715_v29 = vunpack.i.h.bf16 %v12713_v33  ;;  %v12714_v35 = vunpack.i.l.bf16 %v12713_v33 }
0x2d13   :  { %v12710_v36 = vunpack.i.h.bf16 %v12708_v34  ;;  %v12709_v14 = vunpack.i.l.bf16 %v12708_v34 }
0x2d14   :  { %v12637_v37 = vpack.c.bf16 %v12715_v29, %v12714_v35 }
0x2d15   :  { %v12633_v18 = vpack.c.bf16 %v12710_v36, %v12709_v14 }
0x2d17   :  { %12634 = vmatprep.subr.bf16.mxu0 %v12633_v18 }
0x2d18   :  { %12636 = vmatpush3.bf16.msra.mxu0 %v12633_v18 }
0x2d19   :  { %12638 = vmatprep.subr.bf16.mxu0 %v12637_v37 }
0x2d1a   :  { %v12949_v59 = vpop.eup %12948 }
0x2d1b   :  { %v12951_v10 = vpop.eup %12950  ;;  %v9131_v39 = vmul.f32 %v12949_v59, %v9122_v30 }
0x2d1c   :  { %v9124_v2 = vmul.f32 %v12951_v10, %v9121_v49  ;;  %12640 = vmatpush3.bf16.msra.mxu0 %v12637_v37 }
0x2d1d   :  { %v9133_v32 = vsel %vm9132_vm2, %v9122_v30, %v9131_v39  ;;  %12346 = vmatprep.subr.mxu0 %v13056_v6 }
0x2d1e   :  { %v9136_v38 = vsel %vm9134_vm4, %v9135_v47, %v9133_v32  ;;  %v9126_v40 = vsel %vm9125_vm5, %v9121_v49, %v9124_v2 }
0x2d1f   :  { %v9144_v42 = vadd.f32 1e-06, %v9136_v38  ;;  %v9129_v43 = vsel %vm9127_vm6, %v9128_v41, %v9126_v40  ;;  %12334 = vmatmul.mubr.msk.f32.vlgmr.msra.gmra.mrb[100].mxu0 %vm136_vm3, %v13773_v1  ;;  %v9268_v1 = vpop.permute.xlu1 %9267 }
0x2d20   :  { %v9143_v44 = vadd.f32 1e-06, %v9129_v43  ;;  %12348 = vmatprep.mubr.msk.f32.mxu0 %vm13061_vm8, %v13056_v6 }
0x2d21   :  { %12952 = vrcp.f32 %v9144_v42 }
0x2d22   :  { %12954 = vrcp.f32 %v9143_v44 }
0x2d2b   :  { %v12953_v48 = vpop.eup %12952 }
0x2d2c   :  { %v12955_v53 = vpop.eup %12954  ;;  %v9148_v56 = vmul.f32 %v12953_v48, %v9142_v46 }
0x2d2d   :  { %v9146_v57 = vmul.f32 %v12955_v53, %v9141_v4 }
0x2d2e   :  { %v9154_v58 = vadd.f32 %v11298_v55, %v9148_v56 }
0x2d2f   :  { %v9153_v19 = vadd.f32 %v11298_v55, %v9146_v57 }
0x2d31   :  { %12322 = vmatprep.mubr.msk.f32.mxu1 %vm136_vm3, %v9153_v19 }
0x2d32   :  { %12323 = vmatmul.mubr.msk.f32.vlgmr.msra.gmra.mrb[98].mxu1 %vm136_vm3, %v9154_v58 }
0x2d33   :  { %12338 = vmatprep.mubr.msk.f32.mxu1 %vm13061_vm8, %v13056_v6 }
0x2df2   :  { %v12335_v60 = vpop.f32.mrb[100].mxu0 }
0x2df3   :  { %v14184_v61 = vadd.f32 %v12335_v60, %v9268_v1  ;;  %v9336_v63 = vpop.f32.mrb[101].mxu0 }
0x2df4   :  { %v14186_v3 = vadd.f32 %v9336_v63, %v9268_v1 }
0x2df5   :  { %9579 = vrot.lane.b32.xlu1 %v14184_v61, %s13058_s2 }
0x2df6   :  { %9501 = vrot.lane.b32.xlu0 %v14186_v3, %s13058_s2  ;;  %12337 = vmatpush3.xpose.msk.msra.mxu1 %vm289_vm9, %v14186_v3 }
0x2df7   :  { %12341 = vmatprep.subr.mxu1 %v13056_v6 }
0x2df9   :  { %9737 = vrot.lane.b32.xlu1 %v14184_v61, %s13064_s7 }
0x2dfa   :  { %9659 = vrot.lane.b32.xlu0 %v14186_v3, %s13064_s7 }
0x2dfd   :  { %9895 = vrot.lane.b32.xlu1 %v14184_v61, %s13062_s5 }
0x2dfe   :  { %9817 = vrot.lane.b32.xlu0 %v14186_v3, %s13062_s5 }
0x2e05   :  { %v12324_v5 = vpop.f32.mrb[98].mxu1 }
0x2e06   :  { %v9247_v52 = vadd.f32 %v12324_v5, %v14169_v21  ;;  %v9241_v54 = vpop.f32.mrb[99].mxu1 }
0x2e07   :  { %v9242_v16 = vadd.f32 %v14169_v21, %v9241_v54 }
0x2e08   :  { %9577 = vrot.lane.b32.xlu1 %v9247_v52, %s13058_s2 }
0x2e09   :  { %9499 = vrot.lane.b32.xlu0 %v9242_v16, %s13058_s2  ;;  %12339 = vmatmul.mubr.msk.f32.vlgmr.msra.gmra.mrb[100].mxu1 %vm289_vm9, %v9242_v16 }
0x2e0a   :  { %12342 = vmatpush3.xpose.msk.msra.mxu1 %vm289_vm9, %v14184_v61  ;;  %12343 = vmatprep.mubr.msk.f32.mxu1 %vm13061_vm8, %v13056_v6 }
0x2e0b   :  { %12351 = vmatprep.subr.mxu1 %v13056_v6 }
0x2e0c   :  { %9735 = vrot.lane.b32.xlu1 %v9247_v52, %s13064_s7 }
0x2e0d   :  { %9657 = vrot.lane.b32.xlu0 %v9242_v16, %s13064_s7  ;;  %12344 = vmatmul.mubr.msk.f32.vlgmr.msra.gmra.mrb[102].mxu1 %vm289_vm9, %v9247_v52 }
0x2e0e   :  { %12353 = vmatprep.mubr.msk.f32.mxu1 %vm13061_vm8, %v13056_v6 }
0x2e10   :  { %9893 = vrot.lane.b32.xlu1 %v9247_v52, %s13062_s5 }
0x2e11   :  { %9815 = vrot.lane.b32.xlu0 %v9242_v16, %s13062_s5 }
0x2e67   :  { %v9580_v11 = vpop.permute.xlu1 %9579 }
0x2e68   :  { %v9502_v12 = vpop.permute.xlu0 %9501  ;;  %12352 = vmatpush3.xpose.msk.msra.mxu1 %vm289_vm9, %v9580_v11 }
0x2e69   :  { %12347 = vmatpush3.xpose.msk.msra.mxu0 %vm289_vm9, %v9502_v12  ;;  %12361 = vmatprep.subr.mxu1 %v13056_v6 }
0x2e6a   :  { %12356 = vmatprep.subr.mxu0 %v13056_v6 }
0x2e6b   :  { %v9738_v13 = vpop.permute.xlu1 %9737 }
0x2e6c   :  { %v9660_v62 = vpop.permute.xlu0 %9659 }
0x2e6f   :  { %v9896_v0 = vpop.permute.xlu1 %9895 }
0x2e70   :  { %v9818_v27 = vpop.permute.xlu0 %9817 }
0x2e7a   :  { %v9578_v7 = vpop.permute.xlu1 %9577 }
0x2e7b   :  { %v9500_v28 = vpop.permute.xlu0 %9499  ;;  %12354 = vmatmul.mubr.msk.f32.vlgmr.msra.gmra.mrb[104].mxu1 %vm289_vm9, %v9578_v7 }
0x2e7c   :  { %12362 = vmatpush3.xpose.msk.msra.mxu1 %vm289_vm9, %v9738_v13  ;;  %12349 = vmatmul.mubr.msk.f32.vlgmr.msra.gmra.mrb[102].mxu0 %vm289_vm9, %v9500_v28 }
0x2e7d   :  { %12357 = vmatpush3.xpose.msk.msra.mxu0 %vm289_vm9, %v9660_v62  ;;  %12363 = vmatprep.mubr.msk.f32.mxu1 %vm13061_vm8, %v13056_v6 }
0x2e7e   :  { %v9736_v8 = vpop.permute.xlu1 %9735  ;;  %12371 = vmatprep.subr.mxu1 %v13056_v6  ;;  %12358 = vmatprep.mubr.msk.f32.mxu0 %vm13061_vm8, %v13056_v6 }
0x2e7f   :  { %12366 = vmatprep.subr.mxu0 %v13056_v6  ;;  %v9658_v15 = vpop.permute.xlu0 %9657  ;;  %12364 = vmatmul.mubr.msk.f32.vlgmr.msra.gmra.mrb[106].mxu1 %vm289_vm9, %v9736_v8 }
0x2e80   :  { %12372 = vmatpush3.xpose.msk.msra.mxu1 %vm289_vm9, %v9896_v0  ;;  %12359 = vmatmul.mubr.msk.f32.vlgmr.msra.gmra.mrb[104].mxu0 %vm289_vm9, %v9658_v15 }
0x2e81   :  { %12367 = vmatpush3.xpose.msk.msra.mxu0 %vm289_vm9, %v9818_v27  ;;  %12373 = vmatprep.mubr.msk.f32.mxu1 %vm13061_vm8, %v13056_v6 }
0x2e82   :  { %v9894_v17 = vpop.permute.xlu1 %9893  ;;  %12368 = vmatprep.mubr.msk.f32.mxu0 %vm13061_vm8, %v13056_v6  ;;  %12376 = vmatprep.subr.mxu0 %v13056_v6 }
0x2e83   :  { %v9816_v20 = vpop.permute.xlu0 %9815  ;;  %12374 = vmatmul.mubr.msk.f32.vlgmr.msra.gmra.mrb[108].mxu1 %vm289_vm9, %v9894_v17  ;;  %12381 = vmatprep.subr.mxu1 %v13056_v6 }
0x2e84   :  { %12369 = vmatmul.mubr.msk.f32.vlgmr.msra.gmra.mrb[106].mxu0 %vm289_vm9, %v9816_v20  ;;  %12383 = vmatprep.mubr.msk.f32.mxu1 %vm13061_vm8, %v13056_v6 }
0x2e85   :  { %12378 = vmatprep.mubr.msk.f32.mxu0 %vm13061_vm8, %v13056_v6 }
0x2edc   :  { %v9417_v22 = vpop.f32.mrb[100].mxu1 }
0x2edd   :  { %v9497_v23 = vmul.f32 0.35355338, %v9417_v22  ;;  %v12340_v51 = vpop.f32.mrb[101].mxu1 }
0x2edf   :  { %v9973_v24 = vsel %vm289_vm9, %v9497_v23, -inf }
0x2ee0   :  { %9974 = vmax.xlane.f32.xlu0 %v9973_v24  ;;  %v9493_v26 = vpop.f32.mrb[102].mxu1 }
0x2ee1   :  { %v9498_v21 = vmul.f32 0.35355338, %v9493_v26  ;;  %v12345_v25 = vpop.f32.mrb[103].mxu1 }
0x2ee3   :  { %v9985_v30 = vsel %vm289_vm9, %v9498_v21, -inf }
0x2ee4   :  { %9986 = vmax.xlane.f32.xlu1 %v9985_v30 }
0x2f4e   :  { %v9651_v31 = vpop.f32.mrb[104].mxu1 }
0x2f4f   :  { %v9573_v49 = vpop.f32.mrb[102].mxu0  ;;  %v12355_v33 = vpop.f32.mrb[105].mxu1  ;;  %v9656_v35 = vmul.f32 0.35355338, %v9651_v31 }
0x2f50   :  { %v9655_v34 = vmul.f32 0.35355338, %v9573_v49  ;;  %v12350_v29 = vpop.f32.mrb[103].mxu0 }
0x2f51   :  { %v9988_v32 = vsel %vm289_vm9, %v9656_v35, -inf }
0x2f52   :  { %v9809_v36 = vpop.f32.mrb[106].mxu1  ;;  %v9976_v14 = vsel %vm289_vm9, %v9655_v34, -inf }
0x2f53   :  { %v9731_v18 = vpop.f32.mrb[104].mxu0  ;;  %9977 = vmax.xlane.f32.xlu0 %v9976_v14  ;;  %v12365_v37 = vpop.f32.mrb[107].mxu1  ;;  %v9814_v39 = vmul.f32 0.35355338, %v9809_v36 }
0x2f54   :  { %v9813_v59 = vmul.f32 0.35355338, %v9731_v18  ;;  %v12360_v10 = vpop.f32.mrb[105].mxu0 }
0x2f55   :  { %v9991_v45 = vsel %vm289_vm9, %v9814_v39, -inf }
0x2f56   :  { %v9967_v47 = vpop.f32.mrb[108].mxu1  ;;  %v9979_v2 = vsel %vm289_vm9, %v9813_v59, -inf }
0x2f57   :  { %v9889_v41 = vpop.f32.mrb[106].mxu0  ;;  %9980 = vmax.xlane.f32.xlu1 %v9979_v2  ;;  %9989 = vmax.xlane.f32.xlu0 %v9988_v32  ;;  %v12375_v38 = vpop.f32.mrb[109].mxu1  ;;  %v9972_v43 = vmul.f32 0.35355338, %v9967_v47 }
0x2f58   :  { %v9971_v40 = vmul.f32 0.35355338, %v9889_v41  ;;  %v12370_v42 = vpop.f32.mrb[107].mxu0 }
0x2f59   :  { %v9994_v46 = vsel %vm289_vm9, %v9972_v43, -inf }
0x2f5a   :  { %v9982_v44 = vsel %vm289_vm9, %v9971_v40, -inf }
0x2f5b   :  { %9983 = vmax.xlane.f32.xlu1 %v9982_v44  ;;  %9992 = vmax.xlane.f32.xlu0 %v9991_v45 }
0x2f5f   :  { %9995 = vmax.xlane.f32.xlu0 %v9994_v46 }
0x2f6c   :  { %10061 = vrot.lane.b32.xlu1 %v14186_v3, %s13057_s0 }
0x2f6d   :  { %v9975_v53 = vpop.xlane.xlu0 %9974 }
0x2f6e   :  { %v9997_v55 = vsub.f32 %v9497_v23, %v9975_v53 }
0x2f70   :  { %10213 = vrot.lane.b32.xlu1 %v14186_v3, %s13059_s30  ;;  %v10005_v57 = vmul.f32 1.442695, %v9997_v55 }
0x2f71   :  { %v9987_v48 = vpop.xlane.xlu1 %9986 }
0x2f72   :  { %v10001_v4 = vsub.f32 %v9498_v21, %v9987_v48 }
0x2f74   :  { %10289 = vrot.lane.b32.xlu1 %v14184_v61, %s13059_s30  ;;  %v10013_v56 = vmul.f32 1.442695, %v10001_v4 }
0x2f75   :  { %10137 = vrot.lane.b32.xlu0 %v14184_v61, %s13057_s0 }
0x2f76   :  { %12956 = vpow2.f32 %v10013_v56 }
0x2f77   :  { %12958 = vpow2.f32 %v10005_v57 }
0x2f78   :  { %10441 = vrot.lane.b32.xlu1 %v14184_v61, %s13063_s6 }
0x2f79   :  { %10365 = vrot.lane.b32.xlu0 %v14186_v3, %s13063_s6 }
0x2f80   :  { %v14270_v19 = vpop.eup %12956 }
0x2f81   :  { %v10033_v58 = vsel %vm289_vm9, %v14270_v19, 0.0  ;;  %v14274_v1 = vpop.eup %12958 }
0x2f82   :  { %v10021_v60 = vsel %vm289_vm9, %v14274_v1, 0.0 }
0x2f98   :  { %10034 = vadd.xlane.f32.xlu0 %v10033_v58 }
0x2f9c   :  { %10022 = vadd.xlane.f32.xlu1 %v10021_v60 }
0x2fe0   :  { %v9978_v63 = vpop.xlane.xlu0 %9977 }
0x2fe1   :  { %v9998_v5 = vsub.f32 %v9655_v34, %v9978_v63 }
0x2fe3   :  { %v10007_v52 = vmul.f32 1.442695, %v9998_v5 }
0x2fe4   :  { %v9981_v54 = vpop.xlane.xlu1 %9980  ;;  %v9990_v16 = vpop.xlane.xlu0 %9989 }
0x2fe5   :  { %12960 = vpow2.f32 %v10007_v52  ;;  %v9999_v11 = vsub.f32 %v9813_v59, %v9981_v54  ;;  %v10002_v12 = vsub.f32 %v9656_v35, %v9990_v16 }
0x2fe7   :  { %v10009_v13 = vmul.f32 1.442695, %v9999_v11  ;;  %v10015_v62 = vmul.f32 1.442695, %v10002_v12  ;;  %v9160_v11 = vld [vmem:[#allocation2 + $0x280] sm:$0xff]  ;;  %v9161_v12 = vld [vmem:[#allocation2 + $0x288] sm:$0xff] }
0x2fe8   :  { %v9984_v0 = vpop.xlane.xlu1 %9983  ;;  %v9993_v27 = vpop.xlane.xlu0 %9992 }
0x2fe9   :  { %12962 = vpow2.f32 %v10009_v13  ;;  %v10000_v7 = vsub.f32 %v9971_v40, %v9984_v0  ;;  %v10003_v28 = vsub.f32 %v9814_v39, %v9993_v27  ;;  %v12641_v13 = vpack.c.bf16 %v9161_v12, %v9160_v11  ;;  %v9163_v0 = vld [vmem:[#allocation2 + $0x298] sm:$0xff] }
0x2fea   :  { %12964 = vpow2.f32 %v10015_v62  ;;  %v9162_v62 = vld [vmem:[#allocation2 + $0x290] sm:$0xff] }
0x2feb   :  { %v10011_v8 = vmul.f32 1.442695, %v10000_v7  ;;  %v10017_v15 = vmul.f32 1.442695, %v10003_v28  ;;  %v12645_v27 = vpack.c.bf16 %v9163_v0, %v9162_v62 }
0x2fec   :  { %v10062_v17 = vpop.permute.xlu1 %10061  ;;  %v9996_v20 = vpop.xlane.xlu0 %9995 }
0x2fed   :  { %12966 = vpow2.f32 %v10011_v8  ;;  %v10004_v22 = vsub.f32 %v9972_v43, %v9996_v20  ;;  %12377 = vmatpush3.msra.mxu0 %v10062_v17 }
0x2fee   :  { %12968 = vpow2.f32 %v10017_v15  ;;  %12386 = vmatprep.subr.mxu0 %v13056_v6 }
0x2fef   :  { %v12961_v23 = vpop.eup %12960  ;;  %v10019_v51 = vmul.f32 1.442695, %v10004_v22 }
0x2ff0   :  { %v10138_v24 = vpop.permute.xlu0 %10137  ;;  %v10024_v26 = vsel %vm289_vm9, %v12961_v23, 0.0  ;;  %v10214_v14 = vpop.permute.xlu1 %10213 }
0x2ff1   :  { %12970 = vpow2.f32 %v10019_v51  ;;  %10025 = vadd.xlane.f32.xlu1 %v10024_v26  ;;  %12382 = vmatpush3.msra.mxu1 %v10138_v24 }
0x2ff2   :  { %12391 = vmatprep.subr.mxu1 %v13056_v6 }
0x2ff3   :  { %v12963_v21 = vpop.eup %12962 }
0x2ff4   :  { %v12965_v25 = vpop.eup %12964  ;;  %v10027_v30 = vsel %vm289_vm9, %v12963_v21, 0.0  ;;  %v10290_v18 = vpop.permute.xlu1 %10289 }
0x2ff5   :  { %10028 = vadd.xlane.f32.xlu1 %v10027_v30  ;;  %v10036_v31 = vsel %vm289_vm9, %v12965_v25, 0.0  ;;  %v10366_v37 = vpop.permute.xlu0 %10365 }
0x2ff6   :  { %10037 = vadd.xlane.f32.xlu0 %v10036_v31 }
0x2ff7   :  { %v12967_v49 = vpop.eup %12966 }
0x2ff8   :  { %v12969_v33 = vpop.eup %12968  ;;  %v10030_v34 = vsel %vm289_vm9, %v12967_v49, 0.0  ;;  %v10442_v59 = vpop.permute.xlu1 %10441 }
0x2ff9   :  { %10031 = vadd.xlane.f32.xlu1 %v10030_v34  ;;  %v10039_v29 = vsel %vm289_vm9, %v12969_v33, 0.0 }
0x2ffa   :  { %10040 = vadd.xlane.f32.xlu0 %v10039_v29 }
0x2ffb   :  { %v14285_v35 = vpop.eup %12970 }
0x2ffc   :  { %v10042_v36 = vsel %vm289_vm9, %v14285_v35, 0.0 }
0x2ffe   :  { %10043 = vadd.xlane.f32.xlu0 %v10042_v36 }
0x300a   :  { %10593 = vrot.lane.b32.xlu1 %v14184_v61, %s13060_s4 }
0x3014   :  { %10517 = vrot.lane.b32.xlu0 %v14186_v3, %s13060_s4 }
0x3025   :  { %v10035_v10 = vpop.xlane.xlu0 %10034 }
0x3026   :  { %12972 = vrcp.f32 %v10035_v10 }
0x3029   :  { %v10023_v39 = vpop.xlane.xlu1 %10022 }
0x302a   :  { %12974 = vrcp.f32 %v10023_v39 }
0x3030   :  { %v12973_v47 = vpop.eup %12972 }
0x3031   :  { %v10057_v2 = vmul.f32 %v12973_v47, %v14270_v19 }
0x3033   :  { %12384 = vmatmul.mubr.msk.f32.vlgmr.msra.gmra.mrb[110].mxu1 %vm289_vm9, %v10057_v2 }
0x3034   :  { %v12975_v32 = vpop.eup %12974  ;;  %12392 = vmatpush3.msra.mxu1 %v10290_v18  ;;  %12393 = vmatprep.mubr.msk.f32.mxu1 %vm13061_vm8, %v13056_v6 }
0x3035   :  { %v10053_v61 = vmul.f32 %v12975_v32, %v14274_v1  ;;  %12401 = vmatprep.subr.mxu1 %v13056_v6 }
0x3037   :  { %12379 = vmatmul.mubr.msk.f32.vlgmr.msra.gmra.mrb[108].mxu0 %vm289_vm9, %v10053_v61 }
0x3038   :  { %12387 = vmatpush3.msra.mxu0 %v10214_v14  ;;  %12388 = vmatprep.mubr.msk.f32.mxu0 %vm13061_vm8, %v13056_v6 }
0x3039   :  { %12396 = vmatprep.subr.mxu0 %v13056_v6 }
0x307e   :  { %v10026_v3 = vpop.xlane.xlu1 %10025 }
0x307f   :  { %12976 = vrcp.f32 %v10026_v3 }
0x3082   :  { %v10029_v41 = vpop.xlane.xlu1 %10028 }
0x3083   :  { %12978 = vrcp.f32 %v10029_v41  ;;  %v10038_v38 = vpop.xlane.xlu0 %10037 }
0x3084   :  { %12980 = vrcp.f32 %v10038_v38 }
0x3086   :  { %v10032_v40 = vpop.xlane.xlu1 %10031 }
0x3087   :  { %12982 = vrcp.f32 %v10032_v40  ;;  %v10041_v42 = vpop.xlane.xlu0 %10040 }
0x3088   :  { %12984 = vrcp.f32 %v10041_v42 }
0x3089   :  { %v12977_v43 = vpop.eup %12976 }
0x308a   :  { %v10054_v44 = vmul.f32 %v12977_v43, %v12961_v23  ;;  %v10594_v1 = vpop.permute.xlu1 %10593 }
0x308b   :  { %v10044_v45 = vpop.xlane.xlu0 %10043 }
0x308c   :  { %12986 = vrcp.f32 %v10044_v45  ;;  %12389 = vmatmul.mubr.msk.f32.vlgmr.msra.gmra.mrb[110].mxu0 %vm289_vm9, %v10054_v44 }
0x308d   :  { %v12979_v46 = vpop.eup %12978  ;;  %12397 = vmatpush3.msra.mxu0 %v10366_v37  ;;  %12398 = vmatprep.mubr.msk.f32.mxu0 %vm13061_vm8, %v13056_v6  ;;  %v11328_v37 = vld [vmem:[#allocation2 + $0x3c1] ss:$0 sm:$0xff] }
0x308e   :  { %v12981_v48 = vpop.eup %12980  ;;  %v10055_v4 = vmul.f32 %v12979_v46, %v12963_v21  ;;  %12406 = vmatprep.subr.mxu0 %v13056_v6 }
0x308f   :  { %v10058_v53 = vmul.f32 %v12981_v48, %v12965_v25  ;;  %v10518_v55 = vpop.permute.xlu0 %10517  ;;  %v10840_v48 = vld [vmem:[#allocation2 + $0x2a0] sm:$0xff] }
0x3090   :  { %12399 = vmatmul.mubr.msk.f32.vlgmr.msra.gmra.mrb[112].mxu0 %vm289_vm9, %v10055_v4  ;;  %v10841_v4 = vld [vmem:[#allocation2 + $0x2a8] sm:$0xff] }
0x3091   :  { %v12983_v56 = vpop.eup %12982  ;;  %12394 = vmatmul.mubr.msk.f32.vlgmr.msra.gmra.mrb[112].mxu1 %vm289_vm9, %v10058_v53  ;;  %12407 = vmatpush3.msra.mxu0 %v10518_v55  ;;  %v10842_v53 = vld [vmem:[#allocation2 + $0x2b0] sm:$0xff]  ;;  %v12649_v55 = vpack.c.bf16 %v10841_v4, %v10840_v48 }
0x3092   :  { %v12985_v57 = vpop.eup %12984  ;;  %v10056_v19 = vmul.f32 %v12983_v56, %v12967_v49  ;;  %12402 = vmatpush3.msra.mxu1 %v10442_v59  ;;  %12403 = vmatprep.mubr.msk.f32.mxu1 %vm13061_vm8, %v13056_v6  ;;  %v10843_v56 = vld [vmem:[#allocation2 + $0x2b8] sm:$0xff] }
0x3093   :  { %v10059_v58 = vmul.f32 %v12985_v57, %v12969_v33  ;;  %12408 = vmatprep.mubr.msk.f32.mxu0 %vm13061_vm8, %v13056_v6  ;;  %12411 = vmatprep.subr.mxu1 %v13056_v6  ;;  %v12653_v57 = vpack.c.bf16 %v10843_v56, %v10842_v53 }
0x3094   :  { %12409 = vmatmul.mubr.msk.f32.vlgmr.msra.gmra.mrb[114].mxu0 %vm289_vm9, %v10056_v19  ;;  %12642 = vmatprep.subr.bf16.mxu0 %v12641_v13  ;;  %v10845_v19 = vld [vmem:[#allocation2 + $0x2c0] sm:$0xff] }
0x3095   :  { %12404 = vmatmul.mubr.msk.f32.vlgmr.msra.gmra.mrb[114].mxu1 %vm289_vm9, %v10059_v58  ;;  %12644 = vmatpush3.bf16.msra.mxu0 %v12641_v13  ;;  %v10846_v58 = vld [vmem:[#allocation2 + $0x2c8] sm:$0xff] }
0x3096   :  { %v12987_v60 = vpop.eup %12986  ;;  %12412 = vmatpush3.msra.mxu1 %v10594_v1  ;;  %12413 = vmatprep.mubr.msk.f32.mxu1 %vm13061_vm8, %v13056_v6  ;;  %v10847_v1 = vld [vmem:[#allocation2 + $0x2d0] sm:$0xff] }
0x3097   :  { %v10060_v63 = vmul.f32 %v12987_v60, %v14285_v35  ;;  %12646 = vmatprep.subr.bf16.mxu0 %v12645_v27  ;;  %12650 = vmatprep.subr.bf16.mxu1 %v12649_v55  ;;  %v12657_v60 = vpack.c.bf16 %v10846_v58, %v10845_v19 }
0x3099   :  { %12414 = vmatmul.mubr.msk.f32.vlgmr.msra.gmra.mrb[116].mxu1 %vm289_vm9, %v10060_v63  ;;  %12648 = vmatpush3.bf16.msra.mxu0 %v12645_v27  ;;  %v10848_v63 = vld [vmem:[#allocation2 + $0x2d8] sm:$0xff] }
0x309a   :  { %12652 = vmatpush3.bf16.msra.mxu1 %v12649_v55  ;;  %12658 = vmatprep.subr.bf16.mxu0 %v12657_v60 }
0x309b   :  { %12654 = vmatprep.subr.bf16.mxu1 %v12653_v57 }
0x309e   :  { %12656 = vmatpush3.bf16.msra.mxu1 %v12653_v57 }
0x3106   :  { %v10209_v5 = vpop.f32.mrb[110].mxu1 }
0x3107   :  { %v12385_v52 = vpop.f32.mrb[111].mxu1 }
0x3108   :  { %v10849_v52 = vld [vmem:[#allocation2 + $0x2e0] sm:$0xff] }
0x310a   :  { %v10133_v54 = vpop.f32.mrb[108].mxu0 }
0x310b   :  { %v12380_v16 = vpop.f32.mrb[109].mxu0 }
0x315f   :  { %v10285_v7 = vpop.f32.mrb[110].mxu0 }
0x3160   :  { %v12390_v6 = vpop.f32.mrb[111].mxu0  ;;  %10671 = vrot.lane.b32.xlu0 %v10285_v7, %s13054_s23 }
0x3163   :  { %v10437_v28 = vpop.f32.mrb[112].mxu0 }
0x3164   :  { %v10361_v8 = vpop.f32.mrb[112].mxu1  ;;  %10679 = vrot.lane.b32.xlu0 %v10437_v28, %s13069_s12  ;;  %v12400_v15 = vpop.f32.mrb[113].mxu0 }
0x3165   :  { %10673 = vrot.lane.b32.xlu1 %v10361_v8, %s13054_s23  ;;  %v12395_v17 = vpop.f32.mrb[113].mxu1 }
0x3167   :  { %v10589_v20 = vpop.f32.mrb[114].mxu0 }
0x3168   :  { %v10513_v22 = vpop.f32.mrb[114].mxu1  ;;  %10687 = vrot.lane.b32.xlu0 %v10589_v20, %s13070_s13  ;;  %v12410_v23 = vpop.f32.mrb[115].mxu0 }
0x3169   :  { %10681 = vrot.lane.b32.xlu1 %v10513_v22, %s13069_s12  ;;  %v12405_v51 = vpop.f32.mrb[115].mxu1 }
0x316c   :  { %v10665_v24 = vpop.f32.mrb[116].mxu1 }
0x316d   :  { %10689 = vrot.lane.b32.xlu1 %v10665_v24, %s13070_s13  ;;  %v12415_v26 = vpop.f32.mrb[117].mxu1  ;;  %v11331_v24 = vld [vmem:[#allocation2 + $0x3c8] ss:$0 sm:$0xff] }
0x31d2   :  { %v10672_v21 = vpop.permute.xlu0 %10671 }
0x31d3   :  { %v10693_v31 = vsel %vm289_vm9, %v10133_v54, %v10672_v21  ;;  %v10850_v54 = vld [vmem:[#allocation2 + $0x2e8] sm:$0xff] }
0x31d4   :  { %v12665_v16 = vpack.c.bf16 %v10850_v54, %v10849_v52 }
0x31d6   :  { %v10680_v25 = vpop.permute.xlu0 %10679 }
0x31d7   :  { %v10674_v30 = vpop.permute.xlu1 %10673  ;;  %v10695_v49 = vsel %vm48_vm0, %v10693_v31, %v10680_v25  ;;  %v11332_v25 = vld [vmem:[#allocation2 + $0x3c9] ss:$0 sm:$0xff] }
0x31d8   :  { %v10694_v35 = vsel %vm289_vm9, %v10209_v5, %v10674_v30  ;;  %v12661_v5 = vpack.c.bf16 %v10848_v63, %v10847_v1 }
0x31da   :  { %v10688_v33 = vpop.permute.xlu0 %10687 }
0x31db   :  { %v10697_v34 = vsel %vm1641_vm10, %v10695_v49, %v10688_v33  ;;  %v10682_v29 = vpop.permute.xlu1 %10681 }
0x31dc   :  { %12424 = vmatprep.mubr.msk.f32.mxu0 %vm136_vm3, %v10697_v34  ;;  %v10696_v36 = vsel %vm48_vm0, %v10694_v35, %v10682_v29  ;;  %v10851_v35 = vld [vmem:[#allocation2 + $0x2f0] sm:$0xff] }
0x31df   :  { %v10690_v14 = vpop.permute.xlu1 %10689 }
0x31e0   :  { %v10698_v18 = vsel %vm1641_vm10, %v10696_v36, %v10690_v14  ;;  %v10852_v36 = vld [vmem:[#allocation2 + $0x2f8] sm:$0xff] }
0x31e1   :  { %12425 = vmatmul.mubr.msk.f32.vlgmr.msra.gmra.mrb[116].mxu0 %vm136_vm3, %v10698_v18  ;;  %v12669_v14 = vpack.c.bf16 %v10852_v36, %v10851_v35  ;;  %v11333_v18 = vld [vmem:[#allocation2 + $0x3c2] ss:$0 sm:$0xff] }
0x31e2   :  { %12660 = vmatpush3.bf16.msra.mxu0 %v12657_v60 }
0x31e3   :  { %12662 = vmatprep.subr.bf16.mxu0 %v12661_v5 }
0x31e6   :  { %12664 = vmatpush3.bf16.msra.mxu0 %v12661_v5 }
0x31e7   :  { %12666 = vmatprep.subr.bf16.mxu0 %v12665_v16 }
0x31ea   :  { %12668 = vmatpush3.bf16.msra.mxu0 %v12665_v16 }
0x31eb   :  { %12670 = vmatprep.subr.bf16.mxu0 %v12669_v14 }
0x31ee   :  { %12672 = vmatpush3.bf16.msra.mxu0 %v12669_v14 }
0x32b4   :  { %v12426_v59 = vpop.f32.mrb[116].mxu0 }
0x32b5   :  { %v10781_v10 = vadd.f32 %v12426_v59, %v11328_v37  ;;  %v10775_v39 = vpop.f32.mrb[117].mxu0 }
0x32b6   :  { %v10776_v47 = vadd.f32 %v11328_v37, %v10775_v39 }
0x32b7   :  { %v14335_v2 = vadd.f32 %v10781_v10, %v14145_v9 }
0x32b8   :  { %v14338_v32 = vadd.f32 %v10776_v47, %v14148_v50 }
0x32b9   :  { %v10791_v61 = vsel %vm136_vm3, %v14335_v2, 0.0 }
0x32ba   :  { %10792 = vadd.xlane.f32.xlu1 %v10791_v61  ;;  %v10788_v3 = vsel %vm136_vm3, %v14338_v32, 0.0 }
0x32bb   :  { %10789 = vadd.xlane.f32.xlu0 %v10788_v3  ;;  %v11336_v3 = vld [vmem:[#allocation2 + $0x3c3] ss:$0 sm:$0xff] }
0x3347   :  { %v10793_v41 = vpop.xlane.xlu1 %10792 }
0x3348   :  { %v10795_v38 = vmul.f32 0.03125, %v10793_v41  ;;  %v10790_v40 = vpop.xlane.xlu0 %10789 }
0x3349   :  { %v10794_v42 = vmul.f32 0.03125, %v10790_v40 }
0x334a   :  { %v10797_v43 = vsub.f32 %v14335_v2, %v10795_v38 }
0x334b   :  { %v10796_v9 = vsub.f32 %v14338_v32, %v10794_v42 }
0x334c   :  { %v10799_v45 = vmul.f32 %v10797_v43, %v10797_v43  ;;  %v10827_v31 = vmul.f32 %v11331_v24, %v10797_v43 }
0x334d   :  { %v10798_v44 = vmul.f32 %v10796_v9, %v10796_v9  ;;  %v10826_v26 = vmul.f32 %v11331_v24, %v10796_v9 }
0x334e   :  { %v10803_v46 = vsel %vm136_vm3, %v10799_v45, 0.0 }
0x334f   :  { %v10800_v50 = vsel %vm136_vm3, %v10798_v44, 0.0 }
0x3350   :  { %10801 = vadd.xlane.f32.xlu0 %v10800_v50 }
0x3354   :  { %10804 = vadd.xlane.f32.xlu0 %v10803_v46 }
0x33dd   :  { %v10802_v11 = vpop.xlane.xlu0 %10801 }
0x33de   :  { %v10806_v12 = vmul.f32 0.032258064, %v10802_v11 }
0x33e0   :  { %12988 = vrsqrt.f32 %v10806_v12  ;;  %vm10810_vm0 = vcmp.eq.f32.partialorder %v10806_v12, inf  ;;  %v10813_v7 = vand.u32 2147483648, %v10806_v12  ;;  %vm10812_vm8 = vcmp.eq.f32.partialorder %v10806_v12, 0.0 }
0x33e1   :  { %v10805_v13 = vpop.xlane.xlu0 %10804 }
0x33e2   :  { %v10807_v62 = vmul.f32 0.032258064, %v10805_v13 }
0x33e4   :  { %12990 = vrsqrt.f32 %v10807_v62  ;;  %vm10817_vm9 = vcmp.eq.f32.partialorder %v10807_v62, inf  ;;  %v10820_v20 = vand.u32 2147483648, %v10807_v62  ;;  %vm10819_vm10 = vcmp.eq.f32.partialorder %v10807_v62, 0.0 }
0x33ea   :  { %v12989_v0 = vpop.eup %12988 }
0x33eb   :  { %v10809_v27 = vmul.f32 %v12989_v0, %v10806_v12 }
0x33ed   :  { %v10811_v6 = vsel %vm10810_vm0, %v10806_v12, %v10809_v27 }
0x33ee   :  { %v12991_v28 = vpop.eup %12990  ;;  %v10814_v8 = vsel %vm10812_vm8, %v10813_v7, %v10811_v6  ;;  %v11339_v6 = vld [vmem:[#allocation2 + $0x3ca] ss:$0 sm:$0xff] }
0x33ef   :  { %v10816_v15 = vmul.f32 %v12991_v28, %v10807_v62  ;;  %v10828_v17 = vadd.f32 1e-06, %v10814_v8 }
0x33f1   :  { %v10818_v22 = vsel %vm10817_vm9, %v10807_v62, %v10816_v15  ;;  %12992 = vrcp.f32 %v10828_v17  ;;  %v11340_v17 = vld [vmem:[#allocation2 + $0x3cb] ss:$0 sm:$0xff] }
0x33f2   :  { %v10821_v23 = vsel %vm10819_vm10, %v10820_v20, %v10818_v22 }
0x33f3   :  { %v10829_v51 = vadd.f32 1e-06, %v10821_v23 }
0x33f5   :  { %12994 = vrcp.f32 %v10829_v51 }
0x33fb   :  { %v12993_v21 = vpop.eup %12992 }
0x33fc   :  { %v10831_v30 = vmul.f32 %v12993_v21, %v10826_v26 }
0x33fe   :  { %v10838_v49 = vadd.f32 %v11332_v25, %v10831_v30 }
0x33ff   :  { %v12995_v33 = vpop.eup %12994 }
0x3400   :  { %v10833_v34 = vmul.f32 %v12995_v33, %v10827_v31  ;;  %12435 = vmatprep.mubr.msk.f32.mxu1 %vm136_vm3, %v10838_v49 }
0x3402   :  { %v10839_v29 = vadd.f32 %v11332_v25, %v10833_v34 }
0x3404   :  { %12436 = vmatmul.mubr.msk.f32.vlgmr.msra.gmra.mrb[118].mxu1 %vm136_vm3, %v10839_v29 }
0x34d7   :  { %v12437_v37 = vpop.f32.mrb[118].mxu1 }
0x34d8   :  { %v10936_v59 = vadd.f32 %v12437_v37, %v11333_v18  ;;  %v10930_v10 = vpop.f32.mrb[119].mxu1 }
0x34d9   :  { %v10931_v39 = vadd.f32 %v11333_v18, %v10930_v10 }
0x34da   :  { %v10940_v61 = vmax.f32 %v10936_v59, 0.0 }
0x34db   :  { %v10939_v47 = vmax.f32 %v10931_v39, 0.0 }
0x34dd   :  { %12454 = vmatprep.mubr.msk.f32.mxu0 %vm1890_vm15, %v10939_v47 }
0x34de   :  { %12455 = vmatmul.mubr.msk.f32.vlgmr.msra.gmra.mrb[118].mxu0 %vm1890_vm15, %v10940_v61 }
0x35b1   :  { %v12456_v41 = vpop.f32.mrb[118].mxu0 }
0x35b2   :  { %v11023_v38 = vadd.f32 %v12456_v41, %v11336_v3  ;;  %v11017_v40 = vpop.f32.mrb[119].mxu0 }
0x35b3   :  { %v11018_v42 = vadd.f32 %v11336_v3, %v11017_v40 }
0x35b4   :  { %v11027_v43 = vadd.f32 %v11023_v38, %v14335_v2 }
0x35b5   :  { %v11026_v9 = vadd.f32 %v11018_v42, %v14338_v32 }
0x35b6   :  { %v11033_v44 = vsel %vm136_vm3, %v11027_v43, 0.0 }
0x35b7   :  { %11034 = vadd.xlane.f32.xlu0 %v11033_v44  ;;  %v11030_v50 = vsel %vm136_vm3, %v11026_v9, 0.0 }
0x35b8   :  { %11031 = vadd.xlane.f32.xlu1 %v11030_v50 }
0x3644   :  { %v11035_v45 = vpop.xlane.xlu0 %11034 }
0x3645   :  { %v11037_v46 = vmul.f32 0.03125, %v11035_v45  ;;  %v11032_v48 = vpop.xlane.xlu1 %11031 }
0x3646   :  { %v11036_v4 = vmul.f32 0.03125, %v11032_v48 }
0x3647   :  { %v11039_v53 = vsub.f32 %v11027_v43, %v11037_v46 }
0x3648   :  { %v11038_v55 = vsub.f32 %v11026_v9, %v11036_v4 }
0x3649   :  { %v11041_v56 = vmul.f32 %v11039_v53, %v11039_v53  ;;  %v11069_v28 = vmul.f32 %v11339_v6, %v11039_v53 }
0x364a   :  { %v11040_v57 = vmul.f32 %v11038_v55, %v11038_v55  ;;  %v11068_v15 = vmul.f32 %v11339_v6, %v11038_v55 }
0x364b   :  { %v11045_v19 = vsel %vm136_vm3, %v11041_v56, 0.0 }
0x364c   :  { %11046 = vadd.xlane.f32.xlu0 %v11045_v19  ;;  %v11042_v2 = vsel %vm136_vm3, %v11040_v57, 0.0 }
0x364d   :  { %11043 = vadd.xlane.f32.xlu1 %v11042_v2 }
0x36d9   :  { %v11047_v32 = vpop.xlane.xlu0 %11046 }
0x36da   :  { %v11049_v58 = vmul.f32 0.032258064, %v11047_v32  ;;  %v11044_v1 = vpop.xlane.xlu1 %11043 }
0x36db   :  { %v11048_v60 = vmul.f32 0.032258064, %v11044_v1 }
0x36dc   :  { %12996 = vrsqrt.f32 %v11049_v58  ;;  %vm11059_vm15 = vcmp.eq.f32.partialorder %v11049_v58, inf  ;;  %v11062_v54 = vand.u32 2147483648, %v11049_v58  ;;  %vm11061_vm7 = vcmp.eq.f32.partialorder %v11049_v58, 0.0 }
0x36dd   :  { %12998 = vrsqrt.f32 %v11048_v60  ;;  %vm11052_vm11 = vcmp.eq.f32.partialorder %v11048_v60, inf  ;;  %v11055_v12 = vand.u32 2147483648, %v11048_v60  ;;  %vm11054_vm12 = vcmp.eq.f32.partialorder %v11048_v60, 0.0 }
0x36e6   :  { %v12997_v63 = vpop.eup %12996 }
0x36e7   :  { %v12999_v5 = vpop.eup %12998  ;;  %v11058_v52 = vmul.f32 %v12997_v63, %v11049_v58 }
0x36e8   :  { %v11051_v16 = vmul.f32 %v12999_v5, %v11048_v60 }
0x36e9   :  { %v11060_v11 = vsel %vm11059_vm15, %v11049_v58, %v11058_v52 }
0x36ea   :  { %v11063_v13 = vsel %vm11061_vm7, %v11062_v54, %v11060_v11  ;;  %v11053_v62 = vsel %vm11052_vm11, %v11048_v60, %v11051_v16 }
0x36eb   :  { %v11071_v0 = vadd.f32 1e-06, %v11063_v13  ;;  %v11056_v27 = vsel %vm11054_vm12, %v11055_v12, %v11053_v62 }
0x36ec   :  { %v11070_v7 = vadd.f32 1e-06, %v11056_v27 }
0x36ed   :  { %13000 = vrcp.f32 %v11071_v0 }
0x36ee   :  { %13002 = vrcp.f32 %v11070_v7 }
0x36f7   :  { %v13001_v8 = vpop.eup %13000 }
0x36f8   :  { %v13003_v20 = vpop.eup %13002  ;;  %v11075_v22 = vmul.f32 %v13001_v8, %v11069_v28 }
0x36f9   :  { %v11073_v23 = vmul.f32 %v13003_v20, %v11068_v15 }
0x36fa   :  { %v11081_v51 = vadd.f32 %v11340_v17, %v11075_v22 }
0x36fb   :  { %v11080_v24 = vadd.f32 %v11340_v17, %v11073_v23 }
0x36fc   :  { %11083 = vst.msk [vmem:[#allocation5 + $0x8] sm:$0xff] %vm136_vm3, %v11081_v51 }
0x36fd   :  { %11082 = vst.msk [vmem:[#allocation5] sm:$0xff] %vm136_vm3, %v11080_v24 }
0x36fe   :  { %13037 = shalt.err (!%p13034_p12)
}
0x36ff   :  { %s13038_s24 = scalar_lea.hbm %s14378_s3, 256 }
0x3700   :  { %p13039_p13 = scmp.ne.s32.totalorder %s14378_s3, %s13038_s24  ;;  %p13042_p0 = scmp.lt.u32.totalorder %s13038_s24, %s14378_s3 }
0x3702   :  { %p13044_p1 = pnand %p13042_p0, %p13039_p13 }
0x3704   :  { %13047 = shalt.err (!%p13044_p1)
}
0x3705   :  { %11095 = dma.vmem_to_hbm [thread:$0]  %s11090_s18, 256, %s14378_s3, [#allocation4], %s13053_s22, %s13053_s22, %s13054_s23  }
0x3706   :  { %13050 = dma.done.wait [#allocation4], 256  }
0x3707   :  { %13051 = vsyncadd [#allocation4], 4294967040 }
0x3708   :  { %11099 = vsyncpa [#allocation3], 1 }
0x3709   :  { %11100 = vsyncpa [#allocation4], 1 }

</bundles_post_ra>
